<compile_context>
chip_gen: v6e
topology: v6e:2x2x1
jax: 0.10.0
libtpu: 0.0.40
codegen_flags: <defaults>
</compile_context>

<pallas_src>
import functools

import jax
import jax.numpy as jnp
from jax.experimental import pallas as pl
from jax.experimental.pallas import tpu as pltpu

EPS = 1e-5
NEG_SLOPE = 0.2


def _conv_block_kernel(p_ref, w_ref, *rest, use_bn, act):
    if use_bn:
        g_ref, b_ref, o_ref, acc_ref = rest
    else:
        o_ref, acc_ref = rest

    k = pl.program_id(2)

    @pl.when(k == 0)
    def _init():
        acc_ref[...] = jnp.zeros_like(acc_ref)

    # Convolution as an im2col matmul: bf16 operands, f32 accumulation.
    acc_ref[...] += jnp.dot(p_ref[...], w_ref[...],
                            preferred_element_type=jnp.float32)

    @pl.when(k == pl.num_programs(2) - 1)
    def _finalize():
        y = acc_ref[...]
        if use_bn:
            # nn.BatchNorm2d in (default) training mode: biased batch stats,
            # single pass over the finished accumulator (sum + sum-of-squares).
            inv_m = 1.0 / y.shape[0]
            s = jnp.sum(y, axis=0, keepdims=True)
            ss = jnp.sum(y * y, axis=0, keepdims=True)
            mean = s * inv_m
            var = jnp.maximum(ss * inv_m - mean * mean, 0.0)
            y = (y - mean) * jax.lax.rsqrt(var + EPS)
            y = y * g_ref[...] + b_ref[...]
        if act == "leaky":
            y = jnp.where(y > 0, y, NEG_SLOPE * y)
        else:  # sigmoid
            y = jax.nn.sigmoid(y)
        o_ref[...] = y.astype(o_ref.dtype)


def _pick_tile(dim, limit, quantum):
    """Largest t <= limit with t % quantum == 0 and dim % t == 0; else full dim."""
    if dim <= limit:
        return dim
    t = (limit // quantum) * quantum
    while t >= quantum:
        if dim % t == 0:
            return t
        t -= quantum
    return dim


def conv_block(x_nhwc, w_oihw, *, stride, pad, gamma=None, beta=None,
               act="leaky", out_dtype=jnp.bfloat16):
    """Conv2d(bias=False) [+ BatchNorm2d] + activation, fused in one Pallas kernel."""
    N, H, W, Cin = x_nhwc.shape
    Cout, Cin_w, kh, kw = w_oihw.shape
    assert Cin == Cin_w
    Ho = (H + 2 * pad - kh) // stride + 1
    Wo = (W + 2 * pad - kw) // stride + 1

    # Glue (data movement only): pad + strided-slice im2col, in bf16 so the
    # materialized patch matrix costs half the HBM bytes.
    xc = x_nhwc.astype(jnp.bfloat16)
    xp = jnp.pad(xc, ((0, 0), (pad, pad), (pad, pad), (0, 0)))
    cols = []
    for dy in range(kh):
        for dx in range(kw):
            cols.append(xp[:, dy:dy + Ho * stride:stride,
                           dx:dx + Wo * stride:stride, :])
    patches = jnp.stack(cols, axis=3).reshape(N * Ho * Wo, kh * kw * Cin)
    # (Cout,Cin,kh,kw) -> (kh,kw,Cin,Cout) -> (kh*kw*Cin,Cout): matches (dy,dx,c)
    # ordering of the patches above.
    w_mat = jnp.transpose(w_oihw.astype(jnp.bfloat16),
                          (2, 3, 1, 0)).reshape(kh * kw * Cin, Cout)

    M, K = patches.shape
    use_bn = gamma is not None

    # BN reduces over M per channel -> keep M un-tiled for BN layers so the
    # batch statistics on the accumulator are exact.  No-BN layers tile M too.
    tm = M if use_bn else _pick_tile(M, 256, 8)
    tc = _pick_tile(Cout, 128, 128)
    tk = _pick_tile(K, 512, 128)
    grid = (M // tm, Cout // tc, K // tk)

    in_specs = [
        pl.BlockSpec((tm, tk), lambda i, j, k: (i, k)),
        pl.BlockSpec((tk, tc), lambda i, j, k: (k, j)),
    ]
    operands = [patches, w_mat]
    if use_bn:
        in_specs += [
            pl.BlockSpec((1, tc), lambda i, j, k: (0, j)),
            pl.BlockSpec((1, tc), lambda i, j, k: (0, j)),
        ]
        operands += [
            gamma.astype(jnp.float32).reshape(1, Cout),
            beta.astype(jnp.float32).reshape(1, Cout),
        ]

    out_itemsize = jnp.dtype(out_dtype).itemsize
    cost = pl.CostEstimate(
        flops=2 * M * K * Cout,
        transcendentals=(M * Cout if act == "sigmoid" else 0),
        bytes_accessed=2 * M * K + 2 * K * Cout + out_itemsize * M * Cout,
    )

    kernel = functools.partial(_conv_block_kernel, use_bn=use_bn, act=act)
    out = pl.pallas_call(
        kernel,
        out_shape=jax.ShapeDtypeStruct((M, Cout), out_dtype),
        grid_spec=pltpu.PrefetchScalarGridSpec(
            num_scalar_prefetch=0,
            grid=grid,
            in_specs=in_specs,
            out_specs=pl.BlockSpec((tm, tc), lambda i, j, k: (i, j)),
            scratch_shapes=[pltpu.VMEM((tm, tc), jnp.float32)],
        ),
        compiler_params=pltpu.CompilerParams(
            dimension_semantics=("parallel", "parallel", "arbitrary")),
        cost_estimate=cost,
    )(*operands)

    return out.reshape(N, Ho, Wo, Cout)


def init_params(key):
    # Deterministic synthetic init (DCGAN-style N(0, 0.02) conv weights,
    # BatchNorm gamma=1, beta=0). Shapes follow the PyTorch module __init__.
    ks = jax.random.split(key, 5)

    def w(k, cout, cin):
        return 0.02 * jax.random.normal(k, (cout, cin, 4, 4), jnp.float32)

    return dict(
        w1=w(ks[0], 64, 3),
        w2=w(ks[1], 128, 64), g1=jnp.ones(128, jnp.float32), b1=jnp.zeros(128, jnp.float32),
        w3=w(ks[2], 256, 128), g2=jnp.ones(256, jnp.float32), b2=jnp.zeros(256, jnp.float32),
        w4=w(ks[3], 512, 256), g3=jnp.ones(512, jnp.float32), b3=jnp.zeros(512, jnp.float32),
        w5=w(ks[4], 1, 512),
    )


@jax.jit
def discriminator_forward(x_nchw, params):
    x = jnp.transpose(x_nchw, (0, 2, 3, 1))  # NCHW -> NHWC
    x = conv_block(x, params["w1"], stride=2, pad=1, act="leaky")
    x = conv_block(x, params["w2"], stride=2, pad=1,
                   gamma=params["g1"], beta=params["b1"], act="leaky")
    x = conv_block(x, params["w3"], stride=2, pad=1,
                   gamma=params["g2"], beta=params["b2"], act="leaky")
    x = conv_block(x, params["w4"], stride=2, pad=1,
                   gamma=params["g3"], beta=params["b3"], act="leaky")
    x = conv_block(x, params["w5"], stride=1, pad=0, act="sigmoid",
                   out_dtype=jnp.float32)
    return jnp.transpose(x, (0, 3, 1, 2))  # NHWC -> NCHW


if __name__ == "__main__":
    key = jax.random.PRNGKey(0)
    k_x, k_p = jax.random.split(key)
    # Smallest spatial size the conv stack admits (4 stride-2 convs + a 4x4
    # valid conv) is 64; keep the batch small.
    x = jax.random.normal(k_x, (2, 3, 64, 64), jnp.float32)
    params = init_params(k_p)

    out = discriminator_forward(x, params)
    out = jax.block_until_ready(out)
    assert out.shape == (2, 1, 1, 1), out.shape
    assert bool(jnp.all(jnp.isfinite(out)))
    assert bool(jnp.all((out >= 0.0) & (out <= 1.0)))
    print("KERNEL_OK")
</pallas_src>

<mosaic_0001>
module attributes {stable_mosaic.version = 11 : i64} {
  func.func @_conv_block_kernel(%arg0: i32, %arg1: i32, %arg2: i32, %arg3: memref<256x48xbf16, #tpu.memory_space<vmem>>, %arg4: memref<48x64xbf16, #tpu.memory_space<vmem>>, %arg5: memref<256x64xbf16, #tpu.memory_space<vmem>>, %arg6: memref<256x64xf32, #tpu.memory_space<vmem>>) attributes {dimension_semantics = [#tpu.dimension_semantics<parallel>, #tpu.dimension_semantics<parallel>, #tpu.dimension_semantics<arbitrary>], iteration_bounds = array<i64: 8, 1, 1>, scalar_prefetch = 0 : i64, scratch_operands = 1 : i64, tpu.core_type = #tpu.core_type<tc>, window_params = [{transform_indices = @transform_0, window_bounds = array<i64: 256, 48>}, {transform_indices = @transform_1, window_bounds = array<i64: 48, 64>}, {transform_indices = @transform_2, window_bounds = array<i64: 256, 64>}]} {
    %c0_i32 = arith.constant 0 : i32
    %0 = arith.cmpi eq, %arg2, %c0_i32 : i32
    %1 = arith.extui %0 : i1 to i32
    %c0_i32_0 = arith.constant 0 : i32
    %2 = arith.cmpi ne, %1, %c0_i32_0 : i32
    scf.if %2 {
      %cst_10 = arith.constant 0.000000e+00 : f32
      %12 = vector.broadcast %cst_10 : f32 to vector<256x64xf32>
      %c0_11 = arith.constant 0 : index
      %c0_12 = arith.constant 0 : index
      %13 = vector.load %arg6[%c0_11, %c0_12] : memref<256x64xf32, #tpu.memory_space<vmem>>, vector<256x64xf32>
      tpu.vector_store %arg6[%c0_11, %c0_12], %12 {strides = array<i32>} : memref<256x64xf32, #tpu.memory_space<vmem>>, vector<256x64xf32>,
    } else {
    }
    %c0 = arith.constant 0 : index
    %c0_1 = arith.constant 0 : index
    %3 = vector.load %arg6[%c0, %c0_1] : memref<256x64xf32, #tpu.memory_space<vmem>>, vector<256x64xf32>
    %c0_2 = arith.constant 0 : index
    %c0_3 = arith.constant 0 : index
    %4 = vector.load %arg3[%c0_2, %c0_3] : memref<256x48xbf16, #tpu.memory_space<vmem>>, vector<256x48xbf16>
    %c0_4 = arith.constant 0 : index
    %c0_5 = arith.constant 0 : index
    %5 = vector.load %arg4[%c0_4, %c0_5] : memref<48x64xbf16, #tpu.memory_space<vmem>>, vector<48x64xbf16>
    %cst = arith.constant dense<0.000000e+00> : vector<256x64xf32>
    %6 = tpu.matmul %4, %5, %cst {dimension_numbers = #tpu.dot_dimension_numbers<[1], [0], [0], [1], [0, 0, 1, 1], [], []>} : vector<256x48xbf16>, vector<48x64xbf16>, vector<256x64xf32> -> vector<256x64xf32>
    %7 = arith.addf %3, %6 : vector<256x64xf32>
    %c0_6 = arith.constant 0 : index
    %c0_7 = arith.constant 0 : index
    %8 = vector.load %arg6[%c0_6, %c0_7] : memref<256x64xf32, #tpu.memory_space<vmem>>, vector<256x64xf32>
    tpu.vector_store %arg6[%c0_6, %c0_7], %7 {strides = array<i32>} : memref<256x64xf32, #tpu.memory_space<vmem>>, vector<256x64xf32>,
    %c0_i32_8 = arith.constant 0 : i32
    %9 = arith.cmpi eq, %arg2, %c0_i32_8 : i32
    %10 = arith.extui %9 : i1 to i32
    %c0_i32_9 = arith.constant 0 : i32
    %11 = arith.cmpi ne, %10, %c0_i32_9 : i32
    scf.if %11 {
      %c0_10 = arith.constant 0 : index
      %c0_11 = arith.constant 0 : index
      %12 = vector.load %arg6[%c0_10, %c0_11] : memref<256x64xf32, #tpu.memory_space<vmem>>, vector<256x64xf32>
      %cst_12 = arith.constant 0.000000e+00 : f32
      %13 = vector.broadcast %cst_12 : f32 to vector<256x64xf32>
      %14 = arith.cmpf ogt, %12, %13 : vector<256x64xf32>
      %cst_13 = arith.constant 2.000000e-01 : f32
      %15 = vector.broadcast %cst_13 : f32 to vector<256x64xf32>
      %16 = arith.mulf %15, %12 : vector<256x64xf32>
      %17 = arith.select %14, %12, %16 : vector<256x64xi1>, vector<256x64xf32>
      %18 = arith.truncf %17 : vector<256x64xf32> to vector<256x64xbf16>
      %c0_14 = arith.constant 0 : index
      %c0_15 = arith.constant 0 : index
      %19 = vector.load %arg5[%c0_14, %c0_15] : memref<256x64xbf16, #tpu.memory_space<vmem>>, vector<256x64xbf16>
      tpu.vector_store %arg5[%c0_14, %c0_15], %18 {strides = array<i32>} : memref<256x64xbf16, #tpu.memory_space<vmem>>, vector<256x64xbf16>,
    } else {
    }
    return
  }
  func.func @transform_0(%arg0: i32, %arg1: i32, %arg2: i32) -> (i32, i32) {
    %c0_i32 = arith.constant 0 : i32
    return %arg0, %arg2 : i32, i32
  }
  func.func @transform_1(%arg0: i32, %arg1: i32, %arg2: i32) -> (i32, i32) {
    %c0_i32 = arith.constant 0 : i32
    return %arg2, %arg1 : i32, i32
  }
  func.func @transform_2(%arg0: i32, %arg1: i32, %arg2: i32) -> (i32, i32) {
    %c0_i32 = arith.constant 0 : i32
    return %arg0, %arg1 : i32, i32
  }
}

module attributes {stable_mosaic.version = 11 : i64} {
  func.func @_conv_block_kernel(%arg0: i32, %arg1: i32, %arg2: i32, %arg3: memref<512x512xbf16, #tpu.memory_space<vmem>>, %arg4: memref<512x128xbf16, #tpu.memory_space<vmem>>, %arg5: memref<1x128xf32, #tpu.memory_space<vmem>>, %arg6: memref<1x128xf32, #tpu.memory_space<vmem>>, %arg7: memref<512x128xbf16, #tpu.memory_space<vmem>>, %arg8: memref<512x128xf32, #tpu.memory_space<vmem>>) attributes {dimension_semantics = [#tpu.dimension_semantics<parallel>, #tpu.dimension_semantics<parallel>, #tpu.dimension_semantics<arbitrary>], iteration_bounds = array<i64: 1, 1, 2>, scalar_prefetch = 0 : i64, scratch_operands = 1 : i64, tpu.core_type = #tpu.core_type<tc>, window_params = [{transform_indices = @transform_0, window_bounds = array<i64: 512, 512>}, {transform_indices = @transform_1, window_bounds = array<i64: 512, 128>}, {transform_indices = @transform_2, window_bounds = array<i64: 1, 128>}, {transform_indices = @transform_3, window_bounds = array<i64: 1, 128>}, {transform_indices = @transform_4, window_bounds = array<i64: 512, 128>}]} {
    %c0_i32 = arith.constant 0 : i32
    %0 = arith.cmpi eq, %arg2, %c0_i32 : i32
    %1 = arith.extui %0 : i1 to i32
    %c0_i32_0 = arith.constant 0 : i32
    %2 = arith.cmpi ne, %1, %c0_i32_0 : i32
    scf.if %2 {
      %cst_9 = arith.constant 0.000000e+00 : f32
      %12 = vector.broadcast %cst_9 : f32 to vector<512x128xf32>
      %c0_10 = arith.constant 0 : index
      %c0_11 = arith.constant 0 : index
      %13 = vector.load %arg8[%c0_10, %c0_11] : memref<512x128xf32, #tpu.memory_space<vmem>>, vector<512x128xf32>
      tpu.vector_store %arg8[%c0_10, %c0_11], %12 {strides = array<i32>} : memref<512x128xf32, #tpu.memory_space<vmem>>, vector<512x128xf32>,
    } else {
    }
    %c0 = arith.constant 0 : index
    %c0_1 = arith.constant 0 : index
    %3 = vector.load %arg8[%c0, %c0_1] : memref<512x128xf32, #tpu.memory_space<vmem>>, vector<512x128xf32>
    %c0_2 = arith.constant 0 : index
    %c0_3 = arith.constant 0 : index
    %4 = vector.load %arg3[%c0_2, %c0_3] : memref<512x512xbf16, #tpu.memory_space<vmem>>, vector<512x512xbf16>
    %c0_4 = arith.constant 0 : index
    %c0_5 = arith.constant 0 : index
    %5 = vector.load %arg4[%c0_4, %c0_5] : memref<512x128xbf16, #tpu.memory_space<vmem>>, vector<512x128xbf16>
    %cst = arith.constant dense<0.000000e+00> : vector<512x128xf32>
    %6 = tpu.matmul %4, %5, %cst {dimension_numbers = #tpu.dot_dimension_numbers<[1], [0], [0], [1], [0, 0, 1, 1], [], []>} : vector<512x512xbf16>, vector<512x128xbf16>, vector<512x128xf32> -> vector<512x128xf32>
    %7 = arith.addf %3, %6 : vector<512x128xf32>
    %c0_6 = arith.constant 0 : index
    %c0_7 = arith.constant 0 : index
    %8 = vector.load %arg8[%c0_6, %c0_7] : memref<512x128xf32, #tpu.memory_space<vmem>>, vector<512x128xf32>
    tpu.vector_store %arg8[%c0_6, %c0_7], %7 {strides = array<i32>} : memref<512x128xf32, #tpu.memory_space<vmem>>, vector<512x128xf32>,
    %c1_i32 = arith.constant 1 : i32
    %9 = arith.cmpi eq, %arg2, %c1_i32 : i32
    %10 = arith.extui %9 : i1 to i32
    %c0_i32_8 = arith.constant 0 : i32
    %11 = arith.cmpi ne, %10, %c0_i32_8 : i32
    scf.if %11 {
      %c0_9 = arith.constant 0 : index
      %c0_10 = arith.constant 0 : index
      %12 = vector.load %arg8[%c0_9, %c0_10] : memref<512x128xf32, #tpu.memory_space<vmem>>, vector<512x128xf32>
      %cst_11 = arith.constant dense<0.000000e+00> : vector<128xf32>
      %13 = vector.multi_reduction <add>, %12, %cst_11 [0] : vector<512x128xf32> to vector<128xf32>
      %14 = vector.shape_cast %13 : vector<128xf32> to vector<1x128xf32>
      %15 = arith.mulf %12, %12 : vector<512x128xf32>
      %cst_12 = arith.constant dense<0.000000e+00> : vector<128xf32>
      %16 = vector.multi_reduction <add>, %15, %cst_12 [0] : vector<512x128xf32> to vector<128xf32>
      %17 = vector.shape_cast %16 : vector<128xf32> to vector<1x128xf32>
      %cst_13 = arith.constant 0.001953125 : f32
      %18 = vector.broadcast %cst_13 : f32 to vector<1x128xf32>
      %19 = arith.mulf %14, %18 : vector<1x128xf32>
      %cst_14 = arith.constant 0.001953125 : f32
      %20 = vector.broadcast %cst_14 : f32 to vector<1x128xf32>
      %21 = arith.mulf %17, %20 : vector<1x128xf32>
      %22 = arith.mulf %19, %19 : vector<1x128xf32>
      %23 = arith.subf %21, %22 : vector<1x128xf32>
      %cst_15 = arith.constant 0.000000e+00 : f32
      %24 = vector.broadcast %cst_15 : f32 to vector<1x128xf32>
      %25 = arith.maximumf %23, %24 : vector<1x128xf32>
      %26 = vector.broadcast %19 : vector<1x128xf32> to vector<512x128xf32>
      %27 = arith.subf %12, %26 : vector<512x128xf32>
      %cst_16 = arith.constant 9.99999974E-6 : f32
      %28 = vector.broadcast %cst_16 : f32 to vector<1x128xf32>
      %29 = arith.addf %25, %28 : vector<1x128xf32>
      %30 = math.rsqrt %29 : vector<1x128xf32>
      %31 = vector.broadcast %30 : vector<1x128xf32> to vector<512x128xf32>
      %32 = arith.mulf %27, %31 : vector<512x128xf32>
      %c0_17 = arith.constant 0 : index
      %c0_18 = arith.constant 0 : index
      %33 = vector.load %arg5[%c0_17, %c0_18] : memref<1x128xf32, #tpu.memory_space<vmem>>, vector<1x128xf32>
      %34 = vector.broadcast %33 : vector<1x128xf32> to vector<512x128xf32>
      %35 = arith.mulf %32, %34 : vector<512x128xf32>
      %c0_19 = arith.constant 0 : index
      %c0_20 = arith.constant 0 : index
      %36 = vector.load %arg6[%c0_19, %c0_20] : memref<1x128xf32, #tpu.memory_space<vmem>>, vector<1x128xf32>
      %37 = vector.broadcast %36 : vector<1x128xf32> to vector<512x128xf32>
      %38 = arith.addf %35, %37 : vector<512x128xf32>
      %cst_21 = arith.constant 0.000000e+00 : f32
      %39 = vector.broadcast %cst_21 : f32 to vector<512x128xf32>
      %40 = arith.cmpf ogt, %38, %39 : vector<512x128xf32>
      %cst_22 = arith.constant 2.000000e-01 : f32
      %41 = vector.broadcast %cst_22 : f32 to vector<512x128xf32>
      %42 = arith.mulf %41, %38 : vector<512x128xf32>
      %43 = arith.select %40, %38, %42 : vector<512x128xi1>, vector<512x128xf32>
      %44 = arith.truncf %43 : vector<512x128xf32> to vector<512x128xbf16>
      %c0_23 = arith.constant 0 : index
      %c0_24 = arith.constant 0 : index
      %45 = vector.load %arg7[%c0_23, %c0_24] : memref<512x128xbf16, #tpu.memory_space<vmem>>, vector<512x128xbf16>
      tpu.vector_store %arg7[%c0_23, %c0_24], %44 {strides = array<i32>} : memref<512x128xbf16, #tpu.memory_space<vmem>>, vector<512x128xbf16>,
    } else {
    }
    return
  }
  func.func @transform_0(%arg0: i32, %arg1: i32, %arg2: i32) -> (i32, i32) {
    %c0_i32 = arith.constant 0 : i32
    return %arg0, %arg2 : i32, i32
  }
  func.func @transform_1(%arg0: i32, %arg1: i32, %arg2: i32) -> (i32, i32) {
    %c0_i32 = arith.constant 0 : i32
    return %arg2, %arg1 : i32, i32
  }
  func.func @transform_2(%arg0: i32, %arg1: i32, %arg2: i32) -> (i32, i32) {
    %c0_i32 = arith.constant 0 : i32
    %c0_i32_0 = arith.constant 0 : i32
    return %c0_i32, %arg1 : i32, i32
  }
  func.func @transform_3(%arg0: i32, %arg1: i32, %arg2: i32) -> (i32, i32) {
    %c0_i32 = arith.constant 0 : i32
    %c0_i32_0 = arith.constant 0 : i32
    return %c0_i32, %arg1 : i32, i32
  }
  func.func @transform_4(%arg0: i32, %arg1: i32, %arg2: i32) -> (i32, i32) {
    %c0_i32 = arith.constant 0 : i32
    return %arg0, %arg1 : i32, i32
  }
}

module attributes {stable_mosaic.version = 11 : i64} {
  func.func @_conv_block_kernel(%arg0: i32, %arg1: i32, %arg2: i32, %arg3: memref<128x512xbf16, #tpu.memory_space<vmem>>, %arg4: memref<512x128xbf16, #tpu.memory_space<vmem>>, %arg5: memref<1x128xf32, #tpu.memory_space<vmem>>, %arg6: memref<1x128xf32, #tpu.memory_space<vmem>>, %arg7: memref<128x128xbf16, #tpu.memory_space<vmem>>, %arg8: memref<128x128xf32, #tpu.memory_space<vmem>>) attributes {dimension_semantics = [#tpu.dimension_semantics<parallel>, #tpu.dimension_semantics<parallel>, #tpu.dimension_semantics<arbitrary>], iteration_bounds = array<i64: 1, 2, 4>, scalar_prefetch = 0 : i64, scratch_operands = 1 : i64, tpu.core_type = #tpu.core_type<tc>, window_params = [{transform_indices = @transform_0, window_bounds = array<i64: 128, 512>}, {transform_indices = @transform_1, window_bounds = array<i64: 512, 128>}, {transform_indices = @transform_2, window_bounds = array<i64: 1, 128>}, {transform_indices = @transform_3, window_bounds = array<i64: 1, 128>}, {transform_indices = @transform_4, window_bounds = array<i64: 128, 128>}]} {
    %c0_i32 = arith.constant 0 : i32
    %0 = arith.cmpi eq, %arg2, %c0_i32 : i32
    %1 = arith.extui %0 : i1 to i32
    %c0_i32_0 = arith.constant 0 : i32
    %2 = arith.cmpi ne, %1, %c0_i32_0 : i32
    scf.if %2 {
      %cst_9 = arith.constant 0.000000e+00 : f32
      %12 = vector.broadcast %cst_9 : f32 to vector<128x128xf32>
      %c0_10 = arith.constant 0 : index
      %c0_11 = arith.constant 0 : index
      %13 = vector.load %arg8[%c0_10, %c0_11] : memref<128x128xf32, #tpu.memory_space<vmem>>, vector<128x128xf32>
      tpu.vector_store %arg8[%c0_10, %c0_11], %12 {strides = array<i32>} : memref<128x128xf32, #tpu.memory_space<vmem>>, vector<128x128xf32>,
    } else {
    }
    %c0 = arith.constant 0 : index
    %c0_1 = arith.constant 0 : index
    %3 = vector.load %arg8[%c0, %c0_1] : memref<128x128xf32, #tpu.memory_space<vmem>>, vector<128x128xf32>
    %c0_2 = arith.constant 0 : index
    %c0_3 = arith.constant 0 : index
    %4 = vector.load %arg3[%c0_2, %c0_3] : memref<128x512xbf16, #tpu.memory_space<vmem>>, vector<128x512xbf16>
    %c0_4 = arith.constant 0 : index
    %c0_5 = arith.constant 0 : index
    %5 = vector.load %arg4[%c0_4, %c0_5] : memref<512x128xbf16, #tpu.memory_space<vmem>>, vector<512x128xbf16>
    %cst = arith.constant dense<0.000000e+00> : vector<128x128xf32>
    %6 = tpu.matmul %4, %5, %cst {dimension_numbers = #tpu.dot_dimension_numbers<[1], [0], [0], [1], [0, 0, 1, 1], [], []>} : vector<128x512xbf16>, vector<512x128xbf16>, vector<128x128xf32> -> vector<128x128xf32>
    %7 = arith.addf %3, %6 : vector<128x128xf32>
    %c0_6 = arith.constant 0 : index
    %c0_7 = arith.constant 0 : index
    %8 = vector.load %arg8[%c0_6, %c0_7] : memref<128x128xf32, #tpu.memory_space<vmem>>, vector<128x128xf32>
    tpu.vector_store %arg8[%c0_6, %c0_7], %7 {strides = array<i32>} : memref<128x128xf32, #tpu.memory_space<vmem>>, vector<128x128xf32>,
    %c3_i32 = arith.constant 3 : i32
    %9 = arith.cmpi eq, %arg2, %c3_i32 : i32
    %10 = arith.extui %9 : i1 to i32
    %c0_i32_8 = arith.constant 0 : i32
    %11 = arith.cmpi ne, %10, %c0_i32_8 : i32
    scf.if %11 {
      %c0_9 = arith.constant 0 : index
      %c0_10 = arith.constant 0 : index
      %12 = vector.load %arg8[%c0_9, %c0_10] : memref<128x128xf32, #tpu.memory_space<vmem>>, vector<128x128xf32>
      %cst_11 = arith.constant dense<0.000000e+00> : vector<128xf32>
      %13 = vector.multi_reduction <add>, %12, %cst_11 [0] : vector<128x128xf32> to vector<128xf32>
      %14 = vector.shape_cast %13 : vector<128xf32> to vector<1x128xf32>
      %15 = arith.mulf %12, %12 : vector<128x128xf32>
      %cst_12 = arith.constant dense<0.000000e+00> : vector<128xf32>
      %16 = vector.multi_reduction <add>, %15, %cst_12 [0] : vector<128x128xf32> to vector<128xf32>
      %17 = vector.shape_cast %16 : vector<128xf32> to vector<1x128xf32>
      %cst_13 = arith.constant 7.812500e-03 : f32
      %18 = vector.broadcast %cst_13 : f32 to vector<1x128xf32>
      %19 = arith.mulf %14, %18 : vector<1x128xf32>
      %cst_14 = arith.constant 7.812500e-03 : f32
      %20 = vector.broadcast %cst_14 : f32 to vector<1x128xf32>
      %21 = arith.mulf %17, %20 : vector<1x128xf32>
      %22 = arith.mulf %19, %19 : vector<1x128xf32>
      %23 = arith.subf %21, %22 : vector<1x128xf32>
      %cst_15 = arith.constant 0.000000e+00 : f32
      %24 = vector.broadcast %cst_15 : f32 to vector<1x128xf32>
      %25 = arith.maximumf %23, %24 : vector<1x128xf32>
      %26 = vector.broadcast %19 : vector<1x128xf32> to vector<128x128xf32>
      %27 = arith.subf %12, %26 : vector<128x128xf32>
      %cst_16 = arith.constant 9.99999974E-6 : f32
      %28 = vector.broadcast %cst_16 : f32 to vector<1x128xf32>
      %29 = arith.addf %25, %28 : vector<1x128xf32>
      %30 = math.rsqrt %29 : vector<1x128xf32>
      %31 = vector.broadcast %30 : vector<1x128xf32> to vector<128x128xf32>
      %32 = arith.mulf %27, %31 : vector<128x128xf32>
      %c0_17 = arith.constant 0 : index
      %c0_18 = arith.constant 0 : index
      %33 = vector.load %arg5[%c0_17, %c0_18] : memref<1x128xf32, #tpu.memory_space<vmem>>, vector<1x128xf32>
      %34 = vector.broadcast %33 : vector<1x128xf32> to vector<128x128xf32>
      %35 = arith.mulf %32, %34 : vector<128x128xf32>
      %c0_19 = arith.constant 0 : index
      %c0_20 = arith.constant 0 : index
      %36 = vector.load %arg6[%c0_19, %c0_20] : memref<1x128xf32, #tpu.memory_space<vmem>>, vector<1x128xf32>
      %37 = vector.broadcast %36 : vector<1x128xf32> to vector<128x128xf32>
      %38 = arith.addf %35, %37 : vector<128x128xf32>
      %cst_21 = arith.constant 0.000000e+00 : f32
      %39 = vector.broadcast %cst_21 : f32 to vector<128x128xf32>
      %40 = arith.cmpf ogt, %38, %39 : vector<128x128xf32>
      %cst_22 = arith.constant 2.000000e-01 : f32
      %41 = vector.broadcast %cst_22 : f32 to vector<128x128xf32>
      %42 = arith.mulf %41, %38 : vector<128x128xf32>
      %43 = arith.select %40, %38, %42 : vector<128x128xi1>, vector<128x128xf32>
      %44 = arith.truncf %43 : vector<128x128xf32> to vector<128x128xbf16>
      %c0_23 = arith.constant 0 : index
      %c0_24 = arith.constant 0 : index
      %45 = vector.load %arg7[%c0_23, %c0_24] : memref<128x128xbf16, #tpu.memory_space<vmem>>, vector<128x128xbf16>
      tpu.vector_store %arg7[%c0_23, %c0_24], %44 {strides = array<i32>} : memref<128x128xbf16, #tpu.memory_space<vmem>>, vector<128x128xbf16>,
    } else {
    }
    return
  }
  func.func @transform_0(%arg0: i32, %arg1: i32, %arg2: i32) -> (i32, i32) {
    %c0_i32 = arith.constant 0 : i32
    return %arg0, %arg2 : i32, i32
  }
  func.func @transform_1(%arg0: i32, %arg1: i32, %arg2: i32) -> (i32, i32) {
    %c0_i32 = arith.constant 0 : i32
    return %arg2, %arg1 : i32, i32
  }
  func.func @transform_2(%arg0: i32, %arg1: i32, %arg2: i32) -> (i32, i32) {
    %c0_i32 = arith.constant 0 : i32
    %c0_i32_0 = arith.constant 0 : i32
    return %c0_i32, %arg1 : i32, i32
  }
  func.func @transform_3(%arg0: i32, %arg1: i32, %arg2: i32) -> (i32, i32) {
    %c0_i32 = arith.constant 0 : i32
    %c0_i32_0 = arith.constant 0 : i32
    return %c0_i32, %arg1 : i32, i32
  }
  func.func @transform_4(%arg0: i32, %arg1: i32, %arg2: i32) -> (i32, i32) {
    %c0_i32 = arith.constant 0 : i32
    return %arg0, %arg1 : i32, i32
  }
}

module attributes {stable_mosaic.version = 11 : i64} {
  func.func @_conv_block_kernel(%arg0: i32, %arg1: i32, %arg2: i32, %arg3: memref<32x512xbf16, #tpu.memory_space<vmem>>, %arg4: memref<512x128xbf16, #tpu.memory_space<vmem>>, %arg5: memref<1x128xf32, #tpu.memory_space<vmem>>, %arg6: memref<1x128xf32, #tpu.memory_space<vmem>>, %arg7: memref<32x128xbf16, #tpu.memory_space<vmem>>, %arg8: memref<32x128xf32, #tpu.memory_space<vmem>>) attributes {dimension_semantics = [#tpu.dimension_semantics<parallel>, #tpu.dimension_semantics<parallel>, #tpu.dimension_semantics<arbitrary>], iteration_bounds = array<i64: 1, 4, 8>, scalar_prefetch = 0 : i64, scratch_operands = 1 : i64, tpu.core_type = #tpu.core_type<tc>, window_params = [{transform_indices = @transform_0, window_bounds = array<i64: 32, 512>}, {transform_indices = @transform_1, window_bounds = array<i64: 512, 128>}, {transform_indices = @transform_2, window_bounds = array<i64: 1, 128>}, {transform_indices = @transform_3, window_bounds = array<i64: 1, 128>}, {transform_indices = @transform_4, window_bounds = array<i64: 32, 128>}]} {
    %c0_i32 = arith.constant 0 : i32
    %0 = arith.cmpi eq, %arg2, %c0_i32 : i32
    %1 = arith.extui %0 : i1 to i32
    %c0_i32_0 = arith.constant 0 : i32
    %2 = arith.cmpi ne, %1, %c0_i32_0 : i32
    scf.if %2 {
      %cst_9 = arith.constant 0.000000e+00 : f32
      %12 = vector.broadcast %cst_9 : f32 to vector<32x128xf32>
      %c0_10 = arith.constant 0 : index
      %c0_11 = arith.constant 0 : index
      %13 = vector.load %arg8[%c0_10, %c0_11] : memref<32x128xf32, #tpu.memory_space<vmem>>, vector<32x128xf32>
      tpu.vector_store %arg8[%c0_10, %c0_11], %12 {strides = array<i32>} : memref<32x128xf32, #tpu.memory_space<vmem>>, vector<32x128xf32>,
    } else {
    }
    %c0 = arith.constant 0 : index
    %c0_1 = arith.constant 0 : index
    %3 = vector.load %arg8[%c0, %c0_1] : memref<32x128xf32, #tpu.memory_space<vmem>>, vector<32x128xf32>
    %c0_2 = arith.constant 0 : index
    %c0_3 = arith.constant 0 : index
    %4 = vector.load %arg3[%c0_2, %c0_3] : memref<32x512xbf16, #tpu.memory_space<vmem>>, vector<32x512xbf16>
    %c0_4 = arith.constant 0 : index
    %c0_5 = arith.constant 0 : index
    %5 = vector.load %arg4[%c0_4, %c0_5] : memref<512x128xbf16, #tpu.memory_space<vmem>>, vector<512x128xbf16>
    %cst = arith.constant dense<0.000000e+00> : vector<32x128xf32>
    %6 = tpu.matmul %4, %5, %cst {dimension_numbers = #tpu.dot_dimension_numbers<[1], [0], [0], [1], [0, 0, 1, 1], [], []>} : vector<32x512xbf16>, vector<512x128xbf16>, vector<32x128xf32> -> vector<32x128xf32>
    %7 = arith.addf %3, %6 : vector<32x128xf32>
    %c0_6 = arith.constant 0 : index
    %c0_7 = arith.constant 0 : index
    %8 = vector.load %arg8[%c0_6, %c0_7] : memref<32x128xf32, #tpu.memory_space<vmem>>, vector<32x128xf32>
    tpu.vector_store %arg8[%c0_6, %c0_7], %7 {strides = array<i32>} : memref<32x128xf32, #tpu.memory_space<vmem>>, vector<32x128xf32>,
    %c7_i32 = arith.constant 7 : i32
    %9 = arith.cmpi eq, %arg2, %c7_i32 : i32
    %10 = arith.extui %9 : i1 to i32
    %c0_i32_8 = arith.constant 0 : i32
    %11 = arith.cmpi ne, %10, %c0_i32_8 : i32
    scf.if %11 {
      %c0_9 = arith.constant 0 : index
      %c0_10 = arith.constant 0 : index
      %12 = vector.load %arg8[%c0_9, %c0_10] : memref<32x128xf32, #tpu.memory_space<vmem>>, vector<32x128xf32>
      %cst_11 = arith.constant dense<0.000000e+00> : vector<128xf32>
      %13 = vector.multi_reduction <add>, %12, %cst_11 [0] : vector<32x128xf32> to vector<128xf32>
      %14 = vector.shape_cast %13 : vector<128xf32> to vector<1x128xf32>
      %15 = arith.mulf %12, %12 : vector<32x128xf32>
      %cst_12 = arith.constant dense<0.000000e+00> : vector<128xf32>
      %16 = vector.multi_reduction <add>, %15, %cst_12 [0] : vector<32x128xf32> to vector<128xf32>
      %17 = vector.shape_cast %16 : vector<128xf32> to vector<1x128xf32>
      %cst_13 = arith.constant 3.125000e-02 : f32
      %18 = vector.broadcast %cst_13 : f32 to vector<1x128xf32>
      %19 = arith.mulf %14, %18 : vector<1x128xf32>
      %cst_14 = arith.constant 3.125000e-02 : f32
      %20 = vector.broadcast %cst_14 : f32 to vector<1x128xf32>
      %21 = arith.mulf %17, %20 : vector<1x128xf32>
      %22 = arith.mulf %19, %19 : vector<1x128xf32>
      %23 = arith.subf %21, %22 : vector<1x128xf32>
      %cst_15 = arith.constant 0.000000e+00 : f32
      %24 = vector.broadcast %cst_15 : f32 to vector<1x128xf32>
      %25 = arith.maximumf %23, %24 : vector<1x128xf32>
      %26 = vector.broadcast %19 : vector<1x128xf32> to vector<32x128xf32>
      %27 = arith.subf %12, %26 : vector<32x128xf32>
      %cst_16 = arith.constant 9.99999974E-6 : f32
      %28 = vector.broadcast %cst_16 : f32 to vector<1x128xf32>
      %29 = arith.addf %25, %28 : vector<1x128xf32>
      %30 = math.rsqrt %29 : vector<1x128xf32>
      %31 = vector.broadcast %30 : vector<1x128xf32> to vector<32x128xf32>
      %32 = arith.mulf %27, %31 : vector<32x128xf32>
      %c0_17 = arith.constant 0 : index
      %c0_18 = arith.constant 0 : index
      %33 = vector.load %arg5[%c0_17, %c0_18] : memref<1x128xf32, #tpu.memory_space<vmem>>, vector<1x128xf32>
      %34 = vector.broadcast %33 : vector<1x128xf32> to vector<32x128xf32>
      %35 = arith.mulf %32, %34 : vector<32x128xf32>
      %c0_19 = arith.constant 0 : index
      %c0_20 = arith.constant 0 : index
      %36 = vector.load %arg6[%c0_19, %c0_20] : memref<1x128xf32, #tpu.memory_space<vmem>>, vector<1x128xf32>
      %37 = vector.broadcast %36 : vector<1x128xf32> to vector<32x128xf32>
      %38 = arith.addf %35, %37 : vector<32x128xf32>
      %cst_21 = arith.constant 0.000000e+00 : f32
      %39 = vector.broadcast %cst_21 : f32 to vector<32x128xf32>
      %40 = arith.cmpf ogt, %38, %39 : vector<32x128xf32>
      %cst_22 = arith.constant 2.000000e-01 : f32
      %41 = vector.broadcast %cst_22 : f32 to vector<32x128xf32>
      %42 = arith.mulf %41, %38 : vector<32x128xf32>
      %43 = arith.select %40, %38, %42 : vector<32x128xi1>, vector<32x128xf32>
      %44 = arith.truncf %43 : vector<32x128xf32> to vector<32x128xbf16>
      %c0_23 = arith.constant 0 : index
      %c0_24 = arith.constant 0 : index
      %45 = vector.load %arg7[%c0_23, %c0_24] : memref<32x128xbf16, #tpu.memory_space<vmem>>, vector<32x128xbf16>
      tpu.vector_store %arg7[%c0_23, %c0_24], %44 {strides = array<i32>} : memref<32x128xbf16, #tpu.memory_space<vmem>>, vector<32x128xbf16>,
    } else {
    }
    return
  }
  func.func @transform_0(%arg0: i32, %arg1: i32, %arg2: i32) -> (i32, i32) {
    %c0_i32 = arith.constant 0 : i32
    return %arg0, %arg2 : i32, i32
  }
  func.func @transform_1(%arg0: i32, %arg1: i32, %arg2: i32) -> (i32, i32) {
    %c0_i32 = arith.constant 0 : i32
    return %arg2, %arg1 : i32, i32
  }
  func.func @transform_2(%arg0: i32, %arg1: i32, %arg2: i32) -> (i32, i32) {
    %c0_i32 = arith.constant 0 : i32
    %c0_i32_0 = arith.constant 0 : i32
    return %c0_i32, %arg1 : i32, i32
  }
  func.func @transform_3(%arg0: i32, %arg1: i32, %arg2: i32) -> (i32, i32) {
    %c0_i32 = arith.constant 0 : i32
    %c0_i32_0 = arith.constant 0 : i32
    return %c0_i32, %arg1 : i32, i32
  }
  func.func @transform_4(%arg0: i32, %arg1: i32, %arg2: i32) -> (i32, i32) {
    %c0_i32 = arith.constant 0 : i32
    return %arg0, %arg1 : i32, i32
  }
}

module attributes {stable_mosaic.version = 11 : i64} {
  func.func @_conv_block_kernel(%arg0: i32, %arg1: i32, %arg2: i32, %arg3: memref<2x512xbf16, #tpu.memory_space<vmem>>, %arg4: memref<512x1xbf16, #tpu.memory_space<vmem>>, %arg5: memref<2x1xf32, #tpu.memory_space<vmem>>, %arg6: memref<2x1xf32, #tpu.memory_space<vmem>>) attributes {dimension_semantics = [#tpu.dimension_semantics<parallel>, #tpu.dimension_semantics<parallel>, #tpu.dimension_semantics<arbitrary>], iteration_bounds = array<i64: 1, 1, 16>, scalar_prefetch = 0 : i64, scratch_operands = 1 : i64, tpu.core_type = #tpu.core_type<tc>, window_params = [{transform_indices = @transform_0, window_bounds = array<i64: 2, 512>}, {transform_indices = @transform_1, window_bounds = array<i64: 512, 1>}, {transform_indices = @transform_2, window_bounds = array<i64: 2, 1>}]} {
    %c0_i32 = arith.constant 0 : i32
    %0 = arith.cmpi eq, %arg2, %c0_i32 : i32
    %1 = arith.extui %0 : i1 to i32
    %c0_i32_0 = arith.constant 0 : i32
    %2 = arith.cmpi ne, %1, %c0_i32_0 : i32
    scf.if %2 {
      %cst_9 = arith.constant 0.000000e+00 : f32
      %12 = vector.broadcast %cst_9 : f32 to vector<2x1xf32>
      %c0_10 = arith.constant 0 : index
      %c0_11 = arith.constant 0 : index
      %13 = vector.load %arg6[%c0_10, %c0_11] : memref<2x1xf32, #tpu.memory_space<vmem>>, vector<2x1xf32>
      tpu.vector_store %arg6[%c0_10, %c0_11], %12 {strides = array<i32>} : memref<2x1xf32, #tpu.memory_space<vmem>>, vector<2x1xf32>,
    } else {
    }
    %c0 = arith.constant 0 : index
    %c0_1 = arith.constant 0 : index
    %3 = vector.load %arg6[%c0, %c0_1] : memref<2x1xf32, #tpu.memory_space<vmem>>, vector<2x1xf32>
    %c0_2 = arith.constant 0 : index
    %c0_3 = arith.constant 0 : index
    %4 = vector.load %arg3[%c0_2, %c0_3] : memref<2x512xbf16, #tpu.memory_space<vmem>>, vector<2x512xbf16>
    %c0_4 = arith.constant 0 : index
    %c0_5 = arith.constant 0 : index
    %5 = vector.load %arg4[%c0_4, %c0_5] : memref<512x1xbf16, #tpu.memory_space<vmem>>, vector<512x1xbf16>
    %cst = arith.constant dense<0.000000e+00> : vector<2x1xf32>
    %6 = tpu.matmul %4, %5, %cst {dimension_numbers = #tpu.dot_dimension_numbers<[1], [0], [0], [1], [0, 0, 1, 1], [], []>} : vector<2x512xbf16>, vector<512x1xbf16>, vector<2x1xf32> -> vector<2x1xf32>
    %7 = arith.addf %3, %6 : vector<2x1xf32>
    %c0_6 = arith.constant 0 : index
    %c0_7 = arith.constant 0 : index
    %8 = vector.load %arg6[%c0_6, %c0_7] : memref<2x1xf32, #tpu.memory_space<vmem>>, vector<2x1xf32>
    tpu.vector_store %arg6[%c0_6, %c0_7], %7 {strides = array<i32>} : memref<2x1xf32, #tpu.memory_space<vmem>>, vector<2x1xf32>,
    %c15_i32 = arith.constant 15 : i32
    %9 = arith.cmpi eq, %arg2, %c15_i32 : i32
    %10 = arith.extui %9 : i1 to i32
    %c0_i32_8 = arith.constant 0 : i32
    %11 = arith.cmpi ne, %10, %c0_i32_8 : i32
    scf.if %11 {
      %c0_9 = arith.constant 0 : index
      %c0_10 = arith.constant 0 : index
      %12 = vector.load %arg6[%c0_9, %c0_10] : memref<2x1xf32, #tpu.memory_space<vmem>>, vector<2x1xf32>
      %13 = arith.negf %12 : vector<2x1xf32>
      %14 = math.exp %13 : vector<2x1xf32>
      %cst_11 = arith.constant 1.000000e+00 : f32
      %15 = vector.broadcast %cst_11 : f32 to vector<2x1xf32>
      %16 = arith.addf %15, %14 : vector<2x1xf32>
      %17 = arith.divf %15, %16 : vector<2x1xf32>
      %c0_12 = arith.constant 0 : index
      %c0_13 = arith.constant 0 : index
      %18 = vector.load %arg5[%c0_12, %c0_13] : memref<2x1xf32, #tpu.memory_space<vmem>>, vector<2x1xf32>
      tpu.vector_store %arg5[%c0_12, %c0_13], %17 {strides = array<i32>} : memref<2x1xf32, #tpu.memory_space<vmem>>, vector<2x1xf32>,
    } else {
    }
    return
  }
  func.func @transform_0(%arg0: i32, %arg1: i32, %arg2: i32) -> (i32, i32) {
    %c0_i32 = arith.constant 0 : i32
    return %arg0, %arg2 : i32, i32
  }
  func.func @transform_1(%arg0: i32, %arg1: i32, %arg2: i32) -> (i32, i32) {
    %c0_i32 = arith.constant 0 : i32
    return %arg2, %arg1 : i32, i32
  }
  func.func @transform_2(%arg0: i32, %arg1: i32, %arg2: i32) -> (i32, i32) {
    %c0_i32 = arith.constant 0 : i32
    return %arg0, %arg1 : i32, i32
  }
}

</mosaic_0001>

<bundles_post_ra>
// kernel: discriminator_forward.5
= control target key start
LH: loop header
LB: loop body
LE: loop exit
PB: predicated region body
PF: predicated region fallthrough
CT: control target
= control target key end

     0   :  { %s1348_s9 = smov 0   ;;  %s1350_s10 = smov 0   ;;  %s1581_s0 = inlined_call_operand.vmem [shape: bf16[2048,48], index: 0, kind: input, shape index: {}]   ;;  %s1582_s1 = inlined_call_operand.vmem [shape: bf16[48,64], index: 1, kind: input, shape index: {}]   ;;  %s1583_s2 = inlined_call_operand.vmem [shape: bf16[2048,64], index: 2, kind: output, shape index: {}]  }
   0x1   :  { %s1352_s11 = smov 0  }
   0x2 LB: > { %s31_s12 = sadd.s32 1, %s1326_s10  ;;  %p1095_p0 = scmp.ge.s32.totalorder %s1330_s11, 1  ;;  %s1330_s11 = sphi %s1352_s11, %s12_s11   ;;  %s1326_s10 = sphi %s1350_s10, %s1585_s10   ;;  %s1322_s9 = sphi %s1348_s9, %s1584_s9  }
   0x3   : > { %p33_p1 = scmp.ge.s32.totalorder %s31_s12, 8  ;;  %p155_p2 = scmp.lt.s32.totalorder %s1330_s11, 9 }
   0x5   : > { %s1587_s12 = smov (%p33_p1, %s31_s12), 0  ;;  %p156_p3 = pnand %p1095_p0, %p155_p2 }
   0x6   : > { %s1096_s15 = sshll.u32 (!%p156_p3), %s1322_s9, 5 }
   0x7   : > { %159 = sbr.rel (%p156_p3) target bundleno = 273 (0x111), region = 28  ;;  %p192_p4 = scmp.lt.s32.totalorder (!%p156_p3), %s1096_s15, 255 }
   0xc   : > { %v1289_v0 = vld [vmem:[%s1582_s1 + $0x10] sm:$0xff]   ;;  %v1290_v1 = vld [vmem:[%s1582_s1 + $0x8] sm:$0xff]   ;;  %s1589_s15 = smov (!%p192_p4, %s1096_s15), 255  ;;  %vm223_vm0 = vcmask 523264   ;;  %v1291_v2 = vld [vmem:[%s1582_s1] sm:$0xff]   ;;  %v1332_v3 = vmov 0.0  }
   0xd   : > { %1220 = vmatprep.subr.bf16.mxu0 %v1289_v0  ;;  %1258 = vmatprep.subr.bf16.mxu1 %v1289_v0  ;;  %226 = vst.msk [vmem:[#allocation2 + $0x10] sm:$0xff] %vm223_vm0, %v1332_v3  ;;  %224 = vst.msk [vmem:[#allocation2] sm:$0xff] %vm223_vm0, %v1332_v3  ;;  %s1097_s20 = sshll.u32 %s1589_s15, 2  ;;  %vm424_vm1 = vcmask 392192   ;;  %vm958_vm4 = vcmask 519168  }
   0xe   : > { %1221 = vmatpush3.bf16.msra.mxu0 %v1289_v0  ;;  %1261 = vmatpush3.bf16.msra.mxu1 %v1289_v0  ;;  %225 = vst.msk [vmem:[#allocation2 + $0x8] sm:$0xff] %vm223_vm0, %v1332_v3  ;;  %227 = vst.msk [vmem:[#allocation2 + $0x18] sm:$0xff] %vm223_vm0, %v1332_v3  ;;  %s1415_s23 = scalar_lea.vmem %s1581_s0, %s1097_s20  ;;  %s1466_s26 = scalar_lea.vmem %s1583_s2, %s1097_s20 }
   0xf   : > { %1222 = vmatprep.subr.bf16.mxu0 %v1290_v1  ;;  %1259 = vmatprep.subr.bf16.mxu1 %v1290_v1  ;;  %228 = vst.msk [vmem:[#allocation2 + $0x20] sm:$0xff] %vm223_vm0, %v1332_v3  ;;  %229 = vst.msk [vmem:[#allocation2 + $0x28] sm:$0xff] %vm223_vm0, %v1332_v3  ;;  %v1292_v4 = vld [vmem:[%s1415_s23] sm:$0xff]   ;;  %v1294_v6 = vld [vmem:[%s1415_s23 + $0x8] sm:$0xff]  }
  0x10   : > { %230 = vst.msk [vmem:[#allocation2 + $0x30] sm:$0xff] %vm223_vm0, %v1332_v3  ;;  %231 = vst.msk [vmem:[#allocation2 + $0x38] sm:$0xff] %vm223_vm0, %v1332_v3  ;;  %v1293_v5 = vld [vmem:[%s1415_s23 + $0x40] sm:$0xff]   ;;  %1226 = vmatprep.mubr.msk.bf16.mxu0 %vm424_vm1, %v1292_v4  ;;  %v1295_v7 = vld [vmem:[%s1415_s23 + $0x48] sm:$0xff]  }
  0x11   : > { %232 = vst.msk [vmem:[#allocation2 + $0x40] sm:$0xff] %vm223_vm0, %v1332_v3  ;;  %233 = vst.msk [vmem:[#allocation2 + $0x48] sm:$0xff] %vm223_vm0, %v1332_v3  ;;  %1242 = vmatprep.mubr.msk.bf16.mxu1 %vm424_vm1, %v1293_v5  ;;  %v1296_v8 = vld [vmem:[%s1415_s23 + $0x10] sm:$0xff]   ;;  %v1298_v10 = vld [vmem:[%s1415_s23 + $0x18] sm:$0xff]  }
  0x12   : > { %234 = vst.msk [vmem:[#allocation2 + $0x50] sm:$0xff] %vm223_vm0, %v1332_v3  ;;  %235 = vst.msk [vmem:[#allocation2 + $0x58] sm:$0xff] %vm223_vm0, %v1332_v3  ;;  %1223 = vmatpush3.bf16.msra.mxu0 %v1290_v1  ;;  %1262 = vmatpush3.bf16.msra.mxu1 %v1290_v1  ;;  %v1297_v9 = vld [vmem:[%s1415_s23 + $0x50] sm:$0xff]   ;;  %v1299_v11 = vld [vmem:[%s1415_s23 + $0x58] sm:$0xff]  }
  0x13   : > { %236 = vst.msk [vmem:[#allocation2 + $0x60] sm:$0xff] %vm223_vm0, %v1332_v3  ;;  %237 = vst.msk [vmem:[#allocation2 + $0x68] sm:$0xff] %vm223_vm0, %v1332_v3  ;;  %1224 = vmatprep.subr.bf16.mxu0 %v1291_v2  ;;  %1260 = vmatprep.subr.bf16.mxu1 %v1291_v2  ;;  %v1300_v12 = vld [vmem:[%s1415_s23 + $0x20] sm:$0xff]   ;;  %v1302_v14 = vld [vmem:[%s1415_s23 + $0x28] sm:$0xff]  }
  0x14   : > { %238 = vst.msk [vmem:[#allocation2 + $0x70] sm:$0xff] %vm223_vm0, %v1332_v3  ;;  %239 = vst.msk [vmem:[#allocation2 + $0x78] sm:$0xff] %vm223_vm0, %v1332_v3  ;;  %v1301_v13 = vld [vmem:[%s1415_s23 + $0x60] sm:$0xff]   ;;  %v1303_v15 = vld [vmem:[%s1415_s23 + $0x68] sm:$0xff]  }
  0x15   : > { %240 = vst.msk [vmem:[#allocation2 + $0x80] sm:$0xff] %vm223_vm0, %v1332_v3  ;;  %241 = vst.msk [vmem:[#allocation2 + $0x88] sm:$0xff] %vm223_vm0, %v1332_v3  ;;  %v1304_v16 = vld [vmem:[%s1415_s23 + $0x30] sm:$0xff]   ;;  %v1306_v18 = vld [vmem:[%s1415_s23 + $0x38] sm:$0xff]  }
  0x16   : > { %242 = vst.msk [vmem:[#allocation2 + $0x90] sm:$0xff] %vm223_vm0, %v1332_v3  ;;  %243 = vst.msk [vmem:[#allocation2 + $0x98] sm:$0xff] %vm223_vm0, %v1332_v3  ;;  %1225 = vmatpush3.bf16.msra.mxu0 %v1291_v2  ;;  %1263 = vmatpush3.bf16.msra.mxu1 %v1291_v2  ;;  %v1305_v17 = vld [vmem:[%s1415_s23 + $0x70] sm:$0xff]   ;;  %v1307_v19 = vld [vmem:[%s1415_s23 + $0x78] sm:$0xff]  }
  0x17   : > { %244 = vst.msk [vmem:[#allocation2 + $0xa0] sm:$0xff] %vm223_vm0, %v1332_v3  ;;  %245 = vst.msk [vmem:[#allocation2 + $0xa8] sm:$0xff] %vm223_vm0, %v1332_v3  ;;  %v258_v20 = vld [vmem:[#allocation2 + $0x10] sm:$0xff]  ;;  %v256_v24 = vld [vmem:[#allocation2] sm:$0xff] }
  0x18   : > { %246 = vst.msk [vmem:[#allocation2 + $0xb0] sm:$0xff] %vm223_vm0, %v1332_v3  ;;  %247 = vst.msk [vmem:[#allocation2 + $0xb8] sm:$0xff] %vm223_vm0, %v1332_v3  ;;  %v259_v30 = vld [vmem:[#allocation2 + $0x18] sm:$0xff]  ;;  %v257_v36 = vld [vmem:[#allocation2 + $0x8] sm:$0xff] }
  0x19   : > { %248 = vst.msk [vmem:[#allocation2 + $0xc0] sm:$0xff] %vm223_vm0, %v1332_v3  ;;  %249 = vst.msk [vmem:[#allocation2 + $0xc8] sm:$0xff] %vm223_vm0, %v1332_v3  ;;  %1227 = vmatmul.mubr.msk.bf16.vlgmr.msra.gmra.mxu0 %vm424_vm1, %v1294_v6  ;;  %1243 = vmatmul.mubr.msk.bf16.vlgmr.msra.gmra.mxu1 %vm424_vm1, %v1295_v7  ;;  %v262_v42 = vld [vmem:[#allocation2 + $0x30] sm:$0xff]  ;;  %v260_v50 = vld [vmem:[#allocation2 + $0x20] sm:$0xff] }
  0x1a   : > { %250 = vst.msk [vmem:[#allocation2 + $0xd0] sm:$0xff] %vm223_vm0, %v1332_v3  ;;  %251 = vst.msk [vmem:[#allocation2 + $0xd8] sm:$0xff] %vm223_vm0, %v1332_v3  ;;  %1230 = vmatprep.mubr.msk.bf16.mxu0 %vm424_vm1, %v1296_v8  ;;  %1246 = vmatprep.mubr.msk.bf16.mxu1 %vm424_vm1, %v1297_v9 }
  0x1b   : > { %252 = vst.msk [vmem:[#allocation2 + $0xe0] sm:$0xff] %vm223_vm0, %v1332_v3  ;;  %253 = vst.msk [vmem:[#allocation2 + $0xe8] sm:$0xff] %vm223_vm0, %v1332_v3 }
  0x1c   : > { %254 = vst.msk [vmem:[#allocation2 + $0xf0] sm:$0xff] %vm223_vm0, %v1332_v3  ;;  %255 = vst.msk [vmem:[#allocation2 + $0xf8] sm:$0xff] %vm223_vm0, %v1332_v3  ;;  %v272_v25 = vld [vmem:[#allocation2 + $0x80] sm:$0xff]  ;;  %v273_v37 = vld [vmem:[#allocation2 + $0x88] sm:$0xff] }
  0x1d   : > { %v274_v21 = vld [vmem:[#allocation2 + $0x90] sm:$0xff]  ;;  %v275_v31 = vld [vmem:[#allocation2 + $0x98] sm:$0xff] }
  0x1e   : > { %v276_v51 = vld [vmem:[#allocation2 + $0xa0] sm:$0xff]  ;;  %v263_v3 = vld [vmem:[#allocation2 + $0x38] sm:$0xff] }
  0x1f   : > { %v278_v43 = vld [vmem:[#allocation2 + $0xb0] sm:$0xff] }
  0x21   : > { %1231 = vmatmul.mubr.msk.bf16.gmra.mxu0 %vm424_vm1, %v1298_v10  ;;  %1247 = vmatmul.mubr.msk.bf16.gmra.mxu1 %vm424_vm1, %v1299_v11 }
  0x22   : > { %1234 = vmatprep.mubr.msk.bf16.mxu0 %vm424_vm1, %v1300_v12  ;;  %1250 = vmatprep.mubr.msk.bf16.mxu1 %vm424_vm1, %v1301_v13 }
  0x29   : > { %1235 = vmatmul.mubr.msk.bf16.gmra.mxu0 %vm424_vm1, %v1302_v14  ;;  %1251 = vmatmul.mubr.msk.bf16.gmra.mxu1 %vm424_vm1, %v1303_v15 }
  0x2a   : > { %1238 = vmatprep.mubr.msk.bf16.mxu0 %vm424_vm1, %v1304_v16  ;;  %1254 = vmatprep.mubr.msk.bf16.mxu1 %vm424_vm1, %v1305_v17 }
  0x31   : > { %1239 = vmatmul.mubr.msk.bf16.gmra.mxu0 %vm424_vm1, %v1306_v18  ;;  %1255 = vmatmul.mubr.msk.bf16.gmra.mxu1 %vm424_vm1, %v1307_v19 }
  0xd9   : > { %v1228_v22 = vpop.f32.mrf.mxu0  ;;  %v1244_v23 = vpop.f32.mrf.mxu1 }
  0xda   : > { %v636_v26 = vadd.f32 %v1228_v22, %v258_v20  ;;  %v652_v27 = vadd.f32 %v1244_v23, %v274_v21 }
  0xdb   : > { %v507_v28 = vpop.f32.mrf.mxu0  ;;  %v571_v29 = vpop.f32.mrf.mxu1 }
  0xdc   : > { %669 = vst.msk [vmem:[#allocation2 + $0x10] sm:$0xff] %vm223_vm0, %v636_v26  ;;  %685 = vst.msk [vmem:[#allocation2 + $0x90] sm:$0xff] %vm223_vm0, %v652_v27  ;;  %v634_v32 = vadd.f32 %v507_v28, %v256_v24  ;;  %v650_v33 = vadd.f32 %v571_v29, %v272_v25  ;;  %v279_v24 = vld [vmem:[#allocation2 + $0xb8] sm:$0xff] }
  0xdd   : > { %v1229_v34 = vpop.f32.mrf.mxu0  ;;  %v1245_v35 = vpop.f32.mrf.mxu1 }
  0xde   : > { %667 = vst.msk [vmem:[#allocation2] sm:$0xff] %vm223_vm0, %v634_v32  ;;  %683 = vst.msk [vmem:[#allocation2 + $0x80] sm:$0xff] %vm223_vm0, %v650_v33  ;;  %v637_v38 = vadd.f32 %v1229_v34, %v259_v30  ;;  %v653_v39 = vadd.f32 %v1245_v35, %v275_v31  ;;  %v261_v30 = vld [vmem:[#allocation2 + $0x28] sm:$0xff] }
  0xdf   : > { %v510_v40 = vpop.f32.mrf.mxu0  ;;  %v574_v41 = vpop.f32.mrf.mxu1 }
  0xe0   : > { %670 = vst.msk [vmem:[#allocation2 + $0x18] sm:$0xff] %vm223_vm0, %v637_v38  ;;  %686 = vst.msk [vmem:[#allocation2 + $0x98] sm:$0xff] %vm223_vm0, %v653_v39  ;;  %v635_v44 = vadd.f32 %v510_v40, %v257_v36  ;;  %v651_v45 = vadd.f32 %v574_v41, %v273_v37  ;;  %v277_v39 = vld [vmem:[#allocation2 + $0xa8] sm:$0xff]  ;;  %v266_v40 = vld [vmem:[#allocation2 + $0x50] sm:$0xff] }
  0xe1   : > { %v1232_v46 = vpop.f32.mrf.mxu0  ;;  %v1248_v47 = vpop.f32.mrf.mxu1  ;;  %v282_v41 = vld [vmem:[#allocation2 + $0xd0] sm:$0xff] }
  0xe2   : > { %668 = vst.msk [vmem:[#allocation2 + $0x8] sm:$0xff] %vm223_vm0, %v635_v44  ;;  %684 = vst.msk [vmem:[#allocation2 + $0x88] sm:$0xff] %vm223_vm0, %v651_v45  ;;  %v640_v48 = vadd.f32 %v1232_v46, %v262_v42  ;;  %v656_v49 = vadd.f32 %v1248_v47, %v278_v43 }
  0xe3   : > { %v704_v52 = vld [vmem:[#allocation2 + $0x10] sm:$0xff]  ;;  %v523_v54 = vpop.f32.mrf.mxu0  ;;  %v587_v55 = vpop.f32.mrf.mxu1 }
  0xe4   : > { %v720_v53 = vld [vmem:[#allocation2 + $0x90] sm:$0xff]  ;;  %vm736_vm2 = vcmp.gt.f32.partialorder %v704_v52, 0.0  ;;  %v768_v56 = vmul.f32 0.2, %v704_v52  ;;  %673 = vst.msk [vmem:[#allocation2 + $0x30] sm:$0xff] %vm223_vm0, %v640_v48  ;;  %689 = vst.msk [vmem:[#allocation2 + $0xb0] sm:$0xff] %vm223_vm0, %v656_v49  ;;  %v638_v60 = vadd.f32 %v523_v54, %v260_v50  ;;  %v654_v61 = vadd.f32 %v587_v55, %v276_v51 }
  0xe5   : > { %vm752_vm3 = vcmp.gt.f32.partialorder %v720_v53, 0.0  ;;  %v784_v57 = vmul.f32 0.2, %v720_v53  ;;  %v702_v58 = vld [vmem:[#allocation2] sm:$0xff]  ;;  %v1233_v62 = vpop.f32.mrf.mxu0  ;;  %v1459_v63 = vpop.f32.mrf.mxu1  ;;  %v267_v55 = vld [vmem:[#allocation2 + $0x58] sm:$0xff] }
  0xe6   : > { %v718_v59 = vld [vmem:[#allocation2 + $0x80] sm:$0xff]  ;;  %v800_v0 = vsel %vm736_vm2, %v704_v52, %v768_v56  ;;  %vm734_vm5 = vcmp.gt.f32.partialorder %v702_v58, 0.0  ;;  %v766_v2 = vmul.f32 0.2, %v702_v58  ;;  %671 = vst.msk [vmem:[#allocation2 + $0x20] sm:$0xff] %vm223_vm0, %v638_v60  ;;  %687 = vst.msk [vmem:[#allocation2 + $0xa0] sm:$0xff] %vm223_vm0, %v654_v61  ;;  %v641_v18 = vadd.f32 %v1233_v62, %v263_v3 }
  0xe7   : > { %v816_v1 = vsel %vm752_vm3, %v720_v53, %v784_v57  ;;  %v1171_v4 = vpack.c.bf16 %v800_v0, %v800_v0  ;;  %vm750_vm6 = vcmp.gt.f32.partialorder %v718_v59, 0.0  ;;  %v782_v6 = vmul.f32 0.2, %v718_v59  ;;  %v705_v7 = vld [vmem:[#allocation2 + $0x18] sm:$0xff]  ;;  %v526_v9 = vpop.f32.mrf.mxu0  ;;  %v1470_v10 = vpop.f32.mrf.mxu1  ;;  %v264_v50 = vld [vmem:[#allocation2 + $0x40] sm:$0xff]  ;;  %v265_v62 = vld [vmem:[#allocation2 + $0x48] sm:$0xff] }
  0xe8   : > { %v1187_v5 = vpack.c.bf16 %v816_v1, %v816_v1  ;;  %v721_v8 = vld [vmem:[#allocation2 + $0x98] sm:$0xff]  ;;  %v798_v11 = vsel %vm734_vm5, %v702_v58, %v766_v2  ;;  %vm737_vm7 = vcmp.gt.f32.partialorder %v705_v7, 0.0  ;;  %v769_v12 = vmul.f32 0.2, %v705_v7  ;;  %674 = vst.msk [vmem:[#allocation2 + $0x38] sm:$0xff] %vm223_vm0, %v641_v18  ;;  %v280_v54 = vld [vmem:[#allocation2 + $0xc0] sm:$0xff] }
  0xe9   : > { %vm753_vm8 = vcmp.gt.f32.partialorder %v721_v8, 0.0  ;;  %961 = vst.msk [vmem:[%s1466_s26 + $0x8] sm:$0xf] %vm958_vm4, %v1171_v4  ;;  %v1169_v13 = vpack.c.bf16 %v798_v11, %v798_v11  ;;  %v814_v14 = vsel %vm750_vm6, %v718_v59, %v782_v6  ;;  %v785_v15 = vmul.f32 0.2, %v721_v8  ;;  %v703_v16 = vld [vmem:[#allocation2 + $0x8] sm:$0xff]  ;;  %v1236_v19 = vpop.f32.mrf.mxu0  ;;  %v1252_v20 = vpop.f32.mrf.mxu1 }
  0xea   : > { %977 = vst.msk [vmem:[%s1466_s26 + $0x48] sm:$0xf] %vm958_vm4, %v1187_v5  ;;  %v719_v17 = vld [vmem:[#allocation2 + $0x88] sm:$0xff]  ;;  %v1185_v21 = vpack.c.bf16 %v814_v14, %v814_v14  ;;  %v801_v22 = vsel %vm737_vm7, %v705_v7, %v769_v12  ;;  %vm735_vm9 = vcmp.gt.f32.partialorder %v703_v16, 0.0  ;;  %v767_v23 = vmul.f32 0.2, %v703_v16 }
  0xeb   : > { %959 = vst.msk [vmem:[%s1466_s26] sm:$0xf] %vm958_vm4, %v1169_v13  ;;  %v1172_v25 = vpack.c.bf16 %v801_v22, %v801_v22  ;;  %v817_v26 = vsel %vm753_vm8, %v721_v8, %v785_v15  ;;  %vm751_vm10 = vcmp.gt.f32.partialorder %v719_v17, 0.0  ;;  %v783_v27 = vmul.f32 0.2, %v719_v17  ;;  %v708_v28 = vld [vmem:[#allocation2 + $0x30] sm:$0xff]  ;;  %v539_v31 = vpop.f32.mrf.mxu0  ;;  %v603_v32 = vpop.f32.mrf.mxu1 }
  0xec   : > { %v724_v29 = vld [vmem:[#allocation2 + $0xb0] sm:$0xff]  ;;  %975 = vst.msk [vmem:[%s1466_s26 + $0x40] sm:$0xf] %vm958_vm4, %v1185_v21  ;;  %v1188_v33 = vpack.c.bf16 %v817_v26, %v817_v26  ;;  %v799_v34 = vsel %vm735_vm9, %v703_v16, %v767_v23  ;;  %vm740_vm11 = vcmp.gt.f32.partialorder %v708_v28, 0.0  ;;  %v772_v35 = vmul.f32 0.2, %v708_v28 }
  0xed   : > { %962 = vst.msk [vmem:[%s1466_s26 + $0xc] sm:$0xf] %vm958_vm4, %v1172_v25  ;;  %v1170_v36 = vpack.c.bf16 %v799_v34, %v799_v34  ;;  %v815_v37 = vsel %vm751_vm10, %v719_v17, %v783_v27  ;;  %vm756_vm12 = vcmp.gt.f32.partialorder %v724_v29, 0.0  ;;  %v788_v38 = vmul.f32 0.2, %v724_v29  ;;  %v1237_v42 = vpop.f32.mrf.mxu0  ;;  %v1253_v43 = vpop.f32.mrf.mxu1  ;;  %v706_v46 = vld [vmem:[#allocation2 + $0x20] sm:$0xff] }
  0xee   : > { %978 = vst.msk [vmem:[%s1466_s26 + $0x4c] sm:$0xf] %vm958_vm4, %v1188_v33  ;;  %v1186_v44 = vpack.c.bf16 %v815_v37, %v815_v37  ;;  %v804_v45 = vsel %vm740_vm11, %v708_v28, %v772_v35  ;;  %v722_v47 = vld [vmem:[#allocation2 + $0xa0] sm:$0xff]  ;;  %v657_v48 = vadd.f32 %v1459_v63, %v279_v24  ;;  %v639_v49 = vadd.f32 %v526_v9, %v261_v30  ;;  %v283_v61 = vld [vmem:[#allocation2 + $0xd8] sm:$0xff]  ;;  %v281_v3 = vld [vmem:[#allocation2 + $0xc8] sm:$0xff] }
  0xef   : > { %960 = vst.msk [vmem:[%s1466_s26 + $0x4] sm:$0xf] %vm958_vm4, %v1170_v36  ;;  %v1175_v51 = vpack.c.bf16 %v804_v45, %v804_v45  ;;  %v820_v52 = vsel %vm756_vm12, %v724_v29, %v788_v38  ;;  %vm738_vm13 = vcmp.gt.f32.partialorder %v706_v46, 0.0  ;;  %v770_v53 = vmul.f32 0.2, %v706_v46  ;;  %v542_v56 = vpop.f32.mrf.mxu0  ;;  %v606_v57 = vpop.f32.mrf.mxu1  ;;  %v270_v4 = vld [vmem:[#allocation2 + $0x70] sm:$0xff] }
  0xf0   : > { %976 = vst.msk [vmem:[%s1466_s26 + $0x44] sm:$0xf] %vm958_vm4, %v1186_v44  ;;  %v1191_v58 = vpack.c.bf16 %v820_v52, %v820_v52  ;;  %vm754_vm14 = vcmp.gt.f32.partialorder %v722_v47, 0.0  ;;  %v786_v59 = vmul.f32 0.2, %v722_v47  ;;  %v655_v60 = vadd.f32 %v1470_v10, %v277_v39  ;;  %v286_v6 = vld [vmem:[#allocation2 + $0xf0] sm:$0xff] }
  0xf1   : > { %690 = vst.msk [vmem:[#allocation2 + $0xb8] sm:$0xff] %vm223_vm0, %v657_v48  ;;  %672 = vst.msk [vmem:[#allocation2 + $0x28] sm:$0xff] %vm223_vm0, %v639_v49  ;;  %v802_v63 = vsel %vm738_vm13, %v706_v46, %v770_v53  ;;  %v644_v0 = vadd.f32 %v1236_v19, %v266_v40  ;;  %v660_v1 = vadd.f32 %v1252_v20, %v282_v41  ;;  %v1240_v5 = vpop.f32.mrf.mxu0  ;;  %v1256_v7 = vpop.f32.mrf.mxu1  ;;  %v709_v10 = vld [vmem:[#allocation2 + $0x38] sm:$0xff]  ;;  %v268_v13 = vld [vmem:[#allocation2 + $0x60] sm:$0xff] }
  0xf2   : > { %965 = vst.msk [vmem:[%s1466_s26 + $0x18] sm:$0xf] %vm958_vm4, %v1175_v51  ;;  %v642_v2 = vadd.f32 %v539_v31, %v264_v50  ;;  %981 = vst.msk [vmem:[%s1466_s26 + $0x58] sm:$0xf] %vm958_vm4, %v1191_v58  ;;  %v1173_v8 = vpack.c.bf16 %v802_v63, %v802_v63  ;;  %v818_v9 = vsel %vm754_vm14, %v722_v47, %v786_v59  ;;  %v284_v14 = vld [vmem:[#allocation2 + $0xe0] sm:$0xff]  ;;  %vm741_vm15 = vcmp.gt.f32.partialorder %v709_v10, 0.0 }
  0xf3   : > { %688 = vst.msk [vmem:[#allocation2 + $0xa8] sm:$0xff] %vm223_vm0, %v655_v60  ;;  %v658_v11 = vadd.f32 %v603_v32, %v280_v54  ;;  %v645_v12 = vadd.f32 %v1237_v42, %v267_v55  ;;  %v1189_v15 = vpack.c.bf16 %v818_v9, %v818_v9  ;;  %v773_v16 = vmul.f32 0.2, %v709_v10  ;;  %677 = vst.msk [vmem:[#allocation2 + $0x50] sm:$0xff] %vm223_vm0, %v644_v0  ;;  %v555_v18 = vpop.f32.mrf.mxu0  ;;  %v619_v19 = vpop.f32.mrf.mxu1  ;;  %v271_v20 = vld [vmem:[#allocation2 + $0x78] sm:$0xff]  ;;  %v269_v34 = vld [vmem:[#allocation2 + $0x68] sm:$0xff] }
  0xf4   : > { %693 = vst.msk [vmem:[#allocation2 + $0xd0] sm:$0xff] %vm223_vm0, %v660_v1  ;;  %675 = vst.msk [vmem:[#allocation2 + $0x40] sm:$0xff] %vm223_vm0, %v642_v2  ;;  %v661_v17 = vadd.f32 %v1253_v43, %v283_v61  ;;  %v287_v21 = vld [vmem:[#allocation2 + $0xf8] sm:$0xff]  ;;  %v643_v22 = vadd.f32 %v542_v56, %v265_v62  ;;  %v659_v23 = vadd.f32 %v606_v57, %v281_v3  ;;  %v285_v35 = vld [vmem:[#allocation2 + $0xe8] sm:$0xff] }
  0xf5   : > { %963 = vst.msk [vmem:[%s1466_s26 + $0x10] sm:$0xf] %vm958_vm4, %v1173_v8  ;;  %v648_v24 = vadd.f32 %v1240_v5, %v270_v4  ;;  %v664_v25 = vadd.f32 %v1256_v7, %v286_v6  ;;  %979 = vst.msk [vmem:[%s1466_s26 + $0x50] sm:$0xf] %vm958_vm4, %v1189_v15  ;;  %v805_v26 = vsel %vm741_vm15, %v709_v10, %v773_v16  ;;  %v1241_v29 = vpop.f32.mrf.mxu0  ;;  %v1257_v30 = vpop.f32.mrf.mxu1 }
  0xf6   : > { %691 = vst.msk [vmem:[#allocation2 + $0xc0] sm:$0xff] %vm223_vm0, %v658_v11  ;;  %678 = vst.msk [vmem:[#allocation2 + $0x58] sm:$0xff] %vm223_vm0, %v645_v12  ;;  %v646_v27 = vadd.f32 %v555_v18, %v268_v13  ;;  %v662_v28 = vadd.f32 %v619_v19, %v284_v14  ;;  %v1176_v31 = vpack.c.bf16 %v805_v26, %v805_v26 }
  0xf7   : > { %694 = vst.msk [vmem:[#allocation2 + $0xd8] sm:$0xff] %vm223_vm0, %v661_v17  ;;  %676 = vst.msk [vmem:[#allocation2 + $0x48] sm:$0xff] %vm223_vm0, %v643_v22  ;;  %v649_v32 = vadd.f32 %v1241_v29, %v271_v20  ;;  %v665_v33 = vadd.f32 %v1257_v30, %v287_v21  ;;  %v558_v38 = vpop.f32.mrf.mxu0  ;;  %v622_v39 = vpop.f32.mrf.mxu1 }
  0xf8   : > { %692 = vst.msk [vmem:[#allocation2 + $0xc8] sm:$0xff] %vm223_vm0, %v659_v23  ;;  %681 = vst.msk [vmem:[#allocation2 + $0x70] sm:$0xff] %vm223_vm0, %v648_v24  ;;  %v725_v36 = vld [vmem:[#allocation2 + $0xb8] sm:$0xff]  ;;  %v707_v37 = vld [vmem:[#allocation2 + $0x28] sm:$0xff]  ;;  %v647_v43 = vadd.f32 %v558_v38, %v269_v34  ;;  %v663_v44 = vadd.f32 %v622_v39, %v285_v35 }
  0xf9   : > { %697 = vst.msk [vmem:[#allocation2 + $0xf0] sm:$0xff] %vm223_vm0, %v664_v25  ;;  %679 = vst.msk [vmem:[#allocation2 + $0x60] sm:$0xff] %vm223_vm0, %v646_v27  ;;  %vm757_vm1 = vcmp.gt.f32.partialorder %v725_v36, 0.0  ;;  %v789_v40 = vmul.f32 0.2, %v725_v36  ;;  %vm739_vm2 = vcmp.gt.f32.partialorder %v707_v37, 0.0 }
  0xfa   : > { %695 = vst.msk [vmem:[#allocation2 + $0xe0] sm:$0xff] %vm223_vm0, %v662_v28  ;;  %v771_v41 = vmul.f32 0.2, %v707_v37  ;;  %682 = vst.msk [vmem:[#allocation2 + $0x78] sm:$0xff] %vm223_vm0, %v649_v32  ;;  %v723_v42 = vld [vmem:[#allocation2 + $0xa8] sm:$0xff]  ;;  %v712_v48 = vld [vmem:[#allocation2 + $0x50] sm:$0xff] }
  0xfb   : > { %966 = vst.msk [vmem:[%s1466_s26 + $0x1c] sm:$0xf] %vm958_vm4, %v1176_v31  ;;  %v821_v45 = vsel %vm757_vm1, %v725_v36, %v789_v40  ;;  %vm755_vm3 = vcmp.gt.f32.partialorder %v723_v42, 0.0  ;;  %v787_v47 = vmul.f32 0.2, %v723_v42  ;;  %v728_v49 = vld [vmem:[#allocation2 + $0xd0] sm:$0xff] }
  0xfc   : > { %698 = vst.msk [vmem:[#allocation2 + $0xf8] sm:$0xff] %vm223_vm0, %v665_v33  ;;  %v803_v46 = vsel %vm739_vm2, %v707_v37, %v771_v41  ;;  %v710_v50 = vld [vmem:[#allocation2 + $0x40] sm:$0xff]  ;;  %v1192_v51 = vpack.c.bf16 %v821_v45, %v821_v45  ;;  %vm744_vm5 = vcmp.gt.f32.partialorder %v712_v48, 0.0  ;;  %v776_v53 = vmul.f32 0.2, %v712_v48  ;;  %680 = vst.msk [vmem:[#allocation2 + $0x68] sm:$0xff] %vm223_vm0, %v647_v43 }
  0xfd   : > { %v1174_v52 = vpack.c.bf16 %v803_v46, %v803_v46  ;;  %v726_v54 = vld [vmem:[#allocation2 + $0xc0] sm:$0xff]  ;;  %v713_v55 = vld [vmem:[#allocation2 + $0x58] sm:$0xff]  ;;  %696 = vst.msk [vmem:[#allocation2 + $0xe8] sm:$0xff] %vm223_vm0, %v663_v44  ;;  %v819_v56 = vsel %vm755_vm3, %v723_v42, %v787_v47  ;;  %vm760_vm6 = vcmp.gt.f32.partialorder %v728_v49, 0.0  ;;  %v792_v57 = vmul.f32 0.2, %v728_v49 }
  0xfe   : > { %vm742_vm7 = vcmp.gt.f32.partialorder %v710_v50, 0.0  ;;  %v729_v58 = vld [vmem:[#allocation2 + $0xd8] sm:$0xff]  ;;  %982 = vst.msk [vmem:[%s1466_s26 + $0x5c] sm:$0xf] %vm958_vm4, %v1192_v51  ;;  %v1190_v59 = vpack.c.bf16 %v819_v56, %v819_v56  ;;  %v808_v60 = vsel %vm744_vm5, %v712_v48, %v776_v53  ;;  %v774_v61 = vmul.f32 0.2, %v710_v50 }
  0xff   : > { %964 = vst.msk [vmem:[%s1466_s26 + $0x14] sm:$0xf] %vm958_vm4, %v1174_v52  ;;  %vm758_vm8 = vcmp.gt.f32.partialorder %v726_v54, 0.0  ;;  %v711_v62 = vld [vmem:[#allocation2 + $0x48] sm:$0xff]  ;;  %v1179_v63 = vpack.c.bf16 %v808_v60, %v808_v60  ;;  %v824_v0 = vsel %vm760_vm6, %v728_v49, %v792_v57  ;;  %v790_v1 = vmul.f32 0.2, %v726_v54 }
 0x100   : > { %vm745_vm0 = vcmp.gt.f32.partialorder %v713_v55, 0.0  ;;  %v727_v2 = vld [vmem:[#allocation2 + $0xc8] sm:$0xff]  ;;  %980 = vst.msk [vmem:[%s1466_s26 + $0x54] sm:$0xf] %vm958_vm4, %v1190_v59  ;;  %v1195_v3 = vpack.c.bf16 %v824_v0, %v824_v0  ;;  %v806_v4 = vsel %vm742_vm7, %v710_v50, %v774_v61  ;;  %v777_v5 = vmul.f32 0.2, %v713_v55 }
 0x101   : > { %vm761_vm9 = vcmp.gt.f32.partialorder %v729_v58, 0.0  ;;  %v716_v6 = vld [vmem:[#allocation2 + $0x70] sm:$0xff]  ;;  %969 = vst.msk [vmem:[%s1466_s26 + $0x28] sm:$0xf] %vm958_vm4, %v1179_v63  ;;  %v1177_v7 = vpack.c.bf16 %v806_v4, %v806_v4  ;;  %v822_v8 = vsel %vm758_vm8, %v726_v54, %v790_v1  ;;  %v793_v9 = vmul.f32 0.2, %v729_v58 }
 0x102   : > { %vm743_vm10 = vcmp.gt.f32.partialorder %v711_v62, 0.0  ;;  %v732_v10 = vld [vmem:[#allocation2 + $0xf0] sm:$0xff]  ;;  %985 = vst.msk [vmem:[%s1466_s26 + $0x68] sm:$0xf] %vm958_vm4, %v1195_v3  ;;  %v1193_v11 = vpack.c.bf16 %v822_v8, %v822_v8  ;;  %v809_v12 = vsel %vm745_vm0, %v713_v55, %v777_v5  ;;  %v775_v13 = vmul.f32 0.2, %v711_v62 }
 0x103   : > { %vm759_vm11 = vcmp.gt.f32.partialorder %v727_v2, 0.0  ;;  %v714_v14 = vld [vmem:[#allocation2 + $0x60] sm:$0xff]  ;;  %967 = vst.msk [vmem:[%s1466_s26 + $0x20] sm:$0xf] %vm958_vm4, %v1177_v7  ;;  %v1180_v15 = vpack.c.bf16 %v809_v12, %v809_v12  ;;  %v825_v16 = vsel %vm761_vm9, %v729_v58, %v793_v9  ;;  %v791_v17 = vmul.f32 0.2, %v727_v2 }
 0x104   : > { %vm748_vm12 = vcmp.gt.f32.partialorder %v716_v6, 0.0  ;;  %v730_v18 = vld [vmem:[#allocation2 + $0xe0] sm:$0xff]  ;;  %983 = vst.msk [vmem:[%s1466_s26 + $0x60] sm:$0xf] %vm958_vm4, %v1193_v11  ;;  %v1196_v19 = vpack.c.bf16 %v825_v16, %v825_v16  ;;  %v807_v20 = vsel %vm743_vm10, %v711_v62, %v775_v13  ;;  %v780_v21 = vmul.f32 0.2, %v716_v6 }
 0x105   : > { %vm764_vm13 = vcmp.gt.f32.partialorder %v732_v10, 0.0  ;;  %v717_v22 = vld [vmem:[#allocation2 + $0x78] sm:$0xff]  ;;  %970 = vst.msk [vmem:[%s1466_s26 + $0x2c] sm:$0xf] %vm958_vm4, %v1180_v15  ;;  %v1178_v23 = vpack.c.bf16 %v807_v20, %v807_v20  ;;  %v823_v24 = vsel %vm759_vm11, %v727_v2, %v791_v17  ;;  %v796_v25 = vmul.f32 0.2, %v732_v10 }
 0x106   : > { %vm746_vm14 = vcmp.gt.f32.partialorder %v714_v14, 0.0  ;;  %v733_v26 = vld [vmem:[#allocation2 + $0xf8] sm:$0xff]  ;;  %986 = vst.msk [vmem:[%s1466_s26 + $0x6c] sm:$0xf] %vm958_vm4, %v1196_v19  ;;  %v1194_v27 = vpack.c.bf16 %v823_v24, %v823_v24  ;;  %v812_v28 = vsel %vm748_vm12, %v716_v6, %v780_v21  ;;  %v778_v29 = vmul.f32 0.2, %v714_v14 }
 0x107   : > { %vm762_vm15 = vcmp.gt.f32.partialorder %v730_v18, 0.0  ;;  %v715_v30 = vld [vmem:[#allocation2 + $0x68] sm:$0xff]  ;;  %968 = vst.msk [vmem:[%s1466_s26 + $0x24] sm:$0xf] %vm958_vm4, %v1178_v23  ;;  %v1183_v31 = vpack.c.bf16 %v812_v28, %v812_v28  ;;  %v828_v32 = vsel %vm764_vm13, %v732_v10, %v796_v25  ;;  %v794_v33 = vmul.f32 0.2, %v730_v18 }
 0x108   : > { %vm749_vm1 = vcmp.gt.f32.partialorder %v717_v22, 0.0  ;;  %v731_v34 = vld [vmem:[#allocation2 + $0xe8] sm:$0xff]  ;;  %984 = vst.msk [vmem:[%s1466_s26 + $0x64] sm:$0xf] %vm958_vm4, %v1194_v27  ;;  %v1199_v35 = vpack.c.bf16 %v828_v32, %v828_v32  ;;  %v810_v36 = vsel %vm746_vm14, %v714_v14, %v778_v29  ;;  %v781_v37 = vmul.f32 0.2, %v717_v22 }
 0x109   : > { %vm765_vm2 = vcmp.gt.f32.partialorder %v733_v26, 0.0  ;;  %973 = vst.msk [vmem:[%s1466_s26 + $0x38] sm:$0xf] %vm958_vm4, %v1183_v31  ;;  %v1181_v38 = vpack.c.bf16 %v810_v36, %v810_v36  ;;  %v826_v39 = vsel %vm762_vm15, %v730_v18, %v794_v33  ;;  %v797_v40 = vmul.f32 0.2, %v733_v26 }
 0x10a   : > { %vm747_vm3 = vcmp.gt.f32.partialorder %v715_v30, 0.0  ;;  %989 = vst.msk [vmem:[%s1466_s26 + $0x78] sm:$0xf] %vm958_vm4, %v1199_v35  ;;  %v1197_v41 = vpack.c.bf16 %v826_v39, %v826_v39  ;;  %v813_v42 = vsel %vm749_vm1, %v717_v22, %v781_v37  ;;  %v779_v43 = vmul.f32 0.2, %v715_v30 }
 0x10b   : > { %vm763_vm5 = vcmp.gt.f32.partialorder %v731_v34, 0.0  ;;  %971 = vst.msk [vmem:[%s1466_s26 + $0x30] sm:$0xf] %vm958_vm4, %v1181_v38  ;;  %v1184_v44 = vpack.c.bf16 %v813_v42, %v813_v42  ;;  %v829_v45 = vsel %vm765_vm2, %v733_v26, %v797_v40  ;;  %v795_v46 = vmul.f32 0.2, %v731_v34 }
 0x10c   : > { %987 = vst.msk [vmem:[%s1466_s26 + $0x70] sm:$0xf] %vm958_vm4, %v1197_v41  ;;  %v1200_v47 = vpack.c.bf16 %v829_v45, %v829_v45  ;;  %v811_v48 = vsel %vm747_vm3, %v715_v30, %v779_v43 }
 0x10d   : > { %974 = vst.msk [vmem:[%s1466_s26 + $0x3c] sm:$0xf] %vm958_vm4, %v1184_v44  ;;  %v1182_v49 = vpack.c.bf16 %v811_v48, %v811_v48  ;;  %v827_v50 = vsel %vm763_vm5, %v731_v34, %v795_v46 }
 0x10e   : > { %990 = vst.msk [vmem:[%s1466_s26 + $0x7c] sm:$0xf] %vm958_vm4, %v1200_v47  ;;  %v1198_v51 = vpack.c.bf16 %v827_v50, %v827_v50 }
 0x10f   : > { %972 = vst.msk [vmem:[%s1466_s26 + $0x34] sm:$0xf] %vm958_vm4, %v1182_v49 }
 0x110   : > { %988 = vst.msk [vmem:[%s1466_s26 + $0x74] sm:$0xf] %vm958_vm4, %v1198_v51 }
 0x111 PF: > { %s12_s11 = sadd.s32 1, %s1330_s11   ;;  %s1584_s9 = smov %s1326_s10 }
 0x112   : > { %p9_p5 = scmp.ge.s32.totalorder %s12_s11, 10   ;;  %s1585_s10 = smov %s1587_s12 }
 0x114   :  { %11 = sbr.rel (!%p9_p5) target bundleno = 2 (0x2), region = 69 }

// kernel: discriminator_forward.6
= control target key start
LH: loop header
LB: loop body
LE: loop exit
PB: predicated region body
PF: predicated region fallthrough
CT: control target
= control target key end

     0   :  { %s4448_s15 = smov 0   ;;  %s4450_s16 = smov 0   ;;  %s5979_s0 = inlined_call_operand.vmem [shape: bf16[512,1024], index: 0, kind: input, shape index: {}]   ;;  %s5980_s1 = inlined_call_operand.vmem [shape: bf16[1024,128], index: 1, kind: input, shape index: {}]   ;;  %s5981_s2 = inlined_call_operand.vmem [shape: f32[1,128], index: 2, kind: input, shape index: {}]   ;;  %s5982_s3 = inlined_call_operand.vmem [shape: f32[1,128], index: 3, kind: input, shape index: {}]   ;;  %s5983_s4 = inlined_call_operand.vmem [shape: bf16[512,128], index: 4, kind: output, shape index: {}]  }
   0x1   :  { %s4452_s17 = smov 0   ;;  %s4454_s18 = smov 0  }
   0x2   :  { %s4456_s19 = smov 0  }
   0x3 LB: > { %s26_s20 = sadd.s32 1, %s4415_s18  ;;  %p49_p1 = scmp.ne.s32.totalorder %s4407_s16, %s4403_s15  ;;  %s4419_s19 = sphi %s4456_s19, %s14_s19   ;;  %s4415_s18 = sphi %s4454_s18, %s6160_s18   ;;  %s4411_s17 = sphi %s4452_s17, %s6159_s17   ;;  %s4407_s16 = sphi %s4450_s16, %s6158_s16   ;;  %s4403_s15 = sphi %s4448_s15, %s6157_s15  }
   0x4   : > { %p27_p0 = scmp.ge.s32.totalorder %s26_s20, 2  ;;  %p50_p2 = scmp.eq.s32.totalorder %s4419_s19, 0 }
   0x5   : > { %s42_s22 = sadd.s32 1, %s4407_s16  ;;  %p3617_p5 = scmp.ge.s32.totalorder %s4419_s19, 2 }
   0x6   : > { %s6162_s20 = smov (%p27_p0, %s26_s20), 0  ;;  %p51_p3 = por %p50_p2, %p49_p1 }
   0x7   : > { %s38_s21 = ssub.s32 %s4415_s18, %s6162_s20  ;;  %195 = sbr.rel (%p3617_p5) target bundleno = 80 (0x50), region = 24 }
   0x8   : > { %p40_p4 = scmp.eq.s32.totalorder %s38_s21, 0 }
   0xa   : > { %s4483_s23 = scalar_select %p40_p4, %s4407_s16, %s42_s22  }
   0xc   : > { %198 = sbr.rel (!%p51_p3) target bundleno = 80 (0x50), region = 28  ;;  %s200_s24 = sand.u32 (%p51_p3), 1, %s4407_s16  }
   0xd   : > { %s3857_s25 = sshll.u32 (%p51_p3), %s4415_s18, 4  ;;  %s3618_s26 = sshll.u32 (%p51_p3), %s200_s24, 10 }
   0xe   : > { %s4491_s29 = scalar_lea.vmem (%p51_p3), %s5979_s0, %s3857_s25  ;;  %s4496_s30 = scalar_lea.vmem (%p51_p3), [#allocation3], %s3618_s26 }
   0xf   : > { %v221_v0 = vld [vmem:[%s4491_s29] sm:$0xff] (%p51_p3)  ;;  %v223_v1 = vld [vmem:[%s4491_s29 + $0x8] sm:$0xff] (%p51_p3) }
  0x10   : > { %v225_v2 = vld [vmem:[%s4491_s29 + $0x20] sm:$0xff] (%p51_p3)  ;;  %222 = vst [vmem:[%s4496_s30] sm:$0xff] (%p51_p3), %v221_v0  ;;  %224 = vst [vmem:[%s4496_s30 + $0x8] sm:$0xff] (%p51_p3), %v223_v1  ;;  %v227_v3 = vld [vmem:[%s4491_s29 + $0x28] sm:$0xff] (%p51_p3) }
  0x11   : > { %226 = vst [vmem:[%s4496_s30 + $0x10] sm:$0xff] %v225_v2  ;;  %v229_v4 = vld [vmem:[%s4491_s29 + $0x40] sm:$0xff]  ;;  %v231_v5 = vld [vmem:[%s4491_s29 + $0x48] sm:$0xff]  ;;  %228 = vst [vmem:[%s4496_s30 + $0x18] sm:$0xff] %v227_v3 }
  0x12   : > { %230 = vst [vmem:[%s4496_s30 + $0x20] sm:$0xff] %v229_v4  ;;  %232 = vst [vmem:[%s4496_s30 + $0x28] sm:$0xff] %v231_v5  ;;  %v233_v6 = vld [vmem:[%s4491_s29 + $0x60] sm:$0xff]  ;;  %v235_v7 = vld [vmem:[%s4491_s29 + $0x68] sm:$0xff] }
  0x13   : > { %v237_v8 = vld [vmem:[%s4491_s29 + $0x80] sm:$0xff]  ;;  %234 = vst [vmem:[%s4496_s30 + $0x30] sm:$0xff] %v233_v6  ;;  %236 = vst [vmem:[%s4496_s30 + $0x38] sm:$0xff] %v235_v7  ;;  %v239_v9 = vld [vmem:[%s4491_s29 + $0x88] sm:$0xff] }
  0x14   : > { %238 = vst [vmem:[%s4496_s30 + $0x40] sm:$0xff] %v237_v8  ;;  %v241_v10 = vld [vmem:[%s4491_s29 + $0xa0] sm:$0xff]  ;;  %v243_v11 = vld [vmem:[%s4491_s29 + $0xa8] sm:$0xff]  ;;  %240 = vst [vmem:[%s4496_s30 + $0x48] sm:$0xff] %v239_v9 }
  0x15   : > { %242 = vst [vmem:[%s4496_s30 + $0x50] sm:$0xff] %v241_v10  ;;  %244 = vst [vmem:[%s4496_s30 + $0x58] sm:$0xff] %v243_v11  ;;  %v245_v12 = vld [vmem:[%s4491_s29 + $0xc0] sm:$0xff]  ;;  %v247_v13 = vld [vmem:[%s4491_s29 + $0xc8] sm:$0xff] }
  0x16   : > { %v249_v14 = vld [vmem:[%s4491_s29 + $0xe0] sm:$0xff]  ;;  %246 = vst [vmem:[%s4496_s30 + $0x60] sm:$0xff] %v245_v12  ;;  %248 = vst [vmem:[%s4496_s30 + $0x68] sm:$0xff] %v247_v13  ;;  %v251_v15 = vld [vmem:[%s4491_s29 + $0xe8] sm:$0xff] }
  0x17   : > { %250 = vst [vmem:[%s4496_s30 + $0x70] sm:$0xff] %v249_v14  ;;  %v253_v16 = vld [vmem:[%s4491_s29 + $0x100] sm:$0xff]  ;;  %v255_v17 = vld [vmem:[%s4491_s29 + $0x108] sm:$0xff]  ;;  %252 = vst [vmem:[%s4496_s30 + $0x78] sm:$0xff] %v251_v15 }
  0x18   : > { %254 = vst [vmem:[%s4496_s30 + $0x80] sm:$0xff] %v253_v16  ;;  %256 = vst [vmem:[%s4496_s30 + $0x88] sm:$0xff] %v255_v17  ;;  %v257_v18 = vld [vmem:[%s4491_s29 + $0x120] sm:$0xff]  ;;  %v259_v19 = vld [vmem:[%s4491_s29 + $0x128] sm:$0xff] }
  0x19   : > { %v261_v20 = vld [vmem:[%s4491_s29 + $0x140] sm:$0xff]  ;;  %258 = vst [vmem:[%s4496_s30 + $0x90] sm:$0xff] %v257_v18  ;;  %260 = vst [vmem:[%s4496_s30 + $0x98] sm:$0xff] %v259_v19  ;;  %v263_v21 = vld [vmem:[%s4491_s29 + $0x148] sm:$0xff] }
  0x1a   : > { %262 = vst [vmem:[%s4496_s30 + $0xa0] sm:$0xff] %v261_v20  ;;  %v265_v22 = vld [vmem:[%s4491_s29 + $0x160] sm:$0xff]  ;;  %v267_v23 = vld [vmem:[%s4491_s29 + $0x168] sm:$0xff]  ;;  %264 = vst [vmem:[%s4496_s30 + $0xa8] sm:$0xff] %v263_v21 }
  0x1b   : > { %266 = vst [vmem:[%s4496_s30 + $0xb0] sm:$0xff] %v265_v22  ;;  %268 = vst [vmem:[%s4496_s30 + $0xb8] sm:$0xff] %v267_v23  ;;  %v269_v24 = vld [vmem:[%s4491_s29 + $0x180] sm:$0xff]  ;;  %v271_v25 = vld [vmem:[%s4491_s29 + $0x188] sm:$0xff] }
  0x1c   : > { %v273_v26 = vld [vmem:[%s4491_s29 + $0x1a0] sm:$0xff]  ;;  %270 = vst [vmem:[%s4496_s30 + $0xc0] sm:$0xff] %v269_v24  ;;  %272 = vst [vmem:[%s4496_s30 + $0xc8] sm:$0xff] %v271_v25  ;;  %v275_v27 = vld [vmem:[%s4491_s29 + $0x1a8] sm:$0xff] }
  0x1d   : > { %274 = vst [vmem:[%s4496_s30 + $0xd0] sm:$0xff] %v273_v26  ;;  %v277_v28 = vld [vmem:[%s4491_s29 + $0x1c0] sm:$0xff]  ;;  %v279_v29 = vld [vmem:[%s4491_s29 + $0x1c8] sm:$0xff]  ;;  %276 = vst [vmem:[%s4496_s30 + $0xd8] sm:$0xff] %v275_v27 }
  0x1e   : > { %278 = vst [vmem:[%s4496_s30 + $0xe0] sm:$0xff] %v277_v28  ;;  %280 = vst [vmem:[%s4496_s30 + $0xe8] sm:$0xff] %v279_v29  ;;  %v281_v30 = vld [vmem:[%s4491_s29 + $0x1e0] sm:$0xff]  ;;  %v283_v31 = vld [vmem:[%s4491_s29 + $0x1e8] sm:$0xff] }
  0x1f   : > { %v285_v32 = vld [vmem:[%s4491_s29 + $0x200] sm:$0xff]  ;;  %282 = vst [vmem:[%s4496_s30 + $0xf0] sm:$0xff] %v281_v30  ;;  %284 = vst [vmem:[%s4496_s30 + $0xf8] sm:$0xff] %v283_v31  ;;  %v287_v33 = vld [vmem:[%s4491_s29 + $0x208] sm:$0xff] }
  0x20   : > { %286 = vst [vmem:[%s4496_s30 + $0x100] sm:$0xff] %v285_v32  ;;  %v289_v34 = vld [vmem:[%s4491_s29 + $0x220] sm:$0xff]  ;;  %v291_v35 = vld [vmem:[%s4491_s29 + $0x228] sm:$0xff]  ;;  %288 = vst [vmem:[%s4496_s30 + $0x108] sm:$0xff] %v287_v33 }
  0x21   : > { %290 = vst [vmem:[%s4496_s30 + $0x110] sm:$0xff] %v289_v34  ;;  %292 = vst [vmem:[%s4496_s30 + $0x118] sm:$0xff] %v291_v35  ;;  %v293_v36 = vld [vmem:[%s4491_s29 + $0x240] sm:$0xff]  ;;  %v295_v37 = vld [vmem:[%s4491_s29 + $0x248] sm:$0xff] }
  0x22   : > { %v297_v38 = vld [vmem:[%s4491_s29 + $0x260] sm:$0xff]  ;;  %294 = vst [vmem:[%s4496_s30 + $0x120] sm:$0xff] %v293_v36  ;;  %296 = vst [vmem:[%s4496_s30 + $0x128] sm:$0xff] %v295_v37  ;;  %v299_v39 = vld [vmem:[%s4491_s29 + $0x268] sm:$0xff] }
  0x23   : > { %298 = vst [vmem:[%s4496_s30 + $0x130] sm:$0xff] %v297_v38  ;;  %v301_v40 = vld [vmem:[%s4491_s29 + $0x280] sm:$0xff]  ;;  %v303_v41 = vld [vmem:[%s4491_s29 + $0x288] sm:$0xff]  ;;  %300 = vst [vmem:[%s4496_s30 + $0x138] sm:$0xff] %v299_v39 }
  0x24   : > { %302 = vst [vmem:[%s4496_s30 + $0x140] sm:$0xff] %v301_v40  ;;  %304 = vst [vmem:[%s4496_s30 + $0x148] sm:$0xff] %v303_v41  ;;  %v305_v42 = vld [vmem:[%s4491_s29 + $0x2a0] sm:$0xff]  ;;  %v307_v43 = vld [vmem:[%s4491_s29 + $0x2a8] sm:$0xff] }
  0x25   : > { %v309_v44 = vld [vmem:[%s4491_s29 + $0x2c0] sm:$0xff]  ;;  %306 = vst [vmem:[%s4496_s30 + $0x150] sm:$0xff] %v305_v42  ;;  %308 = vst [vmem:[%s4496_s30 + $0x158] sm:$0xff] %v307_v43  ;;  %v311_v45 = vld [vmem:[%s4491_s29 + $0x2c8] sm:$0xff] }
  0x26   : > { %310 = vst [vmem:[%s4496_s30 + $0x160] sm:$0xff] %v309_v44  ;;  %v313_v46 = vld [vmem:[%s4491_s29 + $0x2e0] sm:$0xff]  ;;  %v315_v47 = vld [vmem:[%s4491_s29 + $0x2e8] sm:$0xff]  ;;  %312 = vst [vmem:[%s4496_s30 + $0x168] sm:$0xff] %v311_v45 }
  0x27   : > { %314 = vst [vmem:[%s4496_s30 + $0x170] sm:$0xff] %v313_v46  ;;  %316 = vst [vmem:[%s4496_s30 + $0x178] sm:$0xff] %v315_v47  ;;  %v317_v48 = vld [vmem:[%s4491_s29 + $0x300] sm:$0xff]  ;;  %v319_v49 = vld [vmem:[%s4491_s29 + $0x308] sm:$0xff] }
  0x28   : > { %v321_v50 = vld [vmem:[%s4491_s29 + $0x320] sm:$0xff]  ;;  %318 = vst [vmem:[%s4496_s30 + $0x180] sm:$0xff] %v317_v48  ;;  %320 = vst [vmem:[%s4496_s30 + $0x188] sm:$0xff] %v319_v49  ;;  %v323_v51 = vld [vmem:[%s4491_s29 + $0x328] sm:$0xff] }
  0x29   : > { %322 = vst [vmem:[%s4496_s30 + $0x190] sm:$0xff] %v321_v50  ;;  %v325_v52 = vld [vmem:[%s4491_s29 + $0x340] sm:$0xff]  ;;  %v327_v53 = vld [vmem:[%s4491_s29 + $0x348] sm:$0xff]  ;;  %324 = vst [vmem:[%s4496_s30 + $0x198] sm:$0xff] %v323_v51 }
  0x2a   : > { %326 = vst [vmem:[%s4496_s30 + $0x1a0] sm:$0xff] %v325_v52  ;;  %328 = vst [vmem:[%s4496_s30 + $0x1a8] sm:$0xff] %v327_v53  ;;  %v329_v54 = vld [vmem:[%s4491_s29 + $0x360] sm:$0xff]  ;;  %v331_v55 = vld [vmem:[%s4491_s29 + $0x368] sm:$0xff] }
  0x2b   : > { %v333_v56 = vld [vmem:[%s4491_s29 + $0x380] sm:$0xff]  ;;  %330 = vst [vmem:[%s4496_s30 + $0x1b0] sm:$0xff] %v329_v54  ;;  %332 = vst [vmem:[%s4496_s30 + $0x1b8] sm:$0xff] %v331_v55  ;;  %v335_v57 = vld [vmem:[%s4491_s29 + $0x388] sm:$0xff] }
  0x2c   : > { %334 = vst [vmem:[%s4496_s30 + $0x1c0] sm:$0xff] %v333_v56  ;;  %v337_v58 = vld [vmem:[%s4491_s29 + $0x3a0] sm:$0xff]  ;;  %v339_v59 = vld [vmem:[%s4491_s29 + $0x3a8] sm:$0xff]  ;;  %336 = vst [vmem:[%s4496_s30 + $0x1c8] sm:$0xff] %v335_v57 }
  0x2d   : > { %338 = vst [vmem:[%s4496_s30 + $0x1d0] sm:$0xff] %v337_v58  ;;  %340 = vst [vmem:[%s4496_s30 + $0x1d8] sm:$0xff] %v339_v59  ;;  %v341_v60 = vld [vmem:[%s4491_s29 + $0x3c0] sm:$0xff]  ;;  %v343_v61 = vld [vmem:[%s4491_s29 + $0x3c8] sm:$0xff] }
  0x2e   : > { %v345_v62 = vld [vmem:[%s4491_s29 + $0x3e0] sm:$0xff]  ;;  %342 = vst [vmem:[%s4496_s30 + $0x1e0] sm:$0xff] %v341_v60  ;;  %344 = vst [vmem:[%s4496_s30 + $0x1e8] sm:$0xff] %v343_v61  ;;  %v347_v63 = vld [vmem:[%s4491_s29 + $0x3e8] sm:$0xff] }
  0x2f   : > { %346 = vst [vmem:[%s4496_s30 + $0x1f0] sm:$0xff] %v345_v62  ;;  %v349_v0 = vld [vmem:[%s4491_s29 + $0x400] sm:$0xff]  ;;  %v351_v1 = vld [vmem:[%s4491_s29 + $0x408] sm:$0xff]  ;;  %348 = vst [vmem:[%s4496_s30 + $0x1f8] sm:$0xff] %v347_v63 }
  0x30   : > { %350 = vst [vmem:[%s4496_s30 + $0x200] sm:$0xff] %v349_v0  ;;  %352 = vst [vmem:[%s4496_s30 + $0x208] sm:$0xff] %v351_v1  ;;  %v353_v2 = vld [vmem:[%s4491_s29 + $0x420] sm:$0xff]  ;;  %v355_v3 = vld [vmem:[%s4491_s29 + $0x428] sm:$0xff] }
  0x31   : > { %v357_v4 = vld [vmem:[%s4491_s29 + $0x440] sm:$0xff]  ;;  %354 = vst [vmem:[%s4496_s30 + $0x210] sm:$0xff] %v353_v2  ;;  %356 = vst [vmem:[%s4496_s30 + $0x218] sm:$0xff] %v355_v3  ;;  %v359_v5 = vld [vmem:[%s4491_s29 + $0x448] sm:$0xff] }
  0x32   : > { %358 = vst [vmem:[%s4496_s30 + $0x220] sm:$0xff] %v357_v4  ;;  %v361_v6 = vld [vmem:[%s4491_s29 + $0x460] sm:$0xff]  ;;  %v363_v7 = vld [vmem:[%s4491_s29 + $0x468] sm:$0xff]  ;;  %360 = vst [vmem:[%s4496_s30 + $0x228] sm:$0xff] %v359_v5 }
  0x33   : > { %362 = vst [vmem:[%s4496_s30 + $0x230] sm:$0xff] %v361_v6  ;;  %364 = vst [vmem:[%s4496_s30 + $0x238] sm:$0xff] %v363_v7  ;;  %v365_v8 = vld [vmem:[%s4491_s29 + $0x480] sm:$0xff]  ;;  %v367_v9 = vld [vmem:[%s4491_s29 + $0x488] sm:$0xff] }
  0x34   : > { %v369_v10 = vld [vmem:[%s4491_s29 + $0x4a0] sm:$0xff]  ;;  %366 = vst [vmem:[%s4496_s30 + $0x240] sm:$0xff] %v365_v8  ;;  %368 = vst [vmem:[%s4496_s30 + $0x248] sm:$0xff] %v367_v9  ;;  %v371_v11 = vld [vmem:[%s4491_s29 + $0x4a8] sm:$0xff] }
  0x35   : > { %370 = vst [vmem:[%s4496_s30 + $0x250] sm:$0xff] %v369_v10  ;;  %v373_v12 = vld [vmem:[%s4491_s29 + $0x4c0] sm:$0xff]  ;;  %v375_v13 = vld [vmem:[%s4491_s29 + $0x4c8] sm:$0xff]  ;;  %372 = vst [vmem:[%s4496_s30 + $0x258] sm:$0xff] %v371_v11 }
  0x36   : > { %374 = vst [vmem:[%s4496_s30 + $0x260] sm:$0xff] %v373_v12  ;;  %376 = vst [vmem:[%s4496_s30 + $0x268] sm:$0xff] %v375_v13  ;;  %v377_v14 = vld [vmem:[%s4491_s29 + $0x4e0] sm:$0xff]  ;;  %v379_v15 = vld [vmem:[%s4491_s29 + $0x4e8] sm:$0xff] }
  0x37   : > { %v381_v16 = vld [vmem:[%s4491_s29 + $0x500] sm:$0xff]  ;;  %378 = vst [vmem:[%s4496_s30 + $0x270] sm:$0xff] %v377_v14  ;;  %380 = vst [vmem:[%s4496_s30 + $0x278] sm:$0xff] %v379_v15  ;;  %v383_v17 = vld [vmem:[%s4491_s29 + $0x508] sm:$0xff] }
  0x38   : > { %382 = vst [vmem:[%s4496_s30 + $0x280] sm:$0xff] %v381_v16  ;;  %v385_v18 = vld [vmem:[%s4491_s29 + $0x520] sm:$0xff]  ;;  %v387_v19 = vld [vmem:[%s4491_s29 + $0x528] sm:$0xff]  ;;  %384 = vst [vmem:[%s4496_s30 + $0x288] sm:$0xff] %v383_v17 }
  0x39   : > { %386 = vst [vmem:[%s4496_s30 + $0x290] sm:$0xff] %v385_v18  ;;  %388 = vst [vmem:[%s4496_s30 + $0x298] sm:$0xff] %v387_v19  ;;  %v389_v20 = vld [vmem:[%s4491_s29 + $0x540] sm:$0xff]  ;;  %v391_v21 = vld [vmem:[%s4491_s29 + $0x548] sm:$0xff] }
  0x3a   : > { %v393_v22 = vld [vmem:[%s4491_s29 + $0x560] sm:$0xff]  ;;  %390 = vst [vmem:[%s4496_s30 + $0x2a0] sm:$0xff] %v389_v20  ;;  %392 = vst [vmem:[%s4496_s30 + $0x2a8] sm:$0xff] %v391_v21  ;;  %v395_v23 = vld [vmem:[%s4491_s29 + $0x568] sm:$0xff] }
  0x3b   : > { %394 = vst [vmem:[%s4496_s30 + $0x2b0] sm:$0xff] %v393_v22  ;;  %v397_v24 = vld [vmem:[%s4491_s29 + $0x580] sm:$0xff]  ;;  %v399_v25 = vld [vmem:[%s4491_s29 + $0x588] sm:$0xff]  ;;  %396 = vst [vmem:[%s4496_s30 + $0x2b8] sm:$0xff] %v395_v23 }
  0x3c   : > { %398 = vst [vmem:[%s4496_s30 + $0x2c0] sm:$0xff] %v397_v24  ;;  %400 = vst [vmem:[%s4496_s30 + $0x2c8] sm:$0xff] %v399_v25  ;;  %v401_v26 = vld [vmem:[%s4491_s29 + $0x5a0] sm:$0xff]  ;;  %v403_v27 = vld [vmem:[%s4491_s29 + $0x5a8] sm:$0xff] }
  0x3d   : > { %v405_v28 = vld [vmem:[%s4491_s29 + $0x5c0] sm:$0xff]  ;;  %402 = vst [vmem:[%s4496_s30 + $0x2d0] sm:$0xff] %v401_v26  ;;  %404 = vst [vmem:[%s4496_s30 + $0x2d8] sm:$0xff] %v403_v27  ;;  %v407_v29 = vld [vmem:[%s4491_s29 + $0x5c8] sm:$0xff] }
  0x3e   : > { %406 = vst [vmem:[%s4496_s30 + $0x2e0] sm:$0xff] %v405_v28  ;;  %v409_v30 = vld [vmem:[%s4491_s29 + $0x5e0] sm:$0xff]  ;;  %v411_v31 = vld [vmem:[%s4491_s29 + $0x5e8] sm:$0xff]  ;;  %408 = vst [vmem:[%s4496_s30 + $0x2e8] sm:$0xff] %v407_v29 }
  0x3f   : > { %410 = vst [vmem:[%s4496_s30 + $0x2f0] sm:$0xff] %v409_v30  ;;  %412 = vst [vmem:[%s4496_s30 + $0x2f8] sm:$0xff] %v411_v31  ;;  %v413_v32 = vld [vmem:[%s4491_s29 + $0x600] sm:$0xff]  ;;  %v415_v33 = vld [vmem:[%s4491_s29 + $0x608] sm:$0xff] }
  0x40   : > { %v417_v34 = vld [vmem:[%s4491_s29 + $0x620] sm:$0xff]  ;;  %414 = vst [vmem:[%s4496_s30 + $0x300] sm:$0xff] %v413_v32  ;;  %416 = vst [vmem:[%s4496_s30 + $0x308] sm:$0xff] %v415_v33  ;;  %v419_v35 = vld [vmem:[%s4491_s29 + $0x628] sm:$0xff] }
  0x41   : > { %418 = vst [vmem:[%s4496_s30 + $0x310] sm:$0xff] %v417_v34  ;;  %v421_v36 = vld [vmem:[%s4491_s29 + $0x640] sm:$0xff]  ;;  %v423_v37 = vld [vmem:[%s4491_s29 + $0x648] sm:$0xff]  ;;  %420 = vst [vmem:[%s4496_s30 + $0x318] sm:$0xff] %v419_v35 }
  0x42   : > { %422 = vst [vmem:[%s4496_s30 + $0x320] sm:$0xff] %v421_v36  ;;  %424 = vst [vmem:[%s4496_s30 + $0x328] sm:$0xff] %v423_v37  ;;  %v425_v38 = vld [vmem:[%s4491_s29 + $0x660] sm:$0xff]  ;;  %v427_v39 = vld [vmem:[%s4491_s29 + $0x668] sm:$0xff] }
  0x43   : > { %v429_v40 = vld [vmem:[%s4491_s29 + $0x680] sm:$0xff]  ;;  %426 = vst [vmem:[%s4496_s30 + $0x330] sm:$0xff] %v425_v38  ;;  %428 = vst [vmem:[%s4496_s30 + $0x338] sm:$0xff] %v427_v39  ;;  %v431_v41 = vld [vmem:[%s4491_s29 + $0x688] sm:$0xff] }
  0x44   : > { %430 = vst [vmem:[%s4496_s30 + $0x340] sm:$0xff] %v429_v40  ;;  %v433_v42 = vld [vmem:[%s4491_s29 + $0x6a0] sm:$0xff]  ;;  %v435_v43 = vld [vmem:[%s4491_s29 + $0x6a8] sm:$0xff]  ;;  %432 = vst [vmem:[%s4496_s30 + $0x348] sm:$0xff] %v431_v41 }
  0x45   : > { %434 = vst [vmem:[%s4496_s30 + $0x350] sm:$0xff] %v433_v42  ;;  %436 = vst [vmem:[%s4496_s30 + $0x358] sm:$0xff] %v435_v43  ;;  %v437_v44 = vld [vmem:[%s4491_s29 + $0x6c0] sm:$0xff]  ;;  %v439_v45 = vld [vmem:[%s4491_s29 + $0x6c8] sm:$0xff] }
  0x46   : > { %v441_v46 = vld [vmem:[%s4491_s29 + $0x6e0] sm:$0xff]  ;;  %438 = vst [vmem:[%s4496_s30 + $0x360] sm:$0xff] %v437_v44  ;;  %440 = vst [vmem:[%s4496_s30 + $0x368] sm:$0xff] %v439_v45  ;;  %v443_v47 = vld [vmem:[%s4491_s29 + $0x6e8] sm:$0xff] }
  0x47   : > { %442 = vst [vmem:[%s4496_s30 + $0x370] sm:$0xff] %v441_v46  ;;  %v445_v48 = vld [vmem:[%s4491_s29 + $0x700] sm:$0xff]  ;;  %v447_v49 = vld [vmem:[%s4491_s29 + $0x708] sm:$0xff]  ;;  %444 = vst [vmem:[%s4496_s30 + $0x378] sm:$0xff] %v443_v47 }
  0x48   : > { %446 = vst [vmem:[%s4496_s30 + $0x380] sm:$0xff] %v445_v48  ;;  %448 = vst [vmem:[%s4496_s30 + $0x388] sm:$0xff] %v447_v49  ;;  %v449_v50 = vld [vmem:[%s4491_s29 + $0x720] sm:$0xff]  ;;  %v451_v51 = vld [vmem:[%s4491_s29 + $0x728] sm:$0xff] }
  0x49   : > { %v453_v52 = vld [vmem:[%s4491_s29 + $0x740] sm:$0xff]  ;;  %450 = vst [vmem:[%s4496_s30 + $0x390] sm:$0xff] %v449_v50  ;;  %452 = vst [vmem:[%s4496_s30 + $0x398] sm:$0xff] %v451_v51  ;;  %v455_v53 = vld [vmem:[%s4491_s29 + $0x748] sm:$0xff] }
  0x4a   : > { %454 = vst [vmem:[%s4496_s30 + $0x3a0] sm:$0xff] %v453_v52  ;;  %v457_v54 = vld [vmem:[%s4491_s29 + $0x760] sm:$0xff]  ;;  %v459_v55 = vld [vmem:[%s4491_s29 + $0x768] sm:$0xff]  ;;  %456 = vst [vmem:[%s4496_s30 + $0x3a8] sm:$0xff] %v455_v53 }
  0x4b   : > { %458 = vst [vmem:[%s4496_s30 + $0x3b0] sm:$0xff] %v457_v54  ;;  %460 = vst [vmem:[%s4496_s30 + $0x3b8] sm:$0xff] %v459_v55  ;;  %v461_v56 = vld [vmem:[%s4491_s29 + $0x780] sm:$0xff]  ;;  %v463_v57 = vld [vmem:[%s4491_s29 + $0x788] sm:$0xff] }
  0x4c   : > { %v465_v58 = vld [vmem:[%s4491_s29 + $0x7a0] sm:$0xff]  ;;  %462 = vst [vmem:[%s4496_s30 + $0x3c0] sm:$0xff] %v461_v56  ;;  %464 = vst [vmem:[%s4496_s30 + $0x3c8] sm:$0xff] %v463_v57  ;;  %v467_v59 = vld [vmem:[%s4491_s29 + $0x7a8] sm:$0xff] }
  0x4d   : > { %466 = vst [vmem:[%s4496_s30 + $0x3d0] sm:$0xff] %v465_v58  ;;  %v469_v60 = vld [vmem:[%s4491_s29 + $0x7c0] sm:$0xff]  ;;  %v471_v61 = vld [vmem:[%s4491_s29 + $0x7c8] sm:$0xff]  ;;  %468 = vst [vmem:[%s4496_s30 + $0x3d8] sm:$0xff] %v467_v59 }
  0x4e   : > { %470 = vst [vmem:[%s4496_s30 + $0x3e0] sm:$0xff] %v469_v60  ;;  %472 = vst [vmem:[%s4496_s30 + $0x3e8] sm:$0xff] %v471_v61  ;;  %v473_v62 = vld [vmem:[%s4491_s29 + $0x7e0] sm:$0xff]  ;;  %v475_v63 = vld [vmem:[%s4491_s29 + $0x7e8] sm:$0xff] }
  0x4f   : > { %474 = vst [vmem:[%s4496_s30 + $0x3f0] sm:$0xff] %v473_v62  ;;  %476 = vst [vmem:[%s4496_s30 + $0x3f8] sm:$0xff] %v475_v63 }
  0x50 PF: > { %p3621_p6 = scmp.ge.s32.totalorder %s4419_s19, 1  ;;  %p493_p7 = scmp.lt.s32.totalorder %s4419_s19, 3 }
  0x52   : > { %p494_p8 = pnand %p3621_p6, %p493_p7 }
  0x53   : > { %s500_s5 = sand.u32 (!%p494_p8), 1, %s4403_s15   ;;  %s3623_s6 = sshll.u32 (!%p494_p8), %s4411_s17, 6 }
  0x54   : > { %497 = sbr.rel (%p494_p8) target bundleno = 932 (0x3a4), region = 55  ;;  %s3622_s7 = sshll.u32 (!%p494_p8), %s500_s5, 10 }
  0x55   : > { %p545_p9 = scmp.lt.s32.totalorder (!%p494_p8), %s3623_s6, 127  ;;  %s4760_s12 = scalar_lea.vmem (!%p494_p8), [#allocation3], %s3622_s7 }
  0x56   : > { %p3625_p10 = scmp.ne.s32.totalorder (!%p494_p8), %s4411_s17, 0 }
  0x59   : > { %s6164_s6 = smov (!%p545_p9, %s3623_s6), 127  ;;  %572 = sbr.rel (%p3625_p10) target bundleno = 127 (0x7f), region = 63 }
  0x5a   : > { %s3624_s8 = sshll.u32 %s6164_s6, 2 }
  0x5b   : > { %s4758_s11 = scalar_lea.vmem %s5980_s1, %s3624_s8 }
  0x5e   : > { %v4421_v0 = vmov 0.0  }
  0x5f   : > { %573 = vst [vmem:[#allocation2 + $0xb0] sm:$0xff] %v4421_v0  ;;  %574 = vst [vmem:[#allocation2 + $0x1b0] sm:$0xff] %v4421_v0 }
  0x60   : > { %575 = vst [vmem:[#allocation2 + $0xd8] sm:$0xff] %v4421_v0  ;;  %576 = vst [vmem:[#allocation2 + $0x18] sm:$0xff] %v4421_v0 }
  0x61   : > { %577 = vst [vmem:[#allocation2 + $0x50] sm:$0xff] %v4421_v0  ;;  %578 = vst [vmem:[#allocation2 + $0x168] sm:$0xff] %v4421_v0 }
  0x62   : > { %579 = vst [vmem:[#allocation2 + $0x130] sm:$0xff] %v4421_v0  ;;  %580 = vst [vmem:[#allocation2 + $0x48] sm:$0xff] %v4421_v0 }
  0x63   : > { %581 = vst [vmem:[#allocation2 + $0x180] sm:$0xff] %v4421_v0  ;;  %582 = vst [vmem:[#allocation2 + $0x110] sm:$0xff] %v4421_v0 }
  0x64   : > { %583 = vst [vmem:[#allocation2 + $0x118] sm:$0xff] %v4421_v0  ;;  %584 = vst [vmem:[#allocation2 + $0x98] sm:$0xff] %v4421_v0 }
  0x65   : > { %585 = vst [vmem:[#allocation2 + $0x120] sm:$0xff] %v4421_v0  ;;  %586 = vst [vmem:[#allocation2 + $0x150] sm:$0xff] %v4421_v0 }
  0x66   : > { %587 = vst [vmem:[#allocation2 + $0x108] sm:$0xff] %v4421_v0  ;;  %588 = vst [vmem:[#allocation2 + $0x60] sm:$0xff] %v4421_v0 }
  0x67   : > { %589 = vst [vmem:[#allocation2 + $0xe0] sm:$0xff] %v4421_v0  ;;  %590 = vst [vmem:[#allocation2 + $0x188] sm:$0xff] %v4421_v0 }
  0x68   : > { %591 = vst [vmem:[#allocation2 + $0x138] sm:$0xff] %v4421_v0  ;;  %592 = vst [vmem:[#allocation2 + $0x140] sm:$0xff] %v4421_v0 }
  0x69   : > { %593 = vst [vmem:[#allocation2 + $0x80] sm:$0xff] %v4421_v0  ;;  %594 = vst [vmem:[#allocation2 + $0x1a8] sm:$0xff] %v4421_v0 }
  0x6a   : > { %595 = vst [vmem:[#allocation2 + $0x1b8] sm:$0xff] %v4421_v0  ;;  %596 = vst [vmem:[#allocation2 + $0x28] sm:$0xff] %v4421_v0 }
  0x6b   : > { %597 = vst [vmem:[#allocation2 + $0x1e8] sm:$0xff] %v4421_v0  ;;  %598 = vst [vmem:[#allocation2 + $0xf8] sm:$0xff] %v4421_v0 }
  0x6c   : > { %599 = vst [vmem:[#allocation2 + $0x160] sm:$0xff] %v4421_v0  ;;  %600 = vst [vmem:[#allocation2 + $0x30] sm:$0xff] %v4421_v0 }
  0x6d   : > { %601 = vst [vmem:[#allocation2 + $0x1e0] sm:$0xff] %v4421_v0  ;;  %602 = vst [vmem:[#allocation2] sm:$0xff] %v4421_v0 }
  0x6e   : > { %603 = vst [vmem:[#allocation2 + $0xf0] sm:$0xff] %v4421_v0  ;;  %604 = vst [vmem:[#allocation2 + $0x8] sm:$0xff] %v4421_v0 }
  0x6f   : > { %605 = vst [vmem:[#allocation2 + $0x148] sm:$0xff] %v4421_v0  ;;  %606 = vst [vmem:[#allocation2 + $0x1d0] sm:$0xff] %v4421_v0 }
  0x70   : > { %607 = vst [vmem:[#allocation2 + $0x100] sm:$0xff] %v4421_v0  ;;  %608 = vst [vmem:[#allocation2 + $0xc8] sm:$0xff] %v4421_v0 }
  0x71   : > { %609 = vst [vmem:[#allocation2 + $0x40] sm:$0xff] %v4421_v0  ;;  %610 = vst [vmem:[#allocation2 + $0x1f8] sm:$0xff] %v4421_v0 }
  0x72   : > { %611 = vst [vmem:[#allocation2 + $0x20] sm:$0xff] %v4421_v0  ;;  %612 = vst [vmem:[#allocation2 + $0x128] sm:$0xff] %v4421_v0 }
  0x73   : > { %613 = vst [vmem:[#allocation2 + $0x1a0] sm:$0xff] %v4421_v0  ;;  %614 = vst [vmem:[#allocation2 + $0x1f0] sm:$0xff] %v4421_v0 }
  0x74   : > { %615 = vst [vmem:[#allocation2 + $0xe8] sm:$0xff] %v4421_v0  ;;  %616 = vst [vmem:[#allocation2 + $0x78] sm:$0xff] %v4421_v0 }
  0x75   : > { %617 = vst [vmem:[#allocation2 + $0x70] sm:$0xff] %v4421_v0  ;;  %618 = vst [vmem:[#allocation2 + $0x90] sm:$0xff] %v4421_v0 }
  0x76   : > { %619 = vst [vmem:[#allocation2 + $0x1d8] sm:$0xff] %v4421_v0  ;;  %620 = vst [vmem:[#allocation2 + $0xd0] sm:$0xff] %v4421_v0 }
  0x77   : > { %621 = vst [vmem:[#allocation2 + $0xb8] sm:$0xff] %v4421_v0  ;;  %622 = vst [vmem:[#allocation2 + $0x88] sm:$0xff] %v4421_v0 }
  0x78   : > { %623 = vst [vmem:[#allocation2 + $0xa8] sm:$0xff] %v4421_v0  ;;  %624 = vst [vmem:[#allocation2 + $0x1c8] sm:$0xff] %v4421_v0 }
  0x79   : > { %625 = vst [vmem:[#allocation2 + $0x170] sm:$0xff] %v4421_v0  ;;  %626 = vst [vmem:[#allocation2 + $0x178] sm:$0xff] %v4421_v0 }
  0x7a   : > { %627 = vst [vmem:[#allocation2 + $0x68] sm:$0xff] %v4421_v0  ;;  %628 = vst [vmem:[#allocation2 + $0x190] sm:$0xff] %v4421_v0 }
  0x7b   : > { %629 = vst [vmem:[#allocation2 + $0x198] sm:$0xff] %v4421_v0  ;;  %630 = vst [vmem:[#allocation2 + $0x38] sm:$0xff] %v4421_v0 }
  0x7c   : > { %631 = vst [vmem:[#allocation2 + $0xc0] sm:$0xff] %v4421_v0  ;;  %632 = vst [vmem:[#allocation2 + $0x1c0] sm:$0xff] %v4421_v0 }
  0x7d   : > { %633 = vst [vmem:[#allocation2 + $0x158] sm:$0xff] %v4421_v0  ;;  %634 = vst [vmem:[#allocation2 + $0x10] sm:$0xff] %v4421_v0 }
  0x7e   : > { %635 = vst [vmem:[#allocation2 + $0x58] sm:$0xff] %v4421_v0  ;;  %636 = vst [vmem:[#allocation2 + $0xa0] sm:$0xff] %v4421_v0 }
  0x7f PF: > { %v4155_v1 = vld [vmem:[%s4758_s11 + $0x38] sm:$0xff]   ;;  %v4422_v2 = vmov 0   ;;  %v4157_v4 = vld [vmem:[%s4758_s11 + $0x30] sm:$0xff]   ;;  %v4159_v6 = vld [vmem:[%s4758_s11 + $0x28] sm:$0xff]   ;;  %p3786_p11 = scmp.ne.s32.totalorder %s4411_s17, 1 }
  0x80   : > { %1725 = vmatprep.subr.bf16.mxu0 %v4422_v2  ;;  %2014 = vmatprep.subr.bf16.mxu1 %v4422_v2  ;;  %v4156_v3 = vld [vmem:[%s4758_s11 + $0xb8] sm:$0xff]   ;;  %v4158_v5 = vld [vmem:[%s4758_s11 + $0xb0] sm:$0xff]   ;;  %v4160_v7 = vld [vmem:[%s4758_s11 + $0xa8] sm:$0xff]  }
  0x81   : > { %1726 = vmatpush1.bf16.msra.mxu0 %v4155_v1  ;;  %2015 = vmatpush1.bf16.msra.mxu1 %v4156_v3  ;;  %v4161_v8 = vld [vmem:[%s4758_s11 + $0x20] sm:$0xff]   ;;  %v4163_v10 = vld [vmem:[%s4758_s11 + $0x18] sm:$0xff]   ;;  %v4165_v12 = vld [vmem:[%s4758_s11 + $0x10] sm:$0xff]  }
  0x82   : > { %1727 = vmatprep.subr.bf16.mxu0 %v4422_v2  ;;  %2016 = vmatprep.subr.bf16.mxu1 %v4422_v2  ;;  %v4162_v9 = vld [vmem:[%s4758_s11 + $0xa0] sm:$0xff]   ;;  %v4164_v11 = vld [vmem:[%s4758_s11 + $0x98] sm:$0xff]   ;;  %v4166_v13 = vld [vmem:[%s4758_s11 + $0x90] sm:$0xff]  }
  0x83   : > { %v4167_v14 = vld [vmem:[%s4758_s11 + $0x8] sm:$0xff]   ;;  %v4169_v16 = vld [vmem:[%s4758_s11] sm:$0xff]   ;;  %v4171_v18 = vld [vmem:[%s4758_s11 + $0x78] sm:$0xff]  }
  0x84   : > { %v4168_v15 = vld [vmem:[%s4758_s11 + $0x88] sm:$0xff]   ;;  %v4170_v17 = vld [vmem:[%s4758_s11 + $0x80] sm:$0xff]   ;;  %v4172_v19 = vld [vmem:[%s4758_s11 + $0xf8] sm:$0xff]  }
  0x85   : > { %1728 = vmatpush1.bf16.msra.mxu0 %v4157_v4  ;;  %2017 = vmatpush1.bf16.msra.mxu1 %v4158_v5  ;;  %v4189_v20 = vld [vmem:[%s4760_s12 + $0x4] ss:$16 sps:$4 sm:$0xff]   ;;  %v4192_v22 = vld [vmem:[%s4760_s12 + $0xc] ss:$16 sps:$4 sm:$0xff]   ;;  %v4187_v36 = vld [vmem:[%s4760_s12] ss:$16 sps:$4 sm:$0xff]  }
  0x86   : > { %1729 = vmatprep.subr.bf16.mxu0 %v4422_v2  ;;  %2018 = vmatprep.subr.bf16.mxu1 %v4422_v2  ;;  %v4173_v21 = vld [vmem:[%s4758_s11 + $0x70] sm:$0xff]   ;;  %v4175_v24 = vld [vmem:[%s4758_s11 + $0x68] sm:$0xff]   ;;  %v4177_v26 = vld [vmem:[%s4758_s11 + $0x60] sm:$0xff]  }
  0x87   : > { %v4174_v23 = vld [vmem:[%s4758_s11 + $0xf0] sm:$0xff]   ;;  %1757 = vmatprep.mubr.bf16.mxu0 %v4189_v20  ;;  %2046 = vmatprep.mubr.bf16.mxu1 %v4192_v22  ;;  %v4176_v25 = vld [vmem:[%s4758_s11 + $0xe8] sm:$0xff]   ;;  %v4178_v27 = vld [vmem:[%s4758_s11 + $0xe0] sm:$0xff]  }
  0x88   : > { %v4179_v28 = vld [vmem:[%s4758_s11 + $0x58] sm:$0xff]   ;;  %v4181_v30 = vld [vmem:[%s4758_s11 + $0x50] sm:$0xff]   ;;  %v4183_v32 = vld [vmem:[%s4758_s11 + $0x48] sm:$0xff]  }
  0x89   : > { %1730 = vmatpush1.bf16.msra.mxu0 %v4159_v6  ;;  %2019 = vmatpush1.bf16.msra.mxu1 %v4160_v7  ;;  %v4180_v29 = vld [vmem:[%s4758_s11 + $0xd8] sm:$0xff]   ;;  %v4182_v31 = vld [vmem:[%s4758_s11 + $0xd0] sm:$0xff]   ;;  %v4184_v33 = vld [vmem:[%s4758_s11 + $0xc8] sm:$0xff]  }
  0x8a   : > { %1731 = vmatprep.subr.bf16.mxu0 %v4422_v2  ;;  %2020 = vmatprep.subr.bf16.mxu1 %v4422_v2  ;;  %v4185_v34 = vld [vmem:[%s4758_s11 + $0x40] sm:$0xff]   ;;  %v4190_v37 = vld [vmem:[%s4760_s12 + $0x8] ss:$16 sps:$4 sm:$0xff]   ;;  %v4195_v39 = vld [vmem:[%s4760_s12 + $0x2c] ss:$16 sps:$4 sm:$0xff]  }
  0x8b   : > { %v4186_v35 = vld [vmem:[%s4758_s11 + $0xc0] sm:$0xff]   ;;  %v4198_v41 = vld [vmem:[%s4760_s12 + $0x28] ss:$16 sps:$4 sm:$0xff]   ;;  %v4201_v43 = vld [vmem:[%s4760_s12 + $0x4c] ss:$16 sps:$4 sm:$0xff]  }
  0x8c   : > { %v4193_v38 = vld [vmem:[%s4760_s12 + $0x24] ss:$16 sps:$4 sm:$0xff]   ;;  %v4197_v40 = vld [vmem:[%s4760_s12 + $0x20] ss:$16 sps:$4 sm:$0xff]   ;;  %v4204_v45 = vld [vmem:[%s4760_s12 + $0x48] ss:$16 sps:$4 sm:$0xff]  }
  0x8d   : > { %1732 = vmatpush1.bf16.msra.mxu0 %v4161_v8  ;;  %2021 = vmatpush1.bf16.msra.mxu1 %v4162_v9  ;;  %v4199_v42 = vld [vmem:[%s4760_s12 + $0x44] ss:$16 sps:$4 sm:$0xff]   ;;  %v4203_v44 = vld [vmem:[%s4760_s12 + $0x40] ss:$16 sps:$4 sm:$0xff]   ;;  %v4207_v47 = vld [vmem:[%s4760_s12 + $0x6c] ss:$16 sps:$4 sm:$0xff]  }
  0x8e   : > { %1733 = vmatprep.subr.bf16.mxu0 %v4422_v2  ;;  %2022 = vmatprep.subr.bf16.mxu1 %v4422_v2  ;;  %v4205_v46 = vld [vmem:[%s4760_s12 + $0x64] ss:$16 sps:$4 sm:$0xff]   ;;  %v4209_v48 = vld [vmem:[%s4760_s12 + $0x60] ss:$16 sps:$4 sm:$0xff]   ;;  %v4210_v49 = vld [vmem:[%s4760_s12 + $0x68] ss:$16 sps:$4 sm:$0xff]  }
  0x8f   : > { %v4211_v50 = vld [vmem:[%s4760_s12 + $0x84] ss:$16 sps:$4 sm:$0xff]   ;;  %v4213_v51 = vld [vmem:[%s4760_s12 + $0x8c] ss:$16 sps:$4 sm:$0xff]   ;;  %v4215_v52 = vld [vmem:[%s4760_s12 + $0x80] ss:$16 sps:$4 sm:$0xff]  }
  0x90   : > { %v4216_v53 = vld [vmem:[%s4760_s12 + $0x88] ss:$16 sps:$4 sm:$0xff]   ;;  %v4217_v54 = vld [vmem:[%s4760_s12 + $0xa4] ss:$16 sps:$4 sm:$0xff]   ;;  %v4219_v55 = vld [vmem:[%s4760_s12 + $0xac] ss:$16 sps:$4 sm:$0xff]  }
  0x91   : > { %1734 = vmatpush1.bf16.msra.mxu0 %v4163_v10  ;;  %2023 = vmatpush1.bf16.msra.mxu1 %v4164_v11  ;;  %v4221_v56 = vld [vmem:[%s4760_s12 + $0xa0] ss:$16 sps:$4 sm:$0xff]   ;;  %v4222_v57 = vld [vmem:[%s4760_s12 + $0xa8] ss:$16 sps:$4 sm:$0xff]   ;;  %v4223_v58 = vld [vmem:[%s4760_s12 + $0xc4] ss:$16 sps:$4 sm:$0xff]  }
  0x92   : > { %1735 = vmatprep.subr.bf16.mxu0 %v4422_v2  ;;  %2024 = vmatprep.subr.bf16.mxu1 %v4422_v2  ;;  %v4225_v59 = vld [vmem:[%s4760_s12 + $0xcc] ss:$16 sps:$4 sm:$0xff]   ;;  %v4227_v60 = vld [vmem:[%s4760_s12 + $0xc0] ss:$16 sps:$4 sm:$0xff]   ;;  %v4228_v61 = vld [vmem:[%s4760_s12 + $0xc8] ss:$16 sps:$4 sm:$0xff]  }
  0x93   : > { %v4229_v62 = vld [vmem:[%s4760_s12 + $0xe4] ss:$16 sps:$4 sm:$0xff]   ;;  %v4231_v63 = vld [vmem:[%s4760_s12 + $0xec] ss:$16 sps:$4 sm:$0xff]   ;;  %v4233_v0 = vld [vmem:[%s4760_s12 + $0xe0] ss:$16 sps:$4 sm:$0xff]  }
  0x94   : > { %v4234_v1 = vld [vmem:[%s4760_s12 + $0xe8] ss:$16 sps:$4 sm:$0xff]   ;;  %v4237_v3 = vld [vmem:[%s4760_s12 + $0x10c] ss:$16 sps:$4 sm:$0xff]   ;;  %v4239_v4 = vld [vmem:[%s4760_s12 + $0x100] ss:$16 sps:$4 sm:$0xff]  }
  0x95   : > { %1736 = vmatpush1.bf16.msra.mxu0 %v4165_v12  ;;  %2025 = vmatpush1.bf16.msra.mxu1 %v4166_v13  ;;  %v4240_v5 = vld [vmem:[%s4760_s12 + $0x108] ss:$16 sps:$4 sm:$0xff]   ;;  %v4241_v6 = vld [vmem:[%s4760_s12 + $0x124] ss:$16 sps:$4 sm:$0xff]   ;;  %v4243_v7 = vld [vmem:[%s4760_s12 + $0x12c] ss:$16 sps:$4 sm:$0xff]  }
  0x96   : > { %1737 = vmatprep.subr.bf16.mxu0 %v4422_v2  ;;  %2026 = vmatprep.subr.bf16.mxu1 %v4422_v2  ;;  %v4245_v8 = vld [vmem:[%s4760_s12 + $0x120] ss:$16 sps:$4 sm:$0xff]   ;;  %v4246_v9 = vld [vmem:[%s4760_s12 + $0x128] ss:$16 sps:$4 sm:$0xff]   ;;  %v4247_v10 = vld [vmem:[%s4760_s12 + $0x144] ss:$16 sps:$4 sm:$0xff]  }
  0x97   : > { %v4249_v11 = vld [vmem:[%s4760_s12 + $0x14c] ss:$16 sps:$4 sm:$0xff]   ;;  %v4251_v12 = vld [vmem:[%s4760_s12 + $0x140] ss:$16 sps:$4 sm:$0xff]   ;;  %v4252_v13 = vld [vmem:[%s4760_s12 + $0x148] ss:$16 sps:$4 sm:$0xff]  }
  0x98   : > { %v4263_v20 = vld [vmem:[%s4760_s12 + $0x180] ss:$16 sps:$4 sm:$0xff]   ;;  %v4265_v22 = vld [vmem:[%s4760_s12 + $0x1a4] ss:$16 sps:$4 sm:$0xff]  }
  0x99   : > { %1738 = vmatpush1.bf16.msra.mxu0 %v4167_v14  ;;  %2027 = vmatpush1.bf16.msra.mxu1 %v4168_v15  ;;  %v4253_v14 = vld [vmem:[%s4760_s12 + $0x164] ss:$16 sps:$4 sm:$0xff]   ;;  %v4255_v15 = vld [vmem:[%s4760_s12 + $0x16c] ss:$16 sps:$4 sm:$0xff]  }
  0x9a   : > { %1739 = vmatprep.subr.bf16.mxu0 %v4422_v2  ;;  %2028 = vmatprep.subr.bf16.mxu1 %v4422_v2 }
  0x9d   : > { %1740 = vmatpush1.bf16.msra.mxu0 %v4169_v16  ;;  %2029 = vmatpush1.bf16.msra.mxu1 %v4170_v17  ;;  %v4257_v16 = vld [vmem:[%s4760_s12 + $0x160] ss:$16 sps:$4 sm:$0xff]   ;;  %v4258_v17 = vld [vmem:[%s4760_s12 + $0x168] ss:$16 sps:$4 sm:$0xff]  }
  0x9e   : > { %1741 = vmatprep.subr.bf16.mxu0 %v4422_v2  ;;  %2030 = vmatprep.subr.bf16.mxu1 %v4422_v2 }
  0xa1   : > { %1742 = vmatpush2.bf16.msra.mxu0 %v4171_v18  ;;  %2031 = vmatpush2.bf16.msra.mxu1 %v4172_v19  ;;  %v4259_v18 = vld [vmem:[%s4760_s12 + $0x184] ss:$16 sps:$4 sm:$0xff]   ;;  %v4261_v19 = vld [vmem:[%s4760_s12 + $0x18c] ss:$16 sps:$4 sm:$0xff]  }
  0xa2   : > { %1743 = vmatprep.subr.bf16.mxu0 %v4422_v2  ;;  %2032 = vmatprep.subr.bf16.mxu1 %v4422_v2 }
  0xa5   : > { %1744 = vmatpush2.bf16.msra.mxu0 %v4173_v21  ;;  %2033 = vmatpush2.bf16.msra.mxu1 %v4174_v23  ;;  %v4264_v21 = vld [vmem:[%s4760_s12 + $0x188] ss:$16 sps:$4 sm:$0xff]   ;;  %v4267_v23 = vld [vmem:[%s4760_s12 + $0x1ac] ss:$16 sps:$4 sm:$0xff]  }
  0xa6   : > { %1745 = vmatprep.subr.bf16.mxu0 %v4422_v2  ;;  %2034 = vmatprep.subr.bf16.mxu1 %v4422_v2 }
  0xa9   : > { %1746 = vmatpush2.bf16.msra.mxu0 %v4175_v24  ;;  %2035 = vmatpush2.bf16.msra.mxu1 %v4176_v25  ;;  %v4269_v24 = vld [vmem:[%s4760_s12 + $0x1a0] ss:$16 sps:$4 sm:$0xff]   ;;  %v4270_v25 = vld [vmem:[%s4760_s12 + $0x1a8] ss:$16 sps:$4 sm:$0xff]  }
  0xaa   : > { %1747 = vmatprep.subr.bf16.mxu0 %v4422_v2  ;;  %2036 = vmatprep.subr.bf16.mxu1 %v4422_v2 }
  0xad   : > { %1748 = vmatpush2.bf16.msra.mxu0 %v4177_v26  ;;  %2037 = vmatpush2.bf16.msra.mxu1 %v4178_v27  ;;  %v4271_v26 = vld [vmem:[%s4760_s12 + $0x1c4] ss:$16 sps:$4 sm:$0xff]   ;;  %v4273_v27 = vld [vmem:[%s4760_s12 + $0x1cc] ss:$16 sps:$4 sm:$0xff]  }
  0xae   : > { %1749 = vmatprep.subr.bf16.mxu0 %v4422_v2  ;;  %2038 = vmatprep.subr.bf16.mxu1 %v4422_v2 }
  0xb1   : > { %1750 = vmatpush2.bf16.msra.mxu0 %v4179_v28  ;;  %2039 = vmatpush2.bf16.msra.mxu1 %v4180_v29  ;;  %v4275_v28 = vld [vmem:[%s4760_s12 + $0x1c0] ss:$16 sps:$4 sm:$0xff]   ;;  %v4276_v29 = vld [vmem:[%s4760_s12 + $0x1c8] ss:$16 sps:$4 sm:$0xff]  }
  0xb2   : > { %1751 = vmatprep.subr.bf16.mxu0 %v4422_v2  ;;  %2040 = vmatprep.subr.bf16.mxu1 %v4422_v2 }
  0xb5   : > { %1752 = vmatpush2.bf16.msra.mxu0 %v4181_v30  ;;  %2041 = vmatpush2.bf16.msra.mxu1 %v4182_v31  ;;  %v4277_v30 = vld [vmem:[%s4760_s12 + $0x1e4] ss:$16 sps:$4 sm:$0xff]   ;;  %v4279_v31 = vld [vmem:[%s4760_s12 + $0x1ec] ss:$16 sps:$4 sm:$0xff]  }
  0xb6   : > { %1753 = vmatprep.subr.bf16.mxu0 %v4422_v2  ;;  %2042 = vmatprep.subr.bf16.mxu1 %v4422_v2 }
  0xb9   : > { %1754 = vmatpush2.bf16.msra.mxu0 %v4183_v32  ;;  %2043 = vmatpush2.bf16.msra.mxu1 %v4184_v33  ;;  %v4281_v32 = vld [vmem:[%s4760_s12 + $0x1e0] ss:$16 sps:$4 sm:$0xff]   ;;  %v4282_v33 = vld [vmem:[%s4760_s12 + $0x1e8] ss:$16 sps:$4 sm:$0xff]  }
  0xba   : > { %1755 = vmatprep.subr.bf16.mxu0 %v4422_v2  ;;  %2044 = vmatprep.subr.bf16.mxu1 %v4422_v2  ;;  %v4235_v2 = vld [vmem:[%s4760_s12 + $0x104] ss:$16 sps:$4 sm:$0xff]  }
  0xbd   : > { %1756 = vmatpush2.bf16.msra.mxu0 %v4185_v34  ;;  %2045 = vmatpush2.bf16.msra.mxu1 %v4186_v35  ;;  %v4283_v34 = vld [vmem:[%s4760_s12 + $0x204] ss:$16 sps:$4 sm:$0xff]   ;;  %v4285_v35 = vld [vmem:[%s4760_s12 + $0x20c] ss:$16 sps:$4 sm:$0xff]  }
  0xc0   : > { %1758 = vmatmul.mubr.bf16.vlgmr.msra.gmra.mxu0 %v4187_v36  ;;  %2047 = vmatmul.mubr.bf16.vlgmr.msra.gmra.mxu1 %v4190_v37  ;;  %v4287_v36 = vld [vmem:[%s4760_s12 + $0x200] ss:$16 sps:$4 sm:$0xff]   ;;  %v4288_v37 = vld [vmem:[%s4760_s12 + $0x208] ss:$16 sps:$4 sm:$0xff]  }
  0xc1   : > { %1765 = vmatprep.mubr.bf16.mxu0 %v4193_v38  ;;  %2054 = vmatprep.mubr.bf16.mxu1 %v4195_v39  ;;  %v4289_v38 = vld [vmem:[%s4760_s12 + $0x224] ss:$16 sps:$4 sm:$0xff]   ;;  %v4291_v39 = vld [vmem:[%s4760_s12 + $0x22c] ss:$16 sps:$4 sm:$0xff]  }
  0xc8   : > { %1766 = vmatmul.mubr.bf16.gmra.mxu0 %v4197_v40  ;;  %2055 = vmatmul.mubr.bf16.gmra.mxu1 %v4198_v41  ;;  %v4293_v40 = vld [vmem:[%s4760_s12 + $0x220] ss:$16 sps:$4 sm:$0xff]   ;;  %v4294_v41 = vld [vmem:[%s4760_s12 + $0x228] ss:$16 sps:$4 sm:$0xff]  }
  0xc9   : > { %1773 = vmatprep.mubr.bf16.mxu0 %v4199_v42  ;;  %2062 = vmatprep.mubr.bf16.mxu1 %v4201_v43  ;;  %v4295_v42 = vld [vmem:[%s4760_s12 + $0x244] ss:$16 sps:$4 sm:$0xff]   ;;  %v4297_v43 = vld [vmem:[%s4760_s12 + $0x24c] ss:$16 sps:$4 sm:$0xff]  }
  0xd0   : > { %1774 = vmatmul.mubr.bf16.gmra.mxu0 %v4203_v44  ;;  %2063 = vmatmul.mubr.bf16.gmra.mxu1 %v4204_v45  ;;  %v4299_v44 = vld [vmem:[%s4760_s12 + $0x240] ss:$16 sps:$4 sm:$0xff]   ;;  %v4300_v45 = vld [vmem:[%s4760_s12 + $0x248] ss:$16 sps:$4 sm:$0xff]  }
  0xd1   : > { %1781 = vmatprep.mubr.bf16.mxu0 %v4205_v46  ;;  %2070 = vmatprep.mubr.bf16.mxu1 %v4207_v47  ;;  %v4301_v46 = vld [vmem:[%s4760_s12 + $0x264] ss:$16 sps:$4 sm:$0xff]   ;;  %v4303_v47 = vld [vmem:[%s4760_s12 + $0x26c] ss:$16 sps:$4 sm:$0xff]  }
  0xd8   : > { %1782 = vmatmul.mubr.bf16.gmra.mxu0 %v4209_v48  ;;  %2071 = vmatmul.mubr.bf16.gmra.mxu1 %v4210_v49  ;;  %v4305_v48 = vld [vmem:[%s4760_s12 + $0x260] ss:$16 sps:$4 sm:$0xff]   ;;  %v4306_v49 = vld [vmem:[%s4760_s12 + $0x268] ss:$16 sps:$4 sm:$0xff]  }
  0xd9   : > { %1789 = vmatprep.mubr.bf16.mxu0 %v4211_v50  ;;  %2078 = vmatprep.mubr.bf16.mxu1 %v4213_v51  ;;  %v4307_v50 = vld [vmem:[%s4760_s12 + $0x284] ss:$16 sps:$4 sm:$0xff]   ;;  %v4309_v51 = vld [vmem:[%s4760_s12 + $0x28c] ss:$16 sps:$4 sm:$0xff]  }
  0xe0   : > { %1790 = vmatmul.mubr.bf16.gmra.mxu0 %v4215_v52  ;;  %2079 = vmatmul.mubr.bf16.gmra.mxu1 %v4216_v53  ;;  %v4311_v52 = vld [vmem:[%s4760_s12 + $0x280] ss:$16 sps:$4 sm:$0xff]   ;;  %v4312_v53 = vld [vmem:[%s4760_s12 + $0x288] ss:$16 sps:$4 sm:$0xff]  }
  0xe1   : > { %1797 = vmatprep.mubr.bf16.mxu0 %v4217_v54  ;;  %2086 = vmatprep.mubr.bf16.mxu1 %v4219_v55  ;;  %v4313_v54 = vld [vmem:[%s4760_s12 + $0x2a4] ss:$16 sps:$4 sm:$0xff]   ;;  %v4315_v55 = vld [vmem:[%s4760_s12 + $0x2ac] ss:$16 sps:$4 sm:$0xff]  }
  0xe8   : > { %1798 = vmatmul.mubr.bf16.gmra.mxu0 %v4221_v56  ;;  %2087 = vmatmul.mubr.bf16.gmra.mxu1 %v4222_v57  ;;  %v4317_v56 = vld [vmem:[%s4760_s12 + $0x2a0] ss:$16 sps:$4 sm:$0xff]   ;;  %v4318_v57 = vld [vmem:[%s4760_s12 + $0x2a8] ss:$16 sps:$4 sm:$0xff]  }
  0xe9   : > { %1805 = vmatprep.mubr.bf16.mxu0 %v4223_v58  ;;  %2094 = vmatprep.mubr.bf16.mxu1 %v4225_v59  ;;  %v4319_v58 = vld [vmem:[%s4760_s12 + $0x2c4] ss:$16 sps:$4 sm:$0xff]   ;;  %v4321_v59 = vld [vmem:[%s4760_s12 + $0x2cc] ss:$16 sps:$4 sm:$0xff]  }
  0xf0   : > { %1806 = vmatmul.mubr.bf16.gmra.mxu0 %v4227_v60  ;;  %2095 = vmatmul.mubr.bf16.gmra.mxu1 %v4228_v61  ;;  %v4323_v60 = vld [vmem:[%s4760_s12 + $0x2c0] ss:$16 sps:$4 sm:$0xff]   ;;  %v4324_v61 = vld [vmem:[%s4760_s12 + $0x2c8] ss:$16 sps:$4 sm:$0xff]  }
  0xf1   : > { %1813 = vmatprep.mubr.bf16.mxu0 %v4229_v62  ;;  %2102 = vmatprep.mubr.bf16.mxu1 %v4231_v63  ;;  %v4325_v62 = vld [vmem:[%s4760_s12 + $0x2e4] ss:$16 sps:$4 sm:$0xff]   ;;  %v4327_v63 = vld [vmem:[%s4760_s12 + $0x2ec] ss:$16 sps:$4 sm:$0xff]  }
  0xf8   : > { %1814 = vmatmul.mubr.bf16.gmra.mxu0 %v4233_v0  ;;  %2103 = vmatmul.mubr.bf16.gmra.mxu1 %v4234_v1  ;;  %v4329_v0 = vld [vmem:[%s4760_s12 + $0x2e0] ss:$16 sps:$4 sm:$0xff]   ;;  %v4330_v1 = vld [vmem:[%s4760_s12 + $0x2e8] ss:$16 sps:$4 sm:$0xff]  }
  0xf9   : > { %1821 = vmatprep.mubr.bf16.mxu0 %v4235_v2  ;;  %2110 = vmatprep.mubr.bf16.mxu1 %v4237_v3  ;;  %v4331_v2 = vld [vmem:[%s4760_s12 + $0x304] ss:$16 sps:$4 sm:$0xff]   ;;  %v4333_v3 = vld [vmem:[%s4760_s12 + $0x30c] ss:$16 sps:$4 sm:$0xff]  }
 0x100   : > { %1822 = vmatmul.mubr.bf16.gmra.mxu0 %v4239_v4  ;;  %2111 = vmatmul.mubr.bf16.gmra.mxu1 %v4240_v5  ;;  %v4335_v4 = vld [vmem:[%s4760_s12 + $0x300] ss:$16 sps:$4 sm:$0xff]   ;;  %v4336_v5 = vld [vmem:[%s4760_s12 + $0x308] ss:$16 sps:$4 sm:$0xff]  }
 0x101   : > { %1829 = vmatprep.mubr.bf16.mxu0 %v4241_v6  ;;  %2118 = vmatprep.mubr.bf16.mxu1 %v4243_v7  ;;  %v4337_v6 = vld [vmem:[%s4760_s12 + $0x324] ss:$16 sps:$4 sm:$0xff]   ;;  %v4339_v7 = vld [vmem:[%s4760_s12 + $0x32c] ss:$16 sps:$4 sm:$0xff]  }
 0x108   : > { %1830 = vmatmul.mubr.bf16.gmra.mxu0 %v4245_v8  ;;  %2119 = vmatmul.mubr.bf16.gmra.mxu1 %v4246_v9  ;;  %v637_v9 = vld [vmem:[#allocation2 + $0xb0] sm:$0xff] }
 0x109   : > { %1837 = vmatprep.mubr.bf16.mxu0 %v4247_v10  ;;  %2126 = vmatprep.mubr.bf16.mxu1 %v4249_v11 }
 0x110   : > { %1838 = vmatmul.mubr.bf16.gmra.mxu0 %v4251_v12  ;;  %2127 = vmatmul.mubr.bf16.gmra.mxu1 %v4252_v13 }
 0x111   : > { %1845 = vmatprep.mubr.bf16.mxu0 %v4253_v14  ;;  %2134 = vmatprep.mubr.bf16.mxu1 %v4255_v15 }
 0x118   : > { %1846 = vmatmul.mubr.bf16.gmra.mxu0 %v4257_v16  ;;  %2135 = vmatmul.mubr.bf16.gmra.mxu1 %v4258_v17  ;;  %v4341_v16 = vld [vmem:[%s4760_s12 + $0x320] ss:$16 sps:$4 sm:$0xff]  }
 0x119   : > { %1853 = vmatprep.mubr.bf16.mxu0 %v4259_v18  ;;  %2142 = vmatprep.mubr.bf16.mxu1 %v4261_v19  ;;  %v638_v17 = vld [vmem:[#allocation2 + $0x1b0] sm:$0xff]  ;;  %v4342_v19 = vld [vmem:[%s4760_s12 + $0x328] ss:$16 sps:$4 sm:$0xff]  }
 0x120   : > { %1854 = vmatmul.mubr.bf16.gmra.mxu0 %v4263_v20  ;;  %2143 = vmatmul.mubr.bf16.gmra.mxu1 %v4264_v21  ;;  %v4343_v20 = vld [vmem:[%s4760_s12 + $0x344] ss:$16 sps:$4 sm:$0xff]  }
 0x121   : > { %1861 = vmatprep.mubr.bf16.mxu0 %v4265_v22  ;;  %2150 = vmatprep.mubr.bf16.mxu1 %v4267_v23  ;;  %v4345_v23 = vld [vmem:[%s4760_s12 + $0x34c] ss:$16 sps:$4 sm:$0xff]  }
 0x128   : > { %1862 = vmatmul.mubr.bf16.gmra.mxu0 %v4269_v24  ;;  %2151 = vmatmul.mubr.bf16.gmra.mxu1 %v4270_v25 }
 0x129   : > { %1869 = vmatprep.mubr.bf16.mxu0 %v4271_v26  ;;  %2158 = vmatprep.mubr.bf16.mxu1 %v4273_v27  ;;  %v639_v27 = vld [vmem:[#allocation2 + $0xd8] sm:$0xff] }
 0x130   : > { %1870 = vmatmul.mubr.bf16.gmra.mxu0 %v4275_v28  ;;  %2159 = vmatmul.mubr.bf16.gmra.mxu1 %v4276_v29 }
 0x131   : > { %1877 = vmatprep.mubr.bf16.mxu0 %v4277_v30  ;;  %2166 = vmatprep.mubr.bf16.mxu1 %v4279_v31 }
 0x138   : > { %1878 = vmatmul.mubr.bf16.gmra.mxu0 %v4281_v32  ;;  %2167 = vmatmul.mubr.bf16.gmra.mxu1 %v4282_v33 }
 0x139   : > { %1885 = vmatprep.mubr.bf16.mxu0 %v4283_v34  ;;  %2174 = vmatprep.mubr.bf16.mxu1 %v4285_v35  ;;  %v4347_v34 = vld [vmem:[%s4760_s12 + $0x340] ss:$16 sps:$4 sm:$0xff]   ;;  %v640_v35 = vld [vmem:[#allocation2 + $0x18] sm:$0xff] }
 0x140   : > { %1886 = vmatmul.mubr.bf16.gmra.mxu0 %v4287_v36  ;;  %2175 = vmatmul.mubr.bf16.gmra.mxu1 %v4288_v37  ;;  %v4348_v37 = vld [vmem:[%s4760_s12 + $0x348] ss:$16 sps:$4 sm:$0xff]  }
 0x141   : > { %1893 = vmatprep.mubr.bf16.mxu0 %v4289_v38  ;;  %2182 = vmatprep.mubr.bf16.mxu1 %v4291_v39  ;;  %v4349_v38 = vld [vmem:[%s4760_s12 + $0x364] ss:$16 sps:$4 sm:$0xff]  }
 0x148   : > { %1894 = vmatmul.mubr.bf16.gmra.mxu0 %v4293_v40  ;;  %2183 = vmatmul.mubr.bf16.gmra.mxu1 %v4294_v41  ;;  %v4351_v41 = vld [vmem:[%s4760_s12 + $0x36c] ss:$16 sps:$4 sm:$0xff]  }
 0x149   : > { %1901 = vmatprep.mubr.bf16.mxu0 %v4295_v42  ;;  %2190 = vmatprep.mubr.bf16.mxu1 %v4297_v43 }
 0x150   : > { %1902 = vmatmul.mubr.bf16.gmra.mxu0 %v4299_v44  ;;  %2191 = vmatmul.mubr.bf16.gmra.mxu1 %v4300_v45  ;;  %v641_v45 = vld [vmem:[#allocation2 + $0x50] sm:$0xff] }
 0x151   : > { %1909 = vmatprep.mubr.bf16.mxu0 %v4301_v46  ;;  %2198 = vmatprep.mubr.bf16.mxu1 %v4303_v47 }
 0x158   : > { %1910 = vmatmul.mubr.bf16.gmra.mxu0 %v4305_v48  ;;  %2199 = vmatmul.mubr.bf16.gmra.mxu1 %v4306_v49 }
 0x159   : > { %1917 = vmatprep.mubr.bf16.mxu0 %v4307_v50  ;;  %2206 = vmatprep.mubr.bf16.mxu1 %v4309_v51 }
 0x160   : > { %1918 = vmatmul.mubr.bf16.gmra.mxu0 %v4311_v52  ;;  %2207 = vmatmul.mubr.bf16.gmra.mxu1 %v4312_v53  ;;  %v4353_v52 = vld [vmem:[%s4760_s12 + $0x360] ss:$16 sps:$4 sm:$0xff]   ;;  %v642_v53 = vld [vmem:[#allocation2 + $0x168] sm:$0xff] }
 0x161   : > { %1925 = vmatprep.mubr.bf16.mxu0 %v4313_v54  ;;  %2214 = vmatprep.mubr.bf16.mxu1 %v4315_v55  ;;  %v4354_v55 = vld [vmem:[%s4760_s12 + $0x368] ss:$16 sps:$4 sm:$0xff]  }
 0x168   : > { %1926 = vmatmul.mubr.bf16.gmra.mxu0 %v4317_v56  ;;  %2215 = vmatmul.mubr.bf16.gmra.mxu1 %v4318_v57  ;;  %v4357_v56 = vld [vmem:[%s4760_s12 + $0x384] ss:$16 sps:$4 sm:$0xff]  }
 0x169   : > { %1933 = vmatprep.mubr.bf16.mxu0 %v4319_v58  ;;  %2222 = vmatprep.mubr.bf16.mxu1 %v4321_v59  ;;  %v4360_v59 = vld [vmem:[%s4760_s12 + $0x38c] ss:$16 sps:$4 sm:$0xff]  }
 0x170   : > { %1934 = vmatmul.mubr.bf16.gmra.mxu0 %v4323_v60  ;;  %2223 = vmatmul.mubr.bf16.gmra.mxu1 %v4324_v61 }
 0x171   : > { %1941 = vmatprep.mubr.bf16.mxu0 %v4325_v62  ;;  %2230 = vmatprep.mubr.bf16.mxu1 %v4327_v63  ;;  %v643_v63 = vld [vmem:[#allocation2 + $0x130] sm:$0xff] }
 0x178   : > { %1942 = vmatmul.mubr.bf16.gmra.mxu0 %v4329_v0  ;;  %2231 = vmatmul.mubr.bf16.gmra.mxu1 %v4330_v1 }
 0x179   : > { %1949 = vmatprep.mubr.bf16.mxu0 %v4331_v2  ;;  %2238 = vmatprep.mubr.bf16.mxu1 %v4333_v3 }
 0x180   : > { %v1759_v8 = vpop.f32.mrf.mxu0  ;;  %1950 = vmatmul.mubr.bf16.gmra.mxu0 %v4335_v4  ;;  %v2048_v10 = vpop.f32.mrf.mxu1  ;;  %2239 = vmatmul.mubr.bf16.gmra.mxu1 %v4336_v5 }
 0x181   : > { %1957 = vmatprep.mubr.bf16.mxu0 %v4337_v6  ;;  %v2049_v11 = vadd.f32 %v2048_v10, %v1759_v8  ;;  %2246 = vmatprep.mubr.bf16.mxu1 %v4339_v7  ;;  %v4355_v6 = vld [vmem:[%s4760_s12 + $0x380] ss:$16 sps:$4 sm:$0xff]   ;;  %v644_v7 = vld [vmem:[#allocation2 + $0x48] sm:$0xff]  ;;  %v4363_v10 = vld [vmem:[%s4760_s12 + $0x3a4] ss:$16 sps:$4 sm:$0xff]  }
 0x182   : > { %v1761_v12 = vpop.f32.mrf.mxu0  ;;  %v2050_v13 = vpop.f32.mrf.mxu1 }
 0x183   : > { %v2303_v14 = vadd.f32 %v2049_v11, %v637_v9  ;;  %v4358_v9 = vld [vmem:[%s4760_s12 + $0x388] ss:$16 sps:$4 sm:$0xff]   ;;  %v4366_v13 = vld [vmem:[%s4760_s12 + $0x3ac] ss:$16 sps:$4 sm:$0xff]  }
 0x184   : > { %v1762_v15 = vpop.f32.mrf.mxu0  ;;  %v2051_v18 = vpop.f32.mrf.mxu1 }
 0x185   : > { %2367 = vst [vmem:[#allocation2 + $0xb0] sm:$0xff] %v2303_v14  ;;  %v2052_v21 = vadd.f32 %v2051_v18, %v1762_v15 }
 0x186   : > { %v1764_v22 = vpop.f32.mrf.mxu0  ;;  %v2053_v24 = vpop.f32.mrf.mxu1 }
 0x187   : > { %v2304_v25 = vadd.f32 %v2052_v21, %v638_v17  ;;  %v645_v17 = vld [vmem:[#allocation2 + $0x180] sm:$0xff] }
 0x188   : > { %v1767_v26 = vpop.f32.mrf.mxu0  ;;  %1958 = vmatmul.mubr.bf16.gmra.mxu0 %v4341_v16  ;;  %v2056_v28 = vpop.f32.mrf.mxu1  ;;  %2247 = vmatmul.mubr.bf16.gmra.mxu1 %v4342_v19  ;;  %v4361_v24 = vld [vmem:[%s4760_s12 + $0x3a0] ss:$16 sps:$4 sm:$0xff]  }
 0x189   : > { %1965 = vmatprep.mubr.bf16.mxu0 %v4343_v20  ;;  %2368 = vst [vmem:[#allocation2 + $0x1b0] sm:$0xff] %v2304_v25  ;;  %v2057_v29 = vadd.f32 %v2056_v28, %v1767_v26  ;;  %2254 = vmatprep.mubr.bf16.mxu1 %v4345_v23  ;;  %v646_v25 = vld [vmem:[#allocation2 + $0x110] sm:$0xff] }
 0x18a   : > { %v1769_v30 = vpop.f32.mrf.mxu0  ;;  %v2058_v31 = vpop.f32.mrf.mxu1  ;;  %v4369_v28 = vld [vmem:[%s4760_s12 + $0x3c4] ss:$16 sps:$4 sm:$0xff]  }
 0x18b   : > { %v2305_v32 = vadd.f32 %v2057_v29, %v639_v27  ;;  %v4364_v27 = vld [vmem:[%s4760_s12 + $0x3a8] ss:$16 sps:$4 sm:$0xff]   ;;  %v4372_v31 = vld [vmem:[%s4760_s12 + $0x3cc] ss:$16 sps:$4 sm:$0xff]  }
 0x18c   : > { %v1770_v33 = vpop.f32.mrf.mxu0  ;;  %v2059_v36 = vpop.f32.mrf.mxu1 }
 0x18d   : > { %2369 = vst [vmem:[#allocation2 + $0xd8] sm:$0xff] %v2305_v32  ;;  %v2060_v39 = vadd.f32 %v2059_v36, %v1770_v33 }
 0x18e   : > { %v1772_v40 = vpop.f32.mrf.mxu0  ;;  %v2061_v42 = vpop.f32.mrf.mxu1 }
 0x18f   : > { %v2306_v43 = vadd.f32 %v2060_v39, %v640_v35  ;;  %v647_v35 = vld [vmem:[#allocation2 + $0x118] sm:$0xff]  ;;  %v4367_v42 = vld [vmem:[%s4760_s12 + $0x3c0] ss:$16 sps:$4 sm:$0xff]  }
 0x190   : > { %v1775_v44 = vpop.f32.mrf.mxu0  ;;  %1966 = vmatmul.mubr.bf16.gmra.mxu0 %v4347_v34  ;;  %v2064_v46 = vpop.f32.mrf.mxu1  ;;  %2255 = vmatmul.mubr.bf16.gmra.mxu1 %v4348_v37 }
 0x191   : > { %1973 = vmatprep.mubr.bf16.mxu0 %v4349_v38  ;;  %2370 = vst [vmem:[#allocation2 + $0x18] sm:$0xff] %v2306_v43  ;;  %v2065_v47 = vadd.f32 %v2064_v46, %v1775_v44  ;;  %2262 = vmatprep.mubr.bf16.mxu1 %v4351_v41  ;;  %v648_v43 = vld [vmem:[#allocation2 + $0x98] sm:$0xff]  ;;  %v4375_v46 = vld [vmem:[%s4760_s12 + $0x3e4] ss:$16 sps:$4 sm:$0xff]  }
 0x192   : > { %v1777_v48 = vpop.f32.mrf.mxu0  ;;  %v2066_v49 = vpop.f32.mrf.mxu1 }
 0x193   : > { %v2307_v50 = vadd.f32 %v2065_v47, %v641_v45  ;;  %v4370_v45 = vld [vmem:[%s4760_s12 + $0x3c8] ss:$16 sps:$4 sm:$0xff]   ;;  %v4378_v49 = vld [vmem:[%s4760_s12 + $0x3ec] ss:$16 sps:$4 sm:$0xff]  }
 0x194   : > { %v1778_v51 = vpop.f32.mrf.mxu0  ;;  %v2067_v54 = vpop.f32.mrf.mxu1 }
 0x195   : > { %2371 = vst [vmem:[#allocation2 + $0x50] sm:$0xff] %v2307_v50  ;;  %v2068_v57 = vadd.f32 %v2067_v54, %v1778_v51 }
 0x196   : > { %v1780_v58 = vpop.f32.mrf.mxu0  ;;  %v2069_v60 = vpop.f32.mrf.mxu1 }
 0x197   : > { %v2308_v61 = vadd.f32 %v2068_v57, %v642_v53  ;;  %v649_v53 = vld [vmem:[#allocation2 + $0x120] sm:$0xff] }
 0x198   : > { %v1783_v62 = vpop.f32.mrf.mxu0  ;;  %1974 = vmatmul.mubr.bf16.gmra.mxu0 %v4353_v52  ;;  %v2072_v0 = vpop.f32.mrf.mxu1  ;;  %2263 = vmatmul.mubr.bf16.gmra.mxu1 %v4354_v55  ;;  %v4373_v60 = vld [vmem:[%s4760_s12 + $0x3e0] ss:$16 sps:$4 sm:$0xff]  }
 0x199   : > { %1981 = vmatprep.mubr.bf16.mxu0 %v4357_v56  ;;  %2372 = vst [vmem:[#allocation2 + $0x168] sm:$0xff] %v2308_v61  ;;  %v2073_v1 = vadd.f32 %v2072_v0, %v1783_v62  ;;  %2270 = vmatprep.mubr.bf16.mxu1 %v4360_v59  ;;  %v650_v61 = vld [vmem:[#allocation2 + $0x150] sm:$0xff] }
 0x19a   : > { %v1785_v2 = vpop.f32.mrf.mxu0  ;;  %v2074_v3 = vpop.f32.mrf.mxu1 }
 0x19b   : > { %v2309_v4 = vadd.f32 %v2073_v1, %v643_v63  ;;  %v4376_v63 = vld [vmem:[%s4760_s12 + $0x3e8] ss:$16 sps:$4 sm:$0xff]  }
 0x19c   : > { %v1786_v5 = vpop.f32.mrf.mxu0  ;;  %v2075_v8 = vpop.f32.mrf.mxu1 }
 0x19d   : > { %2373 = vst [vmem:[#allocation2 + $0x130] sm:$0xff] %v2309_v4  ;;  %v2076_v11 = vadd.f32 %v2075_v8, %v1786_v5  ;;  %v651_v5 = vld [vmem:[#allocation2 + $0x108] sm:$0xff] }
 0x19e   : > { %v1788_v12 = vpop.f32.mrf.mxu0  ;;  %v2077_v14 = vpop.f32.mrf.mxu1 }
 0x19f   : > { %v2310_v15 = vadd.f32 %v2076_v11, %v644_v7  ;;  %v652_v12 = vld [vmem:[#allocation2 + $0x60] sm:$0xff] }
 0x1a0   : > { %v1791_v16 = vpop.f32.mrf.mxu0  ;;  %1982 = vmatmul.mubr.bf16.gmra.mxu0 %v4355_v6  ;;  %v2080_v18 = vpop.f32.mrf.mxu1  ;;  %2271 = vmatmul.mubr.bf16.gmra.mxu1 %v4358_v9 }
 0x1a1   : > { %1989 = vmatprep.mubr.bf16.mxu0 %v4363_v10  ;;  %2374 = vst [vmem:[#allocation2 + $0x48] sm:$0xff] %v2310_v15  ;;  %v2081_v19 = vadd.f32 %v2080_v18, %v1791_v16  ;;  %2278 = vmatprep.mubr.bf16.mxu1 %v4366_v13 }
 0x1a2   : > { %v1793_v20 = vpop.f32.mrf.mxu0  ;;  %v2082_v21 = vpop.f32.mrf.mxu1 }
 0x1a3   : > { %v2311_v22 = vadd.f32 %v2081_v19, %v645_v17  ;;  %v653_v19 = vld [vmem:[#allocation2 + $0xe0] sm:$0xff] }
 0x1a4   : > { %v1794_v23 = vpop.f32.mrf.mxu0  ;;  %v2083_v26 = vpop.f32.mrf.mxu1 }
 0x1a5   : > { %2375 = vst [vmem:[#allocation2 + $0x180] sm:$0xff] %v2311_v22  ;;  %v2084_v29 = vadd.f32 %v2083_v26, %v1794_v23  ;;  %v654_v26 = vld [vmem:[#allocation2 + $0x188] sm:$0xff] }
 0x1a6   : > { %v1796_v30 = vpop.f32.mrf.mxu0  ;;  %v2085_v32 = vpop.f32.mrf.mxu1 }
 0x1a7   : > { %v2312_v33 = vadd.f32 %v2084_v29, %v646_v25 }
 0x1a8   : > { %v1799_v34 = vpop.f32.mrf.mxu0  ;;  %1990 = vmatmul.mubr.bf16.gmra.mxu0 %v4361_v24  ;;  %v2088_v36 = vpop.f32.mrf.mxu1  ;;  %2279 = vmatmul.mubr.bf16.gmra.mxu1 %v4364_v27 }
 0x1a9   : > { %1997 = vmatprep.mubr.bf16.mxu0 %v4369_v28  ;;  %2376 = vst [vmem:[#allocation2 + $0x110] sm:$0xff] %v2312_v33  ;;  %v2089_v37 = vadd.f32 %v2088_v36, %v1799_v34  ;;  %2286 = vmatprep.mubr.bf16.mxu1 %v4372_v31  ;;  %v655_v33 = vld [vmem:[#allocation2 + $0x138] sm:$0xff] }
 0x1aa   : > { %v1801_v38 = vpop.f32.mrf.mxu0  ;;  %v2090_v39 = vpop.f32.mrf.mxu1 }
 0x1ab   : > { %v2313_v40 = vadd.f32 %v2089_v37, %v647_v35 }
 0x1ac   : > { %v1802_v41 = vpop.f32.mrf.mxu0  ;;  %v2091_v44 = vpop.f32.mrf.mxu1 }
 0x1ad   : > { %2377 = vst [vmem:[#allocation2 + $0x118] sm:$0xff] %v2313_v40  ;;  %v2092_v47 = vadd.f32 %v2091_v44, %v1802_v41  ;;  %v656_v40 = vld [vmem:[#allocation2 + $0x140] sm:$0xff] }
 0x1ae   : > { %v1804_v48 = vpop.f32.mrf.mxu0  ;;  %v2093_v50 = vpop.f32.mrf.mxu1 }
 0x1af   : > { %v2314_v51 = vadd.f32 %v2092_v47, %v648_v43  ;;  %v657_v47 = vld [vmem:[#allocation2 + $0x80] sm:$0xff] }
 0x1b0   : > { %v1807_v52 = vpop.f32.mrf.mxu0  ;;  %1998 = vmatmul.mubr.bf16.gmra.mxu0 %v4367_v42  ;;  %v2096_v54 = vpop.f32.mrf.mxu1  ;;  %2287 = vmatmul.mubr.bf16.gmra.mxu1 %v4370_v45 }
 0x1b1   : > { %2005 = vmatprep.mubr.bf16.mxu0 %v4375_v46  ;;  %2378 = vst [vmem:[#allocation2 + $0x98] sm:$0xff] %v2314_v51  ;;  %v2097_v55 = vadd.f32 %v2096_v54, %v1807_v52  ;;  %2294 = vmatprep.mubr.bf16.mxu1 %v4378_v49  ;;  %v658_v54 = vld [vmem:[#allocation2 + $0x1a8] sm:$0xff] }
 0x1b2   : > { %v1809_v56 = vpop.f32.mrf.mxu0  ;;  %v2098_v57 = vpop.f32.mrf.mxu1 }
 0x1b3   : > { %v2315_v58 = vadd.f32 %v2097_v55, %v649_v53 }
 0x1b4   : > { %v1810_v59 = vpop.f32.mrf.mxu0  ;;  %v2099_v62 = vpop.f32.mrf.mxu1 }
 0x1b5   : > { %2379 = vst [vmem:[#allocation2 + $0x120] sm:$0xff] %v2315_v58  ;;  %v2100_v0 = vadd.f32 %v2099_v62, %v1810_v59 }
 0x1b6   : > { %v1812_v1 = vpop.f32.mrf.mxu0  ;;  %v2101_v2 = vpop.f32.mrf.mxu1 }
 0x1b7   : > { %v2316_v3 = vadd.f32 %v2100_v0, %v650_v61  ;;  %v659_v61 = vld [vmem:[#allocation2 + $0x1b8] sm:$0xff] }
 0x1b8   : > { %v1815_v4 = vpop.f32.mrf.mxu0  ;;  %2006 = vmatmul.mubr.bf16.gmra.mxu0 %v4373_v60  ;;  %v2104_v6 = vpop.f32.mrf.mxu1  ;;  %2295 = vmatmul.mubr.bf16.gmra.mxu1 %v4376_v63 }
 0x1b9   : > { %2380 = vst [vmem:[#allocation2 + $0x150] sm:$0xff] %v2316_v3  ;;  %v2105_v7 = vadd.f32 %v2104_v6, %v1815_v4  ;;  %v660_v4 = vld [vmem:[#allocation2 + $0x28] sm:$0xff] }
 0x1ba   : > { %v1817_v8 = vpop.f32.mrf.mxu0  ;;  %v2106_v9 = vpop.f32.mrf.mxu1 }
 0x1bb   : > { %v2317_v10 = vadd.f32 %v2105_v7, %v651_v5 }
 0x1bc   : > { %v1818_v11 = vpop.f32.mrf.mxu0  ;;  %v2107_v13 = vpop.f32.mrf.mxu1 }
 0x1bd   : > { %2381 = vst [vmem:[#allocation2 + $0x108] sm:$0xff] %v2317_v10  ;;  %v2108_v14 = vadd.f32 %v2107_v13, %v1818_v11  ;;  %v661_v11 = vld [vmem:[#allocation2 + $0x1e8] sm:$0xff] }
 0x1be   : > { %v1820_v15 = vpop.f32.mrf.mxu0  ;;  %v2109_v16 = vpop.f32.mrf.mxu1 }
 0x1bf   : > { %v2318_v17 = vadd.f32 %v2108_v14, %v652_v12 }
 0x1c0   : > { %v1823_v18 = vpop.f32.mrf.mxu0  ;;  %v2112_v20 = vpop.f32.mrf.mxu1 }
 0x1c1   : > { %2382 = vst [vmem:[#allocation2 + $0x60] sm:$0xff] %v2318_v17  ;;  %v2113_v21 = vadd.f32 %v2112_v20, %v1823_v18  ;;  %v662_v18 = vld [vmem:[#allocation2 + $0xf8] sm:$0xff] }
 0x1c2   : > { %v1825_v22 = vpop.f32.mrf.mxu0  ;;  %v2114_v23 = vpop.f32.mrf.mxu1 }
 0x1c3   : > { %v2319_v24 = vadd.f32 %v2113_v21, %v653_v19 }
 0x1c4   : > { %v1826_v25 = vpop.f32.mrf.mxu0  ;;  %v2115_v27 = vpop.f32.mrf.mxu1 }
 0x1c5   : > { %2383 = vst [vmem:[#allocation2 + $0xe0] sm:$0xff] %v2319_v24  ;;  %v2116_v28 = vadd.f32 %v2115_v27, %v1826_v25  ;;  %v663_v25 = vld [vmem:[#allocation2 + $0x160] sm:$0xff] }
 0x1c6   : > { %v1828_v29 = vpop.f32.mrf.mxu0  ;;  %v2117_v30 = vpop.f32.mrf.mxu1 }
 0x1c7   : > { %v2320_v31 = vadd.f32 %v2116_v28, %v654_v26 }
 0x1c8   : > { %v1831_v32 = vpop.f32.mrf.mxu0  ;;  %v2120_v34 = vpop.f32.mrf.mxu1 }
 0x1c9   : > { %2384 = vst [vmem:[#allocation2 + $0x188] sm:$0xff] %v2320_v31  ;;  %v2121_v35 = vadd.f32 %v2120_v34, %v1831_v32  ;;  %v664_v32 = vld [vmem:[#allocation2 + $0x30] sm:$0xff] }
 0x1ca   : > { %v1833_v36 = vpop.f32.mrf.mxu0  ;;  %v2122_v37 = vpop.f32.mrf.mxu1 }
 0x1cb   : > { %v2321_v38 = vadd.f32 %v2121_v35, %v655_v33 }
 0x1cc   : > { %v1834_v39 = vpop.f32.mrf.mxu0  ;;  %v2123_v41 = vpop.f32.mrf.mxu1 }
 0x1cd   : > { %2385 = vst [vmem:[#allocation2 + $0x138] sm:$0xff] %v2321_v38  ;;  %v2124_v42 = vadd.f32 %v2123_v41, %v1834_v39  ;;  %v665_v39 = vld [vmem:[#allocation2 + $0x1e0] sm:$0xff] }
 0x1ce   : > { %v1836_v43 = vpop.f32.mrf.mxu0  ;;  %v2125_v44 = vpop.f32.mrf.mxu1 }
 0x1cf   : > { %v2322_v45 = vadd.f32 %v2124_v42, %v656_v40 }
 0x1d0   : > { %v1839_v46 = vpop.f32.mrf.mxu0  ;;  %v2128_v48 = vpop.f32.mrf.mxu1 }
 0x1d1   : > { %2386 = vst [vmem:[#allocation2 + $0x140] sm:$0xff] %v2322_v45  ;;  %v2129_v49 = vadd.f32 %v2128_v48, %v1839_v46  ;;  %v666_v46 = vld [vmem:[#allocation2] sm:$0xff] }
 0x1d2   : > { %v1841_v50 = vpop.f32.mrf.mxu0  ;;  %v2130_v51 = vpop.f32.mrf.mxu1 }
 0x1d3   : > { %v2323_v52 = vadd.f32 %v2129_v49, %v657_v47 }
 0x1d4   : > { %v1842_v53 = vpop.f32.mrf.mxu0  ;;  %v2131_v55 = vpop.f32.mrf.mxu1 }
 0x1d5   : > { %2387 = vst [vmem:[#allocation2 + $0x80] sm:$0xff] %v2323_v52  ;;  %v2132_v56 = vadd.f32 %v2131_v55, %v1842_v53  ;;  %v667_v53 = vld [vmem:[#allocation2 + $0xf0] sm:$0xff] }
 0x1d6   : > { %v1844_v57 = vpop.f32.mrf.mxu0  ;;  %v2133_v58 = vpop.f32.mrf.mxu1 }
 0x1d7   : > { %v2324_v59 = vadd.f32 %v2132_v56, %v658_v54 }
 0x1d8   : > { %v1847_v60 = vpop.f32.mrf.mxu0  ;;  %v2136_v62 = vpop.f32.mrf.mxu1 }
 0x1d9   : > { %2388 = vst [vmem:[#allocation2 + $0x1a8] sm:$0xff] %v2324_v59  ;;  %v2137_v63 = vadd.f32 %v2136_v62, %v1847_v60  ;;  %v668_v60 = vld [vmem:[#allocation2 + $0x8] sm:$0xff] }
 0x1da   : > { %v1849_v0 = vpop.f32.mrf.mxu0  ;;  %v2138_v1 = vpop.f32.mrf.mxu1 }
 0x1db   : > { %v2325_v2 = vadd.f32 %v2137_v63, %v659_v61 }
 0x1dc   : > { %v1850_v3 = vpop.f32.mrf.mxu0  ;;  %v2139_v5 = vpop.f32.mrf.mxu1 }
 0x1dd   : > { %2389 = vst [vmem:[#allocation2 + $0x1b8] sm:$0xff] %v2325_v2  ;;  %v2140_v6 = vadd.f32 %v2139_v5, %v1850_v3  ;;  %v669_v3 = vld [vmem:[#allocation2 + $0x148] sm:$0xff] }
 0x1de   : > { %v1852_v7 = vpop.f32.mrf.mxu0  ;;  %v2141_v8 = vpop.f32.mrf.mxu1 }
 0x1df   : > { %v2326_v9 = vadd.f32 %v2140_v6, %v660_v4 }
 0x1e0   : > { %v1855_v10 = vpop.f32.mrf.mxu0  ;;  %v2144_v12 = vpop.f32.mrf.mxu1 }
 0x1e1   : > { %2390 = vst [vmem:[#allocation2 + $0x28] sm:$0xff] %v2326_v9  ;;  %v2145_v13 = vadd.f32 %v2144_v12, %v1855_v10  ;;  %v670_v10 = vld [vmem:[#allocation2 + $0x1d0] sm:$0xff] }
 0x1e2   : > { %v1857_v14 = vpop.f32.mrf.mxu0  ;;  %v2146_v15 = vpop.f32.mrf.mxu1 }
 0x1e3   : > { %v2327_v16 = vadd.f32 %v2145_v13, %v661_v11 }
 0x1e4   : > { %v1858_v17 = vpop.f32.mrf.mxu0  ;;  %v2147_v19 = vpop.f32.mrf.mxu1 }
 0x1e5   : > { %2391 = vst [vmem:[#allocation2 + $0x1e8] sm:$0xff] %v2327_v16  ;;  %v2148_v20 = vadd.f32 %v2147_v19, %v1858_v17  ;;  %v671_v17 = vld [vmem:[#allocation2 + $0x100] sm:$0xff] }
 0x1e6   : > { %v1860_v21 = vpop.f32.mrf.mxu0  ;;  %v2149_v22 = vpop.f32.mrf.mxu1 }
 0x1e7   : > { %v2328_v23 = vadd.f32 %v2148_v20, %v662_v18 }
 0x1e8   : > { %v1863_v24 = vpop.f32.mrf.mxu0  ;;  %v2152_v26 = vpop.f32.mrf.mxu1 }
 0x1e9   : > { %2392 = vst [vmem:[#allocation2 + $0xf8] sm:$0xff] %v2328_v23  ;;  %v2153_v27 = vadd.f32 %v2152_v26, %v1863_v24  ;;  %v672_v24 = vld [vmem:[#allocation2 + $0xc8] sm:$0xff] }
 0x1ea   : > { %v1865_v28 = vpop.f32.mrf.mxu0  ;;  %v2154_v29 = vpop.f32.mrf.mxu1 }
 0x1eb   : > { %v2329_v30 = vadd.f32 %v2153_v27, %v663_v25 }
 0x1ec   : > { %v1866_v31 = vpop.f32.mrf.mxu0  ;;  %v2155_v33 = vpop.f32.mrf.mxu1 }
 0x1ed   : > { %2393 = vst [vmem:[#allocation2 + $0x160] sm:$0xff] %v2329_v30  ;;  %v2156_v34 = vadd.f32 %v2155_v33, %v1866_v31  ;;  %v673_v31 = vld [vmem:[#allocation2 + $0x40] sm:$0xff] }
 0x1ee   : > { %v1868_v35 = vpop.f32.mrf.mxu0  ;;  %v2157_v36 = vpop.f32.mrf.mxu1 }
 0x1ef   : > { %v2330_v37 = vadd.f32 %v2156_v34, %v664_v32 }
 0x1f0   : > { %v1871_v38 = vpop.f32.mrf.mxu0  ;;  %v2160_v40 = vpop.f32.mrf.mxu1 }
 0x1f1   : > { %2394 = vst [vmem:[#allocation2 + $0x30] sm:$0xff] %v2330_v37  ;;  %v2161_v41 = vadd.f32 %v2160_v40, %v1871_v38  ;;  %v674_v38 = vld [vmem:[#allocation2 + $0x1f8] sm:$0xff] }
 0x1f2   : > { %v1873_v42 = vpop.f32.mrf.mxu0  ;;  %v2162_v43 = vpop.f32.mrf.mxu1 }
 0x1f3   : > { %v2331_v44 = vadd.f32 %v2161_v41, %v665_v39 }
 0x1f4   : > { %v1874_v45 = vpop.f32.mrf.mxu0  ;;  %v2163_v47 = vpop.f32.mrf.mxu1 }
 0x1f5   : > { %2395 = vst [vmem:[#allocation2 + $0x1e0] sm:$0xff] %v2331_v44  ;;  %v2164_v48 = vadd.f32 %v2163_v47, %v1874_v45  ;;  %v675_v45 = vld [vmem:[#allocation2 + $0x20] sm:$0xff] }
 0x1f6   : > { %v1876_v49 = vpop.f32.mrf.mxu0  ;;  %v2165_v50 = vpop.f32.mrf.mxu1 }
 0x1f7   : > { %v2332_v51 = vadd.f32 %v2164_v48, %v666_v46 }
 0x1f8   : > { %v1879_v52 = vpop.f32.mrf.mxu0  ;;  %v2168_v54 = vpop.f32.mrf.mxu1 }
 0x1f9   : > { %2396 = vst [vmem:[#allocation2] sm:$0xff] %v2332_v51  ;;  %v2169_v55 = vadd.f32 %v2168_v54, %v1879_v52  ;;  %v676_v52 = vld [vmem:[#allocation2 + $0x128] sm:$0xff] }
 0x1fa   : > { %v1881_v56 = vpop.f32.mrf.mxu0  ;;  %v2170_v57 = vpop.f32.mrf.mxu1 }
 0x1fb   : > { %v2333_v58 = vadd.f32 %v2169_v55, %v667_v53 }
 0x1fc   : > { %v1882_v59 = vpop.f32.mrf.mxu0  ;;  %v2171_v61 = vpop.f32.mrf.mxu1 }
 0x1fd   : > { %2397 = vst [vmem:[#allocation2 + $0xf0] sm:$0xff] %v2333_v58  ;;  %v2172_v62 = vadd.f32 %v2171_v61, %v1882_v59  ;;  %v677_v59 = vld [vmem:[#allocation2 + $0x1a0] sm:$0xff] }
 0x1fe   : > { %v1884_v63 = vpop.f32.mrf.mxu0  ;;  %v2173_v0 = vpop.f32.mrf.mxu1 }
 0x1ff   : > { %v2334_v1 = vadd.f32 %v2172_v62, %v668_v60 }
 0x200   : > { %v1887_v2 = vpop.f32.mrf.mxu0  ;;  %v2176_v4 = vpop.f32.mrf.mxu1 }
 0x201   : > { %2398 = vst [vmem:[#allocation2 + $0x8] sm:$0xff] %v2334_v1  ;;  %v2177_v5 = vadd.f32 %v2176_v4, %v1887_v2  ;;  %v678_v2 = vld [vmem:[#allocation2 + $0x1f0] sm:$0xff] }
 0x202   : > { %v1889_v6 = vpop.f32.mrf.mxu0  ;;  %v2178_v7 = vpop.f32.mrf.mxu1 }
 0x203   : > { %v2335_v8 = vadd.f32 %v2177_v5, %v669_v3 }
 0x204   : > { %v1890_v9 = vpop.f32.mrf.mxu0  ;;  %v2179_v11 = vpop.f32.mrf.mxu1 }
 0x205   : > { %2399 = vst [vmem:[#allocation2 + $0x148] sm:$0xff] %v2335_v8  ;;  %v2180_v12 = vadd.f32 %v2179_v11, %v1890_v9  ;;  %v679_v9 = vld [vmem:[#allocation2 + $0xe8] sm:$0xff] }
 0x206   : > { %v1892_v13 = vpop.f32.mrf.mxu0  ;;  %v2181_v14 = vpop.f32.mrf.mxu1 }
 0x207   : > { %v2336_v15 = vadd.f32 %v2180_v12, %v670_v10 }
 0x208   : > { %v1895_v16 = vpop.f32.mrf.mxu0  ;;  %v2184_v18 = vpop.f32.mrf.mxu1 }
 0x209   : > { %2400 = vst [vmem:[#allocation2 + $0x1d0] sm:$0xff] %v2336_v15  ;;  %v2185_v19 = vadd.f32 %v2184_v18, %v1895_v16  ;;  %v680_v16 = vld [vmem:[#allocation2 + $0x78] sm:$0xff] }
 0x20a   : > { %v1897_v20 = vpop.f32.mrf.mxu0  ;;  %v2186_v21 = vpop.f32.mrf.mxu1 }
 0x20b   : > { %v2337_v22 = vadd.f32 %v2185_v19, %v671_v17 }
 0x20c   : > { %v1898_v23 = vpop.f32.mrf.mxu0  ;;  %v2187_v25 = vpop.f32.mrf.mxu1 }
 0x20d   : > { %2401 = vst [vmem:[#allocation2 + $0x100] sm:$0xff] %v2337_v22  ;;  %v2188_v26 = vadd.f32 %v2187_v25, %v1898_v23  ;;  %v681_v23 = vld [vmem:[#allocation2 + $0x70] sm:$0xff] }
 0x20e   : > { %v1900_v27 = vpop.f32.mrf.mxu0  ;;  %v2189_v28 = vpop.f32.mrf.mxu1 }
 0x20f   : > { %v2338_v29 = vadd.f32 %v2188_v26, %v672_v24 }
 0x210   : > { %v1903_v30 = vpop.f32.mrf.mxu0  ;;  %v2192_v32 = vpop.f32.mrf.mxu1 }
 0x211   : > { %2402 = vst [vmem:[#allocation2 + $0xc8] sm:$0xff] %v2338_v29  ;;  %v2193_v33 = vadd.f32 %v2192_v32, %v1903_v30  ;;  %v682_v30 = vld [vmem:[#allocation2 + $0x90] sm:$0xff] }
 0x212   : > { %v1905_v34 = vpop.f32.mrf.mxu0  ;;  %v2194_v35 = vpop.f32.mrf.mxu1 }
 0x213   : > { %v2339_v36 = vadd.f32 %v2193_v33, %v673_v31 }
 0x214   : > { %v1906_v37 = vpop.f32.mrf.mxu0  ;;  %v2195_v39 = vpop.f32.mrf.mxu1 }
 0x215   : > { %2403 = vst [vmem:[#allocation2 + $0x40] sm:$0xff] %v2339_v36  ;;  %v2196_v40 = vadd.f32 %v2195_v39, %v1906_v37  ;;  %v683_v37 = vld [vmem:[#allocation2 + $0x1d8] sm:$0xff] }
 0x216   : > { %v1908_v41 = vpop.f32.mrf.mxu0  ;;  %v2197_v42 = vpop.f32.mrf.mxu1 }
 0x217   : > { %v2340_v43 = vadd.f32 %v2196_v40, %v674_v38 }
 0x218   : > { %v1911_v44 = vpop.f32.mrf.mxu0  ;;  %v2200_v46 = vpop.f32.mrf.mxu1 }
 0x219   : > { %2404 = vst [vmem:[#allocation2 + $0x1f8] sm:$0xff] %v2340_v43  ;;  %v2201_v47 = vadd.f32 %v2200_v46, %v1911_v44  ;;  %v684_v44 = vld [vmem:[#allocation2 + $0xd0] sm:$0xff] }
 0x21a   : > { %v1913_v48 = vpop.f32.mrf.mxu0  ;;  %v2202_v49 = vpop.f32.mrf.mxu1 }
 0x21b   : > { %v2341_v50 = vadd.f32 %v2201_v47, %v675_v45 }
 0x21c   : > { %v1914_v51 = vpop.f32.mrf.mxu0  ;;  %v2203_v53 = vpop.f32.mrf.mxu1 }
 0x21d   : > { %2405 = vst [vmem:[#allocation2 + $0x20] sm:$0xff] %v2341_v50  ;;  %v2204_v54 = vadd.f32 %v2203_v53, %v1914_v51  ;;  %v685_v51 = vld [vmem:[#allocation2 + $0xb8] sm:$0xff] }
 0x21e   : > { %v1916_v55 = vpop.f32.mrf.mxu0  ;;  %v2205_v56 = vpop.f32.mrf.mxu1 }
 0x21f   : > { %v2342_v57 = vadd.f32 %v2204_v54, %v676_v52 }
 0x220   : > { %v1919_v58 = vpop.f32.mrf.mxu0  ;;  %v2208_v60 = vpop.f32.mrf.mxu1 }
 0x221   : > { %2406 = vst [vmem:[#allocation2 + $0x128] sm:$0xff] %v2342_v57  ;;  %v2209_v61 = vadd.f32 %v2208_v60, %v1919_v58  ;;  %v686_v58 = vld [vmem:[#allocation2 + $0x88] sm:$0xff] }
 0x222   : > { %v1921_v62 = vpop.f32.mrf.mxu0  ;;  %v2210_v63 = vpop.f32.mrf.mxu1 }
 0x223   : > { %v2343_v0 = vadd.f32 %v2209_v61, %v677_v59 }
 0x224   : > { %v1922_v1 = vpop.f32.mrf.mxu0  ;;  %v2211_v3 = vpop.f32.mrf.mxu1 }
 0x225   : > { %2407 = vst [vmem:[#allocation2 + $0x1a0] sm:$0xff] %v2343_v0  ;;  %v2212_v4 = vadd.f32 %v2211_v3, %v1922_v1  ;;  %v687_v1 = vld [vmem:[#allocation2 + $0xa8] sm:$0xff] }
 0x226   : > { %v1924_v5 = vpop.f32.mrf.mxu0  ;;  %v2213_v6 = vpop.f32.mrf.mxu1 }
 0x227   : > { %v2344_v7 = vadd.f32 %v2212_v4, %v678_v2 }
 0x228   : > { %v1927_v8 = vpop.f32.mrf.mxu0  ;;  %v2216_v10 = vpop.f32.mrf.mxu1 }
 0x229   : > { %2408 = vst [vmem:[#allocation2 + $0x1f0] sm:$0xff] %v2344_v7  ;;  %v2217_v11 = vadd.f32 %v2216_v10, %v1927_v8  ;;  %v688_v8 = vld [vmem:[#allocation2 + $0x1c8] sm:$0xff] }
 0x22a   : > { %v1929_v12 = vpop.f32.mrf.mxu0  ;;  %v2218_v13 = vpop.f32.mrf.mxu1 }
 0x22b   : > { %v2345_v14 = vadd.f32 %v2217_v11, %v679_v9 }
 0x22c   : > { %v1930_v15 = vpop.f32.mrf.mxu0  ;;  %v2219_v17 = vpop.f32.mrf.mxu1 }
 0x22d   : > { %2409 = vst [vmem:[#allocation2 + $0xe8] sm:$0xff] %v2345_v14  ;;  %v2220_v18 = vadd.f32 %v2219_v17, %v1930_v15  ;;  %v689_v15 = vld [vmem:[#allocation2 + $0x170] sm:$0xff] }
 0x22e   : > { %v1932_v19 = vpop.f32.mrf.mxu0  ;;  %v2221_v20 = vpop.f32.mrf.mxu1 }
 0x22f   : > { %v2346_v21 = vadd.f32 %v2220_v18, %v680_v16 }
 0x230   : > { %v1935_v22 = vpop.f32.mrf.mxu0  ;;  %v2224_v24 = vpop.f32.mrf.mxu1 }
 0x231   : > { %2410 = vst [vmem:[#allocation2 + $0x78] sm:$0xff] %v2346_v21  ;;  %v2225_v25 = vadd.f32 %v2224_v24, %v1935_v22  ;;  %v690_v22 = vld [vmem:[#allocation2 + $0x178] sm:$0xff] }
 0x232   : > { %v1937_v26 = vpop.f32.mrf.mxu0  ;;  %v2226_v27 = vpop.f32.mrf.mxu1 }
 0x233   : > { %v2347_v28 = vadd.f32 %v2225_v25, %v681_v23 }
 0x234   : > { %v1938_v29 = vpop.f32.mrf.mxu0  ;;  %v2227_v31 = vpop.f32.mrf.mxu1 }
 0x235   : > { %2411 = vst [vmem:[#allocation2 + $0x70] sm:$0xff] %v2347_v28  ;;  %v2228_v32 = vadd.f32 %v2227_v31, %v1938_v29  ;;  %v691_v29 = vld [vmem:[#allocation2 + $0x68] sm:$0xff] }
 0x236   : > { %v1940_v33 = vpop.f32.mrf.mxu0  ;;  %v2229_v34 = vpop.f32.mrf.mxu1 }
 0x237   : > { %v2348_v35 = vadd.f32 %v2228_v32, %v682_v30 }
 0x238   : > { %v1943_v36 = vpop.f32.mrf.mxu0  ;;  %v2232_v38 = vpop.f32.mrf.mxu1 }
 0x239   : > { %2412 = vst [vmem:[#allocation2 + $0x90] sm:$0xff] %v2348_v35  ;;  %v2233_v39 = vadd.f32 %v2232_v38, %v1943_v36  ;;  %v692_v36 = vld [vmem:[#allocation2 + $0x190] sm:$0xff] }
 0x23a   : > { %v1945_v40 = vpop.f32.mrf.mxu0  ;;  %v2234_v41 = vpop.f32.mrf.mxu1 }
 0x23b   : > { %v2349_v42 = vadd.f32 %v2233_v39, %v683_v37 }
 0x23c   : > { %v1946_v43 = vpop.f32.mrf.mxu0  ;;  %v2235_v45 = vpop.f32.mrf.mxu1 }
 0x23d   : > { %2413 = vst [vmem:[#allocation2 + $0x1d8] sm:$0xff] %v2349_v42  ;;  %v2236_v46 = vadd.f32 %v2235_v45, %v1946_v43  ;;  %v693_v43 = vld [vmem:[#allocation2 + $0x198] sm:$0xff] }
 0x23e   : > { %v1948_v47 = vpop.f32.mrf.mxu0  ;;  %v2237_v48 = vpop.f32.mrf.mxu1 }
 0x23f   : > { %v2350_v49 = vadd.f32 %v2236_v46, %v684_v44 }
 0x240   : > { %v1951_v50 = vpop.f32.mrf.mxu0  ;;  %v2240_v52 = vpop.f32.mrf.mxu1 }
 0x241   : > { %2414 = vst [vmem:[#allocation2 + $0xd0] sm:$0xff] %v2350_v49  ;;  %v2241_v53 = vadd.f32 %v2240_v52, %v1951_v50  ;;  %v694_v50 = vld [vmem:[#allocation2 + $0x38] sm:$0xff] }
 0x242   : > { %v1953_v54 = vpop.f32.mrf.mxu0  ;;  %v2242_v55 = vpop.f32.mrf.mxu1 }
 0x243   : > { %v2351_v56 = vadd.f32 %v2241_v53, %v685_v51 }
 0x244   : > { %v1954_v57 = vpop.f32.mrf.mxu0  ;;  %v2243_v59 = vpop.f32.mrf.mxu1 }
 0x245   : > { %2415 = vst [vmem:[#allocation2 + $0xb8] sm:$0xff] %v2351_v56  ;;  %v2244_v60 = vadd.f32 %v2243_v59, %v1954_v57  ;;  %v695_v57 = vld [vmem:[#allocation2 + $0xc0] sm:$0xff] }
 0x246   : > { %v1956_v61 = vpop.f32.mrf.mxu0  ;;  %v2245_v62 = vpop.f32.mrf.mxu1 }
 0x247   : > { %v2352_v63 = vadd.f32 %v2244_v60, %v686_v58 }
 0x248   : > { %v1959_v0 = vpop.f32.mrf.mxu0  ;;  %v2248_v2 = vpop.f32.mrf.mxu1 }
 0x249   : > { %2416 = vst [vmem:[#allocation2 + $0x88] sm:$0xff] %v2352_v63  ;;  %v2249_v3 = vadd.f32 %v2248_v2, %v1959_v0  ;;  %v696_v0 = vld [vmem:[#allocation2 + $0x1c0] sm:$0xff] }
 0x24a   : > { %v1961_v4 = vpop.f32.mrf.mxu0  ;;  %v2250_v5 = vpop.f32.mrf.mxu1 }
 0x24b   : > { %v2353_v6 = vadd.f32 %v2249_v3, %v687_v1 }
 0x24c   : > { %v1962_v7 = vpop.f32.mrf.mxu0  ;;  %v2251_v9 = vpop.f32.mrf.mxu1 }
 0x24d   : > { %2417 = vst [vmem:[#allocation2 + $0xa8] sm:$0xff] %v2353_v6  ;;  %v2252_v10 = vadd.f32 %v2251_v9, %v1962_v7  ;;  %v697_v7 = vld [vmem:[#allocation2 + $0x158] sm:$0xff] }
 0x24e   : > { %v1964_v11 = vpop.f32.mrf.mxu0  ;;  %v2253_v12 = vpop.f32.mrf.mxu1 }
 0x24f   : > { %v2354_v13 = vadd.f32 %v2252_v10, %v688_v8 }
 0x250   : > { %v1967_v14 = vpop.f32.mrf.mxu0  ;;  %v2256_v16 = vpop.f32.mrf.mxu1 }
 0x251   : > { %2418 = vst [vmem:[#allocation2 + $0x1c8] sm:$0xff] %v2354_v13  ;;  %v2257_v17 = vadd.f32 %v2256_v16, %v1967_v14  ;;  %v698_v14 = vld [vmem:[#allocation2 + $0x10] sm:$0xff] }
 0x252   : > { %v1969_v18 = vpop.f32.mrf.mxu0  ;;  %v2258_v19 = vpop.f32.mrf.mxu1 }
 0x253   : > { %v2355_v20 = vadd.f32 %v2257_v17, %v689_v15 }
 0x254   : > { %v1970_v21 = vpop.f32.mrf.mxu0  ;;  %v2259_v23 = vpop.f32.mrf.mxu1 }
 0x255   : > { %2419 = vst [vmem:[#allocation2 + $0x170] sm:$0xff] %v2355_v20  ;;  %v2260_v24 = vadd.f32 %v2259_v23, %v1970_v21  ;;  %v699_v21 = vld [vmem:[#allocation2 + $0x58] sm:$0xff] }
 0x256   : > { %v1972_v25 = vpop.f32.mrf.mxu0  ;;  %v2261_v26 = vpop.f32.mrf.mxu1 }
 0x257   : > { %v2356_v27 = vadd.f32 %v2260_v24, %v690_v22 }
 0x258   : > { %v1975_v28 = vpop.f32.mrf.mxu0  ;;  %v2264_v30 = vpop.f32.mrf.mxu1 }
 0x259   : > { %2420 = vst [vmem:[#allocation2 + $0x178] sm:$0xff] %v2356_v27  ;;  %v2265_v31 = vadd.f32 %v2264_v30, %v1975_v28  ;;  %v700_v28 = vld [vmem:[#allocation2 + $0xa0] sm:$0xff] }
 0x25a   : > { %v1977_v32 = vpop.f32.mrf.mxu0  ;;  %v2266_v33 = vpop.f32.mrf.mxu1 }
 0x25b   : > { %v2357_v34 = vadd.f32 %v2265_v31, %v691_v29 }
 0x25c   : > { %v1978_v35 = vpop.f32.mrf.mxu0  ;;  %v2267_v37 = vpop.f32.mrf.mxu1 }
 0x25d   : > { %2421 = vst [vmem:[#allocation2 + $0x68] sm:$0xff] %v2357_v34  ;;  %v2268_v38 = vadd.f32 %v2267_v37, %v1978_v35 }
 0x25e   : > { %v1980_v39 = vpop.f32.mrf.mxu0  ;;  %v2269_v40 = vpop.f32.mrf.mxu1 }
 0x25f   : > { %v2358_v41 = vadd.f32 %v2268_v38, %v692_v36 }
 0x260   : > { %v1983_v42 = vpop.f32.mrf.mxu0  ;;  %v2272_v44 = vpop.f32.mrf.mxu1 }
 0x261   : > { %2422 = vst [vmem:[#allocation2 + $0x190] sm:$0xff] %v2358_v41  ;;  %v2273_v45 = vadd.f32 %v2272_v44, %v1983_v42 }
 0x262   : > { %v1985_v46 = vpop.f32.mrf.mxu0  ;;  %v2274_v47 = vpop.f32.mrf.mxu1 }
 0x263   : > { %v2359_v48 = vadd.f32 %v2273_v45, %v693_v43 }
 0x264   : > { %v1986_v49 = vpop.f32.mrf.mxu0  ;;  %v2275_v51 = vpop.f32.mrf.mxu1 }
 0x265   : > { %2423 = vst [vmem:[#allocation2 + $0x198] sm:$0xff] %v2359_v48  ;;  %v2276_v52 = vadd.f32 %v2275_v51, %v1986_v49 }
 0x266   : > { %v1988_v53 = vpop.f32.mrf.mxu0  ;;  %v2277_v54 = vpop.f32.mrf.mxu1 }
 0x267   : > { %v2360_v55 = vadd.f32 %v2276_v52, %v694_v50 }
 0x268   : > { %v1991_v56 = vpop.f32.mrf.mxu0  ;;  %v2280_v58 = vpop.f32.mrf.mxu1 }
 0x269   : > { %2424 = vst [vmem:[#allocation2 + $0x38] sm:$0xff] %v2360_v55  ;;  %v2281_v59 = vadd.f32 %v2280_v58, %v1991_v56 }
 0x26a   : > { %v1993_v60 = vpop.f32.mrf.mxu0  ;;  %v2282_v61 = vpop.f32.mrf.mxu1 }
 0x26b   : > { %v2361_v62 = vadd.f32 %v2281_v59, %v695_v57 }
 0x26c   : > { %v1994_v63 = vpop.f32.mrf.mxu0  ;;  %v2283_v1 = vpop.f32.mrf.mxu1 }
 0x26d   : > { %2425 = vst [vmem:[#allocation2 + $0xc0] sm:$0xff] %v2361_v62  ;;  %v2284_v2 = vadd.f32 %v2283_v1, %v1994_v63 }
 0x26e   : > { %v1996_v3 = vpop.f32.mrf.mxu0  ;;  %v2285_v4 = vpop.f32.mrf.mxu1 }
 0x26f   : > { %v2362_v5 = vadd.f32 %v2284_v2, %v696_v0 }
 0x270   : > { %v1999_v6 = vpop.f32.mrf.mxu0  ;;  %v2288_v8 = vpop.f32.mrf.mxu1 }
 0x271   : > { %2426 = vst [vmem:[#allocation2 + $0x1c0] sm:$0xff] %v2362_v5  ;;  %v2289_v9 = vadd.f32 %v2288_v8, %v1999_v6 }
 0x272   : > { %v2001_v10 = vpop.f32.mrf.mxu0  ;;  %v2290_v11 = vpop.f32.mrf.mxu1 }
 0x273   : > { %v2363_v12 = vadd.f32 %v2289_v9, %v697_v7 }
 0x274   : > { %v2002_v13 = vpop.f32.mrf.mxu0  ;;  %v2291_v15 = vpop.f32.mrf.mxu1 }
 0x275   : > { %2427 = vst [vmem:[#allocation2 + $0x158] sm:$0xff] %v2363_v12  ;;  %v2292_v16 = vadd.f32 %v2291_v15, %v2002_v13 }
 0x276   : > { %v2004_v17 = vpop.f32.mrf.mxu0  ;;  %v2293_v18 = vpop.f32.mrf.mxu1 }
 0x277   : > { %v2364_v19 = vadd.f32 %v2292_v16, %v698_v14 }
 0x278   : > { %v2007_v20 = vpop.f32.mrf.mxu0  ;;  %v2296_v22 = vpop.f32.mrf.mxu1 }
 0x279   : > { %2428 = vst [vmem:[#allocation2 + $0x10] sm:$0xff] %v2364_v19  ;;  %v2297_v23 = vadd.f32 %v2296_v22, %v2007_v20 }
 0x27a   : > { %v2009_v24 = vpop.f32.mrf.mxu0  ;;  %v2298_v25 = vpop.f32.mrf.mxu1 }
 0x27b   : > { %v2365_v26 = vadd.f32 %v2297_v23, %v699_v21 }
 0x27c   : > { %v2010_v27 = vpop.f32.mrf.mxu0  ;;  %v2299_v29 = vpop.f32.mrf.mxu1 }
 0x27d   : > { %2429 = vst [vmem:[#allocation2 + $0x58] sm:$0xff] %v2365_v26  ;;  %v2300_v30 = vadd.f32 %v2299_v29, %v2010_v27  ;;  %2434 = sbr.rel (%p3786_p11) target bundleno = 932 (0x3a4), region = 67 }
 0x27e   : > { %v2012_v31 = vpop.f32.mrf.mxu0  ;;  %v2301_v32 = vpop.f32.mrf.mxu1 }
 0x27f   : > { %v2366_v33 = vadd.f32 %v2300_v30, %v700_v28 }
 0x281   : > { %2430 = vst [vmem:[#allocation2 + $0xa0] sm:$0xff] %v2366_v33 }
 0x282   : > { %v5020_v34 = vld [vmem:[#allocation2 + $0xb0] sm:$0xff]  ;;  %v5024_v36 = vld [vmem:[#allocation2 + $0xd8] sm:$0xff]  ;;  %v5041_v46 = vld [vmem:[#allocation2 + $0x168] sm:$0xff] }
 0x283   : > { %v5022_v35 = vld [vmem:[#allocation2 + $0x1b0] sm:$0xff]  ;;  %v5026_v37 = vld [vmem:[#allocation2 + $0x18] sm:$0xff]  ;;  %v2568_v39 = vmul.f32 %v5020_v34, %v5020_v34  ;;  %v2570_v41 = vmul.f32 %v5024_v36, %v5024_v36  ;;  %v2573_v52 = vmul.f32 %v5041_v46, %v5041_v46  ;;  %v5051_v54 = vld [vmem:[#allocation2 + $0x48] sm:$0xff] }
 0x284   : > { %v2499_v38 = vadd.f32 %v5022_v35, %v5020_v34  ;;  %v2569_v40 = vmul.f32 %v5022_v35, %v5022_v35  ;;  %v5036_v42 = vld [vmem:[#allocation2 + $0x50] sm:$0xff]  ;;  %v2571_v44 = vmul.f32 %v5026_v37, %v5026_v37  ;;  %v5056_v58 = vld [vmem:[#allocation2 + $0x180] sm:$0xff]  ;;  %v2575_v60 = vmul.f32 %v5051_v54, %v5051_v54  ;;  %v5066_v2 = vld [vmem:[#allocation2 + $0x118] sm:$0xff] }
 0x285   : > { %v2572_v48 = vmul.f32 %v5036_v42, %v5036_v42  ;;  %v5046_v50 = vld [vmem:[#allocation2 + $0x130] sm:$0xff]  ;;  %v2576_v0 = vmul.f32 %v5056_v58, %v5056_v58  ;;  %v5071_v6 = vld [vmem:[#allocation2 + $0x98] sm:$0xff]  ;;  %v2578_v8 = vmul.f32 %v5066_v2, %v5066_v2  ;;  %v5076_v10 = vld [vmem:[#allocation2 + $0x120] sm:$0xff] }
 0x286   : > { %v2500_v43 = vadd.f32 %v2499_v38, %v5024_v36  ;;  %v2632_v45 = vadd.f32 %v2569_v40, %v2568_v39  ;;  %v2574_v56 = vmul.f32 %v5046_v50, %v5046_v50  ;;  %v5061_v62 = vld [vmem:[#allocation2 + $0x110] sm:$0xff]  ;;  %v2579_v12 = vmul.f32 %v5071_v6, %v5071_v6  ;;  %v5086_v18 = vld [vmem:[#allocation2 + $0x108] sm:$0xff]  ;;  %v5091_v22 = vld [vmem:[#allocation2 + $0x60] sm:$0xff] }
 0x287   : > { %v2577_v4 = vmul.f32 %v5061_v62, %v5061_v62  ;;  %v5081_v14 = vld [vmem:[#allocation2 + $0x150] sm:$0xff]  ;;  %v2580_v16 = vmul.f32 %v5076_v10, %v5076_v10  ;;  %v2582_v24 = vmul.f32 %v5086_v18, %v5086_v18  ;;  %v5096_v26 = vld [vmem:[#allocation2 + $0xe0] sm:$0xff]  ;;  %v2583_v28 = vmul.f32 %v5091_v22, %v5091_v22  ;;  %v5101_v30 = vld [vmem:[#allocation2 + $0x188] sm:$0xff] }
 0x288   : > { %v2501_v47 = vadd.f32 %v2500_v43, %v5026_v37  ;;  %v2633_v49 = vadd.f32 %v2632_v45, %v2570_v41  ;;  %v2581_v20 = vmul.f32 %v5081_v14, %v5081_v14  ;;  %v2584_v32 = vmul.f32 %v5096_v26, %v5096_v26  ;;  %v5106_v38 = vld [vmem:[#allocation2 + $0x138] sm:$0xff]  ;;  %v5111_v43 = vld [vmem:[#allocation2 + $0x140] sm:$0xff] }
 0x289   : > { %v2585_v40 = vmul.f32 %v5101_v30, %v5101_v30  ;;  %v2586_v45 = vmul.f32 %v5106_v38, %v5106_v38 }
 0x28a   : > { %v2502_v51 = vadd.f32 %v2501_v47, %v5036_v42  ;;  %v2634_v53 = vadd.f32 %v2633_v49, %v2571_v44 }
 0x28c   : > { %v2503_v55 = vadd.f32 %v2502_v51, %v5041_v46  ;;  %v2635_v57 = vadd.f32 %v2634_v53, %v2572_v48  ;;  %v5116_v48 = vld [vmem:[#allocation2 + $0x80] sm:$0xff]  ;;  %v2587_v51 = vmul.f32 %v5111_v43, %v5111_v43  ;;  %v5121_v53 = vld [vmem:[#allocation2 + $0x1a8] sm:$0xff] }
 0x28e   : > { %v2504_v59 = vadd.f32 %v2503_v55, %v5046_v50  ;;  %v2636_v61 = vadd.f32 %v2635_v57, %v2573_v52 }
 0x290   : > { %v2505_v63 = vadd.f32 %v2504_v59, %v5051_v54  ;;  %v2637_v1 = vadd.f32 %v2636_v61, %v2574_v56  ;;  %v2588_v56 = vmul.f32 %v5116_v48, %v5116_v48  ;;  %v5126_v59 = vld [vmem:[#allocation2 + $0x1b8] sm:$0xff]  ;;  %v2589_v61 = vmul.f32 %v5121_v53, %v5121_v53 }
 0x292   : > { %v2506_v3 = vadd.f32 %v2505_v63, %v5056_v58  ;;  %v2638_v5 = vadd.f32 %v2637_v1, %v2575_v60 }
 0x294   : > { %v2507_v7 = vadd.f32 %v2506_v3, %v5061_v62  ;;  %v2639_v9 = vadd.f32 %v2638_v5, %v2576_v0  ;;  %v5131_v0 = vld [vmem:[#allocation2 + $0x28] sm:$0xff]  ;;  %v2590_v3 = vmul.f32 %v5126_v59, %v5126_v59 }
 0x295   : > { %v5136_v5 = vld [vmem:[#allocation2 + $0x1e8] sm:$0xff] }
 0x296   : > { %v2508_v11 = vadd.f32 %v2507_v7, %v5066_v2  ;;  %v2640_v13 = vadd.f32 %v2639_v9, %v2577_v4 }
 0x298   : > { %v2509_v15 = vadd.f32 %v2508_v11, %v5071_v6  ;;  %v2641_v17 = vadd.f32 %v2640_v13, %v2578_v8  ;;  %v2591_v8 = vmul.f32 %v5131_v0, %v5131_v0  ;;  %v5141_v11 = vld [vmem:[#allocation2 + $0xf8] sm:$0xff]  ;;  %v2592_v13 = vmul.f32 %v5136_v5, %v5136_v5 }
 0x29a   : > { %v2510_v19 = vadd.f32 %v2509_v15, %v5076_v10  ;;  %v2642_v21 = vadd.f32 %v2641_v17, %v2579_v12 }
 0x29c   : > { %v2511_v23 = vadd.f32 %v2510_v19, %v5081_v14  ;;  %v2643_v25 = vadd.f32 %v2642_v21, %v2580_v16  ;;  %v5146_v16 = vld [vmem:[#allocation2 + $0x160] sm:$0xff]  ;;  %v2593_v19 = vmul.f32 %v5141_v11, %v5141_v11  ;;  %v5151_v21 = vld [vmem:[#allocation2 + $0x30] sm:$0xff] }
 0x29e   : > { %v2512_v27 = vadd.f32 %v2511_v23, %v5086_v18  ;;  %v2644_v29 = vadd.f32 %v2643_v25, %v2581_v20 }
 0x2a0   : > { %v2513_v31 = vadd.f32 %v2512_v27, %v5091_v22  ;;  %v2645_v33 = vadd.f32 %v2644_v29, %v2582_v24  ;;  %v2594_v24 = vmul.f32 %v5146_v16, %v5146_v16  ;;  %v5156_v27 = vld [vmem:[#allocation2 + $0x1e0] sm:$0xff]  ;;  %v2595_v29 = vmul.f32 %v5151_v21, %v5151_v21 }
 0x2a2   : > { %v2514_v39 = vadd.f32 %v2513_v31, %v5096_v26  ;;  %v2646_v41 = vadd.f32 %v2645_v33, %v2583_v28 }
 0x2a4   : > { %v2515_v44 = vadd.f32 %v2514_v39, %v5101_v30  ;;  %v2647_v47 = vadd.f32 %v2646_v41, %v2584_v32  ;;  %v5161_v32 = vld [vmem:[#allocation2] sm:$0xff]  ;;  %v2596_v39 = vmul.f32 %v5156_v27, %v5156_v27  ;;  %v5166_v41 = vld [vmem:[#allocation2 + $0xf0] sm:$0xff] }
 0x2a6   : > { %v2516_v49 = vadd.f32 %v2515_v44, %v5106_v38  ;;  %v2648_v52 = vadd.f32 %v2647_v47, %v2585_v40 }
 0x2a8   : > { %v2517_v55 = vadd.f32 %v2516_v49, %v5111_v43  ;;  %v2649_v57 = vadd.f32 %v2648_v52, %v2586_v45  ;;  %v2597_v45 = vmul.f32 %v5161_v32, %v5161_v32  ;;  %v5171_v49 = vld [vmem:[#allocation2 + $0x8] sm:$0xff]  ;;  %v2598_v52 = vmul.f32 %v5166_v41, %v5166_v41 }
 0x2aa   : > { %v2518_v60 = vadd.f32 %v2517_v55, %v5116_v48  ;;  %v2650_v63 = vadd.f32 %v2649_v57, %v2587_v51 }
 0x2ac   : > { %v2519_v1 = vadd.f32 %v2518_v60, %v5121_v53  ;;  %v2651_v4 = vadd.f32 %v2650_v63, %v2588_v56  ;;  %v5176_v56 = vld [vmem:[#allocation2 + $0x148] sm:$0xff]  ;;  %v2599_v60 = vmul.f32 %v5171_v49, %v5171_v49  ;;  %v5181_v63 = vld [vmem:[#allocation2 + $0x1d0] sm:$0xff] }
 0x2ae   : > { %v2520_v7 = vadd.f32 %v2519_v1, %v5126_v59  ;;  %v2652_v9 = vadd.f32 %v2651_v4, %v2589_v61 }
 0x2b0   : > { %v2521_v12 = vadd.f32 %v2520_v7, %v5131_v0  ;;  %v2653_v15 = vadd.f32 %v2652_v9, %v2590_v3  ;;  %v2600_v3 = vmul.f32 %v5176_v56, %v5176_v56  ;;  %v5186_v7 = vld [vmem:[#allocation2 + $0x100] sm:$0xff]  ;;  %v2601_v9 = vmul.f32 %v5181_v63, %v5181_v63 }
 0x2b2   : > { %v2522_v17 = vadd.f32 %v2521_v12, %v5136_v5  ;;  %v2654_v20 = vadd.f32 %v2653_v15, %v2591_v8 }
 0x2b4   : > { %v2523_v23 = vadd.f32 %v2522_v17, %v5141_v11  ;;  %v2655_v25 = vadd.f32 %v2654_v20, %v2592_v13  ;;  %v5191_v13 = vld [vmem:[#allocation2 + $0xc8] sm:$0xff]  ;;  %v2602_v17 = vmul.f32 %v5186_v7, %v5186_v7  ;;  %v5196_v20 = vld [vmem:[#allocation2 + $0x40] sm:$0xff] }
 0x2b6   : > { %v2524_v28 = vadd.f32 %v2523_v23, %v5146_v16  ;;  %v2656_v31 = vadd.f32 %v2655_v25, %v2593_v19 }
 0x2b8   : > { %v2525_v33 = vadd.f32 %v2524_v28, %v5151_v21  ;;  %v2657_v40 = vadd.f32 %v2656_v31, %v2594_v24  ;;  %v2603_v24 = vmul.f32 %v5191_v13, %v5191_v13  ;;  %v5201_v28 = vld [vmem:[#allocation2 + $0x1f8] sm:$0xff]  ;;  %v2604_v31 = vmul.f32 %v5196_v20, %v5196_v20 }
 0x2ba   : > { %v2526_v44 = vadd.f32 %v2525_v33, %v5156_v27  ;;  %v2658_v47 = vadd.f32 %v2657_v40, %v2595_v29 }
 0x2bc   : > { %v2527_v51 = vadd.f32 %v2526_v44, %v5161_v32  ;;  %v2659_v55 = vadd.f32 %v2658_v47, %v2596_v39  ;;  %v5206_v39 = vld [vmem:[#allocation2 + $0x20] sm:$0xff]  ;;  %v2605_v44 = vmul.f32 %v5201_v28, %v5201_v28  ;;  %v5211_v47 = vld [vmem:[#allocation2 + $0x128] sm:$0xff] }
 0x2be   : > { %v2528_v57 = vadd.f32 %v2527_v51, %v5166_v41  ;;  %v2660_v61 = vadd.f32 %v2659_v55, %v2597_v45 }
 0x2c0   : > { %v2529_v1 = vadd.f32 %v2528_v57, %v5171_v49  ;;  %v2661_v4 = vadd.f32 %v2660_v61, %v2598_v52  ;;  %v2606_v52 = vmul.f32 %v5206_v39, %v5206_v39  ;;  %v5216_v57 = vld [vmem:[#allocation2 + $0x1a0] sm:$0xff]  ;;  %v2607_v61 = vmul.f32 %v5211_v47, %v5211_v47 }
 0x2c2   : > { %v2530_v8 = vadd.f32 %v2529_v1, %v5176_v56  ;;  %v2662_v12 = vadd.f32 %v2661_v4, %v2599_v60 }
 0x2c4   : > { %v2531_v15 = vadd.f32 %v2530_v8, %v5181_v63  ;;  %v2663_v19 = vadd.f32 %v2662_v12, %v2600_v3  ;;  %v5221_v3 = vld [vmem:[#allocation2 + $0x1f0] sm:$0xff]  ;;  %v2608_v8 = vmul.f32 %v5216_v57, %v5216_v57  ;;  %v5226_v12 = vld [vmem:[#allocation2 + $0xe8] sm:$0xff] }
 0x2c5   : > { %6029 = vst [vmem:[#allocation4_spill] sm:$0xff] %v5221_v3  ;;  %6030 = vst [vmem:[#allocation5_spill] sm:$0xff] %v5226_v12 }
 0x2c6   : > { %v2532_v23 = vadd.f32 %v2531_v15, %v5186_v7  ;;  %v2664_v25 = vadd.f32 %v2663_v19, %v2601_v9 }
 0x2c8   : > { %v2533_v29 = vadd.f32 %v2532_v23, %v5191_v13  ;;  %v2665_v33 = vadd.f32 %v2664_v25, %v2602_v17  ;;  %v2609_v17 = vmul.f32 %v5221_v3, %v5221_v3  ;;  %v5231_v23 = vld [vmem:[#allocation2 + $0x78] sm:$0xff]  ;;  %v2610_v25 = vmul.f32 %v5226_v12, %v5226_v12 }
 0x2c9   : > { %6031 = vst [vmem:[#allocation6_spill] sm:$0xff] %v5231_v23 }
 0x2ca   : > { %v2534_v40 = vadd.f32 %v2533_v29, %v5196_v20  ;;  %v2666_v45 = vadd.f32 %v2665_v33, %v2603_v24 }
 0x2cc   : > { %v2535_v51 = vadd.f32 %v2534_v40, %v5201_v28  ;;  %v2667_v55 = vadd.f32 %v2666_v45, %v2604_v31  ;;  %v5236_v31 = vld [vmem:[#allocation2 + $0x70] sm:$0xff]  ;;  %v2611_v40 = vmul.f32 %v5231_v23, %v5231_v23 }
 0x2cd   : > { %6032 = vst [vmem:[#allocation7_spill] sm:$0xff] %v5236_v31  ;;  %v5241_v45 = vld [vmem:[#allocation2 + $0x90] sm:$0xff] }
 0x2ce   : > { %v2536_v60 = vadd.f32 %v2535_v51, %v5206_v39  ;;  %v2668_v1 = vadd.f32 %v2667_v55, %v2605_v44  ;;  %6033 = vst [vmem:[#allocation8_spill] sm:$0xff] %v5241_v45 }
 0x2d0   : > { %v2537_v4 = vadd.f32 %v2536_v60, %v5211_v47  ;;  %v2669_v9 = vadd.f32 %v2668_v1, %v2606_v52  ;;  %v2612_v52 = vmul.f32 %v5236_v31, %v5236_v31  ;;  %v5246_v60 = vld [vmem:[#allocation2 + $0x1d8] sm:$0xff]  ;;  %v2613_v1 = vmul.f32 %v5241_v45, %v5241_v45 }
 0x2d1   : > { %6034 = vst [vmem:[#allocation9_spill] sm:$0xff] %v5246_v60 }
 0x2d2   : > { %v2538_v15 = vadd.f32 %v2537_v4, %v5216_v57  ;;  %v2670_v19 = vadd.f32 %v2669_v9, %v2607_v61 }
 0x2d4   : > { %v2539_v24 = vadd.f32 %v2538_v15, %v5221_v3  ;;  %v2671_v29 = vadd.f32 %v2670_v19, %v2608_v8  ;;  %v5251_v8 = vld [vmem:[#allocation2 + $0xd0] sm:$0xff]  ;;  %v2614_v15 = vmul.f32 %v5246_v60, %v5246_v60  ;;  %v5256_v19 = vld [vmem:[#allocation2 + $0xb8] sm:$0xff] }
 0x2d5   : > { %6035 = vst [vmem:[#allocation10_spill] sm:$0xff] %v5251_v8  ;;  %6036 = vst [vmem:[#allocation11_spill] sm:$0xff] %v5256_v19 }
 0x2d6   : > { %v2540_v33 = vadd.f32 %v2539_v24, %v5226_v12  ;;  %v2672_v44 = vadd.f32 %v2671_v29, %v2609_v17 }
 0x2d8   : > { %v2541_v51 = vadd.f32 %v2540_v33, %v5231_v23  ;;  %v2673_v55 = vadd.f32 %v2672_v44, %v2610_v25  ;;  %v2615_v25 = vmul.f32 %v5251_v8, %v5251_v8  ;;  %v5261_v33 = vld [vmem:[#allocation2 + $0x88] sm:$0xff]  ;;  %v2616_v44 = vmul.f32 %v5256_v19, %v5256_v19 }
 0x2d9   : > { %6037 = vst [vmem:[#allocation12_spill] sm:$0xff] %v5261_v33 }
 0x2da   : > { %v2542_v61 = vadd.f32 %v2541_v51, %v5236_v31  ;;  %v2674_v4 = vadd.f32 %v2673_v55, %v2611_v40  ;;  %v5266_v55 = vld [vmem:[#allocation2 + $0xa8] sm:$0xff] }
 0x2db   : > { %6038 = vst [vmem:[#allocation13_spill] sm:$0xff] %v5266_v55 }
 0x2dc   : > { %v2543_v9 = vadd.f32 %v2542_v61, %v5241_v45  ;;  %v2675_v17 = vadd.f32 %v2674_v4, %v2612_v52  ;;  %v2617_v61 = vmul.f32 %v5261_v33, %v5261_v33 }
 0x2de   : > { %v2544_v24 = vadd.f32 %v2543_v9, %v5246_v60  ;;  %v2676_v29 = vadd.f32 %v2675_v17, %v2613_v1  ;;  %v5271_v9 = vld [vmem:[#allocation2 + $0x1c8] sm:$0xff]  ;;  %v2618_v17 = vmul.f32 %v5266_v55, %v5266_v55 }
 0x2df   : > { %6039 = vst [vmem:[#allocation14_spill] sm:$0xff] %v5271_v9 }
 0x2e0   : > { %v2545_v40 = vadd.f32 %v2544_v24, %v5251_v8  ;;  %v2677_v51 = vadd.f32 %v2676_v29, %v2614_v15  ;;  %v5276_v8 = vld [vmem:[#allocation2 + $0x170] sm:$0xff]  ;;  %v2619_v29 = vmul.f32 %v5271_v9, %v5271_v9 }
 0x2e1   : > { %6040 = vst [vmem:[#allocation15_spill] sm:$0xff] %v5276_v8 }
 0x2e2   : > { %v2546_v52 = vadd.f32 %v2545_v40, %v5256_v19  ;;  %v2678_v4 = vadd.f32 %v2677_v51, %v2615_v25  ;;  %v5281_v19 = vld [vmem:[#allocation2 + $0x178] sm:$0xff]  ;;  %v2620_v51 = vmul.f32 %v5276_v8, %v5276_v8 }
 0x2e3   : > { %6041 = vst [vmem:[#allocation16_spill] sm:$0xff] %v5281_v19 }
 0x2e4   : > { %v2547_v1 = vadd.f32 %v2546_v52, %v5261_v33  ;;  %v2679_v24 = vadd.f32 %v2678_v4, %v2616_v44  ;;  %v5286_v33 = vld [vmem:[#allocation2 + $0x68] sm:$0xff]  ;;  %v2621_v4 = vmul.f32 %v5281_v19, %v5281_v19 }
 0x2e5   : > { %6042 = vst [vmem:[#allocation17_spill] sm:$0xff] %v5286_v33 }
 0x2e6   : > { %v2548_v15 = vadd.f32 %v2547_v1, %v5266_v55  ;;  %v2680_v40 = vadd.f32 %v2679_v24, %v2617_v61  ;;  %v5291_v55 = vld [vmem:[#allocation2 + $0x190] sm:$0xff]  ;;  %v2622_v24 = vmul.f32 %v5286_v33, %v5286_v33 }
 0x2e7   : > { %6043 = vst [vmem:[#allocation18_spill] sm:$0xff] %v5291_v55 }
 0x2e8   : > { %v2549_v25 = vadd.f32 %v2548_v15, %v5271_v9  ;;  %v2681_v52 = vadd.f32 %v2680_v40, %v2618_v17  ;;  %v5296_v9 = vld [vmem:[#allocation2 + $0x198] sm:$0xff]  ;;  %v2623_v40 = vmul.f32 %v5291_v55, %v5291_v55 }
 0x2e9   : > { %6044 = vst [vmem:[#allocation19_spill] sm:$0xff] %v5296_v9 }
 0x2ea   : > { %v2550_v44 = vadd.f32 %v2549_v25, %v5276_v8  ;;  %v2682_v1 = vadd.f32 %v2681_v52, %v2619_v29  ;;  %v5301_v8 = vld [vmem:[#allocation2 + $0x38] sm:$0xff]  ;;  %v2624_v52 = vmul.f32 %v5296_v9, %v5296_v9 }
 0x2eb   : > { %6045 = vst [vmem:[#allocation20_spill] sm:$0xff] %v5301_v8 }
 0x2ec   : > { %v2551_v61 = vadd.f32 %v2550_v44, %v5281_v19  ;;  %v2683_v15 = vadd.f32 %v2682_v1, %v2620_v51  ;;  %v5306_v19 = vld [vmem:[#allocation2 + $0xc0] sm:$0xff]  ;;  %v2625_v1 = vmul.f32 %v5301_v8, %v5301_v8 }
 0x2ed   : > { %6046 = vst [vmem:[#allocation21_spill] sm:$0xff] %v5306_v19 }
 0x2ee   : > { %v2552_v17 = vadd.f32 %v2551_v61, %v5286_v33  ;;  %v2684_v25 = vadd.f32 %v2683_v15, %v2621_v4  ;;  %v5311_v33 = vld [vmem:[#allocation2 + $0x1c0] sm:$0xff]  ;;  %v2626_v15 = vmul.f32 %v5306_v19, %v5306_v19 }
 0x2ef   : > { %6047 = vst [vmem:[#allocation22_spill] sm:$0xff] %v5311_v33 }
 0x2f0   : > { %v2553_v29 = vadd.f32 %v2552_v17, %v5291_v55  ;;  %v2685_v44 = vadd.f32 %v2684_v25, %v2622_v24  ;;  %v5316_v55 = vld [vmem:[#allocation2 + $0x158] sm:$0xff]  ;;  %v2627_v25 = vmul.f32 %v5311_v33, %v5311_v33 }
 0x2f1   : > { %6048 = vst [vmem:[#allocation23_spill] sm:$0xff] %v5316_v55 }
 0x2f2   : > { %v2554_v51 = vadd.f32 %v2553_v29, %v5296_v9  ;;  %v2686_v61 = vadd.f32 %v2685_v44, %v2623_v40  ;;  %v5321_v9 = vld [vmem:[#allocation2 + $0x10] sm:$0xff]  ;;  %v2628_v44 = vmul.f32 %v5316_v55, %v5316_v55 }
 0x2f3   : > { %6049 = vst [vmem:[#allocation24_spill] sm:$0xff] %v5321_v9 }
 0x2f4   : > { %v2555_v4 = vadd.f32 %v2554_v51, %v5301_v8  ;;  %v2687_v17 = vadd.f32 %v2686_v61, %v2624_v52  ;;  %v5326_v8 = vld [vmem:[#allocation2 + $0x58] sm:$0xff]  ;;  %v2629_v61 = vmul.f32 %v5321_v9, %v5321_v9 }
 0x2f5   : > { %6050 = vst [vmem:[#allocation25_spill] sm:$0xff] %v5326_v8 }
 0x2f6   : > { %v2556_v24 = vadd.f32 %v2555_v4, %v5306_v19  ;;  %v2688_v29 = vadd.f32 %v2687_v17, %v2625_v1  ;;  %v5331_v19 = vld [vmem:[#allocation2 + $0xa0] sm:$0xff]  ;;  %v2630_v17 = vmul.f32 %v5326_v8, %v5326_v8 }
 0x2f7   : > { %6051 = vst [vmem:[#allocation26_spill] sm:$0xff] %v5331_v19 }
 0x2f8   : > { %v2557_v40 = vadd.f32 %v2556_v24, %v5311_v33  ;;  %v2689_v51 = vadd.f32 %v2688_v29, %v2626_v15  ;;  %v2631_v15 = vmul.f32 %v5331_v19, %v5331_v19 }
 0x2fa   : > { %v2558_v52 = vadd.f32 %v2557_v40, %v5316_v55  ;;  %v2690_v4 = vadd.f32 %v2689_v51, %v2627_v25 }
 0x2fc   : > { %v2559_v1 = vadd.f32 %v2558_v52, %v5321_v9  ;;  %v2691_v24 = vadd.f32 %v2690_v4, %v2628_v44 }
 0x2fe   : > { %v2560_v33 = vadd.f32 %v2559_v1, %v5326_v8  ;;  %v2692_v29 = vadd.f32 %v2691_v24, %v2629_v61 }
 0x300   : > { %v2561_v40 = vadd.f32 %v2560_v33, %v5331_v19  ;;  %v2693_v55 = vadd.f32 %v2692_v29, %v2630_v17 }
 0x302   : > { %v2562_v60 = vrot.slane %v2561_v40, 4  ;;  %v2694_v45 = vadd.f32 %v2693_v55, %v2631_v15 }
 0x304   : > { %v2563_v25 = vadd.f32 %v2562_v60, %v2561_v40  ;;  %v2695_v51 = vrot.slane %v2694_v45, 4  ;;  %v5469_v60 = vld [vmem:[%s5981_s2] ss:$0 sm:$0xff] }
 0x306   : > { %v2564_v31 = vrot.slane %v2563_v25, 2  ;;  %v2696_v23 = vadd.f32 %v2695_v51, %v2694_v45 }
 0x308   : > { %v2565_v52 = vadd.f32 %v2564_v31, %v2563_v25  ;;  %v2697_v9 = vrot.slane %v2696_v23, 2 }
 0x30a   : > { %v2566_v12 = vrot.slane %v2565_v52, 1  ;;  %v2698_v3 = vadd.f32 %v2697_v9, %v2696_v23 }
 0x30c   : > { %v2567_v44 = vadd.f32 %v2566_v12, %v2565_v52  ;;  %v2699_v4 = vrot.slane %v2698_v3, 1 }
 0x30e   : > { %v5340_v1 = vmul.f32 0.001953125, %v2567_v44  ;;  %v2700_v8 = vadd.f32 %v2699_v4, %v2698_v3  ;;  %v6053_v44 = vld [vmem:[#allocation5_spill] sm:$0xff]  ;;  %v6054_v4 = vld [vmem:[#allocation6_spill] sm:$0xff] }
 0x310   : > { %v2703_v61 = vmul.f32 %v5340_v1, %v5340_v1  ;;  %v2702_v33 = vmul.f32 0.001953125, %v2700_v8  ;;  %v6074_v29 = vsub.f32 %v5020_v34, %v5340_v1  ;;  %v6075_v23 = vsub.f32 %v5022_v35, %v5340_v1  ;;  %v5498_v34 = vld [vmem:[%s5982_s3] ss:$0 sm:$0xff] }
 0x311   : > { %v6076_v31 = vsub.f32 %v5024_v36, %v5340_v1  ;;  %v6077_v3 = vsub.f32 %v5026_v37, %v5340_v1  ;;  %v6078_v35 = vsub.f32 %v5036_v42, %v5340_v1  ;;  %v6079_v36 = vsub.f32 %v5041_v46, %v5340_v1 }
 0x312   : > { %v2704_v17 = vsub.f32 %v2702_v33, %v2703_v61  ;;  %v6055_v61 = vld [vmem:[#allocation7_spill] sm:$0xff]  ;;  %v6080_v37 = vsub.f32 %v5046_v50, %v5340_v1 }
 0x314   : > { %v2705_v24 = vmax.f32 %v2704_v17, 0.0 }
 0x316   : > { %v2770_v45 = vadd.f32 1e-05, %v2705_v24 }
 0x318   : > { %4379 = vrsqrt.f32 %v2770_v45  ;;  %v6052_v45 = vld [vmem:[#allocation4_spill] sm:$0xff] }
 0x325   : > { %v5464_v24 = vpop.eup %4379 }
 0x326   : > { %v2772_v12 = vmul.f32 %v5464_v24, %v6074_v29  ;;  %v2773_v55 = vmul.f32 %v5464_v24, %v6075_v23  ;;  %v2774_v8 = vmul.f32 %v5464_v24, %v6076_v31  ;;  %v2775_v40 = vmul.f32 %v5464_v24, %v6077_v3 }
 0x327   : > { %v2776_v23 = vmul.f32 %v5464_v24, %v6078_v35  ;;  %v2777_v31 = vmul.f32 %v5464_v24, %v6079_v36  ;;  %v2778_v3 = vmul.f32 %v5464_v24, %v6080_v37  ;;  %v6081_v29 = vsub.f32 %v5051_v54, %v5340_v1 }
 0x328   : > { %v2843_v25 = vmul.f32 %v5469_v60, %v2772_v12  ;;  %v2844_v42 = vmul.f32 %v5469_v60, %v2773_v55  ;;  %v2845_v35 = vmul.f32 %v5469_v60, %v2774_v8  ;;  %v2846_v46 = vmul.f32 %v5469_v60, %v2775_v40 }
 0x329   : > { %v2779_v19 = vmul.f32 %v5464_v24, %v6081_v29  ;;  %v2847_v36 = vmul.f32 %v5469_v60, %v2776_v23  ;;  %v2848_v51 = vmul.f32 %v5469_v60, %v2777_v31  ;;  %v2849_v50 = vmul.f32 %v5469_v60, %v2778_v3 }
 0x32a   : > { %v2914_v54 = vadd.f32 %v5498_v34, %v2843_v25  ;;  %v2915_v29 = vadd.f32 %v5498_v34, %v2844_v42  ;;  %v2916_v12 = vadd.f32 %v5498_v34, %v2845_v35  ;;  %v2917_v55 = vadd.f32 %v5498_v34, %v2846_v46 }
 0x32b   : > { %v2850_v37 = vmul.f32 %v5469_v60, %v2779_v19  ;;  %v2918_v8 = vadd.f32 %v5498_v34, %v2847_v36  ;;  %v2919_v40 = vadd.f32 %v5498_v34, %v2848_v51  ;;  %v2920_v23 = vadd.f32 %v5498_v34, %v2849_v50 }
 0x32c   : > { %vm2978_vm0 = vcmp.gt.f32.partialorder %v2914_v54, 0.0  ;;  %vm2979_vm1 = vcmp.gt.f32.partialorder %v2915_v29, 0.0  ;;  %v3042_v3 = vmul.f32 0.2, %v2914_v54  ;;  %v3043_v19 = vmul.f32 0.2, %v2915_v29 }
 0x32d   : > { %v2921_v31 = vadd.f32 %v5498_v34, %v2850_v37  ;;  %vm2980_vm2 = vcmp.gt.f32.partialorder %v2916_v12, 0.0  ;;  %vm2981_vm3 = vcmp.gt.f32.partialorder %v2917_v55, 0.0  ;;  %v3044_v25 = vmul.f32 0.2, %v2916_v12 }
 0x32e   : > { %v3045_v42 = vmul.f32 0.2, %v2917_v55  ;;  %v3106_v52 = vsel %vm2978_vm0, %v2914_v54, %v3042_v3  ;;  %v3107_v35 = vsel %vm2979_vm1, %v2915_v29, %v3043_v19  ;;  %vm2982_vm4 = vcmp.gt.f32.partialorder %v2918_v8, 0.0 }
 0x32f   : > { %vm2983_vm5 = vcmp.gt.f32.partialorder %v2919_v40, 0.0  ;;  %v3925_v46 = vpack.c.bf16 %v3107_v35, %v3106_v52  ;;  %v3108_v36 = vsel %vm2980_vm2, %v2916_v12, %v3044_v25  ;;  %v3046_v51 = vmul.f32 0.2, %v2918_v8 }
 0x330   : > { %v3109_v9 = vsel %vm2981_vm3, %v2917_v55, %v3045_v42  ;;  %v3047_v50 = vmul.f32 0.2, %v2919_v40  ;;  %vm2984_vm6 = vcmp.gt.f32.partialorder %v2920_v23, 0.0  ;;  %vm2985_vm7 = vcmp.gt.f32.partialorder %v2921_v31, 0.0 }
 0x331   : > { %v3930_v15 = vpack.c.bf16 %v3109_v9, %v3108_v36  ;;  %3926 = vst [vmem:[%s5983_s4] sm:$0xff] %v3925_v46   ;;  %v3110_v37 = vsel %vm2982_vm4, %v2918_v8, %v3046_v51  ;;  %v3048_v17 = vmul.f32 0.2, %v2920_v23  ;;  %v3049_v33 = vmul.f32 0.2, %v2921_v31 }
 0x332   : > { %v6082_v54 = vsub.f32 %v5056_v58, %v5340_v1  ;;  %v3111_v9 = vsel %vm2983_vm5, %v2919_v40, %v3047_v50  ;;  %v6083_v52 = vsub.f32 %v5061_v62, %v5340_v1  ;;  %v6084_v55 = vsub.f32 %v5066_v2, %v5340_v1 }
 0x333   : > { %4082 = vst [vmem:[%s5983_s4 + $0x8] sm:$0xff] %v3930_v15   ;;  %v6085_v58 = vsub.f32 %v5071_v6, %v5340_v1  ;;  %v3935_v19 = vpack.c.bf16 %v3111_v9, %v3110_v37  ;;  %v3112_v25 = vsel %vm2984_vm6, %v2920_v23, %v3048_v17  ;;  %v3113_v42 = vsel %vm2985_vm7, %v2921_v31, %v3049_v33 }
 0x334   : > { %v2780_v29 = vmul.f32 %v5464_v24, %v6082_v54  ;;  %v2781_v12 = vmul.f32 %v5464_v24, %v6083_v52  ;;  %v2782_v8 = vmul.f32 %v5464_v24, %v6084_v55  ;;  %v3940_v40 = vpack.c.bf16 %v3113_v42, %v3112_v25 }
 0x335   : > { %v2783_v3 = vmul.f32 %v5464_v24, %v6085_v58  ;;  %4083 = vst [vmem:[%s5983_s4 + $0x10] sm:$0xff] %v3935_v19   ;;  %v6086_v6 = vsub.f32 %v5076_v10, %v5340_v1  ;;  %v6087_v17 = vsub.f32 %v5081_v14, %v5340_v1  ;;  %v6088_v31 = vsub.f32 %v5086_v18, %v5340_v1 }
 0x336   : > { %v2851_v15 = vmul.f32 %v5469_v60, %v2780_v29  ;;  %v2852_v62 = vmul.f32 %v5469_v60, %v2781_v12  ;;  %v2853_v35 = vmul.f32 %v5469_v60, %v2782_v8  ;;  %4084 = vst [vmem:[%s5983_s4 + $0x18] sm:$0xff] %v3940_v40   ;;  %v6089_v14 = vsub.f32 %v5091_v22, %v5340_v1 }
 0x337   : > { %v2854_v46 = vmul.f32 %v5469_v60, %v2783_v3  ;;  %v2784_v33 = vmul.f32 %v5464_v24, %v6086_v6  ;;  %v2785_v23 = vmul.f32 %v5464_v24, %v6087_v17  ;;  %v2786_v36 = vmul.f32 %v5464_v24, %v6088_v31 }
 0x338   : > { %v2922_v2 = vadd.f32 %v5498_v34, %v2851_v15  ;;  %v2923_v51 = vadd.f32 %v5498_v34, %v2852_v62  ;;  %v2924_v10 = vadd.f32 %v5498_v34, %v2853_v35  ;;  %v2787_v37 = vmul.f32 %v5464_v24, %v6089_v14 }
 0x339   : > { %v2925_v50 = vadd.f32 %v5498_v34, %v2854_v46  ;;  %v2855_v18 = vmul.f32 %v5469_v60, %v2784_v33  ;;  %v2856_v29 = vmul.f32 %v5469_v60, %v2785_v23  ;;  %v2857_v3 = vmul.f32 %v5469_v60, %v2786_v36 }
 0x33a   : > { %vm2986_vm8 = vcmp.gt.f32.partialorder %v2922_v2, 0.0  ;;  %v3050_v54 = vmul.f32 0.2, %v2922_v2  ;;  %vm2987_vm9 = vcmp.gt.f32.partialorder %v2923_v51, 0.0  ;;  %v3051_v9 = vmul.f32 0.2, %v2923_v51 }
 0x33b   : > { %vm2988_vm10 = vcmp.gt.f32.partialorder %v2924_v10, 0.0  ;;  %vm2989_vm11 = vcmp.gt.f32.partialorder %v2925_v50, 0.0  ;;  %v3052_v12 = vmul.f32 0.2, %v2924_v10  ;;  %v3053_v55 = vmul.f32 0.2, %v2925_v50 }
 0x33c   : > { %v3114_v52 = vsel %vm2986_vm8, %v2922_v2, %v3050_v54  ;;  %v2926_v8 = vadd.f32 %v5498_v34, %v2855_v18  ;;  %v3115_v58 = vsel %vm2987_vm9, %v2923_v51, %v3051_v9  ;;  %v2927_v22 = vadd.f32 %v5498_v34, %v2856_v29 }
 0x33d   : > { %v2858_v19 = vmul.f32 %v5469_v60, %v2787_v37  ;;  %v3945_v25 = vpack.c.bf16 %v3115_v58, %v3114_v52  ;;  %v3116_v42 = vsel %vm2988_vm10, %v2924_v10, %v3052_v12  ;;  %v3117_v15 = vsel %vm2989_vm11, %v2925_v50, %v3053_v55 }
 0x33e   : > { %vm2990_vm12 = vcmp.gt.f32.partialorder %v2926_v8, 0.0  ;;  %v3950_v40 = vpack.c.bf16 %v3117_v15, %v3116_v42  ;;  %vm2991_vm13 = vcmp.gt.f32.partialorder %v2927_v22, 0.0  ;;  %v3054_v62 = vmul.f32 0.2, %v2926_v8 }
 0x33f   : > { %v3055_v35 = vmul.f32 0.2, %v2927_v22  ;;  %4085 = vst [vmem:[%s5983_s4 + $0x20] sm:$0xff] %v3945_v25   ;;  %v2928_v46 = vadd.f32 %v5498_v34, %v2857_v3  ;;  %v2929_v2 = vadd.f32 %v5498_v34, %v2858_v19  ;;  %v6090_v6 = vsub.f32 %v5096_v26, %v5340_v1 }
 0x340   : > { %v6091_v17 = vsub.f32 %v5101_v30, %v5340_v1  ;;  %4086 = vst [vmem:[%s5983_s4 + $0x28] sm:$0xff] %v3950_v40   ;;  %v3118_v31 = vsel %vm2990_vm12, %v2926_v8, %v3054_v62  ;;  %v6092_v51 = vsub.f32 %v5106_v38, %v5340_v1  ;;  %v6093_v26 = vsub.f32 %v5111_v43, %v5340_v1 }
 0x341   : > { %v2788_v33 = vmul.f32 %v5464_v24, %v6090_v6  ;;  %v3119_v36 = vsel %vm2991_vm13, %v2927_v22, %v3055_v35  ;;  %vm2992_vm14 = vcmp.gt.f32.partialorder %v2928_v46, 0.0  ;;  %vm2993_vm15 = vcmp.gt.f32.partialorder %v2929_v2, 0.0 }
 0x342   : > { %v2789_v23 = vmul.f32 %v5464_v24, %v6091_v17  ;;  %v2790_v10 = vmul.f32 %v5464_v24, %v6092_v51  ;;  %v2791_v50 = vmul.f32 %v5464_v24, %v6093_v26  ;;  %v3955_v14 = vpack.c.bf16 %v3119_v36, %v3118_v31 }
 0x343   : > { %v3056_v30 = vmul.f32 0.2, %v2928_v46  ;;  %v3057_v37 = vmul.f32 0.2, %v2929_v2  ;;  %v2859_v54 = vmul.f32 %v5469_v60, %v2788_v33  ;;  %v6094_v9 = vsub.f32 %v5116_v48, %v5340_v1 }
 0x344   : > { %v2860_v18 = vmul.f32 %v5469_v60, %v2789_v23  ;;  %v2861_v29 = vmul.f32 %v5469_v60, %v2790_v10  ;;  %4087 = vst [vmem:[%s5983_s4 + $0x30] sm:$0xff] %v3955_v14   ;;  %v2862_v43 = vmul.f32 %v5469_v60, %v2791_v50  ;;  %v6095_v12 = vsub.f32 %v5121_v53, %v5340_v1 }
 0x345   : > { %v3120_v38 = vsel %vm2992_vm14, %v2928_v46, %v3056_v30  ;;  %v2792_v52 = vmul.f32 %v5464_v24, %v6094_v9  ;;  %v3121_v8 = vsel %vm2993_vm15, %v2929_v2, %v3057_v37  ;;  %v2930_v58 = vadd.f32 %v5498_v34, %v2859_v54 }
 0x346   : > { %v2793_v55 = vmul.f32 %v5464_v24, %v6095_v12  ;;  %v2931_v22 = vadd.f32 %v5498_v34, %v2860_v18  ;;  %v2932_v3 = vadd.f32 %v5498_v34, %v2861_v29  ;;  %v3960_v19 = vpack.c.bf16 %v3121_v8, %v3120_v38 }
 0x347   : > { %v2933_v25 = vadd.f32 %v5498_v34, %v2862_v43  ;;  %v2863_v42 = vmul.f32 %v5469_v60, %v2792_v52  ;;  %vm2994_vm0 = vcmp.gt.f32.partialorder %v2930_v58, 0.0  ;;  %v3058_v15 = vmul.f32 0.2, %v2930_v58 }
 0x348   : > { %v2864_v48 = vmul.f32 %v5469_v60, %v2793_v55  ;;  %vm2995_vm1 = vcmp.gt.f32.partialorder %v2931_v22, 0.0  ;;  %v3059_v53 = vmul.f32 0.2, %v2931_v22  ;;  %4088 = vst [vmem:[%s5983_s4 + $0x38] sm:$0xff] %v3960_v19   ;;  %vm2996_vm2 = vcmp.gt.f32.partialorder %v2932_v3, 0.0 }
 0x349   : > { %vm2997_vm3 = vcmp.gt.f32.partialorder %v2933_v25, 0.0  ;;  %v3060_v40 = vmul.f32 0.2, %v2932_v3  ;;  %v3061_v62 = vmul.f32 0.2, %v2933_v25  ;;  %v3122_v35 = vsel %vm2994_vm0, %v2930_v58, %v3058_v15 }
 0x34a   : > { %v3123_v46 = vsel %vm2995_vm1, %v2931_v22, %v3059_v53  ;;  %v2934_v2 = vadd.f32 %v5498_v34, %v2863_v42  ;;  %v2935_v6 = vadd.f32 %v5498_v34, %v2864_v48  ;;  %v6096_v31 = vsub.f32 %v5126_v59, %v5340_v1 }
 0x34b   : > { %v3965_v33 = vpack.c.bf16 %v3123_v46, %v3122_v35  ;;  %v3124_v17 = vsel %vm2996_vm2, %v2932_v3, %v3060_v40  ;;  %v3125_v23 = vsel %vm2997_vm3, %v2933_v25, %v3061_v62  ;;  %v6097_v50 = vsub.f32 %v5131_v0, %v5340_v1 }
 0x34c   : > { %v2794_v36 = vmul.f32 %v5464_v24, %v6096_v31  ;;  %v3970_v51 = vpack.c.bf16 %v3125_v23, %v3124_v17  ;;  %vm2998_vm4 = vcmp.gt.f32.partialorder %v2934_v2, 0.0  ;;  %vm2999_vm5 = vcmp.gt.f32.partialorder %v2935_v6, 0.0 }
 0x34d   : > { %v3062_v10 = vmul.f32 0.2, %v2934_v2  ;;  %4089 = vst [vmem:[%s5983_s4 + $0x40] sm:$0xff] %v3965_v33   ;;  %v3063_v26 = vmul.f32 0.2, %v2935_v6  ;;  %v2795_v14 = vmul.f32 %v5464_v24, %v6097_v50  ;;  %v6098_v59 = vsub.f32 %v5136_v5, %v5340_v1 }
 0x34e   : > { %v2865_v30 = vmul.f32 %v5469_v60, %v2794_v36  ;;  %4090 = vst [vmem:[%s5983_s4 + $0x48] sm:$0xff] %v3970_v51   ;;  %v6099_v18 = vsub.f32 %v5141_v11, %v5340_v1  ;;  %v6100_v0 = vsub.f32 %v5146_v16, %v5340_v1  ;;  %v6101_v5 = vsub.f32 %v5151_v21, %v5340_v1 }
 0x34f   : > { %v2796_v37 = vmul.f32 %v5464_v24, %v6098_v59  ;;  %v3126_v54 = vsel %vm2998_vm4, %v2934_v2, %v3062_v10  ;;  %v3127_v9 = vsel %vm2999_vm5, %v2935_v6, %v3063_v26  ;;  %v2866_v52 = vmul.f32 %v5469_v60, %v2795_v14 }
 0x350   : > { %v2797_v29 = vmul.f32 %v5464_v24, %v6099_v18  ;;  %v2798_v38 = vmul.f32 %v5464_v24, %v6100_v0  ;;  %v2799_v43 = vmul.f32 %v5464_v24, %v6101_v5  ;;  %v2936_v12 = vadd.f32 %v5498_v34, %v2865_v30 }
 0x351   : > { %v2867_v55 = vmul.f32 %v5469_v60, %v2796_v37  ;;  %v3975_v11 = vpack.c.bf16 %v3127_v9, %v3126_v54  ;;  %v2937_v22 = vadd.f32 %v5498_v34, %v2866_v52  ;;  %v6102_v48 = vsub.f32 %v5156_v27, %v5340_v1 }
 0x352   : > { %v2868_v8 = vmul.f32 %v5469_v60, %v2797_v29  ;;  %v2869_v58 = vmul.f32 %v5469_v60, %v2798_v38  ;;  %v2870_v16 = vmul.f32 %v5469_v60, %v2799_v43  ;;  %vm3000_vm6 = vcmp.gt.f32.partialorder %v2936_v12, 0.0 }
 0x353   : > { %v3064_v21 = vmul.f32 0.2, %v2936_v12  ;;  %v2938_v3 = vadd.f32 %v5498_v34, %v2867_v55  ;;  %4091 = vst [vmem:[%s5983_s4 + $0x50] sm:$0xff] %v3975_v11   ;;  %v2800_v15 = vmul.f32 %v5464_v24, %v6102_v48  ;;  %vm3001_vm7 = vcmp.gt.f32.partialorder %v2937_v22, 0.0 }
 0x354   : > { %v2939_v19 = vadd.f32 %v5498_v34, %v2868_v8  ;;  %v2940_v25 = vadd.f32 %v5498_v34, %v2869_v58  ;;  %v2941_v42 = vadd.f32 %v5498_v34, %v2870_v16  ;;  %v3065_v53 = vmul.f32 0.2, %v2937_v22 }
 0x355   : > { %v3128_v40 = vsel %vm3000_vm6, %v2936_v12, %v3064_v21  ;;  %vm3002_vm8 = vcmp.gt.f32.partialorder %v2938_v3, 0.0  ;;  %v3066_v62 = vmul.f32 0.2, %v2938_v3  ;;  %v6103_v27 = vsub.f32 %v5161_v32, %v5340_v1 }
 0x356   : > { %vm3003_vm9 = vcmp.gt.f32.partialorder %v2939_v19, 0.0  ;;  %v3067_v35 = vmul.f32 0.2, %v2939_v19  ;;  %vm3004_vm10 = vcmp.gt.f32.partialorder %v2940_v25, 0.0  ;;  %v3129_v46 = vsel %vm3001_vm7, %v2937_v22, %v3065_v53 }
 0x357   : > { %vm3005_vm11 = vcmp.gt.f32.partialorder %v2941_v42, 0.0  ;;  %v3068_v2 = vmul.f32 0.2, %v2940_v25  ;;  %v3069_v6 = vmul.f32 0.2, %v2941_v42  ;;  %v3980_v33 = vpack.c.bf16 %v3129_v46, %v3128_v40 }
 0x358   : > { %v3130_v17 = vsel %vm3002_vm8, %v2938_v3, %v3066_v62  ;;  %v3131_v23 = vsel %vm3003_vm9, %v2939_v19, %v3067_v35  ;;  %v2801_v31 = vmul.f32 %v5464_v24, %v6103_v27  ;;  %v2871_v26 = vmul.f32 %v5469_v60, %v2800_v15 }
 0x359   : > { %v3985_v36 = vpack.c.bf16 %v3131_v23, %v3130_v17  ;;  %v3132_v51 = vsel %vm3004_vm10, %v2940_v25, %v3068_v2  ;;  %v3133_v10 = vsel %vm3005_vm11, %v2941_v42, %v3069_v6  ;;  %4092 = vst [vmem:[%s5983_s4 + $0x58] sm:$0xff] %v3980_v33   ;;  %v6104_v30 = vsub.f32 %v5166_v41, %v5340_v1 }
 0x35a   : > { %v3990_v50 = vpack.c.bf16 %v3133_v10, %v3132_v51  ;;  %v2872_v14 = vmul.f32 %v5469_v60, %v2801_v31  ;;  %v6105_v32 = vsub.f32 %v5171_v49, %v5340_v1  ;;  %v2942_v54 = vadd.f32 %v5498_v34, %v2871_v26 }
 0x35b   : > { %v2802_v59 = vmul.f32 %v5464_v24, %v6104_v30  ;;  %4093 = vst [vmem:[%s5983_s4 + $0x60] sm:$0xff] %v3985_v36   ;;  %v6106_v18 = vsub.f32 %v5176_v56, %v5340_v1  ;;  %v6107_v41 = vsub.f32 %v5181_v63, %v5340_v1  ;;  %v6108_v49 = vsub.f32 %v5186_v7, %v5340_v1 }
 0x35c   : > { %v2803_v37 = vmul.f32 %v5464_v24, %v6105_v32  ;;  %4094 = vst [vmem:[%s5983_s4 + $0x68] sm:$0xff] %v3990_v50   ;;  %v2943_v5 = vadd.f32 %v5498_v34, %v2872_v14  ;;  %v6109_v63 = vsub.f32 %v5191_v13, %v5340_v1  ;;  %vm3006_vm12 = vcmp.gt.f32.partialorder %v2942_v54, 0.0 }
 0x35d   : > { %v2804_v29 = vmul.f32 %v5464_v24, %v6106_v18  ;;  %v2805_v0 = vmul.f32 %v5464_v24, %v6107_v41  ;;  %v2806_v38 = vmul.f32 %v5464_v24, %v6108_v49  ;;  %v2873_v56 = vmul.f32 %v5469_v60, %v2802_v59 }
 0x35e   : > { %v2874_v43 = vmul.f32 %v5469_v60, %v2803_v37  ;;  %v2807_v9 = vmul.f32 %v5464_v24, %v6109_v63  ;;  %v3070_v52 = vmul.f32 0.2, %v2942_v54  ;;  %vm3007_vm13 = vcmp.gt.f32.partialorder %v2943_v5, 0.0 }
 0x35f   : > { %v2875_v7 = vmul.f32 %v5469_v60, %v2804_v29  ;;  %v2876_v12 = vmul.f32 %v5469_v60, %v2805_v0  ;;  %v3071_v55 = vmul.f32 0.2, %v2943_v5  ;;  %v2944_v11 = vadd.f32 %v5498_v34, %v2873_v56 }
 0x360   : > { %v2945_v8 = vadd.f32 %v5498_v34, %v2874_v43  ;;  %v3134_v58 = vsel %vm3006_vm12, %v2942_v54, %v3070_v52  ;;  %v2877_v13 = vmul.f32 %v5469_v60, %v2806_v38  ;;  %v2878_v53 = vmul.f32 %v5469_v60, %v2807_v9 }
 0x361   : > { %v2946_v16 = vadd.f32 %v5498_v34, %v2875_v7  ;;  %v2947_v22 = vadd.f32 %v5498_v34, %v2876_v12  ;;  %v3135_v21 = vsel %vm3007_vm13, %v2943_v5, %v3071_v55  ;;  %vm3008_vm14 = vcmp.gt.f32.partialorder %v2944_v11, 0.0 }
 0x362   : > { %vm3009_vm15 = vcmp.gt.f32.partialorder %v2945_v8, 0.0  ;;  %v3072_v3 = vmul.f32 0.2, %v2944_v11  ;;  %v3995_v19 = vpack.c.bf16 %v3135_v21, %v3134_v58  ;;  %v3073_v25 = vmul.f32 0.2, %v2945_v8 }
 0x363   : > { %vm3010_vm0 = vcmp.gt.f32.partialorder %v2946_v16, 0.0  ;;  %vm3011_vm1 = vcmp.gt.f32.partialorder %v2947_v22, 0.0  ;;  %v3074_v48 = vmul.f32 0.2, %v2946_v16  ;;  %v3075_v15 = vmul.f32 0.2, %v2947_v22 }
 0x364   : > { %v3136_v42 = vsel %vm3008_vm14, %v2944_v11, %v3072_v3  ;;  %4095 = vst [vmem:[%s5983_s4 + $0x70] sm:$0xff] %v3995_v19   ;;  %v3137_v40 = vsel %vm3009_vm15, %v2945_v8, %v3073_v25  ;;  %v2948_v62 = vadd.f32 %v5498_v34, %v2877_v13  ;;  %v6110_v35 = vsub.f32 %v5196_v20, %v5340_v1 }
 0x365   : > { %v6111_v2 = vsub.f32 %v5201_v28, %v5340_v1  ;;  %v4000_v33 = vpack.c.bf16 %v3137_v40, %v3136_v42  ;;  %v3138_v17 = vsel %vm3010_vm0, %v2946_v16, %v3074_v48  ;;  %v3139_v23 = vsel %vm3011_vm1, %v2947_v22, %v3075_v15  ;;  %v6119_v40 = vld [vmem:[#allocation8_spill] sm:$0xff] }
 0x366   : > { %v2808_v46 = vmul.f32 %v5464_v24, %v6110_v35  ;;  %v2949_v27 = vadd.f32 %v5498_v34, %v2878_v53  ;;  %v4005_v31 = vpack.c.bf16 %v3139_v23, %v3138_v17  ;;  %vm3012_vm2 = vcmp.gt.f32.partialorder %v2948_v62, 0.0  ;;  %v6123_v23 = vld [vmem:[#allocation10_spill] sm:$0xff] }
 0x367   : > { %v2809_v6 = vmul.f32 %v5464_v24, %v6111_v2  ;;  %v3076_v36 = vmul.f32 0.2, %v2948_v62  ;;  %4096 = vst [vmem:[%s5983_s4 + $0x78] sm:$0xff] %v4000_v33   ;;  %v6112_v10 = vsub.f32 %v5206_v39, %v5340_v1  ;;  %v6113_v30 = vsub.f32 %v5211_v47, %v5340_v1 }
 0x368   : > { %v2879_v51 = vmul.f32 %v5469_v60, %v2808_v46  ;;  %vm3013_vm3 = vcmp.gt.f32.partialorder %v2949_v27, 0.0  ;;  %v3077_v20 = vmul.f32 0.2, %v2949_v27  ;;  %4097 = vst [vmem:[%s5983_s4 + $0x80] sm:$0xff] %v4005_v31   ;;  %v6114_v32 = vsub.f32 %v5216_v57, %v5340_v1  ;;  %v6121_v46 = vld [vmem:[#allocation9_spill] sm:$0xff] }
 0x369   : > { %v2880_v28 = vmul.f32 %v5469_v60, %v2809_v6  ;;  %v2810_v26 = vmul.f32 %v5464_v24, %v6112_v10  ;;  %v3140_v50 = vsel %vm3012_vm2, %v2948_v62, %v3076_v36  ;;  %v2811_v59 = vmul.f32 %v5464_v24, %v6113_v30 }
 0x36a   : > { %v2950_v14 = vadd.f32 %v5498_v34, %v2879_v51  ;;  %v2812_v37 = vmul.f32 %v5464_v24, %v6114_v32  ;;  %v3141_v39 = vsel %vm3013_vm3, %v2949_v27, %v3077_v20  ;;  %v6115_v29 = vsub.f32 %v6052_v45, %v5340_v1 }
 0x36b   : > { %v2951_v54 = vadd.f32 %v5498_v34, %v2880_v28  ;;  %v2881_v18 = vmul.f32 %v5469_v60, %v2810_v26  ;;  %v4010_v0 = vpack.c.bf16 %v3141_v39, %v3140_v50  ;;  %v2882_v49 = vmul.f32 %v5469_v60, %v2811_v59  ;;  %v6125_v59 = vld [vmem:[#allocation11_spill] sm:$0xff] }
 0x36c   : > { %v2813_v41 = vmul.f32 %v5464_v24, %v6115_v29  ;;  %vm3014_vm4 = vcmp.gt.f32.partialorder %v2950_v14, 0.0  ;;  %v3078_v47 = vmul.f32 0.2, %v2950_v14  ;;  %v2883_v5 = vmul.f32 %v5469_v60, %v2812_v37 }
 0x36d   : > { %vm3015_vm5 = vcmp.gt.f32.partialorder %v2951_v54, 0.0  ;;  %v3079_v38 = vmul.f32 0.2, %v2951_v54  ;;  %v2952_v57 = vadd.f32 %v5498_v34, %v2881_v18  ;;  %4098 = vst [vmem:[%s5983_s4 + $0x88] sm:$0xff] %v4010_v0   ;;  %v2953_v45 = vadd.f32 %v5498_v34, %v2882_v49 }
 0x36e   : > { %v3142_v56 = vsel %vm3014_vm4, %v2950_v14, %v3078_v47  ;;  %v2884_v43 = vmul.f32 %v5469_v60, %v2813_v41  ;;  %v6116_v63 = vsub.f32 %v6053_v44, %v5340_v1  ;;  %v2954_v12 = vadd.f32 %v5498_v34, %v2883_v5 }
 0x36f   : > { %v3143_v52 = vsel %vm3015_vm5, %v2951_v54, %v3079_v38  ;;  %vm3016_vm6 = vcmp.gt.f32.partialorder %v2952_v57, 0.0  ;;  %v3080_v7 = vmul.f32 0.2, %v2952_v57  ;;  %vm3017_vm7 = vcmp.gt.f32.partialorder %v2953_v45, 0.0 }
 0x370   : > { %v2814_v9 = vmul.f32 %v5464_v24, %v6116_v63  ;;  %v4015_v55 = vpack.c.bf16 %v3143_v52, %v3142_v56  ;;  %v3081_v11 = vmul.f32 0.2, %v2953_v45  ;;  %v2955_v8 = vadd.f32 %v5498_v34, %v2884_v43  ;;  %v6129_v43 = vld [vmem:[#allocation13_spill] sm:$0xff] }
 0x371   : > { %v3144_v58 = vsel %vm3016_vm6, %v2952_v57, %v3080_v7  ;;  %vm3018_vm8 = vcmp.gt.f32.partialorder %v2954_v12, 0.0  ;;  %v3082_v16 = vmul.f32 0.2, %v2954_v12  ;;  %v6117_v22 = vsub.f32 %v6054_v4, %v5340_v1  ;;  %v6127_v57 = vld [vmem:[#allocation12_spill] sm:$0xff] }
 0x372   : > { %4099 = vst [vmem:[%s5983_s4 + $0x90] sm:$0xff] %v4015_v55   ;;  %v3145_v13 = vsel %vm3017_vm7, %v2953_v45, %v3081_v11  ;;  %vm3019_vm9 = vcmp.gt.f32.partialorder %v2955_v8, 0.0  ;;  %v3083_v21 = vmul.f32 0.2, %v2955_v8  ;;  %v2885_v3 = vmul.f32 %v5469_v60, %v2814_v9  ;;  %v6131_v55 = vld [vmem:[#allocation14_spill] sm:$0xff] }
 0x373   : > { %v2815_v44 = vmul.f32 %v5464_v24, %v6117_v22  ;;  %v4020_v19 = vpack.c.bf16 %v3145_v13, %v3144_v58  ;;  %v3146_v25 = vsel %vm3018_vm8, %v2954_v12, %v3082_v16  ;;  %v6118_v48 = vsub.f32 %v6055_v61, %v5340_v1 }
 0x374   : > { %v3147_v15 = vsel %vm3019_vm9, %v2955_v8, %v3083_v21  ;;  %v2956_v53 = vadd.f32 %v5498_v34, %v2885_v3  ;;  %v6120_v62 = vsub.f32 %v6119_v40, %v5340_v1  ;;  %v6122_v2 = vsub.f32 %v6121_v46, %v5340_v1  ;;  %v6133_v21 = vld [vmem:[#allocation15_spill] sm:$0xff] }
 0x375   : > { %v2886_v42 = vmul.f32 %v5469_v60, %v2815_v44  ;;  %v2816_v4 = vmul.f32 %v5464_v24, %v6118_v48  ;;  %4100 = vst [vmem:[%s5983_s4 + $0x98] sm:$0xff] %v4020_v19   ;;  %v4025_v61 = vpack.c.bf16 %v3147_v15, %v3146_v25  ;;  %v6124_v27 = vsub.f32 %v6123_v23, %v5340_v1  ;;  %v6135_v25 = vld [vmem:[#allocation16_spill] sm:$0xff] }
 0x376   : > { %v2817_v35 = vmul.f32 %v5464_v24, %v6120_v62  ;;  %v2818_v6 = vmul.f32 %v5464_v24, %v6122_v2  ;;  %vm3020_vm10 = vcmp.gt.f32.partialorder %v2956_v53, 0.0  ;;  %v3084_v36 = vmul.f32 0.2, %v2956_v53 }
 0x377   : > { %v2957_v33 = vadd.f32 %v5498_v34, %v2886_v42  ;;  %v2887_v17 = vmul.f32 %v5469_v60, %v2816_v4  ;;  %v2819_v31 = vmul.f32 %v5464_v24, %v6124_v27  ;;  %4101 = vst [vmem:[%s5983_s4 + $0xa0] sm:$0xff] %v4025_v61   ;;  %v6126_v32 = vsub.f32 %v6125_v59, %v5340_v1  ;;  %v6137_v4 = vld [vmem:[#allocation17_spill] sm:$0xff]  ;;  %v6139_v61 = vld [vmem:[#allocation18_spill] sm:$0xff] }
 0x378   : > { %v2888_v51 = vmul.f32 %v5469_v60, %v2817_v35  ;;  %v2889_v20 = vmul.f32 %v5469_v60, %v2818_v6  ;;  %v3148_v50 = vsel %vm3020_vm10, %v2956_v53, %v3084_v36  ;;  %v6128_v5 = vsub.f32 %v6127_v57, %v5340_v1 }
 0x379   : > { %vm3021_vm11 = vcmp.gt.f32.partialorder %v2957_v33, 0.0  ;;  %v3085_v28 = vmul.f32 0.2, %v2957_v33  ;;  %v2958_v10 = vadd.f32 %v5498_v34, %v2887_v17  ;;  %v2890_v26 = vmul.f32 %v5469_v60, %v2819_v31 }
 0x37a   : > { %v2959_v14 = vadd.f32 %v5498_v34, %v2888_v51  ;;  %v2960_v30 = vadd.f32 %v5498_v34, %v2889_v20  ;;  %v2820_v37 = vmul.f32 %v5464_v24, %v6126_v32  ;;  %v2821_v56 = vmul.f32 %v5464_v24, %v6128_v5  ;;  %v6145_v5 = vld [vmem:[#allocation21_spill] sm:$0xff] }
 0x37b   : > { %v3149_v39 = vsel %vm3021_vm11, %v2957_v33, %v3085_v28  ;;  %vm3022_vm12 = vcmp.gt.f32.partialorder %v2958_v10, 0.0  ;;  %v3086_v54 = vmul.f32 0.2, %v2958_v10  ;;  %v2961_v18 = vadd.f32 %v5498_v34, %v2890_v26 }
 0x37c   : > { %v4030_v29 = vpack.c.bf16 %v3149_v39, %v3148_v50  ;;  %vm3023_vm13 = vcmp.gt.f32.partialorder %v2959_v14, 0.0  ;;  %v3087_v41 = vmul.f32 0.2, %v2959_v14  ;;  %vm3024_vm14 = vcmp.gt.f32.partialorder %v2960_v30, 0.0 }
 0x37d   : > { %v3150_v0 = vsel %vm3022_vm12, %v2958_v10, %v3086_v54  ;;  %vm3025_vm15 = vcmp.gt.f32.partialorder %v2961_v18, 0.0  ;;  %v3088_v47 = vmul.f32 0.2, %v2960_v30  ;;  %v3089_v49 = vmul.f32 0.2, %v2961_v18 }
 0x37e   : > { %4102 = vst [vmem:[%s5983_s4 + $0xa8] sm:$0xff] %v4030_v29   ;;  %v3151_v38 = vsel %vm3023_vm13, %v2959_v14, %v3087_v41  ;;  %v2891_v45 = vmul.f32 %v5469_v60, %v2820_v37  ;;  %v6130_v63 = vsub.f32 %v6129_v43, %v5340_v1  ;;  %v6132_v11 = vsub.f32 %v6131_v55, %v5340_v1  ;;  %v6147_v43 = vld [vmem:[#allocation22_spill] sm:$0xff] }
 0x37f   : > { %v4035_v52 = vpack.c.bf16 %v3151_v38, %v3150_v0  ;;  %v3152_v7 = vsel %vm3024_vm14, %v2960_v30, %v3088_v47  ;;  %v3153_v12 = vsel %vm3025_vm15, %v2961_v18, %v3089_v49  ;;  %v2892_v16 = vmul.f32 %v5469_v60, %v2821_v56  ;;  %v6141_v18 = vld [vmem:[#allocation19_spill] sm:$0xff]  ;;  %v6143_v0 = vld [vmem:[#allocation20_spill] sm:$0xff] }
 0x380   : > { %v2822_v9 = vmul.f32 %v5464_v24, %v6130_v63  ;;  %v2823_v8 = vmul.f32 %v5464_v24, %v6132_v11  ;;  %v4040_v58 = vpack.c.bf16 %v3153_v12, %v3152_v7  ;;  %v2962_v22 = vadd.f32 %v5498_v34, %v2891_v45 }
 0x381   : > { %4103 = vst [vmem:[%s5983_s4 + $0xb0] sm:$0xff] %v4035_v52   ;;  %v6134_v3 = vsub.f32 %v6133_v21, %v5340_v1  ;;  %v6136_v42 = vsub.f32 %v6135_v25, %v5340_v1  ;;  %v6138_v15 = vsub.f32 %v6137_v4, %v5340_v1  ;;  %v2963_v40 = vadd.f32 %v5498_v34, %v2892_v16  ;;  %v6151_v21 = vld [vmem:[#allocation24_spill] sm:$0xff] }
 0x382   : > { %v2893_v44 = vmul.f32 %v5469_v60, %v2822_v9  ;;  %v2894_v13 = vmul.f32 %v5469_v60, %v2823_v8  ;;  %4104 = vst [vmem:[%s5983_s4 + $0xb8] sm:$0xff] %v4040_v58   ;;  %vm3026_vm0 = vcmp.gt.f32.partialorder %v2962_v22, 0.0  ;;  %v3090_v62 = vmul.f32 0.2, %v2962_v22 }
 0x383   : > { %v2824_v19 = vmul.f32 %v5464_v24, %v6134_v3  ;;  %v2825_v48 = vmul.f32 %v5464_v24, %v6136_v42  ;;  %v2826_v53 = vmul.f32 %v5464_v24, %v6138_v15  ;;  %v6140_v33 = vsub.f32 %v6139_v61, %v5340_v1 }
 0x384   : > { %v2964_v35 = vadd.f32 %v5498_v34, %v2893_v44  ;;  %v2965_v46 = vadd.f32 %v5498_v34, %v2894_v13  ;;  %vm3027_vm1 = vcmp.gt.f32.partialorder %v2963_v40, 0.0  ;;  %v3091_v23 = vmul.f32 0.2, %v2963_v40 }
 0x385   : > { %v2895_v2 = vmul.f32 %v5469_v60, %v2824_v19  ;;  %v2896_v6 = vmul.f32 %v5469_v60, %v2825_v48  ;;  %v2827_v17 = vmul.f32 %v5464_v24, %v6140_v33  ;;  %v3154_v27 = vsel %vm3026_vm0, %v2962_v22, %v3090_v62  ;;  %v6149_v22 = vld [vmem:[#allocation23_spill] sm:$0xff] }
 0x386   : > { %vm3028_vm2 = vcmp.gt.f32.partialorder %v2964_v35, 0.0  ;;  %vm3029_vm3 = vcmp.gt.f32.partialorder %v2965_v46, 0.0  ;;  %v3092_v31 = vmul.f32 0.2, %v2964_v35  ;;  %v3093_v36 = vmul.f32 0.2, %v2965_v46 }
 0x387   : > { %v2966_v51 = vadd.f32 %v5498_v34, %v2895_v2  ;;  %v3155_v20 = vsel %vm3027_vm1, %v2963_v40, %v3091_v23  ;;  %v2967_v28 = vadd.f32 %v5498_v34, %v2896_v6  ;;  %v2897_v10 = vmul.f32 %v5469_v60, %v2826_v53 }
 0x388   : > { %v2898_v26 = vmul.f32 %v5469_v60, %v2827_v17  ;;  %v4045_v50 = vpack.c.bf16 %v3155_v20, %v3154_v27  ;;  %v3156_v14 = vsel %vm3028_vm2, %v2964_v35, %v3092_v31  ;;  %v3157_v30 = vsel %vm3029_vm3, %v2965_v46, %v3093_v36 }
 0x389   : > { %vm3030_vm4 = vcmp.gt.f32.partialorder %v2966_v51, 0.0  ;;  %v4050_v59 = vpack.c.bf16 %v3157_v30, %v3156_v14  ;;  %vm3031_vm5 = vcmp.gt.f32.partialorder %v2967_v28, 0.0  ;;  %v3094_v32 = vmul.f32 0.2, %v2966_v51  ;;  %v6155_v14 = vld [vmem:[#allocation26_spill] sm:$0xff] }
 0x38a   : > { %v3095_v37 = vmul.f32 0.2, %v2967_v28  ;;  %4105 = vst [vmem:[%s5983_s4 + $0xc0] sm:$0xff] %v4045_v50   ;;  %v2968_v39 = vadd.f32 %v5498_v34, %v2897_v10  ;;  %v2969_v54 = vadd.f32 %v5498_v34, %v2898_v26  ;;  %v6142_v29 = vsub.f32 %v6141_v18, %v5340_v1 }
 0x38b   : > { %v6144_v47 = vsub.f32 %v6143_v0, %v5340_v1  ;;  %4106 = vst [vmem:[%s5983_s4 + $0xc8] sm:$0xff] %v4050_v59   ;;  %v3158_v38 = vsel %vm3030_vm4, %v2966_v51, %v3094_v32  ;;  %v6146_v56 = vsub.f32 %v6145_v5, %v5340_v1  ;;  %v6148_v63 = vsub.f32 %v6147_v43, %v5340_v1  ;;  %v6153_v51 = vld [vmem:[#allocation25_spill] sm:$0xff] }
 0x38c   : > { %v2828_v41 = vmul.f32 %v5464_v24, %v6142_v29  ;;  %v3159_v57 = vsel %vm3031_vm5, %v2967_v28, %v3095_v37  ;;  %vm3032_vm6 = vcmp.gt.f32.partialorder %v2968_v39, 0.0  ;;  %vm3033_vm7 = vcmp.gt.f32.partialorder %v2969_v54, 0.0 }
 0x38d   : > { %v2829_v49 = vmul.f32 %v5464_v24, %v6144_v47  ;;  %v2830_v45 = vmul.f32 %v5464_v24, %v6146_v56  ;;  %v2831_v9 = vmul.f32 %v5464_v24, %v6148_v63  ;;  %v4055_v52 = vpack.c.bf16 %v3159_v57, %v3158_v38 }
 0x38e   : > { %v3096_v7 = vmul.f32 0.2, %v2968_v39  ;;  %v3097_v12 = vmul.f32 0.2, %v2969_v54  ;;  %v2899_v55 = vmul.f32 %v5469_v60, %v2828_v41  ;;  %v6150_v44 = vsub.f32 %v6149_v22, %v5340_v1 }
 0x38f   : > { %v2900_v11 = vmul.f32 %v5469_v60, %v2829_v49  ;;  %v2901_v8 = vmul.f32 %v5469_v60, %v2830_v45  ;;  %4107 = vst [vmem:[%s5983_s4 + $0xd0] sm:$0xff] %v4055_v52   ;;  %v2902_v16 = vmul.f32 %v5469_v60, %v2831_v9  ;;  %v6152_v3 = vsub.f32 %v6151_v21, %v5340_v1 }
 0x390   : > { %v3160_v58 = vsel %vm3032_vm6, %v2968_v39, %v3096_v7  ;;  %v2832_v13 = vmul.f32 %v5464_v24, %v6150_v44  ;;  %v3161_v25 = vsel %vm3033_vm7, %v2969_v54, %v3097_v12  ;;  %v2970_v42 = vadd.f32 %v5498_v34, %v2899_v55 }
 0x391   : > { %v2833_v19 = vmul.f32 %v5464_v24, %v6152_v3  ;;  %v2971_v48 = vadd.f32 %v5498_v34, %v2900_v11  ;;  %v2972_v4 = vadd.f32 %v5498_v34, %v2901_v8  ;;  %v4060_v15 = vpack.c.bf16 %v3161_v25, %v3160_v58 }
 0x392   : > { %v2973_v53 = vadd.f32 %v5498_v34, %v2902_v16  ;;  %v2903_v40 = vmul.f32 %v5469_v60, %v2832_v13  ;;  %vm3034_vm8 = vcmp.gt.f32.partialorder %v2970_v42, 0.0  ;;  %v3098_v35 = vmul.f32 0.2, %v2970_v42 }
 0x393   : > { %v2904_v62 = vmul.f32 %v5469_v60, %v2833_v19  ;;  %vm3035_vm9 = vcmp.gt.f32.partialorder %v2971_v48, 0.0  ;;  %v3099_v46 = vmul.f32 0.2, %v2971_v48  ;;  %4108 = vst [vmem:[%s5983_s4 + $0xd8] sm:$0xff] %v4060_v15   ;;  %vm3036_vm10 = vcmp.gt.f32.partialorder %v2972_v4, 0.0 }
 0x394   : > { %vm3037_vm11 = vcmp.gt.f32.partialorder %v2973_v53, 0.0  ;;  %v3100_v2 = vmul.f32 0.2, %v2972_v4  ;;  %v3101_v6 = vmul.f32 0.2, %v2973_v53  ;;  %v3162_v61 = vsel %vm3034_vm8, %v2970_v42, %v3098_v35 }
 0x395   : > { %v3163_v33 = vsel %vm3035_vm9, %v2971_v48, %v3099_v46  ;;  %v2974_v17 = vadd.f32 %v5498_v34, %v2903_v40  ;;  %v2975_v23 = vadd.f32 %v5498_v34, %v2904_v62  ;;  %v6154_v20 = vsub.f32 %v6153_v51, %v5340_v1 }
 0x396   : > { %v4065_v27 = vpack.c.bf16 %v3163_v33, %v3162_v61  ;;  %v3164_v31 = vsel %vm3036_vm10, %v2972_v4, %v3100_v2  ;;  %v3165_v36 = vsel %vm3037_vm11, %v2973_v53, %v3101_v6  ;;  %v6156_v30 = vsub.f32 %v6155_v14, %v5340_v1 }
 0x397   : > { %v2834_v28 = vmul.f32 %v5464_v24, %v6154_v20  ;;  %v4070_v10 = vpack.c.bf16 %v3165_v36, %v3164_v31  ;;  %vm3038_vm12 = vcmp.gt.f32.partialorder %v2974_v17, 0.0  ;;  %vm3039_vm13 = vcmp.gt.f32.partialorder %v2975_v23, 0.0 }
 0x398   : > { %v3102_v26 = vmul.f32 0.2, %v2974_v17  ;;  %4109 = vst [vmem:[%s5983_s4 + $0xe0] sm:$0xff] %v4065_v27   ;;  %v3103_v50 = vmul.f32 0.2, %v2975_v23  ;;  %v2835_v59 = vmul.f32 %v5464_v24, %v6156_v30 }
 0x399   : > { %v2905_v32 = vmul.f32 %v5469_v60, %v2834_v28  ;;  %4110 = vst [vmem:[%s5983_s4 + $0xe8] sm:$0xff] %v4070_v10  }
 0x39a   : > { %v3166_v37 = vsel %vm3038_vm12, %v2974_v17, %v3102_v26  ;;  %v3167_v39 = vsel %vm3039_vm13, %v2975_v23, %v3103_v50  ;;  %v2906_v54 = vmul.f32 %v5469_v60, %v2835_v59 }
 0x39b   : > { %v2976_v18 = vadd.f32 %v5498_v34, %v2905_v32  ;;  %v4075_v29 = vpack.c.bf16 %v3167_v39, %v3166_v37 }
 0x39c   : > { %v2977_v41 = vadd.f32 %v5498_v34, %v2906_v54 }
 0x39d   : > { %vm3040_vm14 = vcmp.gt.f32.partialorder %v2976_v18, 0.0  ;;  %v3104_v0 = vmul.f32 0.2, %v2976_v18  ;;  %4111 = vst [vmem:[%s5983_s4 + $0xf0] sm:$0xff] %v4075_v29  }
 0x39e   : > { %vm3041_vm15 = vcmp.gt.f32.partialorder %v2977_v41, 0.0  ;;  %v3105_v1 = vmul.f32 0.2, %v2977_v41 }
 0x39f   : > { %v3168_v24 = vsel %vm3040_vm14, %v2976_v18, %v3104_v0 }
 0x3a0   : > { %v3169_v47 = vsel %vm3041_vm15, %v2977_v41, %v3105_v1 }
 0x3a1   : > { %v4080_v49 = vpack.c.bf16 %v3169_v47, %v3168_v24 }
 0x3a3   : > { %4112 = vst [vmem:[%s5983_s4 + $0xf8] sm:$0xff] %v4080_v49  }
 0x3a4 PF: > { %s14_s19 = sadd.s32 1, %s4419_s19   ;;  %s6157_s15 = smov %s4407_s16 }
 0x3a5   : > { %p11_p12 = scmp.ge.s32.totalorder %s14_s19, 4   ;;  %s6158_s16 = smov %s4483_s23 }
 0x3a6   : > { %s6159_s17 = smov %s4415_s18  ;;  %s6160_s18 = smov %s6162_s20 }
 0x3a7   :  { %13 = sbr.rel (!%p11_p12) target bundleno = 3 (0x3), region = 111 }

// kernel: discriminator_forward.7
= control target key start
LH: loop header
LB: loop body
LE: loop exit
PB: predicated region body
PF: predicated region fallthrough
CT: control target
= control target key end

     0   :  { %s3120_s0 = inlined_call_operand.vmem [shape: bf16[128,2048], index: 0, kind: input, shape index: {}]   ;;  %s3121_s1 = inlined_call_operand.vmem [shape: bf16[2048,256], index: 1, kind: input, shape index: {}]   ;;  %s3122_s2 = inlined_call_operand.vmem [shape: f32[1,256], index: 2, kind: input, shape index: {}]   ;;  %s3123_s3 = inlined_call_operand.vmem [shape: f32[1,256], index: 3, kind: input, shape index: {}]   ;;  %s3124_s4 = inlined_call_operand.vmem [shape: bf16[128,256], index: 4, kind: output, shape index: {}]  }
   0x1   :  { %3128 = sst [smem:[#allocation9_spill]] %s3120_s0 }
   0x2   :  { %3129 = sst [smem:[#allocation10_spill]] %s3121_s1 }
   0x3   :  { %s2462_s15 = smov 0   ;;  %s2464_s16 = smov 0  }
   0x4   :  { %s2466_s17 = smov 0   ;;  %s2468_s18 = smov 0  }
   0x5   :  { %s2470_s19 = smov 0   ;;  %s2472_s20 = smov 0  }
   0x6   :  { %s2474_s21 = smov 0   ;;  %s2476_s22 = smov 0  }
   0x7   :  { %s2478_s23 = smov 0   ;;  %s2480_s24 = smov 0  }
   0x8   :  { %s2482_s25 = smov 0  }
   0x9 LB: > { %3130 = sst [smem:[#allocation6_spill]] %s2430_s24  ;;  %s1881_s26 = sadd.s32 4294967295, %s2434_s25   ;;  %s2434_s25 = sphi %s2482_s25, %s14_s25   ;;  %s2430_s24 = sphi %s2480_s24, %s3140_s24   ;;  %s2426_s23 = sphi %s2478_s23, %s3148_s23   ;;  %s2422_s22 = sphi %s2476_s22, %s3138_s22   ;;  %s2418_s21 = sphi %s2474_s21, %s3147_s21   ;;  %s2414_s20 = sphi %s2472_s20, %s3146_s20   ;;  %s2410_s19 = sphi %s2470_s19, %s3145_s19   ;;  %s2406_s18 = sphi %s2468_s18, %s3144_s18   ;;  %s2402_s17 = sphi %s2466_s17, %s3143_s17   ;;  %s2398_s16 = sphi %s2464_s16, %s3142_s16   ;;  %s2394_s15 = sphi %s2462_s15, %s3141_s15  }
   0xa   : > { %s26_s27 = sadd.s32 1, %s2426_s23  ;;  %s29_s28 = sadd.s32 1, %s2430_s24 }
   0xb   : > { %p27_p0 = scmp.ge.s32.totalorder %s26_s27, 4  ;;  %s42_s29 = sadd.s32 1, %s2414_s20 }
   0xc   : > { %p49_p1 = scmp.ne.s32.totalorder %s2414_s20, %s2410_s19  ;;  %p50_p2 = scmp.eq.s32.totalorder %s2434_s25, 0 }
   0xd   : > { %s3150_s27 = smov (%p27_p0, %s26_s27), 0  ;;  %s3152_s28 = smov (!%p27_p0, %s29_s28), %s2430_s24 }
   0xe   : > { %3131 = sst [smem:[#allocation7_spill]] %s3150_s27  ;;  %s38_s30 = ssub.s32 %s2426_s23, %s3150_s27 }
   0xf   : > { %p31_p3 = scmp.ge.s32.totalorder %s3152_s28, 2  ;;  %p40_p4 = scmp.eq.s32.totalorder %s38_s30, 0 }
  0x10   : > { %p2529_p5 = por %p50_p2, %p49_p1  ;;  %s70_s6 = sadd.s32 1, %s2406_s18 }
  0x11   : > { %s3154_s28 = smov (%p31_p3, %s3152_s28), 0  ;;  %p77_p6 = scmp.ne.s32.totalorder %s2406_s18, %s2402_s17 }
  0x12   : > { %3133 = sst [smem:[#allocation8_spill]] %s3154_s28  ;;  %s66_s8 = ssub.s32 %s2430_s24, %s3154_s28 }
  0x13   : > { %s2537_s7 = scalar_select %p40_p4, %s2414_s20, %s42_s29  }
  0x14   : > { %s67_s9 = sor.u32 %s66_s8, %s38_s30  ;;  %p148_p7 = scmp.eq.s32.totalorder %s66_s8, 0 }
  0x15   : > { %p68_p8 = scmp.eq.s32.totalorder %s67_s9, 0  ;;  %p2543_p9 = por %p77_p6, %p50_p2 }
  0x16   : > { %s150_s11 = sadd.s32 1, %s2398_s16  ;;  %p160_p10 = scmp.ne.s32.totalorder %s2398_s16, %s2394_s15 }
  0x17   : > { %s2551_s12 = scalar_select %p68_p8, %s2406_s18, %s70_s6  }
  0x18   : > { %s2554_s13 = scalar_select %p148_p7, %s2398_s16, %s150_s11  }
  0x19   : > { %p161_p11 = scmp.eq.s32.totalorder %s1881_s26, 7  ;;  %p1884_p13 = scmp.ge.s32.totalorder %s2434_s25, 8 }
  0x1b   : > { %p2556_p12 = por %p161_p11, %p160_p10  ;;  %183 = sbr.rel (%p1884_p13) target bundleno = 110 (0x6e), region = 16 }
  0x20   : > { %186 = sbr.rel (!%p2529_p5) target bundleno = 58 (0x3a), region = 20  ;;  %s188_s29 = sand.u32 (%p2529_p5), 1, %s2414_s20  }
  0x21   : > { %s1984_s30 = sshll.u32 (%p2529_p5), %s2426_s23, 4  ;;  %s1885_s8 = sshll.u32 (%p2529_p5), %s188_s29, 8 }
  0x22   : > { %s3136_s0 = sld [smem:[#allocation9_spill]] (%p2529_p5)  ;;  %s2573_s26 = scalar_lea.vmem (%p2529_p5), [#allocation3], %s1885_s8 }
  0x28   : > { %s2568_s11 = scalar_lea.vmem %s3136_s0, %s1984_s30 }
  0x29   : > { %v209_v0 = vld [vmem:[%s2568_s11] sm:$0xff]  ;;  %v211_v1 = vld [vmem:[%s2568_s11 + $0x8] sm:$0xff] }
  0x2a   : > { %v213_v2 = vld [vmem:[%s2568_s11 + $0x40] sm:$0xff]  ;;  %210 = vst [vmem:[%s2573_s26] sm:$0xff] %v209_v0  ;;  %212 = vst [vmem:[%s2573_s26 + $0x8] sm:$0xff] %v211_v1  ;;  %v215_v3 = vld [vmem:[%s2568_s11 + $0x48] sm:$0xff] }
  0x2b   : > { %214 = vst [vmem:[%s2573_s26 + $0x10] sm:$0xff] %v213_v2  ;;  %v217_v4 = vld [vmem:[%s2568_s11 + $0x80] sm:$0xff]  ;;  %v219_v5 = vld [vmem:[%s2568_s11 + $0x88] sm:$0xff]  ;;  %216 = vst [vmem:[%s2573_s26 + $0x18] sm:$0xff] %v215_v3 }
  0x2c   : > { %218 = vst [vmem:[%s2573_s26 + $0x20] sm:$0xff] %v217_v4  ;;  %220 = vst [vmem:[%s2573_s26 + $0x28] sm:$0xff] %v219_v5  ;;  %v221_v6 = vld [vmem:[%s2568_s11 + $0xc0] sm:$0xff]  ;;  %v223_v7 = vld [vmem:[%s2568_s11 + $0xc8] sm:$0xff] }
  0x2d   : > { %v225_v8 = vld [vmem:[%s2568_s11 + $0x100] sm:$0xff]  ;;  %222 = vst [vmem:[%s2573_s26 + $0x30] sm:$0xff] %v221_v6  ;;  %224 = vst [vmem:[%s2573_s26 + $0x38] sm:$0xff] %v223_v7  ;;  %v227_v9 = vld [vmem:[%s2568_s11 + $0x108] sm:$0xff] }
  0x2e   : > { %226 = vst [vmem:[%s2573_s26 + $0x40] sm:$0xff] %v225_v8  ;;  %v229_v10 = vld [vmem:[%s2568_s11 + $0x140] sm:$0xff]  ;;  %v231_v11 = vld [vmem:[%s2568_s11 + $0x148] sm:$0xff]  ;;  %228 = vst [vmem:[%s2573_s26 + $0x48] sm:$0xff] %v227_v9 }
  0x2f   : > { %230 = vst [vmem:[%s2573_s26 + $0x50] sm:$0xff] %v229_v10  ;;  %232 = vst [vmem:[%s2573_s26 + $0x58] sm:$0xff] %v231_v11  ;;  %v233_v12 = vld [vmem:[%s2568_s11 + $0x180] sm:$0xff]  ;;  %v235_v13 = vld [vmem:[%s2568_s11 + $0x188] sm:$0xff] }
  0x30   : > { %v237_v14 = vld [vmem:[%s2568_s11 + $0x1c0] sm:$0xff]  ;;  %234 = vst [vmem:[%s2573_s26 + $0x60] sm:$0xff] %v233_v12  ;;  %236 = vst [vmem:[%s2573_s26 + $0x68] sm:$0xff] %v235_v13  ;;  %v239_v15 = vld [vmem:[%s2568_s11 + $0x1c8] sm:$0xff] }
  0x31   : > { %238 = vst [vmem:[%s2573_s26 + $0x70] sm:$0xff] %v237_v14  ;;  %v241_v16 = vld [vmem:[%s2568_s11 + $0x200] sm:$0xff]  ;;  %v243_v17 = vld [vmem:[%s2568_s11 + $0x208] sm:$0xff]  ;;  %240 = vst [vmem:[%s2573_s26 + $0x78] sm:$0xff] %v239_v15 }
  0x32   : > { %242 = vst [vmem:[%s2573_s26 + $0x80] sm:$0xff] %v241_v16  ;;  %244 = vst [vmem:[%s2573_s26 + $0x88] sm:$0xff] %v243_v17  ;;  %v245_v18 = vld [vmem:[%s2568_s11 + $0x240] sm:$0xff]  ;;  %v247_v19 = vld [vmem:[%s2568_s11 + $0x248] sm:$0xff] }
  0x33   : > { %v249_v20 = vld [vmem:[%s2568_s11 + $0x280] sm:$0xff]  ;;  %246 = vst [vmem:[%s2573_s26 + $0x90] sm:$0xff] %v245_v18  ;;  %248 = vst [vmem:[%s2573_s26 + $0x98] sm:$0xff] %v247_v19  ;;  %v251_v21 = vld [vmem:[%s2568_s11 + $0x288] sm:$0xff] }
  0x34   : > { %250 = vst [vmem:[%s2573_s26 + $0xa0] sm:$0xff] %v249_v20  ;;  %v253_v22 = vld [vmem:[%s2568_s11 + $0x2c0] sm:$0xff]  ;;  %v255_v23 = vld [vmem:[%s2568_s11 + $0x2c8] sm:$0xff]  ;;  %252 = vst [vmem:[%s2573_s26 + $0xa8] sm:$0xff] %v251_v21 }
  0x35   : > { %254 = vst [vmem:[%s2573_s26 + $0xb0] sm:$0xff] %v253_v22  ;;  %256 = vst [vmem:[%s2573_s26 + $0xb8] sm:$0xff] %v255_v23  ;;  %v257_v24 = vld [vmem:[%s2568_s11 + $0x300] sm:$0xff]  ;;  %v259_v25 = vld [vmem:[%s2568_s11 + $0x308] sm:$0xff] }
  0x36   : > { %v261_v26 = vld [vmem:[%s2568_s11 + $0x340] sm:$0xff]  ;;  %258 = vst [vmem:[%s2573_s26 + $0xc0] sm:$0xff] %v257_v24  ;;  %260 = vst [vmem:[%s2573_s26 + $0xc8] sm:$0xff] %v259_v25  ;;  %v263_v27 = vld [vmem:[%s2568_s11 + $0x348] sm:$0xff] }
  0x37   : > { %262 = vst [vmem:[%s2573_s26 + $0xd0] sm:$0xff] %v261_v26  ;;  %v265_v28 = vld [vmem:[%s2568_s11 + $0x380] sm:$0xff]  ;;  %v267_v29 = vld [vmem:[%s2568_s11 + $0x388] sm:$0xff]  ;;  %264 = vst [vmem:[%s2573_s26 + $0xd8] sm:$0xff] %v263_v27 }
  0x38   : > { %266 = vst [vmem:[%s2573_s26 + $0xe0] sm:$0xff] %v265_v28  ;;  %268 = vst [vmem:[%s2573_s26 + $0xe8] sm:$0xff] %v267_v29  ;;  %v269_v30 = vld [vmem:[%s2568_s11 + $0x3c0] sm:$0xff]  ;;  %v271_v31 = vld [vmem:[%s2568_s11 + $0x3c8] sm:$0xff] }
  0x39   : > { %270 = vst [vmem:[%s2573_s26 + $0xf0] sm:$0xff] %v269_v30  ;;  %272 = vst [vmem:[%s2573_s26 + $0xf8] sm:$0xff] %v271_v31 }
  0x3a PF: > { %278 = sbr.rel (!%p2543_p9) target bundleno = 110 (0x6e), region = 43  ;;  %s280_s5 = sand.u32 (%p2543_p9), 1, %s2406_s18  }
  0x3b   : > { %s1985_s29 = sshll.u32 (%p2543_p9), %s2426_s23, 7  ;;  %s1888_s30 = sshll.u32 (%p2543_p9), %s280_s5, 8 }
  0x3c   : > { %s285_s8 = sadd.s32 (%p2543_p9), %s2430_s24, %s1985_s29  ;;  %s3137_s1 = sld [smem:[#allocation10_spill]] (%p2543_p9) }
  0x3d   : > { %s1891_s6 = sshll.u32 (%p2543_p9), %s285_s8, 2  ;;  %s2649_s10 = scalar_lea.vmem (%p2543_p9), [#allocation4], %s1888_s30 }
  0x42   : > { %s2644_s28 = scalar_lea.vmem %s3137_s1, %s1891_s6 }
  0x43   : > { %v304_v32 = vld [vmem:[%s2644_s28] sm:$0xf]  ;;  %v306_v33 = vld [vmem:[%s2644_s28 + $0x8] sm:$0xf]  ;;  %v308_v34 = vld [vmem:[%s2644_s28 + $0x10] sm:$0xf] }
  0x44   : > { %305 = vst [vmem:[%s2649_s10] sm:$0xf] %v304_v32  ;;  %307 = vst [vmem:[%s2649_s10 + $0x4] sm:$0xf] %v306_v33  ;;  %v310_v35 = vld [vmem:[%s2644_s28 + $0x18] sm:$0xf] }
  0x45   : > { %309 = vst [vmem:[%s2649_s10 + $0x8] sm:$0xf] %v308_v34  ;;  %v312_v36 = vld [vmem:[%s2644_s28 + $0x20] sm:$0xf]  ;;  %v314_v37 = vld [vmem:[%s2644_s28 + $0x28] sm:$0xf] }
  0x46   : > { %311 = vst [vmem:[%s2649_s10 + $0xc] sm:$0xf] %v310_v35  ;;  %313 = vst [vmem:[%s2649_s10 + $0x10] sm:$0xf] %v312_v36  ;;  %v316_v38 = vld [vmem:[%s2644_s28 + $0x30] sm:$0xf] }
  0x47   : > { %315 = vst [vmem:[%s2649_s10 + $0x14] sm:$0xf] %v314_v37  ;;  %v318_v39 = vld [vmem:[%s2644_s28 + $0x38] sm:$0xf]  ;;  %v320_v40 = vld [vmem:[%s2644_s28 + $0x40] sm:$0xf] }
  0x48   : > { %317 = vst [vmem:[%s2649_s10 + $0x18] sm:$0xf] %v316_v38  ;;  %319 = vst [vmem:[%s2649_s10 + $0x1c] sm:$0xf] %v318_v39  ;;  %v322_v41 = vld [vmem:[%s2644_s28 + $0x48] sm:$0xf] }
  0x49   : > { %321 = vst [vmem:[%s2649_s10 + $0x20] sm:$0xf] %v320_v40  ;;  %v324_v42 = vld [vmem:[%s2644_s28 + $0x50] sm:$0xf]  ;;  %v326_v43 = vld [vmem:[%s2644_s28 + $0x58] sm:$0xf] }
  0x4a   : > { %323 = vst [vmem:[%s2649_s10 + $0x24] sm:$0xf] %v322_v41  ;;  %325 = vst [vmem:[%s2649_s10 + $0x28] sm:$0xf] %v324_v42  ;;  %v328_v44 = vld [vmem:[%s2644_s28 + $0x60] sm:$0xf] }
  0x4b   : > { %327 = vst [vmem:[%s2649_s10 + $0x2c] sm:$0xf] %v326_v43  ;;  %v330_v45 = vld [vmem:[%s2644_s28 + $0x68] sm:$0xf]  ;;  %v332_v46 = vld [vmem:[%s2644_s28 + $0x70] sm:$0xf] }
  0x4c   : > { %329 = vst [vmem:[%s2649_s10 + $0x30] sm:$0xf] %v328_v44  ;;  %331 = vst [vmem:[%s2649_s10 + $0x34] sm:$0xf] %v330_v45  ;;  %v334_v47 = vld [vmem:[%s2644_s28 + $0x78] sm:$0xf] }
  0x4d   : > { %333 = vst [vmem:[%s2649_s10 + $0x38] sm:$0xf] %v332_v46  ;;  %v336_v48 = vld [vmem:[%s2644_s28 + $0x80] sm:$0xf]  ;;  %v338_v49 = vld [vmem:[%s2644_s28 + $0x88] sm:$0xf] }
  0x4e   : > { %335 = vst [vmem:[%s2649_s10 + $0x3c] sm:$0xf] %v334_v47  ;;  %337 = vst [vmem:[%s2649_s10 + $0x40] sm:$0xf] %v336_v48  ;;  %v340_v50 = vld [vmem:[%s2644_s28 + $0x90] sm:$0xf] }
  0x4f   : > { %339 = vst [vmem:[%s2649_s10 + $0x44] sm:$0xf] %v338_v49  ;;  %v342_v51 = vld [vmem:[%s2644_s28 + $0x98] sm:$0xf]  ;;  %v344_v52 = vld [vmem:[%s2644_s28 + $0xa0] sm:$0xf] }
  0x50   : > { %341 = vst [vmem:[%s2649_s10 + $0x48] sm:$0xf] %v340_v50  ;;  %343 = vst [vmem:[%s2649_s10 + $0x4c] sm:$0xf] %v342_v51  ;;  %v346_v53 = vld [vmem:[%s2644_s28 + $0xa8] sm:$0xf] }
  0x51   : > { %345 = vst [vmem:[%s2649_s10 + $0x50] sm:$0xf] %v344_v52  ;;  %v348_v54 = vld [vmem:[%s2644_s28 + $0xb0] sm:$0xf]  ;;  %v350_v55 = vld [vmem:[%s2644_s28 + $0xb8] sm:$0xf] }
  0x52   : > { %347 = vst [vmem:[%s2649_s10 + $0x54] sm:$0xf] %v346_v53  ;;  %349 = vst [vmem:[%s2649_s10 + $0x58] sm:$0xf] %v348_v54  ;;  %v352_v56 = vld [vmem:[%s2644_s28 + $0xc0] sm:$0xf] }
  0x53   : > { %351 = vst [vmem:[%s2649_s10 + $0x5c] sm:$0xf] %v350_v55  ;;  %v354_v57 = vld [vmem:[%s2644_s28 + $0xc8] sm:$0xf]  ;;  %v356_v58 = vld [vmem:[%s2644_s28 + $0xd0] sm:$0xf] }
  0x54   : > { %353 = vst [vmem:[%s2649_s10 + $0x60] sm:$0xf] %v352_v56  ;;  %355 = vst [vmem:[%s2649_s10 + $0x64] sm:$0xf] %v354_v57  ;;  %v358_v59 = vld [vmem:[%s2644_s28 + $0xd8] sm:$0xf] }
  0x55   : > { %357 = vst [vmem:[%s2649_s10 + $0x68] sm:$0xf] %v356_v58  ;;  %v360_v60 = vld [vmem:[%s2644_s28 + $0xe0] sm:$0xf]  ;;  %v362_v61 = vld [vmem:[%s2644_s28 + $0xe8] sm:$0xf] }
  0x56   : > { %359 = vst [vmem:[%s2649_s10 + $0x6c] sm:$0xf] %v358_v59  ;;  %361 = vst [vmem:[%s2649_s10 + $0x70] sm:$0xf] %v360_v60  ;;  %v364_v62 = vld [vmem:[%s2644_s28 + $0xf0] sm:$0xf] }
  0x57   : > { %363 = vst [vmem:[%s2649_s10 + $0x74] sm:$0xf] %v362_v61  ;;  %v366_v63 = vld [vmem:[%s2644_s28 + $0xf8] sm:$0xf]  ;;  %v368_v0 = vld [vmem:[%s2644_s28 + $0x100] sm:$0xf] }
  0x58   : > { %365 = vst [vmem:[%s2649_s10 + $0x78] sm:$0xf] %v364_v62  ;;  %367 = vst [vmem:[%s2649_s10 + $0x7c] sm:$0xf] %v366_v63  ;;  %v370_v1 = vld [vmem:[%s2644_s28 + $0x108] sm:$0xf] }
  0x59   : > { %369 = vst [vmem:[%s2649_s10 + $0x80] sm:$0xf] %v368_v0  ;;  %v372_v2 = vld [vmem:[%s2644_s28 + $0x110] sm:$0xf]  ;;  %v374_v3 = vld [vmem:[%s2644_s28 + $0x118] sm:$0xf] }
  0x5a   : > { %371 = vst [vmem:[%s2649_s10 + $0x84] sm:$0xf] %v370_v1  ;;  %373 = vst [vmem:[%s2649_s10 + $0x88] sm:$0xf] %v372_v2  ;;  %v376_v4 = vld [vmem:[%s2644_s28 + $0x120] sm:$0xf] }
  0x5b   : > { %375 = vst [vmem:[%s2649_s10 + $0x8c] sm:$0xf] %v374_v3  ;;  %v378_v5 = vld [vmem:[%s2644_s28 + $0x128] sm:$0xf]  ;;  %v380_v6 = vld [vmem:[%s2644_s28 + $0x130] sm:$0xf] }
  0x5c   : > { %377 = vst [vmem:[%s2649_s10 + $0x90] sm:$0xf] %v376_v4  ;;  %379 = vst [vmem:[%s2649_s10 + $0x94] sm:$0xf] %v378_v5  ;;  %v382_v7 = vld [vmem:[%s2644_s28 + $0x138] sm:$0xf] }
  0x5d   : > { %381 = vst [vmem:[%s2649_s10 + $0x98] sm:$0xf] %v380_v6  ;;  %v384_v8 = vld [vmem:[%s2644_s28 + $0x140] sm:$0xf]  ;;  %v386_v9 = vld [vmem:[%s2644_s28 + $0x148] sm:$0xf] }
  0x5e   : > { %383 = vst [vmem:[%s2649_s10 + $0x9c] sm:$0xf] %v382_v7  ;;  %385 = vst [vmem:[%s2649_s10 + $0xa0] sm:$0xf] %v384_v8  ;;  %v388_v10 = vld [vmem:[%s2644_s28 + $0x150] sm:$0xf] }
  0x5f   : > { %387 = vst [vmem:[%s2649_s10 + $0xa4] sm:$0xf] %v386_v9  ;;  %v390_v11 = vld [vmem:[%s2644_s28 + $0x158] sm:$0xf]  ;;  %v392_v12 = vld [vmem:[%s2644_s28 + $0x160] sm:$0xf] }
  0x60   : > { %389 = vst [vmem:[%s2649_s10 + $0xa8] sm:$0xf] %v388_v10  ;;  %391 = vst [vmem:[%s2649_s10 + $0xac] sm:$0xf] %v390_v11  ;;  %v394_v13 = vld [vmem:[%s2644_s28 + $0x168] sm:$0xf] }
  0x61   : > { %393 = vst [vmem:[%s2649_s10 + $0xb0] sm:$0xf] %v392_v12  ;;  %v396_v14 = vld [vmem:[%s2644_s28 + $0x170] sm:$0xf]  ;;  %v398_v15 = vld [vmem:[%s2644_s28 + $0x178] sm:$0xf] }
  0x62   : > { %395 = vst [vmem:[%s2649_s10 + $0xb4] sm:$0xf] %v394_v13  ;;  %397 = vst [vmem:[%s2649_s10 + $0xb8] sm:$0xf] %v396_v14  ;;  %v400_v16 = vld [vmem:[%s2644_s28 + $0x180] sm:$0xf] }
  0x63   : > { %399 = vst [vmem:[%s2649_s10 + $0xbc] sm:$0xf] %v398_v15  ;;  %v402_v17 = vld [vmem:[%s2644_s28 + $0x188] sm:$0xf]  ;;  %v404_v18 = vld [vmem:[%s2644_s28 + $0x190] sm:$0xf] }
  0x64   : > { %401 = vst [vmem:[%s2649_s10 + $0xc0] sm:$0xf] %v400_v16  ;;  %403 = vst [vmem:[%s2649_s10 + $0xc4] sm:$0xf] %v402_v17  ;;  %v406_v19 = vld [vmem:[%s2644_s28 + $0x198] sm:$0xf] }
  0x65   : > { %405 = vst [vmem:[%s2649_s10 + $0xc8] sm:$0xf] %v404_v18  ;;  %v408_v20 = vld [vmem:[%s2644_s28 + $0x1a0] sm:$0xf]  ;;  %v410_v21 = vld [vmem:[%s2644_s28 + $0x1a8] sm:$0xf] }
  0x66   : > { %407 = vst [vmem:[%s2649_s10 + $0xcc] sm:$0xf] %v406_v19  ;;  %409 = vst [vmem:[%s2649_s10 + $0xd0] sm:$0xf] %v408_v20  ;;  %v412_v22 = vld [vmem:[%s2644_s28 + $0x1b0] sm:$0xf] }
  0x67   : > { %411 = vst [vmem:[%s2649_s10 + $0xd4] sm:$0xf] %v410_v21  ;;  %v414_v23 = vld [vmem:[%s2644_s28 + $0x1b8] sm:$0xf]  ;;  %v416_v24 = vld [vmem:[%s2644_s28 + $0x1c0] sm:$0xf] }
  0x68   : > { %413 = vst [vmem:[%s2649_s10 + $0xd8] sm:$0xf] %v412_v22  ;;  %415 = vst [vmem:[%s2649_s10 + $0xdc] sm:$0xf] %v414_v23  ;;  %v418_v25 = vld [vmem:[%s2644_s28 + $0x1c8] sm:$0xf] }
  0x69   : > { %417 = vst [vmem:[%s2649_s10 + $0xe0] sm:$0xf] %v416_v24  ;;  %v420_v26 = vld [vmem:[%s2644_s28 + $0x1d0] sm:$0xf]  ;;  %v422_v27 = vld [vmem:[%s2644_s28 + $0x1d8] sm:$0xf] }
  0x6a   : > { %419 = vst [vmem:[%s2649_s10 + $0xe4] sm:$0xf] %v418_v25  ;;  %421 = vst [vmem:[%s2649_s10 + $0xe8] sm:$0xf] %v420_v26  ;;  %v424_v28 = vld [vmem:[%s2644_s28 + $0x1e0] sm:$0xf] }
  0x6b   : > { %423 = vst [vmem:[%s2649_s10 + $0xec] sm:$0xf] %v422_v27  ;;  %v426_v29 = vld [vmem:[%s2644_s28 + $0x1e8] sm:$0xf]  ;;  %v428_v30 = vld [vmem:[%s2644_s28 + $0x1f0] sm:$0xf] }
  0x6c   : > { %425 = vst [vmem:[%s2649_s10 + $0xf0] sm:$0xf] %v424_v28  ;;  %427 = vst [vmem:[%s2649_s10 + $0xf4] sm:$0xf] %v426_v29  ;;  %v430_v31 = vld [vmem:[%s2644_s28 + $0x1f8] sm:$0xf] }
  0x6d   : > { %429 = vst [vmem:[%s2649_s10 + $0xf8] sm:$0xf] %v428_v30  ;;  %431 = vst [vmem:[%s2649_s10 + $0xfc] sm:$0xf] %v430_v31 }
  0x6e PF: > { %p1892_p0 = scmp.ge.s32.totalorder %s2434_s25, 1  ;;  %p594_p1 = scmp.lt.s32.totalorder %s2434_s25, 9 }
  0x70   : > { %p595_p2 = pnand %p1892_p0, %p594_p1 }
  0x71   : > { %s601_s0 = sand.u32 (!%p595_p2), 1, %s2410_s19   ;;  %s608_s11 = sand.u32 (!%p595_p2), 1, %s2402_s17  }
  0x72   : > { %598 = sbr.rel (%p595_p2) target bundleno = 542 (0x21e), region = 92  ;;  %s1893_s26 = sshll.u32 (!%p595_p2), %s601_s0, 8 }
  0x73   : > { %s1894_s5 = sshll.u32 (!%p595_p2), %s608_s11, 8  ;;  %s639_s29 = sand.u32 (!%p595_p2), 1, %s2394_s15  }
  0x74   : > { %p645_p3 = scmp.lt.s32.totalorder (!%p595_p2), %s2422_s22, 1  ;;  %s1895_s28 = sshll.u32 (!%p595_p2), %s639_s29, 6 }
  0x75   : > { %s2793_s24 = scalar_lea.vmem (!%p595_p2), [#allocation3], %s1893_s26  ;;  %s2795_s17 = scalar_lea.vmem (!%p595_p2), [#allocation4], %s1894_s5 }
  0x76   : > { %s2797_s19 = scalar_lea.vmem (!%p595_p2), [#allocation5], %s1895_s28  ;;  %p1896_p4 = scmp.ne.s32.totalorder (!%p595_p2), %s2418_s21, 0 }
  0x77   : > { %s2783_s30 = scalar_select %p645_p3, %s2422_s22, 1 }
  0x78   : > { %656 = sbr.rel (%p1896_p4) target bundleno = 134 (0x86), region = 104 }
  0x79   : > { %s647_s9 = scalar_lea.vmem %s3122_s2, %s2783_s30  ;;  %s650_s27 = scalar_lea.vmem %s3123_s3, %s2783_s30 }
  0x7d   : > { %v2436_v32 = vmov 0.0  }
  0x7e   : > { %657 = vst [vmem:[#allocation2 + $0x30] sm:$0xff] %v2436_v32  ;;  %658 = vst [vmem:[#allocation2] sm:$0xff] %v2436_v32 }
  0x7f   : > { %659 = vst [vmem:[#allocation2 + $0x58] sm:$0xff] %v2436_v32  ;;  %660 = vst [vmem:[#allocation2 + $0x18] sm:$0xff] %v2436_v32 }
  0x80   : > { %661 = vst [vmem:[#allocation2 + $0x50] sm:$0xff] %v2436_v32  ;;  %662 = vst [vmem:[#allocation2 + $0x68] sm:$0xff] %v2436_v32 }
  0x81   : > { %663 = vst [vmem:[#allocation2 + $0x8] sm:$0xff] %v2436_v32  ;;  %664 = vst [vmem:[#allocation2 + $0x48] sm:$0xff] %v2436_v32 }
  0x82   : > { %665 = vst [vmem:[#allocation2 + $0x40] sm:$0xff] %v2436_v32  ;;  %666 = vst [vmem:[#allocation2 + $0x20] sm:$0xff] %v2436_v32 }
  0x83   : > { %667 = vst [vmem:[#allocation2 + $0x10] sm:$0xff] %v2436_v32  ;;  %668 = vst [vmem:[#allocation2 + $0x38] sm:$0xff] %v2436_v32 }
  0x84   : > { %669 = vst [vmem:[#allocation2 + $0x60] sm:$0xff] %v2436_v32  ;;  %670 = vst [vmem:[#allocation2 + $0x70] sm:$0xff] %v2436_v32 }
  0x85   : > { %671 = vst [vmem:[#allocation2 + $0x78] sm:$0xff] %v2436_v32  ;;  %672 = vst [vmem:[#allocation2 + $0x28] sm:$0xff] %v2436_v32 }
  0x86 PF: > { %v2266_v33 = vld [vmem:[%s2795_s17 + $0x78] sm:$0xff]   ;;  %v2270_v37 = vld [vmem:[%s2795_s17 + $0x70] sm:$0xff]   ;;  %v2274_v41 = vld [vmem:[%s2795_s17 + $0x68] sm:$0xff]   ;;  %p1961_p5 = scmp.ne.s32.totalorder %s2418_s21, 3 }
  0x87   : > { %v2267_v34 = vld [vmem:[%s2795_s17 + $0xf8] sm:$0xff]   ;;  %2049 = vmatprep.subr.bf16.mxu0 %v2266_v33  ;;  %v2271_v38 = vld [vmem:[%s2795_s17 + $0xf0] sm:$0xff]   ;;  %v2275_v42 = vld [vmem:[%s2795_s17 + $0xe8] sm:$0xff]  }
  0x88   : > { %v2268_v35 = vld [vmem:[%s2795_s17 + $0x38] sm:$0xff]   ;;  %2113 = vmatprep.subr.bf16.mxu1 %v2267_v34  ;;  %v2272_v39 = vld [vmem:[%s2795_s17 + $0x30] sm:$0xff]   ;;  %v2276_v43 = vld [vmem:[%s2795_s17 + $0x28] sm:$0xff]  }
  0x89   : > { %v2269_v36 = vld [vmem:[%s2795_s17 + $0xb8] sm:$0xff]   ;;  %2050 = vmatpush3.bf16.msra.mxu0 %v2268_v35  ;;  %v2273_v40 = vld [vmem:[%s2795_s17 + $0xb0] sm:$0xff]   ;;  %v2277_v44 = vld [vmem:[%s2795_s17 + $0xa8] sm:$0xff]  }
  0x8a   : > { %2114 = vmatpush3.bf16.msra.mxu1 %v2269_v36  ;;  %2051 = vmatprep.subr.bf16.mxu0 %v2270_v37  ;;  %v2278_v45 = vld [vmem:[%s2795_s17 + $0x60] sm:$0xff]   ;;  %v2282_v49 = vld [vmem:[%s2795_s17 + $0x58] sm:$0xff]   ;;  %v2286_v53 = vld [vmem:[%s2795_s17 + $0x50] sm:$0xff]  }
  0x8b   : > { %2115 = vmatprep.subr.bf16.mxu1 %v2271_v38  ;;  %v2279_v46 = vld [vmem:[%s2795_s17 + $0xe0] sm:$0xff]   ;;  %v2283_v50 = vld [vmem:[%s2795_s17 + $0xd8] sm:$0xff]   ;;  %v2287_v54 = vld [vmem:[%s2795_s17 + $0xd0] sm:$0xff]  }
  0x8c   : > { %v2280_v47 = vld [vmem:[%s2795_s17 + $0x20] sm:$0xff]   ;;  %v2284_v51 = vld [vmem:[%s2795_s17 + $0x18] sm:$0xff]   ;;  %v2288_v55 = vld [vmem:[%s2795_s17 + $0x10] sm:$0xff]  }
  0x8d   : > { %2052 = vmatpush3.bf16.msra.mxu0 %v2272_v39  ;;  %v2281_v48 = vld [vmem:[%s2795_s17 + $0xa0] sm:$0xff]   ;;  %v2285_v52 = vld [vmem:[%s2795_s17 + $0x98] sm:$0xff]   ;;  %v2289_v56 = vld [vmem:[%s2795_s17 + $0x90] sm:$0xff]  }
  0x8e   : > { %2116 = vmatpush3.bf16.msra.mxu1 %v2273_v40  ;;  %2053 = vmatprep.subr.bf16.mxu0 %v2274_v41  ;;  %v2290_v57 = vld [vmem:[%s2795_s17 + $0x48] sm:$0xff]   ;;  %v2294_v61 = vld [vmem:[%s2795_s17 + $0x40] sm:$0xff]   ;;  %v673_v40 = vld [vmem:[#allocation2 + $0x30] sm:$0xff] }
  0x8f   : > { %2117 = vmatprep.subr.bf16.mxu1 %v2275_v42  ;;  %v2291_v58 = vld [vmem:[%s2795_s17 + $0xc8] sm:$0xff]   ;;  %v2295_v62 = vld [vmem:[%s2795_s17 + $0xc0] sm:$0xff]  }
  0x90   : > { %v2292_v59 = vld [vmem:[%s2795_s17 + $0x8] sm:$0xff]   ;;  %v2296_v63 = vld [vmem:[%s2795_s17] sm:$0xff]  }
  0x91   : > { %2054 = vmatpush3.bf16.msra.mxu0 %v2276_v43  ;;  %v2293_v60 = vld [vmem:[%s2795_s17 + $0x88] sm:$0xff]   ;;  %v2297_v0 = vld [vmem:[%s2795_s17 + $0x80] sm:$0xff]  }
  0x92   : > { %2118 = vmatpush3.bf16.msra.mxu1 %v2277_v44  ;;  %2055 = vmatprep.subr.bf16.mxu0 %v2278_v45  ;;  %v2298_v1 = vld [vmem:[%s2793_s24] ss:$16 sps:$4 sm:$0xff]   ;;  %v2300_v2 = vld [vmem:[%s2793_s24 + $0x4] ss:$16 sps:$4 sm:$0xff]   ;;  %v2301_v3 = vld [vmem:[%s2793_s24 + $0x8] ss:$16 sps:$4 sm:$0xff]  }
  0x93   : > { %2119 = vmatprep.subr.bf16.mxu1 %v2279_v46  ;;  %v2303_v4 = vld [vmem:[%s2793_s24 + $0xc] ss:$16 sps:$4 sm:$0xff]   ;;  %1169 = vmatprep.mubr.bf16.mxu0 %v2300_v2  ;;  %v2304_v5 = vld [vmem:[%s2793_s24 + $0x24] ss:$16 sps:$4 sm:$0xff]   ;;  %v2308_v7 = vld [vmem:[%s2793_s24 + $0x20] ss:$16 sps:$4 sm:$0xff]  }
  0x94   : > { %1266 = vmatprep.mubr.bf16.mxu1 %v2303_v4  ;;  %v2306_v6 = vld [vmem:[%s2793_s24 + $0x2c] ss:$16 sps:$4 sm:$0xff]   ;;  %v2309_v8 = vld [vmem:[%s2793_s24 + $0x28] ss:$16 sps:$4 sm:$0xff]   ;;  %v2310_v9 = vld [vmem:[%s2793_s24 + $0x44] ss:$16 sps:$4 sm:$0xff]  }
  0x95   : > { %2056 = vmatpush3.bf16.msra.mxu0 %v2280_v47  ;;  %v2312_v10 = vld [vmem:[%s2793_s24 + $0x4c] ss:$16 sps:$4 sm:$0xff]   ;;  %v2314_v11 = vld [vmem:[%s2793_s24 + $0x40] ss:$16 sps:$4 sm:$0xff]   ;;  %v2315_v12 = vld [vmem:[%s2793_s24 + $0x48] ss:$16 sps:$4 sm:$0xff]  }
  0x96   : > { %2120 = vmatpush3.bf16.msra.mxu1 %v2281_v48  ;;  %2057 = vmatprep.subr.bf16.mxu0 %v2282_v49  ;;  %v2316_v13 = vld [vmem:[%s2793_s24 + $0x64] ss:$16 sps:$4 sm:$0xff]   ;;  %v2318_v14 = vld [vmem:[%s2793_s24 + $0x6c] ss:$16 sps:$4 sm:$0xff]   ;;  %v2320_v15 = vld [vmem:[%s2793_s24 + $0x60] ss:$16 sps:$4 sm:$0xff]  }
  0x97   : > { %2121 = vmatprep.subr.bf16.mxu1 %v2283_v50  ;;  %v2321_v16 = vld [vmem:[%s2793_s24 + $0x68] ss:$16 sps:$4 sm:$0xff]   ;;  %v2322_v17 = vld [vmem:[%s2793_s24 + $0x84] ss:$16 sps:$4 sm:$0xff]   ;;  %v2324_v18 = vld [vmem:[%s2793_s24 + $0x8c] ss:$16 sps:$4 sm:$0xff]  }
  0x98   : > { %v2326_v19 = vld [vmem:[%s2793_s24 + $0x80] ss:$16 sps:$4 sm:$0xff]   ;;  %v2327_v20 = vld [vmem:[%s2793_s24 + $0x88] ss:$16 sps:$4 sm:$0xff]   ;;  %v2328_v21 = vld [vmem:[%s2793_s24 + $0xa4] ss:$16 sps:$4 sm:$0xff]  }
  0x99   : > { %2058 = vmatpush3.bf16.msra.mxu0 %v2284_v51  ;;  %v2330_v22 = vld [vmem:[%s2793_s24 + $0xac] ss:$16 sps:$4 sm:$0xff]   ;;  %v2332_v23 = vld [vmem:[%s2793_s24 + $0xa0] ss:$16 sps:$4 sm:$0xff]   ;;  %v2333_v24 = vld [vmem:[%s2793_s24 + $0xa8] ss:$16 sps:$4 sm:$0xff]  }
  0x9a   : > { %2122 = vmatpush3.bf16.msra.mxu1 %v2285_v52  ;;  %2059 = vmatprep.subr.bf16.mxu0 %v2286_v53  ;;  %v2334_v25 = vld [vmem:[%s2793_s24 + $0xc4] ss:$16 sps:$4 sm:$0xff]   ;;  %v2336_v26 = vld [vmem:[%s2793_s24 + $0xcc] ss:$16 sps:$4 sm:$0xff]   ;;  %v2338_v27 = vld [vmem:[%s2793_s24 + $0xc0] ss:$16 sps:$4 sm:$0xff]  }
  0x9b   : > { %2123 = vmatprep.subr.bf16.mxu1 %v2287_v54  ;;  %v2339_v28 = vld [vmem:[%s2793_s24 + $0xc8] ss:$16 sps:$4 sm:$0xff]   ;;  %v2340_v29 = vld [vmem:[%s2793_s24 + $0xe4] ss:$16 sps:$4 sm:$0xff]   ;;  %v2342_v30 = vld [vmem:[%s2793_s24 + $0xec] ss:$16 sps:$4 sm:$0xff]  }
  0x9c   : > { %v2344_v31 = vld [vmem:[%s2793_s24 + $0xe0] ss:$16 sps:$4 sm:$0xff]   ;;  %v2345_v32 = vld [vmem:[%s2793_s24 + $0xe8] ss:$16 sps:$4 sm:$0xff]  }
  0x9d   : > { %2060 = vmatpush3.bf16.msra.mxu0 %v2288_v55  ;;  %v674_v49 = vld [vmem:[#allocation2] sm:$0xff] }
  0x9e   : > { %2124 = vmatpush3.bf16.msra.mxu1 %v2289_v56  ;;  %2061 = vmatprep.subr.bf16.mxu0 %v2290_v57 }
  0x9f   : > { %2125 = vmatprep.subr.bf16.mxu1 %v2291_v58  ;;  %v675_v58 = vld [vmem:[#allocation2 + $0x58] sm:$0xff] }
  0xa1   : > { %2062 = vmatpush3.bf16.msra.mxu0 %v2292_v59 }
  0xa2   : > { %2126 = vmatpush3.bf16.msra.mxu1 %v2293_v60  ;;  %2063 = vmatprep.subr.bf16.mxu0 %v2294_v61 }
  0xa3   : > { %2127 = vmatprep.subr.bf16.mxu1 %v2295_v62 }
  0xa5   : > { %2064 = vmatpush3.bf16.msra.mxu0 %v2296_v63 }
  0xa6   : > { %2128 = vmatpush3.bf16.msra.mxu1 %v2297_v0 }
  0xa8   : > { %1170 = vmatmul.mubr.bf16.vlgmr.msra.gmra.mxu0 %v2298_v1 }
  0xa9   : > { %1267 = vmatmul.mubr.bf16.vlgmr.msra.gmra.mxu1 %v2301_v3  ;;  %1177 = vmatprep.mubr.bf16.mxu0 %v2304_v5  ;;  %v676_v3 = vld [vmem:[#allocation2 + $0x18] sm:$0xff] }
  0xaa   : > { %1274 = vmatprep.mubr.bf16.mxu1 %v2306_v6 }
  0xb0   : > { %1178 = vmatmul.mubr.bf16.gmra.mxu0 %v2308_v7 }
  0xb1   : > { %1275 = vmatmul.mubr.bf16.gmra.mxu1 %v2309_v8  ;;  %1185 = vmatprep.mubr.bf16.mxu0 %v2310_v9 }
  0xb2   : > { %1282 = vmatprep.mubr.bf16.mxu1 %v2312_v10 }
  0xb8   : > { %1186 = vmatmul.mubr.bf16.gmra.mxu0 %v2314_v11 }
  0xb9   : > { %1283 = vmatmul.mubr.bf16.gmra.mxu1 %v2315_v12  ;;  %1193 = vmatprep.mubr.bf16.mxu0 %v2316_v13  ;;  %v677_v12 = vld [vmem:[#allocation2 + $0x50] sm:$0xff] }
  0xba   : > { %1290 = vmatprep.mubr.bf16.mxu1 %v2318_v14 }
  0xc0   : > { %1194 = vmatmul.mubr.bf16.gmra.mxu0 %v2320_v15 }
  0xc1   : > { %1291 = vmatmul.mubr.bf16.gmra.mxu1 %v2321_v16  ;;  %1201 = vmatprep.mubr.bf16.mxu0 %v2322_v17 }
  0xc2   : > { %1298 = vmatprep.mubr.bf16.mxu1 %v2324_v18 }
  0xc8   : > { %1202 = vmatmul.mubr.bf16.gmra.mxu0 %v2326_v19 }
  0xc9   : > { %1299 = vmatmul.mubr.bf16.gmra.mxu1 %v2327_v20  ;;  %1209 = vmatprep.mubr.bf16.mxu0 %v2328_v21  ;;  %v678_v21 = vld [vmem:[#allocation2 + $0x68] sm:$0xff] }
  0xca   : > { %1306 = vmatprep.mubr.bf16.mxu1 %v2330_v22 }
  0xd0   : > { %1210 = vmatmul.mubr.bf16.gmra.mxu0 %v2332_v23 }
  0xd1   : > { %1307 = vmatmul.mubr.bf16.gmra.mxu1 %v2333_v24  ;;  %1217 = vmatprep.mubr.bf16.mxu0 %v2334_v25 }
  0xd2   : > { %1314 = vmatprep.mubr.bf16.mxu1 %v2336_v26 }
  0xd8   : > { %1218 = vmatmul.mubr.bf16.gmra.mxu0 %v2338_v27 }
  0xd9   : > { %1315 = vmatmul.mubr.bf16.gmra.mxu1 %v2339_v28  ;;  %1225 = vmatprep.mubr.bf16.mxu0 %v2340_v29 }
  0xda   : > { %1322 = vmatprep.mubr.bf16.mxu1 %v2342_v30  ;;  %v679_v30 = vld [vmem:[#allocation2 + $0x8] sm:$0xff] }
  0xe0   : > { %1226 = vmatmul.mubr.bf16.gmra.mxu0 %v2344_v31 }
  0xe1   : > { %1323 = vmatmul.mubr.bf16.gmra.mxu1 %v2345_v32 }
 0x168   : > { %v2065_v33 = vpop.f32.mrf.mxu0 }
 0x169   : > { %v2129_v34 = vpop.f32.mrf.mxu1 }
 0x16a   : > { %v2066_v35 = vpop.f32.mrf.mxu0 }
 0x16b   : > { %v2067_v36 = vadd.f32 %v2066_v35, %v2065_v33  ;;  %v2130_v37 = vpop.f32.mrf.mxu1 }
 0x16c   : > { %v2131_v38 = vadd.f32 %v2130_v37, %v2129_v34  ;;  %v2068_v39 = vpop.f32.mrf.mxu0 }
 0x16d   : > { %v2132_v41 = vpop.f32.mrf.mxu1 }
 0x16e   : > { %v1269_v42 = vadd.f32 %v2131_v38, %v2067_v36  ;;  %v2069_v43 = vpop.f32.mrf.mxu0 }
 0x16f   : > { %v2070_v44 = vadd.f32 %v2069_v43, %v2068_v39  ;;  %v2133_v45 = vpop.f32.mrf.mxu1  ;;  %v680_v39 = vld [vmem:[#allocation2 + $0x48] sm:$0xff] }
 0x170   : > { %v1331_v46 = vadd.f32 %v1269_v42, %v673_v40  ;;  %v2134_v47 = vadd.f32 %v2133_v45, %v2132_v41  ;;  %v2071_v48 = vpop.f32.mrf.mxu0 }
 0x171   : > { %v2135_v50 = vpop.f32.mrf.mxu1 }
 0x172   : > { %1347 = vst [vmem:[#allocation2 + $0x30] sm:$0xff] %v1331_v46  ;;  %v1272_v51 = vadd.f32 %v2134_v47, %v2070_v44  ;;  %v2072_v52 = vpop.f32.mrf.mxu0 }
 0x173   : > { %v2073_v53 = vadd.f32 %v2072_v52, %v2071_v48  ;;  %v2136_v54 = vpop.f32.mrf.mxu1  ;;  %v681_v48 = vld [vmem:[#allocation2 + $0x40] sm:$0xff] }
 0x174   : > { %v1332_v55 = vadd.f32 %v1272_v51, %v674_v49  ;;  %v2137_v56 = vadd.f32 %v2136_v54, %v2135_v50  ;;  %v2074_v57 = vpop.f32.mrf.mxu0 }
 0x175   : > { %v2138_v59 = vpop.f32.mrf.mxu1 }
 0x176   : > { %1348 = vst [vmem:[#allocation2] sm:$0xff] %v1332_v55  ;;  %v1277_v60 = vadd.f32 %v2137_v56, %v2073_v53  ;;  %v2075_v61 = vpop.f32.mrf.mxu0 }
 0x177   : > { %v2076_v62 = vadd.f32 %v2075_v61, %v2074_v57  ;;  %v2139_v63 = vpop.f32.mrf.mxu1  ;;  %v682_v57 = vld [vmem:[#allocation2 + $0x20] sm:$0xff] }
 0x178   : > { %v1333_v0 = vadd.f32 %v1277_v60, %v675_v58  ;;  %v2140_v1 = vadd.f32 %v2139_v63, %v2138_v59  ;;  %v2077_v2 = vpop.f32.mrf.mxu0 }
 0x179   : > { %v2141_v4 = vpop.f32.mrf.mxu1 }
 0x17a   : > { %1349 = vst [vmem:[#allocation2 + $0x58] sm:$0xff] %v1333_v0  ;;  %v1280_v5 = vadd.f32 %v2140_v1, %v2076_v62  ;;  %v2078_v6 = vpop.f32.mrf.mxu0 }
 0x17b   : > { %v2079_v7 = vadd.f32 %v2078_v6, %v2077_v2  ;;  %v2142_v8 = vpop.f32.mrf.mxu1  ;;  %v683_v2 = vld [vmem:[#allocation2 + $0x10] sm:$0xff] }
 0x17c   : > { %v1334_v9 = vadd.f32 %v1280_v5, %v676_v3  ;;  %v2143_v10 = vadd.f32 %v2142_v8, %v2141_v4  ;;  %v2080_v11 = vpop.f32.mrf.mxu0 }
 0x17d   : > { %v2144_v13 = vpop.f32.mrf.mxu1 }
 0x17e   : > { %1350 = vst [vmem:[#allocation2 + $0x18] sm:$0xff] %v1334_v9  ;;  %v1285_v14 = vadd.f32 %v2143_v10, %v2079_v7  ;;  %v2081_v15 = vpop.f32.mrf.mxu0 }
 0x17f   : > { %v2082_v16 = vadd.f32 %v2081_v15, %v2080_v11  ;;  %v2145_v17 = vpop.f32.mrf.mxu1  ;;  %v684_v11 = vld [vmem:[#allocation2 + $0x38] sm:$0xff] }
 0x180   : > { %v1335_v18 = vadd.f32 %v1285_v14, %v677_v12  ;;  %v2146_v19 = vadd.f32 %v2145_v17, %v2144_v13  ;;  %v2083_v20 = vpop.f32.mrf.mxu0 }
 0x181   : > { %v2147_v22 = vpop.f32.mrf.mxu1 }
 0x182   : > { %1351 = vst [vmem:[#allocation2 + $0x50] sm:$0xff] %v1335_v18  ;;  %v1288_v23 = vadd.f32 %v2146_v19, %v2082_v16  ;;  %v2084_v24 = vpop.f32.mrf.mxu0 }
 0x183   : > { %v2085_v25 = vadd.f32 %v2084_v24, %v2083_v20  ;;  %v2148_v26 = vpop.f32.mrf.mxu1  ;;  %v685_v20 = vld [vmem:[#allocation2 + $0x60] sm:$0xff] }
 0x184   : > { %v1336_v27 = vadd.f32 %v1288_v23, %v678_v21  ;;  %v2149_v28 = vadd.f32 %v2148_v26, %v2147_v22  ;;  %v2086_v29 = vpop.f32.mrf.mxu0 }
 0x185   : > { %v2150_v31 = vpop.f32.mrf.mxu1 }
 0x186   : > { %1352 = vst [vmem:[#allocation2 + $0x68] sm:$0xff] %v1336_v27  ;;  %v1293_v32 = vadd.f32 %v2149_v28, %v2085_v25  ;;  %v2087_v33 = vpop.f32.mrf.mxu0 }
 0x187   : > { %v2088_v34 = vadd.f32 %v2087_v33, %v2086_v29  ;;  %v2151_v35 = vpop.f32.mrf.mxu1  ;;  %v686_v29 = vld [vmem:[#allocation2 + $0x70] sm:$0xff] }
 0x188   : > { %v1337_v36 = vadd.f32 %v1293_v32, %v679_v30  ;;  %v2152_v37 = vadd.f32 %v2151_v35, %v2150_v31  ;;  %v2089_v38 = vpop.f32.mrf.mxu0 }
 0x189   : > { %v2153_v40 = vpop.f32.mrf.mxu1 }
 0x18a   : > { %1353 = vst [vmem:[#allocation2 + $0x8] sm:$0xff] %v1337_v36  ;;  %v1296_v41 = vadd.f32 %v2152_v37, %v2088_v34  ;;  %v2090_v42 = vpop.f32.mrf.mxu0 }
 0x18b   : > { %v2091_v43 = vadd.f32 %v2090_v42, %v2089_v38  ;;  %v2154_v44 = vpop.f32.mrf.mxu1  ;;  %v687_v38 = vld [vmem:[#allocation2 + $0x78] sm:$0xff] }
 0x18c   : > { %v1338_v45 = vadd.f32 %v1296_v41, %v680_v39  ;;  %v2155_v46 = vadd.f32 %v2154_v44, %v2153_v40  ;;  %v2092_v47 = vpop.f32.mrf.mxu0 }
 0x18d   : > { %v2156_v49 = vpop.f32.mrf.mxu1 }
 0x18e   : > { %1354 = vst [vmem:[#allocation2 + $0x48] sm:$0xff] %v1338_v45  ;;  %v1301_v50 = vadd.f32 %v2155_v46, %v2091_v43  ;;  %v2093_v51 = vpop.f32.mrf.mxu0  ;;  %v688_v46 = vld [vmem:[#allocation2 + $0x28] sm:$0xff] }
 0x18f   : > { %v2094_v52 = vadd.f32 %v2093_v51, %v2092_v47  ;;  %v2157_v53 = vpop.f32.mrf.mxu1 }
 0x190   : > { %v1339_v54 = vadd.f32 %v1301_v50, %v681_v48  ;;  %v2158_v55 = vadd.f32 %v2157_v53, %v2156_v49  ;;  %v2095_v56 = vpop.f32.mrf.mxu0 }
 0x191   : > { %v2159_v58 = vpop.f32.mrf.mxu1 }
 0x192   : > { %1355 = vst [vmem:[#allocation2 + $0x40] sm:$0xff] %v1339_v54  ;;  %v1304_v59 = vadd.f32 %v2158_v55, %v2094_v52  ;;  %v2096_v60 = vpop.f32.mrf.mxu0 }
 0x193   : > { %v2097_v61 = vadd.f32 %v2096_v60, %v2095_v56  ;;  %v2160_v62 = vpop.f32.mrf.mxu1 }
 0x194   : > { %v1340_v63 = vadd.f32 %v1304_v59, %v682_v57  ;;  %v2161_v0 = vadd.f32 %v2160_v62, %v2159_v58  ;;  %v2098_v1 = vpop.f32.mrf.mxu0 }
 0x195   : > { %v2162_v3 = vpop.f32.mrf.mxu1 }
 0x196   : > { %1356 = vst [vmem:[#allocation2 + $0x20] sm:$0xff] %v1340_v63  ;;  %v1309_v4 = vadd.f32 %v2161_v0, %v2097_v61  ;;  %v2099_v5 = vpop.f32.mrf.mxu0 }
 0x197   : > { %v2100_v6 = vadd.f32 %v2099_v5, %v2098_v1  ;;  %v2163_v7 = vpop.f32.mrf.mxu1 }
 0x198   : > { %v1341_v8 = vadd.f32 %v1309_v4, %v683_v2  ;;  %v2164_v9 = vadd.f32 %v2163_v7, %v2162_v3  ;;  %v2101_v10 = vpop.f32.mrf.mxu0 }
 0x199   : > { %v2165_v12 = vpop.f32.mrf.mxu1 }
 0x19a   : > { %1357 = vst [vmem:[#allocation2 + $0x10] sm:$0xff] %v1341_v8  ;;  %v1312_v13 = vadd.f32 %v2164_v9, %v2100_v6  ;;  %v2102_v14 = vpop.f32.mrf.mxu0 }
 0x19b   : > { %v2103_v15 = vadd.f32 %v2102_v14, %v2101_v10  ;;  %v2166_v16 = vpop.f32.mrf.mxu1 }
 0x19c   : > { %v1342_v17 = vadd.f32 %v1312_v13, %v684_v11  ;;  %v2167_v18 = vadd.f32 %v2166_v16, %v2165_v12  ;;  %v2104_v19 = vpop.f32.mrf.mxu0 }
 0x19d   : > { %v2168_v21 = vpop.f32.mrf.mxu1 }
 0x19e   : > { %1358 = vst [vmem:[#allocation2 + $0x38] sm:$0xff] %v1342_v17  ;;  %v1317_v22 = vadd.f32 %v2167_v18, %v2103_v15  ;;  %v2105_v23 = vpop.f32.mrf.mxu0 }
 0x19f   : > { %v2106_v24 = vadd.f32 %v2105_v23, %v2104_v19  ;;  %v2169_v25 = vpop.f32.mrf.mxu1 }
 0x1a0   : > { %v1343_v26 = vadd.f32 %v1317_v22, %v685_v20  ;;  %v2170_v27 = vadd.f32 %v2169_v25, %v2168_v21  ;;  %v2107_v28 = vpop.f32.mrf.mxu0 }
 0x1a1   : > { %v2171_v30 = vpop.f32.mrf.mxu1 }
 0x1a2   : > { %1359 = vst [vmem:[#allocation2 + $0x60] sm:$0xff] %v1343_v26  ;;  %v1320_v31 = vadd.f32 %v2170_v27, %v2106_v24  ;;  %v2108_v32 = vpop.f32.mrf.mxu0 }
 0x1a3   : > { %v2109_v33 = vadd.f32 %v2108_v32, %v2107_v28  ;;  %v2172_v34 = vpop.f32.mrf.mxu1 }
 0x1a4   : > { %v1344_v35 = vadd.f32 %v1320_v31, %v686_v29  ;;  %v2173_v36 = vadd.f32 %v2172_v34, %v2171_v30  ;;  %v2110_v37 = vpop.f32.mrf.mxu0 }
 0x1a5   : > { %v2174_v39 = vpop.f32.mrf.mxu1 }
 0x1a6   : > { %1360 = vst [vmem:[#allocation2 + $0x70] sm:$0xff] %v1344_v35  ;;  %v1325_v40 = vadd.f32 %v2173_v36, %v2109_v33  ;;  %v2111_v41 = vpop.f32.mrf.mxu0 }
 0x1a7   : > { %v2112_v42 = vadd.f32 %v2111_v41, %v2110_v37  ;;  %v2175_v43 = vpop.f32.mrf.mxu1 }
 0x1a8   : > { %v1345_v44 = vadd.f32 %v1325_v40, %v687_v38  ;;  %v2176_v45 = vadd.f32 %v2175_v43, %v2174_v39 }
 0x1aa   : > { %1361 = vst [vmem:[#allocation2 + $0x78] sm:$0xff] %v1345_v44  ;;  %v1328_v47 = vadd.f32 %v2176_v45, %v2112_v42  ;;  %1366 = sbr.rel (%p1961_p5) target bundleno = 530 (0x212), region = 108 }
 0x1ac   : > { %v1346_v48 = vadd.f32 %v1328_v47, %v688_v46 }
 0x1ae   : > { %1362 = vst [vmem:[#allocation2 + $0x28] sm:$0xff] %v1346_v48 }
 0x1af   : > { %v2865_v49 = vld [vmem:[#allocation2 + $0x30] sm:$0xff]  ;;  %v2867_v50 = vld [vmem:[#allocation2] sm:$0xff]  ;;  %v2869_v51 = vld [vmem:[#allocation2 + $0x58] sm:$0xff] }
 0x1b0   : > { %v2871_v52 = vld [vmem:[#allocation2 + $0x18] sm:$0xff]  ;;  %v1383_v53 = vadd.f32 %v2867_v50, %v2865_v49  ;;  %v1404_v54 = vmul.f32 %v2865_v49, %v2865_v49  ;;  %v1405_v55 = vmul.f32 %v2867_v50, %v2867_v50  ;;  %v1406_v56 = vmul.f32 %v2869_v51, %v2869_v51  ;;  %v2881_v57 = vld [vmem:[#allocation2 + $0x50] sm:$0xff]  ;;  %v2886_v61 = vld [vmem:[#allocation2 + $0x68] sm:$0xff] }
 0x1b1   : > { %v1407_v59 = vmul.f32 %v2871_v52, %v2871_v52  ;;  %v1408_v63 = vmul.f32 %v2881_v57, %v2881_v57  ;;  %v2891_v1 = vld [vmem:[#allocation2 + $0x8] sm:$0xff]  ;;  %v1409_v3 = vmul.f32 %v2886_v61, %v2886_v61  ;;  %v2901_v9 = vld [vmem:[#allocation2 + $0x40] sm:$0xff]  ;;  %v2911_v17 = vld [vmem:[#allocation2 + $0x10] sm:$0xff] }
 0x1b2   : > { %v1384_v58 = vadd.f32 %v1383_v53, %v2869_v51  ;;  %v1420_v60 = vadd.f32 %v1405_v55, %v1404_v54  ;;  %v2896_v5 = vld [vmem:[#allocation2 + $0x48] sm:$0xff]  ;;  %v1410_v7 = vmul.f32 %v2891_v1, %v2891_v1  ;;  %v2906_v13 = vld [vmem:[#allocation2 + $0x20] sm:$0xff]  ;;  %v1412_v15 = vmul.f32 %v2901_v9, %v2901_v9  ;;  %v2916_v21 = vld [vmem:[#allocation2 + $0x38] sm:$0xff] }
 0x1b3   : > { %v1411_v11 = vmul.f32 %v2896_v5, %v2896_v5  ;;  %v1413_v19 = vmul.f32 %v2906_v13, %v2906_v13  ;;  %v1414_v23 = vmul.f32 %v2911_v17, %v2911_v17  ;;  %v2921_v25 = vld [vmem:[#allocation2 + $0x60] sm:$0xff]  ;;  %v1415_v27 = vmul.f32 %v2916_v21, %v2916_v21  ;;  %v2926_v29 = vld [vmem:[#allocation2 + $0x70] sm:$0xff]  ;;  %v2931_v33 = vld [vmem:[#allocation2 + $0x78] sm:$0xff] }
 0x1b4   : > { %v1385_v62 = vadd.f32 %v1384_v58, %v2871_v52  ;;  %v1421_v0 = vadd.f32 %v1420_v60, %v1406_v56  ;;  %v1416_v31 = vmul.f32 %v2921_v25, %v2921_v25  ;;  %v1417_v35 = vmul.f32 %v2926_v29, %v2926_v29 }
 0x1b5   : > { %v2936_v37 = vld [vmem:[#allocation2 + $0x28] sm:$0xff]  ;;  %v1418_v39 = vmul.f32 %v2931_v33, %v2931_v33 }
 0x1b6   : > { %v1386_v2 = vadd.f32 %v1385_v62, %v2881_v57  ;;  %v1422_v4 = vadd.f32 %v1421_v0, %v1407_v59  ;;  %v1419_v42 = vmul.f32 %v2936_v37, %v2936_v37 }
 0x1b8   : > { %v1387_v6 = vadd.f32 %v1386_v2, %v2886_v61  ;;  %v1423_v8 = vadd.f32 %v1422_v4, %v1408_v63 }
 0x1ba   : > { %v1388_v10 = vadd.f32 %v1387_v6, %v2891_v1  ;;  %v1424_v12 = vadd.f32 %v1423_v8, %v1409_v3 }
 0x1bc   : > { %v1389_v14 = vadd.f32 %v1388_v10, %v2896_v5  ;;  %v1425_v16 = vadd.f32 %v1424_v12, %v1410_v7 }
 0x1be   : > { %v1390_v18 = vadd.f32 %v1389_v14, %v2901_v9  ;;  %v1426_v20 = vadd.f32 %v1425_v16, %v1411_v11 }
 0x1c0   : > { %v1391_v22 = vadd.f32 %v1390_v18, %v2906_v13  ;;  %v1427_v24 = vadd.f32 %v1426_v20, %v1412_v15 }
 0x1c2   : > { %v1392_v26 = vadd.f32 %v1391_v22, %v2911_v17  ;;  %v1428_v28 = vadd.f32 %v1427_v24, %v1413_v19 }
 0x1c4   : > { %v1393_v30 = vadd.f32 %v1392_v26, %v2916_v21  ;;  %v1429_v32 = vadd.f32 %v1428_v28, %v1414_v23  ;;  %v2999_v23 = vld [vmem:[%s650_s27] ss:$0 sm:$0xff] }
 0x1c6   : > { %v1394_v34 = vadd.f32 %v1393_v30, %v2921_v25  ;;  %v1430_v36 = vadd.f32 %v1429_v32, %v1415_v27 }
 0x1c8   : > { %v1395_v38 = vadd.f32 %v1394_v34, %v2926_v29  ;;  %v1431_v40 = vadd.f32 %v1430_v36, %v1416_v31 }
 0x1ca   : > { %v1396_v41 = vadd.f32 %v1395_v38, %v2931_v33  ;;  %v1432_v43 = vadd.f32 %v1431_v40, %v1417_v35 }
 0x1cc   : > { %v1397_v44 = vadd.f32 %v1396_v41, %v2936_v37  ;;  %v1433_v45 = vadd.f32 %v1432_v43, %v1418_v39 }
 0x1ce   : > { %v1398_v46 = vrot.slane %v1397_v44, 4  ;;  %v1434_v47 = vadd.f32 %v1433_v45, %v1419_v42 }
 0x1d0   : > { %v1399_v48 = vadd.f32 %v1398_v46, %v1397_v44  ;;  %v1435_v53 = vrot.slane %v1434_v47, 4 }
 0x1d2   : > { %v1400_v54 = vrot.slane %v1399_v48, 2  ;;  %v1436_v55 = vadd.f32 %v1435_v53, %v1434_v47 }
 0x1d4   : > { %v1401_v56 = vadd.f32 %v1400_v54, %v1399_v48  ;;  %v1437_v58 = vrot.slane %v1436_v55, 2 }
 0x1d6   : > { %v1402_v59 = vrot.slane %v1401_v56, 1  ;;  %v1438_v60 = vadd.f32 %v1437_v58, %v1436_v55 }
 0x1d8   : > { %v1403_v62 = vadd.f32 %v1402_v59, %v1401_v56  ;;  %v1439_v63 = vrot.slane %v1438_v60, 1 }
 0x1da   : > { %v2945_v0 = vmul.f32 0.0078125, %v1403_v62  ;;  %v1440_v2 = vadd.f32 %v1439_v63, %v1438_v60 }
 0x1dc   : > { %v1443_v3 = vmul.f32 %v2945_v0, %v2945_v0  ;;  %v1442_v4 = vmul.f32 0.0078125, %v1440_v2  ;;  %v1446_v10 = vsub.f32 %v2865_v49, %v2945_v0  ;;  %v1447_v11 = vsub.f32 %v2867_v50, %v2945_v0 }
 0x1dd   : > { %v1448_v12 = vsub.f32 %v2869_v51, %v2945_v0  ;;  %v1449_v14 = vsub.f32 %v2871_v52, %v2945_v0  ;;  %v1450_v15 = vsub.f32 %v2881_v57, %v2945_v0  ;;  %v1451_v16 = vsub.f32 %v2886_v61, %v2945_v0 }
 0x1de   : > { %v1444_v6 = vsub.f32 %v1442_v4, %v1443_v3  ;;  %v1452_v18 = vsub.f32 %v2891_v1, %v2945_v0  ;;  %v1453_v49 = vsub.f32 %v2896_v5, %v2945_v0  ;;  %v1454_v50 = vsub.f32 %v2901_v9, %v2945_v0  ;;  %v2980_v1 = vld [vmem:[%s647_s9] ss:$0 sm:$0xff] }
 0x1df   : > { %v1455_v51 = vsub.f32 %v2906_v13, %v2945_v0  ;;  %v1456_v52 = vsub.f32 %v2911_v17, %v2945_v0  ;;  %v1457_v57 = vsub.f32 %v2916_v21, %v2945_v0  ;;  %v1458_v5 = vsub.f32 %v2921_v25, %v2945_v0 }
 0x1e0   : > { %v1445_v7 = vmax.f32 %v1444_v6, 0.0  ;;  %v1459_v9 = vsub.f32 %v2926_v29, %v2945_v0  ;;  %v1460_v13 = vsub.f32 %v2931_v33, %v2945_v0  ;;  %v1461_v17 = vsub.f32 %v2936_v37, %v2945_v0 }
 0x1e2   : > { %v1462_v8 = vadd.f32 1e-05, %v1445_v7 }
 0x1e4   : > { %2346 = vrsqrt.f32 %v1462_v8 }
 0x1f1   : > { %v2973_v61 = vpop.eup %2346 }
 0x1f2   : > { %v1464_v19 = vmul.f32 %v2973_v61, %v1446_v10  ;;  %v1465_v20 = vmul.f32 %v2973_v61, %v1447_v11  ;;  %v1466_v21 = vmul.f32 %v2973_v61, %v1448_v12  ;;  %v1467_v22 = vmul.f32 %v2973_v61, %v1449_v14 }
 0x1f3   : > { %v1468_v24 = vmul.f32 %v2973_v61, %v1450_v15  ;;  %v1469_v26 = vmul.f32 %v2973_v61, %v1451_v16  ;;  %v1470_v27 = vmul.f32 %v2973_v61, %v1452_v18  ;;  %v1471_v28 = vmul.f32 %v2973_v61, %v1453_v49 }
 0x1f4   : > { %v1487_v30 = vmul.f32 %v2980_v1, %v1464_v19  ;;  %v1488_v31 = vmul.f32 %v2980_v1, %v1465_v20  ;;  %v1489_v32 = vmul.f32 %v2980_v1, %v1466_v21  ;;  %v1490_v34 = vmul.f32 %v2980_v1, %v1467_v22 }
 0x1f5   : > { %v1491_v35 = vmul.f32 %v2980_v1, %v1468_v24  ;;  %v1492_v36 = vmul.f32 %v2980_v1, %v1469_v26  ;;  %v1493_v38 = vmul.f32 %v2980_v1, %v1470_v27  ;;  %v1494_v39 = vmul.f32 %v2980_v1, %v1471_v28 }
 0x1f6   : > { %v1510_v40 = vadd.f32 %v2999_v23, %v1487_v30  ;;  %v1511_v41 = vadd.f32 %v2999_v23, %v1488_v31  ;;  %v1512_v42 = vadd.f32 %v2999_v23, %v1489_v32  ;;  %v1513_v43 = vadd.f32 %v2999_v23, %v1490_v34 }
 0x1f7   : > { %v1514_v44 = vadd.f32 %v2999_v23, %v1491_v35  ;;  %v1515_v45 = vadd.f32 %v2999_v23, %v1492_v36  ;;  %v1516_v46 = vadd.f32 %v2999_v23, %v1493_v38  ;;  %v1517_v47 = vadd.f32 %v2999_v23, %v1494_v39 }
 0x1f8   : > { %vm1526_vm0 = vcmp.gt.f32.partialorder %v1510_v40, 0.0  ;;  %vm1527_vm1 = vcmp.gt.f32.partialorder %v1511_v41, 0.0  ;;  %v1542_v48 = vmul.f32 0.2, %v1510_v40  ;;  %v1543_v53 = vmul.f32 0.2, %v1511_v41 }
 0x1f9   : > { %vm1528_vm2 = vcmp.gt.f32.partialorder %v1512_v42, 0.0  ;;  %vm1529_vm3 = vcmp.gt.f32.partialorder %v1513_v43, 0.0  ;;  %v1544_v54 = vmul.f32 0.2, %v1512_v42  ;;  %v1545_v55 = vmul.f32 0.2, %v1513_v43 }
 0x1fa   : > { %v1558_v56 = vsel %vm1526_vm0, %v1510_v40, %v1542_v48  ;;  %v1559_v58 = vsel %vm1527_vm1, %v1511_v41, %v1543_v53  ;;  %vm1530_vm4 = vcmp.gt.f32.partialorder %v1514_v44, 0.0  ;;  %vm1531_vm5 = vcmp.gt.f32.partialorder %v1515_v45, 0.0 }
 0x1fb   : > { %v2005_v59 = vpack.c.bf16 %v1559_v58, %v1558_v56  ;;  %v1560_v60 = vsel %vm1528_vm2, %v1512_v42, %v1544_v54  ;;  %v1561_v62 = vsel %vm1529_vm3, %v1513_v43, %v1545_v55  ;;  %v1546_v63 = vmul.f32 0.2, %v1514_v44 }
 0x1fc   : > { %v2010_v2 = vpack.c.bf16 %v1561_v62, %v1560_v60  ;;  %v1547_v3 = vmul.f32 0.2, %v1515_v45  ;;  %vm1532_vm6 = vcmp.gt.f32.partialorder %v1516_v46, 0.0  ;;  %vm1533_vm7 = vcmp.gt.f32.partialorder %v1517_v47, 0.0 }
 0x1fd   : > { %2006 = vst [vmem:[%s2797_s19] sm:$0xff] %v2005_v59   ;;  %v1562_v4 = vsel %vm1530_vm4, %v1514_v44, %v1546_v63  ;;  %v1548_v6 = vmul.f32 0.2, %v1516_v46  ;;  %v1549_v7 = vmul.f32 0.2, %v1517_v47  ;;  %v1472_v8 = vmul.f32 %v2973_v61, %v1454_v50 }
 0x1fe   : > { %2042 = vst [vmem:[%s2797_s19 + $0x8] sm:$0xff] %v2010_v2   ;;  %v1563_v10 = vsel %vm1531_vm5, %v1515_v45, %v1547_v3  ;;  %v1473_v11 = vmul.f32 %v2973_v61, %v1455_v51  ;;  %v1474_v12 = vmul.f32 %v2973_v61, %v1456_v52  ;;  %v1475_v14 = vmul.f32 %v2973_v61, %v1457_v57 }
 0x1ff   : > { %v2015_v15 = vpack.c.bf16 %v1563_v10, %v1562_v4  ;;  %v1564_v16 = vsel %vm1532_vm6, %v1516_v46, %v1548_v6  ;;  %v1565_v18 = vsel %vm1533_vm7, %v1517_v47, %v1549_v7  ;;  %v1495_v49 = vmul.f32 %v2980_v1, %v1472_v8 }
 0x200   : > { %v2020_v19 = vpack.c.bf16 %v1565_v18, %v1564_v16  ;;  %v1496_v20 = vmul.f32 %v2980_v1, %v1473_v11  ;;  %v1497_v21 = vmul.f32 %v2980_v1, %v1474_v12  ;;  %v1498_v50 = vmul.f32 %v2980_v1, %v1475_v14 }
 0x201   : > { %2043 = vst [vmem:[%s2797_s19 + $0x10] sm:$0xff] %v2015_v15   ;;  %v1518_v51 = vadd.f32 %v2999_v23, %v1495_v49  ;;  %v1476_v52 = vmul.f32 %v2973_v61, %v1458_v5  ;;  %v1477_v57 = vmul.f32 %v2973_v61, %v1459_v9  ;;  %v1478_v22 = vmul.f32 %v2973_v61, %v1460_v13 }
 0x202   : > { %2044 = vst [vmem:[%s2797_s19 + $0x18] sm:$0xff] %v2020_v19   ;;  %v1519_v24 = vadd.f32 %v2999_v23, %v1496_v20  ;;  %v1520_v26 = vadd.f32 %v2999_v23, %v1497_v21  ;;  %v1521_v27 = vadd.f32 %v2999_v23, %v1498_v50  ;;  %v1479_v25 = vmul.f32 %v2973_v61, %v1461_v17 }
 0x203   : > { %vm1534_vm8 = vcmp.gt.f32.partialorder %v1518_v51, 0.0  ;;  %v1550_v29 = vmul.f32 0.2, %v1518_v51  ;;  %v1499_v5 = vmul.f32 %v2980_v1, %v1476_v52  ;;  %v1500_v33 = vmul.f32 %v2980_v1, %v1477_v57 }
 0x204   : > { %vm1535_vm9 = vcmp.gt.f32.partialorder %v1519_v24, 0.0  ;;  %v1551_v9 = vmul.f32 0.2, %v1519_v24  ;;  %vm1536_vm10 = vcmp.gt.f32.partialorder %v1520_v26, 0.0  ;;  %vm1537_vm11 = vcmp.gt.f32.partialorder %v1521_v27, 0.0 }
 0x205   : > { %v1566_v13 = vsel %vm1534_vm8, %v1518_v51, %v1550_v29  ;;  %v1552_v28 = vmul.f32 0.2, %v1520_v26  ;;  %v1553_v30 = vmul.f32 0.2, %v1521_v27  ;;  %v1522_v31 = vadd.f32 %v2999_v23, %v1499_v5 }
 0x206   : > { %v1567_v37 = vsel %vm1535_vm9, %v1519_v24, %v1551_v9  ;;  %v1523_v0 = vadd.f32 %v2999_v23, %v1500_v33  ;;  %v1501_v61 = vmul.f32 %v2980_v1, %v1478_v22  ;;  %v1502_v17 = vmul.f32 %v2980_v1, %v1479_v25 }
 0x207   : > { %v2025_v32 = vpack.c.bf16 %v1567_v37, %v1566_v13  ;;  %v1568_v34 = vsel %vm1536_vm10, %v1520_v26, %v1552_v28  ;;  %v1569_v35 = vsel %vm1537_vm11, %v1521_v27, %v1553_v30  ;;  %vm1538_vm12 = vcmp.gt.f32.partialorder %v1522_v31, 0.0 }
 0x208   : > { %v2030_v36 = vpack.c.bf16 %v1569_v35, %v1568_v34  ;;  %vm1539_vm13 = vcmp.gt.f32.partialorder %v1523_v0, 0.0  ;;  %v1554_v38 = vmul.f32 0.2, %v1522_v31  ;;  %v1555_v39 = vmul.f32 0.2, %v1523_v0 }
 0x209   : > { %2045 = vst [vmem:[%s2797_s19 + $0x20] sm:$0xff] %v2025_v32   ;;  %v1524_v40 = vadd.f32 %v2999_v23, %v1501_v61  ;;  %v1525_v41 = vadd.f32 %v2999_v23, %v1502_v17 }
 0x20a   : > { %2046 = vst [vmem:[%s2797_s19 + $0x28] sm:$0xff] %v2030_v36   ;;  %v1570_v42 = vsel %vm1538_vm12, %v1522_v31, %v1554_v38  ;;  %v1571_v43 = vsel %vm1539_vm13, %v1523_v0, %v1555_v39 }
 0x20b   : > { %v2035_v44 = vpack.c.bf16 %v1571_v43, %v1570_v42  ;;  %vm1540_vm14 = vcmp.gt.f32.partialorder %v1524_v40, 0.0  ;;  %vm1541_vm15 = vcmp.gt.f32.partialorder %v1525_v41, 0.0  ;;  %v1556_v1 = vmul.f32 0.2, %v1524_v40 }
 0x20c   : > { %v1557_v45 = vmul.f32 0.2, %v1525_v41 }
 0x20d   : > { %2047 = vst [vmem:[%s2797_s19 + $0x30] sm:$0xff] %v2035_v44   ;;  %v1572_v46 = vsel %vm1540_vm14, %v1524_v40, %v1556_v1 }
 0x20e   : > { %v1573_v47 = vsel %vm1541_vm15, %v1525_v41, %v1557_v45 }
 0x20f   : > { %v2040_v48 = vpack.c.bf16 %v1573_v47, %v1572_v46 }
 0x211   : > { %2048 = vst [vmem:[%s2797_s19 + $0x38] sm:$0xff] %v2040_v48  }
 0x212 PF: > { %1660 = sbr.rel (!%p2556_p12) target bundleno = 542 (0x21e), region = 112  ;;  %s1981_s27 = sshll.u32 (%p2556_p12), %s2422_s22, 2  ;;  %v1682_v23 = vld [vmem:[%s2797_s19] sm:$0xf] (%p2556_p12)  ;;  %v1684_v53 = vld [vmem:[%s2797_s19 + $0x4] sm:$0xf] (%p2556_p12) }
 0x213   : > { %s1665_s26 = scalar_lea.vmem (%p2556_p12), %s3124_s4, %s1981_s27  ;;  %v1686_v54 = vld [vmem:[%s2797_s19 + $0x8] sm:$0xf] (%p2556_p12)  ;;  %v1688_v55 = vld [vmem:[%s2797_s19 + $0xc] sm:$0xf] (%p2556_p12)  ;;  %v1690_v56 = vld [vmem:[%s2797_s19 + $0x10] sm:$0xf] (%p2556_p12) }
 0x214   : > { %1683 = vst [vmem:[%s1665_s26] sm:$0xf] (%p2556_p12), %v1682_v23  ;;  %1685 = vst [vmem:[%s1665_s26 + $0x8] sm:$0xf] (%p2556_p12), %v1684_v53  ;;  %v1692_v58 = vld [vmem:[%s2797_s19 + $0x14] sm:$0xf] (%p2556_p12) }
 0x215   : > { %1687 = vst [vmem:[%s1665_s26 + $0x10] sm:$0xf] (%p2556_p12), %v1686_v54  ;;  %1689 = vst [vmem:[%s1665_s26 + $0x18] sm:$0xf] (%p2556_p12), %v1688_v55  ;;  %v1694_v59 = vld [vmem:[%s2797_s19 + $0x18] sm:$0xf] (%p2556_p12) }
 0x216   : > { %1691 = vst [vmem:[%s1665_s26 + $0x20] sm:$0xf] (%p2556_p12), %v1690_v56  ;;  %v1696_v60 = vld [vmem:[%s2797_s19 + $0x1c] sm:$0xf] (%p2556_p12)  ;;  %1693 = vst [vmem:[%s1665_s26 + $0x28] sm:$0xf] (%p2556_p12), %v1692_v58 }
 0x217   : > { %1695 = vst [vmem:[%s1665_s26 + $0x30] sm:$0xf] %v1694_v59  ;;  %1697 = vst [vmem:[%s1665_s26 + $0x38] sm:$0xf] %v1696_v60  ;;  %v1698_v62 = vld [vmem:[%s2797_s19 + $0x20] sm:$0xf] }
 0x218   : > { %v1700_v63 = vld [vmem:[%s2797_s19 + $0x24] sm:$0xf]  ;;  %v1702_v2 = vld [vmem:[%s2797_s19 + $0x28] sm:$0xf]  ;;  %1699 = vst [vmem:[%s1665_s26 + $0x40] sm:$0xf] %v1698_v62 }
 0x219   : > { %1701 = vst [vmem:[%s1665_s26 + $0x48] sm:$0xf] %v1700_v63  ;;  %1703 = vst [vmem:[%s1665_s26 + $0x50] sm:$0xf] %v1702_v2  ;;  %v1704_v3 = vld [vmem:[%s2797_s19 + $0x2c] sm:$0xf] }
 0x21a   : > { %v1706_v4 = vld [vmem:[%s2797_s19 + $0x30] sm:$0xf]  ;;  %v1708_v6 = vld [vmem:[%s2797_s19 + $0x34] sm:$0xf]  ;;  %1705 = vst [vmem:[%s1665_s26 + $0x58] sm:$0xf] %v1704_v3 }
 0x21b   : > { %1707 = vst [vmem:[%s1665_s26 + $0x60] sm:$0xf] %v1706_v4  ;;  %1709 = vst [vmem:[%s1665_s26 + $0x68] sm:$0xf] %v1708_v6  ;;  %v1710_v7 = vld [vmem:[%s2797_s19 + $0x38] sm:$0xf] }
 0x21c   : > { %v1712_v8 = vld [vmem:[%s2797_s19 + $0x3c] sm:$0xf]  ;;  %1711 = vst [vmem:[%s1665_s26 + $0x70] sm:$0xf] %v1710_v7 }
 0x21d   : > { %1713 = vst [vmem:[%s1665_s26 + $0x78] sm:$0xf] %v1712_v8 }
 0x21e PF: > { %s14_s25 = sadd.s32 1, %s2434_s25   ;;  %s3138_s22 = sld [smem:[#allocation6_spill]] }
 0x21f   : > { %p11_p6 = scmp.ge.s32.totalorder %s14_s25, 10   ;;  %s3139_s14 = sld [smem:[#allocation7_spill]] }
 0x220   : > { %s3140_s24 = sld [smem:[#allocation8_spill]]  ;;  %s3141_s15 = smov %s2398_s16 }
 0x221   : > { %s3142_s16 = smov %s2554_s13  ;;  %s3143_s17 = smov %s2406_s18 }
 0x222   : > { %s3144_s18 = smov %s2551_s12  ;;  %s3145_s19 = smov %s2414_s20 }
 0x223   : > { %s3146_s20 = smov %s2537_s7  ;;  %s3147_s21 = smov %s2426_s23 }
 0x224   :  { %13 = sbr.rel (!%p11_p6) target bundleno = 9 (0x9), region = 198 }
 0x225   : > { %s3148_s23 = smov %s3139_s14 }

// kernel: discriminator_forward.8
= control target key start
LH: loop header
LB: loop body
LE: loop exit
PB: predicated region body
PF: predicated region fallthrough
CT: control target
= control target key end

     0   :  { %s2060_s0 = inlined_call_operand.vmem [shape: bf16[32,4096], index: 0, kind: input, shape index: {}]   ;;  %s2061_s1 = inlined_call_operand.vmem [shape: bf16[4096,512], index: 1, kind: input, shape index: {}]   ;;  %s2062_s2 = inlined_call_operand.vmem [shape: f32[1,512], index: 2, kind: input, shape index: {}]   ;;  %s2063_s3 = inlined_call_operand.vmem [shape: f32[1,512], index: 3, kind: input, shape index: {}]   ;;  %s2064_s4 = inlined_call_operand.vmem [shape: bf16[32,512], index: 4, kind: output, shape index: {}]  }
   0x1   :  { %2068 = sst [smem:[#allocation9_spill]] %s2060_s0 }
   0x2   :  { %2069 = sst [smem:[#allocation10_spill]] %s2061_s1 }
   0x3   :  { %s1694_s15 = smov 0   ;;  %s1696_s16 = smov 0  }
   0x4   :  { %s1698_s17 = smov 0   ;;  %s1700_s18 = smov 0  }
   0x5   :  { %s1702_s19 = smov 0   ;;  %s1704_s20 = smov 0  }
   0x6   :  { %s1706_s21 = smov 0   ;;  %s1708_s22 = smov 0  }
   0x7   :  { %s1710_s23 = smov 0   ;;  %s1712_s24 = smov 0  }
   0x8   :  { %s1714_s25 = smov 0  }
   0x9 LB: > { %2070 = sst [smem:[#allocation6_spill]] %s1662_s24  ;;  %s1305_s26 = sadd.s32 4294967295, %s1666_s25   ;;  %s1666_s25 = sphi %s1714_s25, %s14_s25   ;;  %s1662_s24 = sphi %s1712_s24, %s2080_s24   ;;  %s1658_s23 = sphi %s1710_s23, %s2088_s23   ;;  %s1654_s22 = sphi %s1708_s22, %s2078_s22   ;;  %s1650_s21 = sphi %s1706_s21, %s2087_s21   ;;  %s1646_s20 = sphi %s1704_s20, %s2086_s20   ;;  %s1642_s19 = sphi %s1702_s19, %s2085_s19   ;;  %s1638_s18 = sphi %s1700_s18, %s2084_s18   ;;  %s1634_s17 = sphi %s1698_s17, %s2083_s17   ;;  %s1630_s16 = sphi %s1696_s16, %s2082_s16   ;;  %s1626_s15 = sphi %s1694_s15, %s2081_s15  }
   0xa   : > { %s26_s27 = sadd.s32 1, %s1658_s23  ;;  %s29_s28 = sadd.s32 1, %s1662_s24 }
   0xb   : > { %p27_p0 = scmp.ge.s32.totalorder %s26_s27, 8  ;;  %s42_s29 = sadd.s32 1, %s1646_s20 }
   0xc   : > { %p49_p1 = scmp.ne.s32.totalorder %s1646_s20, %s1642_s19  ;;  %p50_p2 = scmp.eq.s32.totalorder %s1666_s25, 0 }
   0xd   : > { %s2090_s27 = smov (%p27_p0, %s26_s27), 0  ;;  %s2092_s28 = smov (!%p27_p0, %s29_s28), %s1662_s24 }
   0xe   : > { %2071 = sst [smem:[#allocation7_spill]] %s2090_s27  ;;  %s38_s30 = ssub.s32 %s1658_s23, %s2090_s27 }
   0xf   : > { %p31_p3 = scmp.ge.s32.totalorder %s2092_s28, 4  ;;  %p40_p4 = scmp.eq.s32.totalorder %s38_s30, 0 }
  0x10   : > { %p1761_p5 = por %p50_p2, %p49_p1  ;;  %s70_s6 = sadd.s32 1, %s1638_s18 }
  0x11   : > { %s2094_s28 = smov (%p31_p3, %s2092_s28), 0  ;;  %p77_p6 = scmp.ne.s32.totalorder %s1638_s18, %s1634_s17 }
  0x12   : > { %2073 = sst [smem:[#allocation8_spill]] %s2094_s28  ;;  %s66_s8 = ssub.s32 %s1662_s24, %s2094_s28 }
  0x13   : > { %s1769_s7 = scalar_select %p40_p4, %s1646_s20, %s42_s29  }
  0x14   : > { %s67_s9 = sor.u32 %s66_s8, %s38_s30  ;;  %p148_p7 = scmp.eq.s32.totalorder %s66_s8, 0 }
  0x15   : > { %p68_p8 = scmp.eq.s32.totalorder %s67_s9, 0  ;;  %p1775_p9 = por %p77_p6, %p50_p2 }
  0x16   : > { %s150_s11 = sadd.s32 1, %s1630_s16  ;;  %p160_p10 = scmp.ne.s32.totalorder %s1630_s16, %s1626_s15 }
  0x17   : > { %s1783_s12 = scalar_select %p68_p8, %s1638_s18, %s70_s6  }
  0x18   : > { %s1786_s13 = scalar_select %p148_p7, %s1630_s16, %s150_s11  }
  0x19   : > { %p161_p11 = scmp.eq.s32.totalorder %s1305_s26, 31  ;;  %p1308_p13 = scmp.ge.s32.totalorder %s1666_s25, 32 }
  0x1b   : > { %p1788_p12 = por %p161_p11, %p160_p10  ;;  %183 = sbr.rel (%p1308_p13) target bundleno = 99 (0x63), region = 16 }
  0x20   : > { %186 = sbr.rel (!%p1761_p5) target bundleno = 46 (0x2e), region = 20  ;;  %s188_s29 = sand.u32 (%p1761_p5), 1, %s1646_s20  }
  0x21   : > { %s1372_s30 = sshll.u32 (%p1761_p5), %s1658_s23, 4  ;;  %s1309_s8 = sshll.u32 (%p1761_p5), %s188_s29, 6 }
  0x22   : > { %s2076_s0 = sld [smem:[#allocation9_spill]] (%p1761_p5)  ;;  %s190_s26 = scalar_lea.vmem (%p1761_p5), [#allocation3], %s1309_s8 }
  0x28   : > { %s196_s11 = scalar_lea.vmem %s2076_s0, %s1372_s30 }
  0x29   : > { %v209_v0 = vld [vmem:[%s196_s11] sm:$0xff]  ;;  %v211_v1 = vld [vmem:[%s196_s11 + $0x8] sm:$0xff] }
  0x2a   : > { %v213_v2 = vld [vmem:[%s196_s11 + $0x80] sm:$0xff]  ;;  %210 = vst [vmem:[%s190_s26] sm:$0xff] %v209_v0  ;;  %212 = vst [vmem:[%s190_s26 + $0x8] sm:$0xff] %v211_v1  ;;  %v215_v3 = vld [vmem:[%s196_s11 + $0x88] sm:$0xff] }
  0x2b   : > { %214 = vst [vmem:[%s190_s26 + $0x10] sm:$0xff] %v213_v2  ;;  %v217_v4 = vld [vmem:[%s196_s11 + $0x100] sm:$0xff]  ;;  %v219_v5 = vld [vmem:[%s196_s11 + $0x108] sm:$0xff]  ;;  %216 = vst [vmem:[%s190_s26 + $0x18] sm:$0xff] %v215_v3 }
  0x2c   : > { %218 = vst [vmem:[%s190_s26 + $0x20] sm:$0xff] %v217_v4  ;;  %220 = vst [vmem:[%s190_s26 + $0x28] sm:$0xff] %v219_v5  ;;  %v221_v6 = vld [vmem:[%s196_s11 + $0x180] sm:$0xff]  ;;  %v223_v7 = vld [vmem:[%s196_s11 + $0x188] sm:$0xff] }
  0x2d   : > { %222 = vst [vmem:[%s190_s26 + $0x30] sm:$0xff] %v221_v6  ;;  %224 = vst [vmem:[%s190_s26 + $0x38] sm:$0xff] %v223_v7 }
  0x2e PF: > { %230 = sbr.rel (!%p1775_p9) target bundleno = 99 (0x63), region = 43  ;;  %s232_s5 = sand.u32 (%p1775_p9), 1, %s1638_s18  }
  0x2f   : > { %s1373_s29 = sshll.u32 (%p1775_p9), %s1658_s23, 8  ;;  %s1312_s30 = sshll.u32 (%p1775_p9), %s232_s5, 8 }
  0x30   : > { %s237_s8 = sadd.s32 (%p1775_p9), %s1662_s24, %s1373_s29  ;;  %s2077_s1 = sld [smem:[#allocation10_spill]] (%p1775_p9) }
  0x31   : > { %s1315_s6 = sshll.u32 (%p1775_p9), %s237_s8, 2  ;;  %s1813_s10 = scalar_lea.vmem (%p1775_p9), [#allocation4], %s1312_s30 }
  0x36   : > { %s1808_s28 = scalar_lea.vmem %s2077_s1, %s1315_s6 }
  0x37   : > { %v256_v8 = vld [vmem:[%s1808_s28] sm:$0xf]  ;;  %v258_v9 = vld [vmem:[%s1808_s28 + $0x10] sm:$0xf] }
  0x38   : > { %v260_v10 = vld [vmem:[%s1808_s28 + $0x20] sm:$0xf]  ;;  %257 = vst [vmem:[%s1813_s10] sm:$0xf] %v256_v8  ;;  %259 = vst [vmem:[%s1813_s10 + $0x4] sm:$0xf] %v258_v9 }
  0x39   : > { %261 = vst [vmem:[%s1813_s10 + $0x8] sm:$0xf] %v260_v10  ;;  %v262_v11 = vld [vmem:[%s1808_s28 + $0x30] sm:$0xf]  ;;  %v264_v12 = vld [vmem:[%s1808_s28 + $0x40] sm:$0xf] }
  0x3a   : > { %v266_v13 = vld [vmem:[%s1808_s28 + $0x50] sm:$0xf]  ;;  %263 = vst [vmem:[%s1813_s10 + $0xc] sm:$0xf] %v262_v11  ;;  %265 = vst [vmem:[%s1813_s10 + $0x10] sm:$0xf] %v264_v12 }
  0x3b   : > { %267 = vst [vmem:[%s1813_s10 + $0x14] sm:$0xf] %v266_v13  ;;  %v268_v14 = vld [vmem:[%s1808_s28 + $0x60] sm:$0xf]  ;;  %v270_v15 = vld [vmem:[%s1808_s28 + $0x70] sm:$0xf] }
  0x3c   : > { %v272_v16 = vld [vmem:[%s1808_s28 + $0x80] sm:$0xf]  ;;  %269 = vst [vmem:[%s1813_s10 + $0x18] sm:$0xf] %v268_v14  ;;  %271 = vst [vmem:[%s1813_s10 + $0x1c] sm:$0xf] %v270_v15 }
  0x3d   : > { %273 = vst [vmem:[%s1813_s10 + $0x20] sm:$0xf] %v272_v16  ;;  %v274_v17 = vld [vmem:[%s1808_s28 + $0x90] sm:$0xf]  ;;  %v276_v18 = vld [vmem:[%s1808_s28 + $0xa0] sm:$0xf] }
  0x3e   : > { %v278_v19 = vld [vmem:[%s1808_s28 + $0xb0] sm:$0xf]  ;;  %275 = vst [vmem:[%s1813_s10 + $0x24] sm:$0xf] %v274_v17  ;;  %277 = vst [vmem:[%s1813_s10 + $0x28] sm:$0xf] %v276_v18 }
  0x3f   : > { %279 = vst [vmem:[%s1813_s10 + $0x2c] sm:$0xf] %v278_v19  ;;  %v280_v20 = vld [vmem:[%s1808_s28 + $0xc0] sm:$0xf]  ;;  %v282_v21 = vld [vmem:[%s1808_s28 + $0xd0] sm:$0xf] }
  0x40   : > { %v284_v22 = vld [vmem:[%s1808_s28 + $0xe0] sm:$0xf]  ;;  %281 = vst [vmem:[%s1813_s10 + $0x30] sm:$0xf] %v280_v20  ;;  %283 = vst [vmem:[%s1813_s10 + $0x34] sm:$0xf] %v282_v21 }
  0x41   : > { %285 = vst [vmem:[%s1813_s10 + $0x38] sm:$0xf] %v284_v22  ;;  %v286_v23 = vld [vmem:[%s1808_s28 + $0xf0] sm:$0xf]  ;;  %v288_v24 = vld [vmem:[%s1808_s28 + $0x100] sm:$0xf] }
  0x42   : > { %v290_v25 = vld [vmem:[%s1808_s28 + $0x110] sm:$0xf]  ;;  %287 = vst [vmem:[%s1813_s10 + $0x3c] sm:$0xf] %v286_v23  ;;  %289 = vst [vmem:[%s1813_s10 + $0x40] sm:$0xf] %v288_v24 }
  0x43   : > { %291 = vst [vmem:[%s1813_s10 + $0x44] sm:$0xf] %v290_v25  ;;  %v292_v26 = vld [vmem:[%s1808_s28 + $0x120] sm:$0xf]  ;;  %v294_v27 = vld [vmem:[%s1808_s28 + $0x130] sm:$0xf] }
  0x44   : > { %v296_v28 = vld [vmem:[%s1808_s28 + $0x140] sm:$0xf]  ;;  %293 = vst [vmem:[%s1813_s10 + $0x48] sm:$0xf] %v292_v26  ;;  %295 = vst [vmem:[%s1813_s10 + $0x4c] sm:$0xf] %v294_v27 }
  0x45   : > { %297 = vst [vmem:[%s1813_s10 + $0x50] sm:$0xf] %v296_v28  ;;  %v298_v29 = vld [vmem:[%s1808_s28 + $0x150] sm:$0xf]  ;;  %v300_v30 = vld [vmem:[%s1808_s28 + $0x160] sm:$0xf] }
  0x46   : > { %v302_v31 = vld [vmem:[%s1808_s28 + $0x170] sm:$0xf]  ;;  %299 = vst [vmem:[%s1813_s10 + $0x54] sm:$0xf] %v298_v29  ;;  %301 = vst [vmem:[%s1813_s10 + $0x58] sm:$0xf] %v300_v30 }
  0x47   : > { %303 = vst [vmem:[%s1813_s10 + $0x5c] sm:$0xf] %v302_v31  ;;  %v304_v32 = vld [vmem:[%s1808_s28 + $0x180] sm:$0xf]  ;;  %v306_v33 = vld [vmem:[%s1808_s28 + $0x190] sm:$0xf] }
  0x48   : > { %v308_v34 = vld [vmem:[%s1808_s28 + $0x1a0] sm:$0xf]  ;;  %305 = vst [vmem:[%s1813_s10 + $0x60] sm:$0xf] %v304_v32  ;;  %307 = vst [vmem:[%s1813_s10 + $0x64] sm:$0xf] %v306_v33 }
  0x49   : > { %309 = vst [vmem:[%s1813_s10 + $0x68] sm:$0xf] %v308_v34  ;;  %v310_v35 = vld [vmem:[%s1808_s28 + $0x1b0] sm:$0xf]  ;;  %v312_v36 = vld [vmem:[%s1808_s28 + $0x1c0] sm:$0xf] }
  0x4a   : > { %v314_v37 = vld [vmem:[%s1808_s28 + $0x1d0] sm:$0xf]  ;;  %311 = vst [vmem:[%s1813_s10 + $0x6c] sm:$0xf] %v310_v35  ;;  %313 = vst [vmem:[%s1813_s10 + $0x70] sm:$0xf] %v312_v36 }
  0x4b   : > { %315 = vst [vmem:[%s1813_s10 + $0x74] sm:$0xf] %v314_v37  ;;  %v316_v38 = vld [vmem:[%s1808_s28 + $0x1e0] sm:$0xf]  ;;  %v318_v39 = vld [vmem:[%s1808_s28 + $0x1f0] sm:$0xf] }
  0x4c   : > { %v320_v40 = vld [vmem:[%s1808_s28 + $0x200] sm:$0xf]  ;;  %317 = vst [vmem:[%s1813_s10 + $0x78] sm:$0xf] %v316_v38  ;;  %319 = vst [vmem:[%s1813_s10 + $0x7c] sm:$0xf] %v318_v39 }
  0x4d   : > { %321 = vst [vmem:[%s1813_s10 + $0x80] sm:$0xf] %v320_v40  ;;  %v322_v41 = vld [vmem:[%s1808_s28 + $0x210] sm:$0xf]  ;;  %v324_v42 = vld [vmem:[%s1808_s28 + $0x220] sm:$0xf] }
  0x4e   : > { %v326_v43 = vld [vmem:[%s1808_s28 + $0x230] sm:$0xf]  ;;  %323 = vst [vmem:[%s1813_s10 + $0x84] sm:$0xf] %v322_v41  ;;  %325 = vst [vmem:[%s1813_s10 + $0x88] sm:$0xf] %v324_v42 }
  0x4f   : > { %327 = vst [vmem:[%s1813_s10 + $0x8c] sm:$0xf] %v326_v43  ;;  %v328_v44 = vld [vmem:[%s1808_s28 + $0x240] sm:$0xf]  ;;  %v330_v45 = vld [vmem:[%s1808_s28 + $0x250] sm:$0xf] }
  0x50   : > { %v332_v46 = vld [vmem:[%s1808_s28 + $0x260] sm:$0xf]  ;;  %329 = vst [vmem:[%s1813_s10 + $0x90] sm:$0xf] %v328_v44  ;;  %331 = vst [vmem:[%s1813_s10 + $0x94] sm:$0xf] %v330_v45 }
  0x51   : > { %333 = vst [vmem:[%s1813_s10 + $0x98] sm:$0xf] %v332_v46  ;;  %v334_v47 = vld [vmem:[%s1808_s28 + $0x270] sm:$0xf]  ;;  %v336_v48 = vld [vmem:[%s1808_s28 + $0x280] sm:$0xf] }
  0x52   : > { %v338_v49 = vld [vmem:[%s1808_s28 + $0x290] sm:$0xf]  ;;  %335 = vst [vmem:[%s1813_s10 + $0x9c] sm:$0xf] %v334_v47  ;;  %337 = vst [vmem:[%s1813_s10 + $0xa0] sm:$0xf] %v336_v48 }
  0x53   : > { %339 = vst [vmem:[%s1813_s10 + $0xa4] sm:$0xf] %v338_v49  ;;  %v340_v50 = vld [vmem:[%s1808_s28 + $0x2a0] sm:$0xf]  ;;  %v342_v51 = vld [vmem:[%s1808_s28 + $0x2b0] sm:$0xf] }
  0x54   : > { %v344_v52 = vld [vmem:[%s1808_s28 + $0x2c0] sm:$0xf]  ;;  %341 = vst [vmem:[%s1813_s10 + $0xa8] sm:$0xf] %v340_v50  ;;  %343 = vst [vmem:[%s1813_s10 + $0xac] sm:$0xf] %v342_v51 }
  0x55   : > { %345 = vst [vmem:[%s1813_s10 + $0xb0] sm:$0xf] %v344_v52  ;;  %v346_v53 = vld [vmem:[%s1808_s28 + $0x2d0] sm:$0xf]  ;;  %v348_v54 = vld [vmem:[%s1808_s28 + $0x2e0] sm:$0xf] }
  0x56   : > { %v350_v55 = vld [vmem:[%s1808_s28 + $0x2f0] sm:$0xf]  ;;  %347 = vst [vmem:[%s1813_s10 + $0xb4] sm:$0xf] %v346_v53  ;;  %349 = vst [vmem:[%s1813_s10 + $0xb8] sm:$0xf] %v348_v54 }
  0x57   : > { %351 = vst [vmem:[%s1813_s10 + $0xbc] sm:$0xf] %v350_v55  ;;  %v352_v56 = vld [vmem:[%s1808_s28 + $0x300] sm:$0xf]  ;;  %v354_v57 = vld [vmem:[%s1808_s28 + $0x310] sm:$0xf] }
  0x58   : > { %v356_v58 = vld [vmem:[%s1808_s28 + $0x320] sm:$0xf]  ;;  %353 = vst [vmem:[%s1813_s10 + $0xc0] sm:$0xf] %v352_v56  ;;  %355 = vst [vmem:[%s1813_s10 + $0xc4] sm:$0xf] %v354_v57 }
  0x59   : > { %357 = vst [vmem:[%s1813_s10 + $0xc8] sm:$0xf] %v356_v58  ;;  %v358_v59 = vld [vmem:[%s1808_s28 + $0x330] sm:$0xf]  ;;  %v360_v60 = vld [vmem:[%s1808_s28 + $0x340] sm:$0xf] }
  0x5a   : > { %v362_v61 = vld [vmem:[%s1808_s28 + $0x350] sm:$0xf]  ;;  %359 = vst [vmem:[%s1813_s10 + $0xcc] sm:$0xf] %v358_v59  ;;  %361 = vst [vmem:[%s1813_s10 + $0xd0] sm:$0xf] %v360_v60 }
  0x5b   : > { %363 = vst [vmem:[%s1813_s10 + $0xd4] sm:$0xf] %v362_v61  ;;  %v364_v62 = vld [vmem:[%s1808_s28 + $0x360] sm:$0xf]  ;;  %v366_v63 = vld [vmem:[%s1808_s28 + $0x370] sm:$0xf] }
  0x5c   : > { %v368_v0 = vld [vmem:[%s1808_s28 + $0x380] sm:$0xf]  ;;  %365 = vst [vmem:[%s1813_s10 + $0xd8] sm:$0xf] %v364_v62  ;;  %367 = vst [vmem:[%s1813_s10 + $0xdc] sm:$0xf] %v366_v63 }
  0x5d   : > { %369 = vst [vmem:[%s1813_s10 + $0xe0] sm:$0xf] %v368_v0  ;;  %v370_v1 = vld [vmem:[%s1808_s28 + $0x390] sm:$0xf]  ;;  %v372_v2 = vld [vmem:[%s1808_s28 + $0x3a0] sm:$0xf] }
  0x5e   : > { %v374_v3 = vld [vmem:[%s1808_s28 + $0x3b0] sm:$0xf]  ;;  %371 = vst [vmem:[%s1813_s10 + $0xe4] sm:$0xf] %v370_v1  ;;  %373 = vst [vmem:[%s1813_s10 + $0xe8] sm:$0xf] %v372_v2 }
  0x5f   : > { %375 = vst [vmem:[%s1813_s10 + $0xec] sm:$0xf] %v374_v3  ;;  %v376_v4 = vld [vmem:[%s1808_s28 + $0x3c0] sm:$0xf]  ;;  %v378_v5 = vld [vmem:[%s1808_s28 + $0x3d0] sm:$0xf] }
  0x60   : > { %v380_v6 = vld [vmem:[%s1808_s28 + $0x3e0] sm:$0xf]  ;;  %377 = vst [vmem:[%s1813_s10 + $0xf0] sm:$0xf] %v376_v4  ;;  %379 = vst [vmem:[%s1813_s10 + $0xf4] sm:$0xf] %v378_v5 }
  0x61   : > { %381 = vst [vmem:[%s1813_s10 + $0xf8] sm:$0xf] %v380_v6  ;;  %v382_v7 = vld [vmem:[%s1808_s28 + $0x3f0] sm:$0xf] }
  0x62   : > { %383 = vst [vmem:[%s1813_s10 + $0xfc] sm:$0xf] %v382_v7 }
  0x63 PF: > { %p1316_p0 = scmp.ge.s32.totalorder %s1666_s25, 1  ;;  %p546_p1 = scmp.lt.s32.totalorder %s1666_s25, 33 }
  0x65   : > { %p547_p2 = pnand %p1316_p0, %p546_p1 }
  0x66   : > { %s553_s0 = sand.u32 (!%p547_p2), 1, %s1642_s19   ;;  %s560_s11 = sand.u32 (!%p547_p2), 1, %s1634_s17  }
  0x67   : > { %550 = sbr.rel (%p547_p2) target bundleno = 433 (0x1b1), region = 92  ;;  %s1317_s26 = sshll.u32 (!%p547_p2), %s553_s0, 6 }
  0x68   : > { %s1318_s5 = sshll.u32 (!%p547_p2), %s560_s11, 8  ;;  %s591_s29 = sand.u32 (!%p547_p2), 1, %s1626_s15  }
  0x69   : > { %p597_p3 = scmp.lt.s32.totalorder (!%p547_p2), %s1654_s22, 3  ;;  %s1319_s28 = sshll.u32 (!%p547_p2), %s591_s29, 4 }
  0x6a   : > { %s1957_s24 = scalar_lea.vmem (!%p547_p2), [#allocation3], %s1317_s26  ;;  %s1959_s17 = scalar_lea.vmem (!%p547_p2), [#allocation4], %s1318_s5 }
  0x6b   : > { %s1961_s19 = scalar_lea.vmem (!%p547_p2), [#allocation5], %s1319_s28  ;;  %p1320_p4 = scmp.ne.s32.totalorder (!%p547_p2), %s1650_s21, 0 }
  0x6c   : > { %s1947_s30 = scalar_select %p597_p3, %s1654_s22, 3 }
  0x6d   : > { %608 = sbr.rel (%p1320_p4) target bundleno = 117 (0x75), region = 104 }
  0x6e   : > { %s599_s9 = scalar_lea.vmem %s2062_s2, %s1947_s30  ;;  %s602_s27 = scalar_lea.vmem %s2063_s3, %s1947_s30 }
  0x72   : > { %v1668_v8 = vmov 0.0  }
  0x73   : > { %609 = vst [vmem:[#allocation2 + $0x10] sm:$0xff] %v1668_v8  ;;  %610 = vst [vmem:[#allocation2] sm:$0xff] %v1668_v8 }
  0x74   : > { %611 = vst [vmem:[#allocation2 + $0x18] sm:$0xff] %v1668_v8  ;;  %612 = vst [vmem:[#allocation2 + $0x8] sm:$0xff] %v1668_v8 }
  0x75 PF: > { %v1534_v9 = vld [vmem:[%s1959_s17 + $0x78] sm:$0xff]   ;;  %v1538_v13 = vld [vmem:[%s1959_s17 + $0x70] sm:$0xff]   ;;  %v1542_v17 = vld [vmem:[%s1959_s17 + $0x68] sm:$0xff]   ;;  %p1361_p5 = scmp.ne.s32.totalorder %s1650_s21, 7 }
  0x76   : > { %v1535_v10 = vld [vmem:[%s1959_s17 + $0xf8] sm:$0xff]   ;;  %1389 = vmatprep.subr.bf16.mxu0 %v1534_v9  ;;  %v1539_v14 = vld [vmem:[%s1959_s17 + $0xf0] sm:$0xff]   ;;  %v1543_v18 = vld [vmem:[%s1959_s17 + $0xe8] sm:$0xff]  }
  0x77   : > { %v1536_v11 = vld [vmem:[%s1959_s17 + $0x38] sm:$0xff]   ;;  %1417 = vmatprep.subr.bf16.mxu1 %v1535_v10  ;;  %v1540_v15 = vld [vmem:[%s1959_s17 + $0x30] sm:$0xff]   ;;  %v1544_v19 = vld [vmem:[%s1959_s17 + $0x28] sm:$0xff]  }
  0x78   : > { %v1537_v12 = vld [vmem:[%s1959_s17 + $0xb8] sm:$0xff]   ;;  %1390 = vmatpush3.bf16.msra.mxu0 %v1536_v11  ;;  %v1541_v16 = vld [vmem:[%s1959_s17 + $0xb0] sm:$0xff]   ;;  %v1545_v20 = vld [vmem:[%s1959_s17 + $0xa8] sm:$0xff]  }
  0x79   : > { %1418 = vmatpush3.bf16.msra.mxu1 %v1537_v12  ;;  %1391 = vmatprep.subr.bf16.mxu0 %v1538_v13  ;;  %v1546_v21 = vld [vmem:[%s1959_s17 + $0x60] sm:$0xff]   ;;  %v1550_v25 = vld [vmem:[%s1959_s17 + $0x58] sm:$0xff]   ;;  %v1554_v29 = vld [vmem:[%s1959_s17 + $0x50] sm:$0xff]  }
  0x7a   : > { %1419 = vmatprep.subr.bf16.mxu1 %v1539_v14  ;;  %v1547_v22 = vld [vmem:[%s1959_s17 + $0xe0] sm:$0xff]   ;;  %v1551_v26 = vld [vmem:[%s1959_s17 + $0xd8] sm:$0xff]   ;;  %v1555_v30 = vld [vmem:[%s1959_s17 + $0xd0] sm:$0xff]  }
  0x7b   : > { %v1548_v23 = vld [vmem:[%s1959_s17 + $0x20] sm:$0xff]   ;;  %v1552_v27 = vld [vmem:[%s1959_s17 + $0x18] sm:$0xff]   ;;  %v1556_v31 = vld [vmem:[%s1959_s17 + $0x10] sm:$0xff]  }
  0x7c   : > { %1392 = vmatpush3.bf16.msra.mxu0 %v1540_v15  ;;  %v1549_v24 = vld [vmem:[%s1959_s17 + $0xa0] sm:$0xff]   ;;  %v1553_v28 = vld [vmem:[%s1959_s17 + $0x98] sm:$0xff]   ;;  %v1557_v32 = vld [vmem:[%s1959_s17 + $0x90] sm:$0xff]  }
  0x7d   : > { %1420 = vmatpush3.bf16.msra.mxu1 %v1541_v16  ;;  %1393 = vmatprep.subr.bf16.mxu0 %v1542_v17  ;;  %v1558_v33 = vld [vmem:[%s1959_s17 + $0x48] sm:$0xff]   ;;  %v1562_v37 = vld [vmem:[%s1959_s17 + $0x40] sm:$0xff]   ;;  %v613_v56 = vld [vmem:[#allocation2 + $0x10] sm:$0xff] }
  0x7e   : > { %1421 = vmatprep.subr.bf16.mxu1 %v1543_v18  ;;  %v1559_v34 = vld [vmem:[%s1959_s17 + $0xc8] sm:$0xff]   ;;  %v1563_v38 = vld [vmem:[%s1959_s17 + $0xc0] sm:$0xff]   ;;  %v615_v10 = vld [vmem:[#allocation2 + $0x18] sm:$0xff] }
  0x7f   : > { %v1560_v35 = vld [vmem:[%s1959_s17 + $0x8] sm:$0xff]   ;;  %v1564_v39 = vld [vmem:[%s1959_s17] sm:$0xff]  }
  0x80   : > { %1394 = vmatpush3.bf16.msra.mxu0 %v1544_v19  ;;  %v1561_v36 = vld [vmem:[%s1959_s17 + $0x88] sm:$0xff]   ;;  %v1565_v40 = vld [vmem:[%s1959_s17 + $0x80] sm:$0xff]  }
  0x81   : > { %1422 = vmatpush3.bf16.msra.mxu1 %v1545_v20  ;;  %1395 = vmatprep.subr.bf16.mxu0 %v1546_v21  ;;  %v1566_v41 = vld [vmem:[%s1957_s24] ss:$16 sps:$4 sm:$0xff]   ;;  %v1568_v42 = vld [vmem:[%s1957_s24 + $0x4] ss:$16 sps:$4 sm:$0xff]   ;;  %v1569_v43 = vld [vmem:[%s1957_s24 + $0x8] ss:$16 sps:$4 sm:$0xff]  }
  0x82   : > { %1423 = vmatprep.subr.bf16.mxu1 %v1547_v22  ;;  %v1571_v44 = vld [vmem:[%s1957_s24 + $0xc] ss:$16 sps:$4 sm:$0xff]   ;;  %953 = vmatprep.mubr.bf16.mxu0 %v1568_v42  ;;  %v1572_v45 = vld [vmem:[%s1957_s24 + $0x24] ss:$16 sps:$4 sm:$0xff]   ;;  %v1576_v47 = vld [vmem:[%s1957_s24 + $0x20] ss:$16 sps:$4 sm:$0xff]  }
  0x83   : > { %1002 = vmatprep.mubr.bf16.mxu1 %v1571_v44  ;;  %v1574_v46 = vld [vmem:[%s1957_s24 + $0x2c] ss:$16 sps:$4 sm:$0xff]   ;;  %v1577_v48 = vld [vmem:[%s1957_s24 + $0x28] ss:$16 sps:$4 sm:$0xff]   ;;  %v614_v1 = vld [vmem:[#allocation2] sm:$0xff] }
  0x84   : > { %1396 = vmatpush3.bf16.msra.mxu0 %v1548_v23  ;;  %v616_v18 = vld [vmem:[#allocation2 + $0x8] sm:$0xff] }
  0x85   : > { %1424 = vmatpush3.bf16.msra.mxu1 %v1549_v24  ;;  %1397 = vmatprep.subr.bf16.mxu0 %v1550_v25 }
  0x86   : > { %1425 = vmatprep.subr.bf16.mxu1 %v1551_v26 }
  0x88   : > { %1398 = vmatpush3.bf16.msra.mxu0 %v1552_v27 }
  0x89   : > { %1426 = vmatpush3.bf16.msra.mxu1 %v1553_v28  ;;  %1399 = vmatprep.subr.bf16.mxu0 %v1554_v29 }
  0x8a   : > { %1427 = vmatprep.subr.bf16.mxu1 %v1555_v30 }
  0x8c   : > { %1400 = vmatpush3.bf16.msra.mxu0 %v1556_v31 }
  0x8d   : > { %1428 = vmatpush3.bf16.msra.mxu1 %v1557_v32  ;;  %1401 = vmatprep.subr.bf16.mxu0 %v1558_v33 }
  0x8e   : > { %1429 = vmatprep.subr.bf16.mxu1 %v1559_v34 }
  0x90   : > { %1402 = vmatpush3.bf16.msra.mxu0 %v1560_v35 }
  0x91   : > { %1430 = vmatpush3.bf16.msra.mxu1 %v1561_v36  ;;  %1403 = vmatprep.subr.bf16.mxu0 %v1562_v37 }
  0x92   : > { %1431 = vmatprep.subr.bf16.mxu1 %v1563_v38 }
  0x94   : > { %1404 = vmatpush3.bf16.msra.mxu0 %v1564_v39 }
  0x95   : > { %1432 = vmatpush3.bf16.msra.mxu1 %v1565_v40 }
  0x97   : > { %954 = vmatmul.mubr.bf16.vlgmr.msra.gmra.mxu0 %v1566_v41 }
  0x98   : > { %1003 = vmatmul.mubr.bf16.vlgmr.msra.gmra.mxu1 %v1569_v43  ;;  %961 = vmatprep.mubr.bf16.mxu0 %v1572_v45 }
  0x99   : > { %1010 = vmatprep.mubr.bf16.mxu1 %v1574_v46 }
  0x9f   : > { %962 = vmatmul.mubr.bf16.gmra.mxu0 %v1576_v47 }
  0xa0   : > { %1011 = vmatmul.mubr.bf16.gmra.mxu1 %v1577_v48 }
 0x157   : > { %v1405_v49 = vpop.f32.mrf.mxu0 }
 0x158   : > { %v1433_v50 = vpop.f32.mrf.mxu1 }
 0x159   : > { %v1406_v51 = vpop.f32.mrf.mxu0 }
 0x15a   : > { %v1407_v52 = vadd.f32 %v1406_v51, %v1405_v49  ;;  %v1434_v53 = vpop.f32.mrf.mxu1 }
 0x15b   : > { %v1435_v54 = vadd.f32 %v1434_v53, %v1433_v50  ;;  %v1408_v55 = vpop.f32.mrf.mxu0 }
 0x15c   : > { %v1436_v57 = vpop.f32.mrf.mxu1 }
 0x15d   : > { %v1005_v58 = vadd.f32 %v1435_v54, %v1407_v52  ;;  %v1409_v59 = vpop.f32.mrf.mxu0 }
 0x15e   : > { %v1410_v60 = vadd.f32 %v1409_v59, %v1408_v55  ;;  %v1437_v61 = vpop.f32.mrf.mxu1 }
 0x15f   : > { %v1019_v62 = vadd.f32 %v1005_v58, %v613_v56  ;;  %v1438_v63 = vadd.f32 %v1437_v61, %v1436_v57  ;;  %v1411_v0 = vpop.f32.mrf.mxu0 }
 0x160   : > { %v1439_v2 = vpop.f32.mrf.mxu1 }
 0x161   : > { %1023 = vst [vmem:[#allocation2 + $0x10] sm:$0xff] %v1019_v62  ;;  %v1008_v3 = vadd.f32 %v1438_v63, %v1410_v60  ;;  %v1412_v4 = vpop.f32.mrf.mxu0 }
 0x162   : > { %v1413_v5 = vadd.f32 %v1412_v4, %v1411_v0  ;;  %v1440_v6 = vpop.f32.mrf.mxu1 }
 0x163   : > { %v1020_v7 = vadd.f32 %v1008_v3, %v614_v1  ;;  %v1441_v8 = vadd.f32 %v1440_v6, %v1439_v2  ;;  %v1414_v9 = vpop.f32.mrf.mxu0 }
 0x164   : > { %v1442_v11 = vpop.f32.mrf.mxu1 }
 0x165   : > { %1024 = vst [vmem:[#allocation2] sm:$0xff] %v1020_v7  ;;  %v1013_v12 = vadd.f32 %v1441_v8, %v1413_v5  ;;  %v1415_v13 = vpop.f32.mrf.mxu0 }
 0x166   : > { %v1416_v14 = vadd.f32 %v1415_v13, %v1414_v9  ;;  %v1443_v15 = vpop.f32.mrf.mxu1 }
 0x167   : > { %v1021_v16 = vadd.f32 %v1013_v12, %v615_v10  ;;  %v1444_v17 = vadd.f32 %v1443_v15, %v1442_v11 }
 0x169   : > { %1025 = vst [vmem:[#allocation2 + $0x18] sm:$0xff] %v1021_v16  ;;  %v1016_v19 = vadd.f32 %v1444_v17, %v1416_v14  ;;  %1030 = sbr.rel (%p1361_p5) target bundleno = 424 (0x1a8), region = 108 }
 0x16b   : > { %v1022_v20 = vadd.f32 %v1016_v19, %v616_v18 }
 0x16d   : > { %1026 = vst [vmem:[#allocation2 + $0x8] sm:$0xff] %v1022_v20 }
 0x16e   : > { %v1031_v21 = vld [vmem:[#allocation2 + $0x10] sm:$0xff]  ;;  %v1032_v22 = vld [vmem:[#allocation2] sm:$0xff] }
 0x16f   : > { %v1035_v25 = vadd.f32 %v1032_v22, %v1031_v21  ;;  %v1044_v26 = vmul.f32 %v1031_v21, %v1031_v21  ;;  %v1045_v27 = vmul.f32 %v1032_v22, %v1032_v22  ;;  %v1362_v58 = vld [vmem:[%s599_s9] ss:$0 sm:$0xff] }
 0x170   : > { %v1033_v23 = vld [vmem:[#allocation2 + $0x18] sm:$0xff]  ;;  %v1363_v63 = vld [vmem:[%s602_s27] ss:$0 sm:$0xff] }
 0x171   : > { %v1046_v28 = vmul.f32 %v1033_v23, %v1033_v23  ;;  %v1036_v29 = vadd.f32 %v1035_v25, %v1033_v23  ;;  %v1048_v31 = vadd.f32 %v1045_v27, %v1044_v26 }
 0x173   : > { %v1049_v33 = vadd.f32 %v1048_v31, %v1046_v28 }
 0x174   : > { %v1034_v24 = vld [vmem:[#allocation2 + $0x8] sm:$0xff] }
 0x175   : > { %v1047_v30 = vmul.f32 %v1034_v24, %v1034_v24  ;;  %v1037_v32 = vadd.f32 %v1036_v29, %v1034_v24 }
 0x177   : > { %v1038_v34 = vrot.slane %v1037_v32, 4  ;;  %v1050_v35 = vadd.f32 %v1049_v33, %v1047_v30 }
 0x179   : > { %v1039_v36 = vadd.f32 %v1038_v34, %v1037_v32  ;;  %v1051_v37 = vrot.slane %v1050_v35, 4 }
 0x17b   : > { %v1040_v38 = vrot.slane %v1039_v36, 2  ;;  %v1052_v39 = vadd.f32 %v1051_v37, %v1050_v35 }
 0x17d   : > { %v1041_v40 = vadd.f32 %v1040_v38, %v1039_v36  ;;  %v1053_v41 = vrot.slane %v1052_v39, 2 }
 0x17f   : > { %v1042_v42 = vrot.slane %v1041_v40, 1  ;;  %v1054_v43 = vadd.f32 %v1053_v41, %v1052_v39 }
 0x181   : > { %v1043_v44 = vadd.f32 %v1042_v42, %v1041_v40  ;;  %v1055_v45 = vrot.slane %v1054_v43, 1 }
 0x183   : > { %v1056_v46 = vadd.f32 %v1055_v45, %v1054_v43  ;;  %v1057_v47 = vmul.f32 0.03125, %v1043_v44 }
 0x185   : > { %v1058_v48 = vmul.f32 0.03125, %v1056_v46  ;;  %v1059_v49 = vmul.f32 %v1057_v47, %v1057_v47  ;;  %v1062_v53 = vsub.f32 %v1031_v21, %v1057_v47  ;;  %v1063_v54 = vsub.f32 %v1032_v22, %v1057_v47 }
 0x186   : > { %v1064_v55 = vsub.f32 %v1033_v23, %v1057_v47  ;;  %v1065_v56 = vsub.f32 %v1034_v24, %v1057_v47 }
 0x187   : > { %v1060_v50 = vsub.f32 %v1058_v48, %v1059_v49 }
 0x189   : > { %v1061_v51 = vmax.f32 %v1060_v50, 0.0 }
 0x18b   : > { %v1066_v52 = vadd.f32 1e-05, %v1061_v51 }
 0x18d   : > { %1578 = vrsqrt.f32 %v1066_v52 }
 0x19a   : > { %v1579_v57 = vpop.eup %1578 }
 0x19b   : > { %v1068_v59 = vmul.f32 %v1579_v57, %v1062_v53  ;;  %v1069_v60 = vmul.f32 %v1579_v57, %v1063_v54  ;;  %v1070_v61 = vmul.f32 %v1579_v57, %v1064_v55  ;;  %v1071_v62 = vmul.f32 %v1579_v57, %v1065_v56 }
 0x19d   : > { %v1079_v0 = vmul.f32 %v1362_v58, %v1068_v59  ;;  %v1080_v1 = vmul.f32 %v1362_v58, %v1069_v60  ;;  %v1081_v2 = vmul.f32 %v1362_v58, %v1070_v61  ;;  %v1082_v3 = vmul.f32 %v1362_v58, %v1071_v62 }
 0x19f   : > { %v1090_v4 = vadd.f32 %v1363_v63, %v1079_v0  ;;  %v1091_v5 = vadd.f32 %v1363_v63, %v1080_v1  ;;  %v1092_v6 = vadd.f32 %v1363_v63, %v1081_v2  ;;  %v1093_v7 = vadd.f32 %v1363_v63, %v1082_v3 }
 0x1a1   : > { %vm1094_vm0 = vcmp.gt.f32.partialorder %v1090_v4, 0.0  ;;  %vm1095_vm1 = vcmp.gt.f32.partialorder %v1091_v5, 0.0  ;;  %v1098_v8 = vmul.f32 0.2, %v1090_v4  ;;  %v1099_v9 = vmul.f32 0.2, %v1091_v5 }
 0x1a2   : > { %vm1096_vm2 = vcmp.gt.f32.partialorder %v1092_v6, 0.0  ;;  %vm1097_vm3 = vcmp.gt.f32.partialorder %v1093_v7, 0.0  ;;  %v1100_v10 = vmul.f32 0.2, %v1092_v6  ;;  %v1101_v11 = vmul.f32 0.2, %v1093_v7 }
 0x1a3   : > { %v1102_v12 = vsel %vm1094_vm0, %v1090_v4, %v1098_v8  ;;  %v1103_v13 = vsel %vm1095_vm1, %v1091_v5, %v1099_v9 }
 0x1a4   : > { %v1381_v14 = vpack.c.bf16 %v1103_v13, %v1102_v12  ;;  %v1104_v15 = vsel %vm1096_vm2, %v1092_v6, %v1100_v10  ;;  %v1105_v16 = vsel %vm1097_vm3, %v1093_v7, %v1101_v11 }
 0x1a5   : > { %v1386_v17 = vpack.c.bf16 %v1105_v16, %v1104_v15 }
 0x1a6   : > { %1382 = vst [vmem:[%s1961_s19] sm:$0xff] %v1381_v14  }
 0x1a7   : > { %1388 = vst [vmem:[%s1961_s19 + $0x8] sm:$0xff] %v1386_v17  }
 0x1a8 PF: > { %1132 = sbr.rel (!%p1788_p12) target bundleno = 433 (0x1b1), region = 112  ;;  %s1369_s27 = sshll.u32 (%p1788_p12), %s1654_s22, 2 }
 0x1a9   : > { %s1137_s26 = scalar_lea.vmem (%p1788_p12), %s2064_s4, %s1369_s27 }
 0x1ad   : > { %v1154_v18 = vld [vmem:[%s1961_s19] sm:$0xf]  ;;  %v1156_v19 = vld [vmem:[%s1961_s19 + $0x4] sm:$0xf] }
 0x1ae   : > { %v1158_v20 = vld [vmem:[%s1961_s19 + $0x8] sm:$0xf]  ;;  %v1160_v21 = vld [vmem:[%s1961_s19 + $0xc] sm:$0xf]  ;;  %1155 = vst [vmem:[%s1137_s26] sm:$0xf] %v1154_v18 }
 0x1af   : > { %1157 = vst [vmem:[%s1137_s26 + $0x10] sm:$0xf] %v1156_v19  ;;  %1159 = vst [vmem:[%s1137_s26 + $0x20] sm:$0xf] %v1158_v20 }
 0x1b0   : > { %1161 = vst [vmem:[%s1137_s26 + $0x30] sm:$0xf] %v1160_v21 }
 0x1b1 PF: > { %s14_s25 = sadd.s32 1, %s1666_s25   ;;  %s2078_s22 = sld [smem:[#allocation6_spill]] }
 0x1b2   : > { %p11_p6 = scmp.ge.s32.totalorder %s14_s25, 34   ;;  %s2079_s14 = sld [smem:[#allocation7_spill]] }
 0x1b3   : > { %s2080_s24 = sld [smem:[#allocation8_spill]]  ;;  %s2081_s15 = smov %s1630_s16 }
 0x1b4   : > { %s2082_s16 = smov %s1786_s13  ;;  %s2083_s17 = smov %s1638_s18 }
 0x1b5   : > { %s2084_s18 = smov %s1783_s12  ;;  %s2085_s19 = smov %s1646_s20 }
 0x1b6   : > { %s2086_s20 = smov %s1769_s7  ;;  %s2087_s21 = smov %s1658_s23 }
 0x1b7   :  { %13 = sbr.rel (!%p11_p6) target bundleno = 9 (0x9), region = 198 }
 0x1b8   : > { %s2088_s23 = smov %s2079_s14 }

// kernel: discriminator_forward.9
= control target key start
LH: loop header
LB: loop body
LE: loop exit
PB: predicated region body
PF: predicated region fallthrough
CT: control target
= control target key end

     0   :  { %s887_s9 = smov 0   ;;  %s889_s10 = smov 0   ;;  %s971_s0 = inlined_call_operand.vmem [shape: bf16[2,8192], index: 0, kind: input, shape index: {}]   ;;  %s972_s1 = inlined_call_operand.vmem [shape: bf16[8192,1], index: 1, kind: input, shape index: {}]   ;;  %s973_s2 = inlined_call_operand.vmem [shape: f32[2,1], index: 2, kind: output, shape index: {}]  }
   0x1   :  { %s891_s11 = smov 0  }
   0x2 LB: > { %s24_s12 = sadd.s32 1, %s864_s10  ;;  %p697_p0 = scmp.ge.s32.totalorder %s868_s11, 1  ;;  %s868_s11 = sphi %s891_s11, %s12_s11   ;;  %s864_s10 = sphi %s889_s10, %s975_s10   ;;  %s860_s9 = sphi %s887_s9, %s974_s9  }
   0x3   : > { %p25_p1 = scmp.ge.s32.totalorder %s24_s12, 16  ;;  %p155_p2 = scmp.lt.s32.totalorder %s868_s11, 17 }
   0x5   : > { %s977_s12 = smov (%p25_p1, %s24_s12), 0  ;;  %p156_p3 = pnand %p697_p0, %p155_p2 }
   0x6   : > { %s698_s13 = sshll.u32 (!%p156_p3), %s860_s9, 2  ;;  %s699_s14 = sshll.u32 (!%p156_p3), %s860_s9, 6 }
   0x7   : > { %159 = sbr.rel (%p156_p3) target bundleno = 298 (0x12a), region = 28  ;;  %p193_p4 = scmp.lt.s32.totalorder (!%p156_p3), %s698_s13, 63 }
   0x8   : > { %p200_p5 = scmp.lt.s32.totalorder (!%p156_p3), %s699_s14, 1023  ;;  %p701_p6 = scmp.ne.s32.totalorder (!%p156_p3), %s860_s9, 0 }
   0xc   : > { %s979_s13 = smov (!%p193_p4, %s698_s13), 63  ;;  %s981_s14 = smov (!%p200_p5, %s699_s14), 1023 }
   0xd   : > { %s197_s17 = scalar_lea.vmem %s971_s0, %s979_s13  ;;  %s700_s18 = sshll.u32 %s981_s14, 2 }
   0xe   : > { %s918_s21 = scalar_lea.vmem %s972_s1, %s700_s18  ;;  %219 = sbr.rel (%p701_p6) target bundleno = 21 (0x15), region = 32 }
  0x13   : > { %vm220_vm0 = vcmask 1024   ;;  %v870_v0 = vmov 0.0  }
  0x14   : > { %221 = vst.msk [vmem:[#allocation2] sm:$0x3] %vm220_vm0, %v870_v0 }
  0x15 PF: > { %v810_v1 = vld [vmem:[%s918_s21 + $0x78] sm:$0xff]   ;;  %v814_v5 = vld [vmem:[%s918_s21 + $0x70] sm:$0xff]   ;;  %v818_v9 = vld [vmem:[%s918_s21 + $0x68] sm:$0xff]   ;;  %v300_v31 = vlaneseq  ;;  %v871_v35 = vmov 1966171168   ;;  %vm590_vm1 = vcmask 1024  }
  0x16   : > { %v811_v2 = vld [vmem:[%s918_s21 + $0xf8] sm:$0xff]   ;;  %740 = vmatprep.subr.bf16.mxu0 %v810_v1  ;;  %v815_v6 = vld [vmem:[%s918_s21 + $0xf0] sm:$0xff]   ;;  %v819_v10 = vld [vmem:[%s918_s21 + $0xe8] sm:$0xff]   ;;  %v298_v36 = vunpack.c.l.s4 %v871_v35  ;;  %p735_p7 = scmp.ne.s32.totalorder %s860_s9, 15 }
  0x17   : > { %v812_v3 = vld [vmem:[%s918_s21 + $0x38] sm:$0xff]   ;;  %762 = vmatprep.subr.bf16.mxu1 %v811_v2  ;;  %v816_v7 = vld [vmem:[%s918_s21 + $0x30] sm:$0xff]   ;;  %v820_v11 = vld [vmem:[%s918_s21 + $0x28] sm:$0xff]   ;;  %v301_v37 = vshrl.u32 %v300_v31, 7 }
  0x18   : > { %v813_v4 = vld [vmem:[%s918_s21 + $0xb8] sm:$0xff]   ;;  %741 = vmatpush3.bf16.msra.mxu0 %v812_v3  ;;  %v817_v8 = vld [vmem:[%s918_s21 + $0xb0] sm:$0xff]   ;;  %v821_v12 = vld [vmem:[%s918_s21 + $0xa8] sm:$0xff]   ;;  %v299_v39 = vunpack.c.0.s8 %v298_v36 }
  0x19   : > { %763 = vmatpush3.bf16.msra.mxu1 %v813_v4  ;;  %742 = vmatprep.subr.bf16.mxu0 %v814_v5  ;;  %v822_v13 = vld [vmem:[%s918_s21 + $0x60] sm:$0xff]   ;;  %v826_v17 = vld [vmem:[%s918_s21 + $0x58] sm:$0xff]   ;;  %v830_v21 = vld [vmem:[%s918_s21 + $0x50] sm:$0xff]  }
  0x1a   : > { %764 = vmatprep.subr.bf16.mxu1 %v815_v6  ;;  %v823_v14 = vld [vmem:[%s918_s21 + $0xe0] sm:$0xff]   ;;  %v827_v18 = vld [vmem:[%s918_s21 + $0xd8] sm:$0xff]   ;;  %v831_v22 = vld [vmem:[%s918_s21 + $0xd0] sm:$0xff]   ;;  %v302_v40 = vsub.s32 %v299_v39, %v301_v37 }
  0x1b   : > { %v824_v15 = vld [vmem:[%s918_s21 + $0x20] sm:$0xff]   ;;  %v828_v19 = vld [vmem:[%s918_s21 + $0x18] sm:$0xff]   ;;  %v832_v23 = vld [vmem:[%s918_s21 + $0x10] sm:$0xff]  }
  0x1c   : > { %743 = vmatpush3.bf16.msra.mxu0 %v816_v7  ;;  %v825_v16 = vld [vmem:[%s918_s21 + $0xa0] sm:$0xff]   ;;  %v829_v20 = vld [vmem:[%s918_s21 + $0x98] sm:$0xff]   ;;  %v833_v24 = vld [vmem:[%s918_s21 + $0x90] sm:$0xff]  }
  0x1d   : > { %765 = vmatpush3.bf16.msra.mxu1 %v817_v8  ;;  %744 = vmatprep.subr.bf16.mxu0 %v818_v9  ;;  %v834_v25 = vld [vmem:[%s918_s21 + $0x48] sm:$0xff]   ;;  %v838_v29 = vld [vmem:[%s918_s21 + $0x40] sm:$0xff]  }
  0x1e   : > { %766 = vmatprep.subr.bf16.mxu1 %v819_v10  ;;  %v835_v26 = vld [vmem:[%s918_s21 + $0xc8] sm:$0xff]   ;;  %v839_v30 = vld [vmem:[%s918_s21 + $0xc0] sm:$0xff]  }
  0x1f   : > { %v836_v27 = vld [vmem:[%s918_s21 + $0x8] sm:$0xff]   ;;  %v840_v32 = vld [vmem:[%s918_s21] sm:$0xff]  }
  0x20   : > { %745 = vmatpush3.bf16.msra.mxu0 %v820_v11  ;;  %v837_v28 = vld [vmem:[%s918_s21 + $0x88] sm:$0xff]   ;;  %v841_v33 = vld [vmem:[%s918_s21 + $0x80] sm:$0xff]  }
  0x21   : > { %767 = vmatpush3.bf16.msra.mxu1 %v821_v12  ;;  %746 = vmatprep.subr.bf16.mxu0 %v822_v13  ;;  %v702_v34 = vld.sshfl [vmem:[%s197_s17] sm:$0x33 pattern:$0x75316420] }
  0x22   : > { %768 = vmatprep.subr.bf16.mxu1 %v823_v14  ;;  %v296_v38 = vcombine.high %v702_v34, %v702_v34  ;;  %v303_v42 = vrot.slane %v702_v34, %v302_v40  ;;  %v222_v52 = vld [vmem:[#allocation2] sm:$0x3] }
  0x24   : > { %747 = vmatpush3.bf16.msra.mxu0 %v824_v15  ;;  %v310_v41 = vrot.slane %v296_v38, %v302_v40  ;;  %v311_v44 = vcombine.high %v303_v42, %v303_v42 }
  0x25   : > { %769 = vmatpush3.bf16.msra.mxu1 %v825_v16  ;;  %748 = vmatprep.subr.bf16.mxu0 %v826_v17 }
  0x26   : > { %770 = vmatprep.subr.bf16.mxu1 %v827_v18  ;;  %541 = vmatprep.mubr.bf16.mxu0 %v310_v41  ;;  %v312_v43 = vcombine.high %v310_v41, %v310_v41 }
  0x28   : > { %749 = vmatpush3.bf16.msra.mxu0 %v828_v19  ;;  %581 = vmatprep.mubr.bf16.mxu1 %v312_v43 }
  0x29   : > { %771 = vmatpush3.bf16.msra.mxu1 %v829_v20  ;;  %750 = vmatprep.subr.bf16.mxu0 %v830_v21 }
  0x2a   : > { %772 = vmatprep.subr.bf16.mxu1 %v831_v22 }
  0x2c   : > { %751 = vmatpush3.bf16.msra.mxu0 %v832_v23 }
  0x2d   : > { %773 = vmatpush3.bf16.msra.mxu1 %v833_v24  ;;  %752 = vmatprep.subr.bf16.mxu0 %v834_v25 }
  0x2e   : > { %774 = vmatprep.subr.bf16.mxu1 %v835_v26 }
  0x30   : > { %753 = vmatpush3.bf16.msra.mxu0 %v836_v27 }
  0x31   : > { %775 = vmatpush3.bf16.msra.mxu1 %v837_v28  ;;  %754 = vmatprep.subr.bf16.mxu0 %v838_v29 }
  0x32   : > { %776 = vmatprep.subr.bf16.mxu1 %v839_v30 }
  0x34   : > { %755 = vmatpush3.bf16.msra.mxu0 %v840_v32 }
  0x35   : > { %777 = vmatpush3.bf16.msra.mxu1 %v841_v33 }
  0x37   : > { %542 = vmatmul.mubr.bf16.vlgmr.msra.gmra.mxu0 %v303_v42 }
  0x38   : > { %582 = vmatmul.mubr.bf16.vlgmr.msra.gmra.mxu1 %v311_v44 }
  0xf7   : > { %v756_v45 = vpop.f32.mrf.mxu0 }
  0xf8   : > { %v778_v46 = vpop.f32.mrf.mxu1 }
  0xf9   : > { %v757_v47 = vpop.f32.mrf.mxu0 }
  0xfa   : > { %v758_v48 = vadd.f32 %v757_v47, %v756_v45  ;;  %v779_v49 = vpop.f32.mrf.mxu1 }
  0xfb   : > { %v759_v50 = vpop.f32.mrf.mxu0  ;;  %v780_v51 = vadd.f32 %v779_v49, %v778_v46 }
  0xfc   : > { %v781_v53 = vpop.f32.mrf.mxu1 }
  0xfd   : > { %v760_v54 = vpop.f32.mrf.mxu0  ;;  %v584_v55 = vadd.f32 %v780_v51, %v758_v48  ;;  %595 = sbr.rel (%p735_p7) target bundleno = 298 (0x12a), region = 36 }
  0xfe   : > { %v782_v56 = vpop.f32.mrf.mxu1 }
  0xff   : > { %v589_v57 = vadd.f32 %v584_v55, %v222_v52 }
 0x101   : > { %591 = vst.msk [vmem:[#allocation2] sm:$0x3] %vm590_vm1, %v589_v57 }
 0x108   : > { %v596_v58 = vld [vmem:[#allocation2] sm:$0x3] }
 0x109   : > { %v736_v59 = vmul.f32 -1.442695, %v596_v58 }
 0x10b   : > { %842 = vpow2.f32 %v736_v59 }
 0x118   : > { %v843_v60 = vpop.eup %842 }
 0x119   : > { %v600_v61 = vadd.f32 1.0, %v843_v60 }
 0x11b   : > { %844 = vrcp.f32 %v600_v61 }
 0x128   : > { %v845_v62 = vpop.eup %844 }
 0x129   : > { %603 = vst.msk [vmem:[%s973_s2] sm:$0x3] %vm590_vm1, %v845_v62 }
 0x12a PF: > { %s12_s11 = sadd.s32 1, %s868_s11   ;;  %s974_s9 = smov %s864_s10 }
 0x12b   : > { %p9_p8 = scmp.ge.s32.totalorder %s12_s11, 18   ;;  %s975_s10 = smov %s977_s12 }
 0x12d   :  { %11 = sbr.rel (!%p9_p8) target bundleno = 2 (0x2), region = 69 }

</bundles_post_ra>
